<compile_context>
chip_gen: v5e
topology: v5e:2x2
jax: 0.10.0
libtpu: 0.0.40
codegen_flags: <defaults>
</compile_context>

<pallas_src>
import functools

import jax
import jax.numpy as jnp
from jax.experimental import pallas as pl
from jax.experimental.pallas import tpu as pltpu

_LANE = 128


# ----------------------------------------------------------------------------- helpers

def _round_up(x, m):
    return ((x + m - 1) // m) * m


def _erf(x):
    # Abramowitz & Stegun 7.1.26, |err| < 1.5e-7 (f32-exact); exp/mul/add only.
    a1, a2, a3, a4, a5 = 0.254829592, -0.284496736, 1.421413741, -1.453152027, 1.061405429
    p = 0.3275911
    ax = jnp.abs(x)
    t = 1.0 / (1.0 + p * ax)
    poly = ((((a5 * t + a4) * t + a3) * t + a2) * t + a1) * t
    y = 1.0 - poly * jnp.exp(-ax * ax)
    return jnp.where(x >= 0.0, y, -y)


def _gelu(x):
    # nn.GELU() default = exact erf GELU
    return 0.5 * x * (1.0 + _erf(x * 0.7071067811865476))


# ------------------------------------------------------------------------- fused kernel

def _fused_kernel(x_ref, wf_ref, bf_ref, w1_ref, b1_ref, w2h_ref, b2h_ref, y_ref,
                  out_ref, *, classnum, img_per_tile, rows_per_img, total_imgs, loss_lane):
    # Fusion.fusion (1x1 Conv2d over NHWC rows): (R, K) @ (K, 256) on the MXU, f32 acc.
    fused = jnp.dot(x_ref[...], wf_ref[...],
                    preferred_element_type=jnp.float32) + bf_ref[...]
    # Backbone.connector[0] (1x1 conv) + nn.GELU()
    h = jnp.dot(fused.astype(w1_ref.dtype), w1_ref[...],
                preferred_element_type=jnp.float32) + b1_ref[...]
    h = _gelu(h)

    # TODO(synk): the pretrained ViLT text+vision transformer (dandelin/vilt-b32) has no Pallas
    # equivalent; mean-pooled patch embeddings stand in for outputs.last_hidden_state[:, 0, :].
    # connector[2] + vqa head are folded into one (256, npad) matrix (mean commutes with linear).
    pooled = jnp.mean(h.reshape(img_per_tile, rows_per_img, h.shape[-1]), axis=1)   # (IPT, 256)
    logits = jnp.dot(pooled.astype(w2h_ref.dtype), w2h_ref[...],
                     preferred_element_type=jnp.float32) + b2h_ref[...]             # (IPT, npad)
    probs = 1.0 / (1.0 + jnp.exp(-logits))                                          # sigmoid

    # nn.BCELoss elementwise term (logs clamped at -100), masked to the real classnum lanes and
    # to valid images of this (possibly padded) block; only per-image partial sums here — the
    # mean over B*classnum elements is finalized outside the kernel.
    y = y_ref[...]
    log_p = jnp.maximum(jnp.log(probs), -100.0)
    log_1mp = jnp.maximum(jnp.log(1.0 - probs), -100.0)
    elem = -(y * log_p + (1.0 - y) * log_1mp)
    lane = jax.lax.broadcasted_iota(jnp.int32, elem.shape, 1)
    cls_mask = (lane < classnum).astype(jnp.float32)
    img_ids = (pl.program_id(0) * img_per_tile
               + jax.lax.broadcasted_iota(jnp.int32, (img_per_tile, 1), 0))
    img_valid = (img_ids < total_imgs).astype(jnp.float32)
    loss_sum = jnp.sum(elem * cls_mask, axis=1, keepdims=True) * img_valid           # (IPT, 1)

    # Single merged lane-dense output block: probs on lanes [0, classnum), per-image BCE partial
    # sum on lane `loss_lane`.
    out_ref[...] = jnp.where(lane == loss_lane, loss_sum, probs)


def fused_forward(rows, labels_pad, params, *, classnum, img_per_tile, rows_per_img, total_imgs):
    """fusion -> connector[0](+GELU) -> folded connector[2]+head(+sigmoid) -> BCE partials,
    one pallas_call with a batched grid over image blocks (weights stay VMEM-resident)."""
    wf, bf = params["fusion"]
    w1, b1 = params["conn1"]
    w2h, b2h = params["head"]
    npad = w2h.shape[1]
    K = rows.shape[1]
    hid1 = wf.shape[1]
    hid2 = w1.shape[1]
    B_pad = labels_pad.shape[0]
    n_blocks = B_pad // img_per_tile
    rtile = img_per_tile * rows_per_img

    kernel = functools.partial(
        _fused_kernel, classnum=classnum, img_per_tile=img_per_tile,
        rows_per_img=rows_per_img, total_imgs=total_imgs, loss_lane=npad - 1)

    flops = (2 * B_pad * rows_per_img * K * hid1
             + 2 * B_pad * rows_per_img * hid1 * hid2
             + 2 * B_pad * hid2 * npad)
    transcendentals = B_pad * rows_per_img * hid2 + 3 * B_pad * npad
    bytes_accessed = (rows.size * 2                                   # bf16 rows
                      + (wf.size + w1.size + w2h.size) * 2            # bf16 weights (fetched once)
                      + (bf.size + b1.size + b2h.size) * 4            # f32 biases
                      + labels_pad.size * 4 + B_pad * npad * 4)       # labels + merged output

    return pl.pallas_call(
        kernel,
        out_shape=jax.ShapeDtypeStruct((B_pad, npad), jnp.float32),
        grid=(n_blocks,),
        in_specs=[
            pl.BlockSpec((rtile, K), lambda g: (g, 0)),               # rows: streamed per block
            pl.BlockSpec(wf.shape, lambda g: (0, 0)),                 # weights: VMEM-resident
            pl.BlockSpec(bf.shape, lambda g: (0, 0)),
            pl.BlockSpec(w1.shape, lambda g: (0, 0)),
            pl.BlockSpec(b1.shape, lambda g: (0, 0)),
            pl.BlockSpec(w2h.shape, lambda g: (0, 0)),
            pl.BlockSpec(b2h.shape, lambda g: (0, 0)),
            pl.BlockSpec((img_per_tile, npad), lambda g: (g, 0)),     # labels per block
        ],
        out_specs=pl.BlockSpec((img_per_tile, npad), lambda g: (g, 0)),
        compiler_params=pltpu.CompilerParams(dimension_semantics=("parallel",)),
        cost_estimate=pl.CostEstimate(flops=int(flops),
                                      transcendentals=int(transcendentals),
                                      bytes_accessed=int(bytes_accessed)),
    )(rows, wf, bf, w1, b1, w2h, b2h, labels_pad)


# ------------------------------------------------------------- bilinear interpolate glue

def bilinear_resize_nchw(x, out_hw):
    """torch.nn.functional.interpolate(mode='bilinear', align_corners=False) on NCHW.
    Layout/gather plumbing kept in plain JAX (data-dependent gather, not kernel-worthy here)."""
    B, C, H, W = x.shape
    oh, ow = out_hw
    if (H, W) == (oh, ow):
        return x
    scale_h, scale_w = H / oh, W / ow
    ys = jnp.clip((jnp.arange(oh, dtype=jnp.float32) + 0.5) * scale_h - 0.5, 0.0, H - 1)
    xs = jnp.clip((jnp.arange(ow, dtype=jnp.float32) + 0.5) * scale_w - 0.5, 0.0, W - 1)
    y0 = jnp.floor(ys).astype(jnp.int32)
    x0 = jnp.floor(xs).astype(jnp.int32)
    y1 = jnp.minimum(y0 + 1, H - 1)
    x1 = jnp.minimum(x0 + 1, W - 1)
    wy = (ys - y0)[None, None, :, None]
    wx = (xs - x0)[None, None, None, :]

    def gather(yi, xi):
        return x[:, :, yi][:, :, :, xi]

    top = gather(y0, x0) * (1.0 - wx) + gather(y0, x1) * wx
    bot = gather(y1, x0) * (1.0 - wx) + gather(y1, x1) * wx
    return top * (1.0 - wy) + bot * wy


# ------------------------------------------------------------------------ model wrapper

def _init_linear(key, cin, cout, scale=0.02, wdtype=jnp.bfloat16):
    kw, kb = jax.random.split(key)
    w = (jax.random.normal(kw, (cin, cout), jnp.float32) * scale).astype(wdtype)
    b = jax.random.normal(kb, (1, cout), jnp.float32) * scale
    return w, b


def init_params(key, fused_cin, backbone_features, hidden_size, classnum):
    k1, k2, k3, k4 = jax.random.split(key, 4)
    wf, bf = _init_linear(k1, fused_cin, backbone_features)     # Fusion.fusion 1x1 conv
    w1, b1 = _init_linear(k2, backbone_features, 256)           # connector[0] 1x1 conv
    w2, b2 = _init_linear(k3, 256, hidden_size)                 # connector[2] 1x1 conv
    wh, bh = _init_linear(k4, hidden_size, classnum)            # vqa_outputs Linear

    # Fold connector[2] with the vqa head: everything between GELU and the head is linear and
    # commutes with the spatial mean-pool, so  mean(h@w2+b2)@wh+bh == mean(h)@(w2@wh)+(b2@wh+bh).
    npad = _round_up(classnum + 1, _LANE)   # +1 keeps a free lane for the fused loss output
    w2h = jnp.dot(w2.astype(jnp.float32), wh.astype(jnp.float32))
    b2h = jnp.dot(b2, wh.astype(jnp.float32)) + bh
    w2h_pad = jnp.zeros((256, npad), jnp.float32).at[:, :classnum].set(w2h).astype(jnp.bfloat16)
    b2h_pad = jnp.zeros((1, npad), jnp.float32).at[:, :classnum].set(b2h)
    return {
        "fusion": (wf, bf),
        "conn1": (w1, b1),
        "head": (w2h_pad, b2h_pad),   # folded connector[2] + vqa_outputs, lane-dense padded
        "classnum": classnum,
    }


def multitask_forward(feats, labels, params, question_topic="birads", img_per_tile=8):
    B = feats[0].shape[0]
    classnum = params["classnum"]
    npad = params["head"][0].shape[1]
    loss_lane = npad - 1

    # Fusion.forward: resize every stage feature to feats[-2] spatial size, concat on C.
    # Cast to bf16 *before* the concat/transpose so the XLA prologue moves half the bytes.
    target = feats[-2].shape[2:]
    interp = [bilinear_resize_nchw(f, target).astype(jnp.bfloat16) for f in feats]
    cat = jnp.concatenate(interp, axis=1)                          # (B, sum(C), th, tw)
    _, C, H, W = cat.shape
    rows_per_img = H * W
    rows = jnp.transpose(cat, (0, 2, 3, 1)).reshape(B * rows_per_img, C)

    # Pad the image count up to a multiple of the per-tile packing (padded images are masked
    # out of the loss inside the kernel and dropped from probs here).
    n_blocks = pl.cdiv(B, img_per_tile)
    B_pad = n_blocks * img_per_tile
    if B_pad != B:
        rows = jnp.pad(rows, ((0, (B_pad - B) * rows_per_img), (0, 0)))
    labels2d = jnp.reshape(labels, (B, classnum)).astype(jnp.float32)
    labels_pad = jnp.zeros((B_pad, npad), jnp.float32).at[:B, :classnum].set(labels2d)

    out = fused_forward(rows, labels_pad, params, classnum=classnum,
                        img_per_tile=img_per_tile, rows_per_img=rows_per_img, total_imgs=B)

    probs = out[:B, :classnum]
    # nn.BCELoss(mean) over all B*classnum elements (divisor fixed for batching).
    loss = jnp.sum(out[:, loss_lane]) / float(B * classnum)
    return {question_topic: probs}, loss


if __name__ == "__main__":
    key = jax.random.PRNGKey(0)
    kf, kp, kl = jax.random.split(key, 3)

    # TODO(synk): the pretrained vision backbone (torchvision ResNet50 / EfficientNet / ViT with
    # torch.load-ed checkpoints) is external; its stage outputs are simulated here as
    # deterministic random feature maps with a small ResNet-style channel pyramid.
    B = 16                              # images per call: amortizes weight DMA across the grid
    chans = (128, 256, 512, 1024)       # stand-in stage channels (sum = 1920, lane-aligned)
    spatials = (16, 8, 4, 2)            # Fusion target = feats[-2] -> 4x4 = 16 rows / image
    fkeys = jax.random.split(kf, len(chans))
    feats = [jax.random.normal(k, (B, c, s, s), jnp.float32)
             for k, c, s in zip(fkeys, chans, spatials)]

    classnum = 4                                                  # len(data_info["birads"])
    labels = (jax.random.uniform(kl, (B, classnum)) > 0.5).astype(jnp.float32)

    params = init_params(kp, sum(chans), backbone_features=256, hidden_size=768,
                         classnum=classnum)

    logits, loss = multitask_forward(feats, labels, params)
    jax.block_until_ready((logits, loss))
    print("KERNEL_OK")
</pallas_src>

<mosaic_0001>
module attributes {stable_mosaic.version = 11 : i64} {
  func.func @_fused_kernel(%arg0: i32, %arg1: memref<128x1920xbf16, #tpu.memory_space<vmem>>, %arg2: memref<1920x256xbf16, #tpu.memory_space<vmem>>, %arg3: memref<1x256xf32, #tpu.memory_space<vmem>>, %arg4: memref<256x256xbf16, #tpu.memory_space<vmem>>, %arg5: memref<1x256xf32, #tpu.memory_space<vmem>>, %arg6: memref<256x128xbf16, #tpu.memory_space<vmem>>, %arg7: memref<1x128xf32, #tpu.memory_space<vmem>>, %arg8: memref<8x128xf32, #tpu.memory_space<vmem>>, %arg9: memref<8x128xf32, #tpu.memory_space<vmem>>) attributes {dimension_semantics = [#tpu.dimension_semantics<parallel>], iteration_bounds = array<i64: 2>, scalar_prefetch = 0 : i64, scratch_operands = 0 : i64, tpu.core_type = #tpu.core_type<tc>, window_params = [{transform_indices = @transform_0, window_bounds = array<i64: 128, 1920>}, {pipeline_mode = #tpu.pipeline_mode<synchronous>, transform_indices = @transform_1, window_bounds = array<i64: 1920, 256>}, {pipeline_mode = #tpu.pipeline_mode<synchronous>, transform_indices = @transform_2, window_bounds = array<i64: 1, 256>}, {pipeline_mode = #tpu.pipeline_mode<synchronous>, transform_indices = @transform_3, window_bounds = array<i64: 256, 256>}, {pipeline_mode = #tpu.pipeline_mode<synchronous>, transform_indices = @transform_4, window_bounds = array<i64: 1, 256>}, {pipeline_mode = #tpu.pipeline_mode<synchronous>, transform_indices = @transform_5, window_bounds = array<i64: 256, 128>}, {pipeline_mode = #tpu.pipeline_mode<synchronous>, transform_indices = @transform_6, window_bounds = array<i64: 1, 128>}, {transform_indices = @transform_7, window_bounds = array<i64: 8, 128>}, {transform_indices = @transform_8, window_bounds = array<i64: 8, 128>}]} {
    %c0 = arith.constant 0 : index
    %c0_0 = arith.constant 0 : index
    %0 = vector.load %arg1[%c0, %c0_0] : memref<128x1920xbf16, #tpu.memory_space<vmem>>, vector<128x1920xbf16>
    %c0_1 = arith.constant 0 : index
    %c0_2 = arith.constant 0 : index
    %1 = vector.load %arg2[%c0_1, %c0_2] : memref<1920x256xbf16, #tpu.memory_space<vmem>>, vector<1920x256xbf16>
    %cst = arith.constant dense<0.000000e+00> : vector<128x256xf32>
    %2 = tpu.matmul %0, %1, %cst {dimension_numbers = #tpu.dot_dimension_numbers<[1], [0], [0], [1], [0, 0, 1, 1], [], []>} : vector<128x1920xbf16>, vector<1920x256xbf16>, vector<128x256xf32> -> vector<128x256xf32>
    %c0_3 = arith.constant 0 : index
    %c0_4 = arith.constant 0 : index
    %3 = vector.load %arg3[%c0_3, %c0_4] : memref<1x256xf32, #tpu.memory_space<vmem>>, vector<1x256xf32>
    %4 = vector.broadcast %3 : vector<1x256xf32> to vector<128x256xf32>
    %5 = arith.addf %2, %4 : vector<128x256xf32>
    %6 = arith.truncf %5 : vector<128x256xf32> to vector<128x256xbf16>
    %c0_5 = arith.constant 0 : index
    %c0_6 = arith.constant 0 : index
    %7 = vector.load %arg4[%c0_5, %c0_6] : memref<256x256xbf16, #tpu.memory_space<vmem>>, vector<256x256xbf16>
    %cst_7 = arith.constant dense<0.000000e+00> : vector<128x256xf32>
    %8 = tpu.matmul %6, %7, %cst_7 {dimension_numbers = #tpu.dot_dimension_numbers<[1], [0], [0], [1], [0, 0, 1, 1], [], []>} : vector<128x256xbf16>, vector<256x256xbf16>, vector<128x256xf32> -> vector<128x256xf32>
    %c0_8 = arith.constant 0 : index
    %c0_9 = arith.constant 0 : index
    %9 = vector.load %arg5[%c0_8, %c0_9] : memref<1x256xf32, #tpu.memory_space<vmem>>, vector<1x256xf32>
    %10 = vector.broadcast %9 : vector<1x256xf32> to vector<128x256xf32>
    %11 = arith.addf %8, %10 : vector<128x256xf32>
    %cst_10 = arith.constant 5.000000e-01 : f32
    %12 = vector.broadcast %cst_10 : f32 to vector<128x256xf32>
    %13 = arith.mulf %12, %11 : vector<128x256xf32>
    %cst_11 = arith.constant 0.707106769 : f32
    %14 = vector.broadcast %cst_11 : f32 to vector<128x256xf32>
    %15 = arith.mulf %11, %14 : vector<128x256xf32>
    %16 = math.absf %15 : vector<128x256xf32>
    %cst_12 = arith.constant 0.327591091 : f32
    %17 = vector.broadcast %cst_12 : f32 to vector<128x256xf32>
    %18 = arith.mulf %17, %16 : vector<128x256xf32>
    %cst_13 = arith.constant 1.000000e+00 : f32
    %19 = vector.broadcast %cst_13 : f32 to vector<128x256xf32>
    %20 = arith.addf %19, %18 : vector<128x256xf32>
    %cst_14 = arith.constant 1.000000e+00 : f32
    %21 = vector.broadcast %cst_14 : f32 to vector<128x256xf32>
    %22 = arith.divf %21, %20 : vector<128x256xf32>
    %cst_15 = arith.constant 1.06140542 : f32
    %23 = vector.broadcast %cst_15 : f32 to vector<128x256xf32>
    %24 = arith.mulf %23, %22 : vector<128x256xf32>
    %cst_16 = arith.constant -1.45315206 : f32
    %25 = vector.broadcast %cst_16 : f32 to vector<128x256xf32>
    %26 = arith.addf %24, %25 : vector<128x256xf32>
    %27 = arith.mulf %26, %22 : vector<128x256xf32>
    %cst_17 = arith.constant 1.42141378 : f32
    %28 = vector.broadcast %cst_17 : f32 to vector<128x256xf32>
    %29 = arith.addf %27, %28 : vector<128x256xf32>
    %30 = arith.mulf %29, %22 : vector<128x256xf32>
    %cst_18 = arith.constant -0.284496725 : f32
    %31 = vector.broadcast %cst_18 : f32 to vector<128x256xf32>
    %32 = arith.addf %30, %31 : vector<128x256xf32>
    %33 = arith.mulf %32, %22 : vector<128x256xf32>
    %cst_19 = arith.constant 0.254829586 : f32
    %34 = vector.broadcast %cst_19 : f32 to vector<128x256xf32>
    %35 = arith.addf %33, %34 : vector<128x256xf32>
    %36 = arith.mulf %35, %22 : vector<128x256xf32>
    %cst_20 = arith.constant 0.000000e+00 : f32
    %37 = vector.broadcast %cst_20 : f32 to vector<128x256xf32>
    %38 = arith.subf %37, %16 : vector<128x256xf32>
    %39 = arith.mulf %38, %16 : vector<128x256xf32>
    %40 = math.exp %39 : vector<128x256xf32>
    %41 = arith.mulf %36, %40 : vector<128x256xf32>
    %cst_21 = arith.constant 1.000000e+00 : f32
    %42 = vector.broadcast %cst_21 : f32 to vector<128x256xf32>
    %43 = arith.subf %42, %41 : vector<128x256xf32>
    %cst_22 = arith.constant 0.000000e+00 : f32
    %44 = vector.broadcast %cst_22 : f32 to vector<128x256xf32>
    %45 = arith.cmpf oge, %15, %44 : vector<128x256xf32>
    %cst_23 = arith.constant 0.000000e+00 : f32
    %46 = vector.broadcast %cst_23 : f32 to vector<128x256xf32>
    %47 = arith.subf %46, %43 : vector<128x256xf32>
    %48 = arith.select %45, %43, %47 : vector<128x256xi1>, vector<128x256xf32>
    %cst_24 = arith.constant 1.000000e+00 : f32
    %49 = vector.broadcast %cst_24 : f32 to vector<128x256xf32>
    %50 = arith.addf %49, %48 : vector<128x256xf32>
    %51 = arith.mulf %13, %50 : vector<128x256xf32>
    %52 = vector.shape_cast %51 : vector<128x256xf32> to vector<8x16x256xf32>
    %cst_25 = arith.constant dense<0.000000e+00> : vector<8x256xf32>
    %53 = vector.multi_reduction <add>, %52, %cst_25 [1] : vector<8x16x256xf32> to vector<8x256xf32>
    %cst_26 = arith.constant 1.600000e+01 : f32
    %54 = vector.broadcast %cst_26 : f32 to vector<8x256xf32>
    %55 = arith.divf %53, %54 : vector<8x256xf32>
    %56 = arith.truncf %55 : vector<8x256xf32> to vector<8x256xbf16>
    %c0_27 = arith.constant 0 : index
    %c0_28 = arith.constant 0 : index
    %57 = vector.load %arg6[%c0_27, %c0_28] : memref<256x128xbf16, #tpu.memory_space<vmem>>, vector<256x128xbf16>
    %cst_29 = arith.constant dense<0.000000e+00> : vector<8x128xf32>
    %58 = tpu.matmul %56, %57, %cst_29 {dimension_numbers = #tpu.dot_dimension_numbers<[1], [0], [0], [1], [0, 0, 1, 1], [], []>} : vector<8x256xbf16>, vector<256x128xbf16>, vector<8x128xf32> -> vector<8x128xf32>
    %c0_30 = arith.constant 0 : index
    %c0_31 = arith.constant 0 : index
    %59 = vector.load %arg7[%c0_30, %c0_31] : memref<1x128xf32, #tpu.memory_space<vmem>>, vector<1x128xf32>
    %60 = vector.broadcast %59 : vector<1x128xf32> to vector<8x128xf32>
    %61 = arith.addf %58, %60 : vector<8x128xf32>
    %cst_32 = arith.constant 0.000000e+00 : f32
    %62 = vector.broadcast %cst_32 : f32 to vector<8x128xf32>
    %63 = arith.subf %62, %61 : vector<8x128xf32>
    %64 = math.exp %63 : vector<8x128xf32>
    %cst_33 = arith.constant 1.000000e+00 : f32
    %65 = vector.broadcast %cst_33 : f32 to vector<8x128xf32>
    %66 = arith.addf %65, %64 : vector<8x128xf32>
    %cst_34 = arith.constant 1.000000e+00 : f32
    %67 = vector.broadcast %cst_34 : f32 to vector<8x128xf32>
    %68 = arith.divf %67, %66 : vector<8x128xf32>
    %c0_35 = arith.constant 0 : index
    %c0_36 = arith.constant 0 : index
    %69 = vector.load %arg8[%c0_35, %c0_36] : memref<8x128xf32, #tpu.memory_space<vmem>>, vector<8x128xf32>
    %70 = math.log %68 : vector<8x128xf32>
    %cst_37 = arith.constant -1.000000e+02 : f32
    %71 = vector.broadcast %cst_37 : f32 to vector<8x128xf32>
    %72 = arith.maximumf %70, %71 : vector<8x128xf32>
    %cst_38 = arith.constant 1.000000e+00 : f32
    %73 = vector.broadcast %cst_38 : f32 to vector<8x128xf32>
    %74 = arith.subf %73, %68 : vector<8x128xf32>
    %75 = math.log %74 : vector<8x128xf32>
    %cst_39 = arith.constant -1.000000e+02 : f32
    %76 = vector.broadcast %cst_39 : f32 to vector<8x128xf32>
    %77 = arith.maximumf %75, %76 : vector<8x128xf32>
    %78 = arith.mulf %69, %72 : vector<8x128xf32>
    %cst_40 = arith.constant 1.000000e+00 : f32
    %79 = vector.broadcast %cst_40 : f32 to vector<8x128xf32>
    %80 = arith.subf %79, %69 : vector<8x128xf32>
    %81 = arith.mulf %80, %77 : vector<8x128xf32>
    %82 = arith.addf %78, %81 : vector<8x128xf32>
    %cst_41 = arith.constant 0.000000e+00 : f32
    %83 = vector.broadcast %cst_41 : f32 to vector<8x128xf32>
    %84 = arith.subf %83, %82 : vector<8x128xf32>
    %85 = tpu.iota {dimensions = array<i32: 1>} : vector<8x128xi32>
    %c4_i32 = arith.constant 4 : i32
    %86 = vector.broadcast %c4_i32 : i32 to vector<8x128xi32>
    %87 = arith.cmpi slt, %85, %86 : vector<8x128xi32>
    %88 = arith.extui %87 : vector<8x128xi1> to vector<8x128xi32>
    %89 = arith.sitofp %88 : vector<8x128xi32> to vector<8x128xf32>
    %c8_i32 = arith.constant 8 : i32
    %90 = arith.muli %arg0, %c8_i32 : i32
    %91 = tpu.iota {dimensions = array<i32: 0>} : vector<8x1xi32>
    %92 = vector.broadcast %90 : i32 to vector<8x1xi32>
    %93 = arith.addi %92, %91 : vector<8x1xi32>
    %c16_i32 = arith.constant 16 : i32
    %94 = vector.broadcast %c16_i32 : i32 to vector<8x1xi32>
    %95 = arith.cmpi slt, %93, %94 : vector<8x1xi32>
    %96 = arith.extui %95 : vector<8x1xi1> to vector<8x1xi32>
    %97 = arith.sitofp %96 : vector<8x1xi32> to vector<8x1xf32>
    %98 = arith.mulf %84, %89 : vector<8x128xf32>
    %cst_42 = arith.constant dense<0.000000e+00> : vector<8xf32>
    %99 = vector.multi_reduction <add>, %98, %cst_42 [1] : vector<8x128xf32> to vector<8xf32>
    %100 = vector.shape_cast %99 : vector<8xf32> to vector<8x1xf32>
    %101 = arith.mulf %100, %97 : vector<8x1xf32>
    %c127_i32 = arith.constant 127 : i32
    %102 = vector.broadcast %c127_i32 : i32 to vector<8x128xi32>
    %103 = arith.cmpi eq, %85, %102 : vector<8x128xi32>
    %104 = vector.shape_cast %101 : vector<8x1xf32> to vector<8x1xf32>
    %105 = vector.broadcast %104 : vector<8x1xf32> to vector<8x128xf32>
    %106 = arith.select %103, %105, %68 : vector<8x128xi1>, vector<8x128xf32>
    %c0_43 = arith.constant 0 : index
    %c0_44 = arith.constant 0 : index
    %107 = vector.load %arg9[%c0_43, %c0_44] : memref<8x128xf32, #tpu.memory_space<vmem>>, vector<8x128xf32>
    tpu.vector_store %arg9[%c0_43, %c0_44], %106 {strides = array<i32>} : memref<8x128xf32, #tpu.memory_space<vmem>>, vector<8x128xf32>,
    return
  }
  func.func @transform_0(%arg0: i32) -> (i32, i32) {
    %c0_i32 = arith.constant 0 : i32
    %c0_i32_0 = arith.constant 0 : i32
    return %arg0, %c0_i32 : i32, i32
  }
  func.func @transform_1(%arg0: i32) -> (i32, i32) {
    %c0_i32 = arith.constant 0 : i32
    %c0_i32_0 = arith.constant 0 : i32
    %c0_i32_1 = arith.constant 0 : i32
    return %c0_i32, %c0_i32_0 : i32, i32
  }
  func.func @transform_2(%arg0: i32) -> (i32, i32) {
    %c0_i32 = arith.constant 0 : i32
    %c0_i32_0 = arith.constant 0 : i32
    %c0_i32_1 = arith.constant 0 : i32
    return %c0_i32, %c0_i32_0 : i32, i32
  }
  func.func @transform_3(%arg0: i32) -> (i32, i32) {
    %c0_i32 = arith.constant 0 : i32
    %c0_i32_0 = arith.constant 0 : i32
    %c0_i32_1 = arith.constant 0 : i32
    return %c0_i32, %c0_i32_0 : i32, i32
  }
  func.func @transform_4(%arg0: i32) -> (i32, i32) {
    %c0_i32 = arith.constant 0 : i32
    %c0_i32_0 = arith.constant 0 : i32
    %c0_i32_1 = arith.constant 0 : i32
    return %c0_i32, %c0_i32_0 : i32, i32
  }
  func.func @transform_5(%arg0: i32) -> (i32, i32) {
    %c0_i32 = arith.constant 0 : i32
    %c0_i32_0 = arith.constant 0 : i32
    %c0_i32_1 = arith.constant 0 : i32
    return %c0_i32, %c0_i32_0 : i32, i32
  }
  func.func @transform_6(%arg0: i32) -> (i32, i32) {
    %c0_i32 = arith.constant 0 : i32
    %c0_i32_0 = arith.constant 0 : i32
    %c0_i32_1 = arith.constant 0 : i32
    return %c0_i32, %c0_i32_0 : i32, i32
  }
  func.func @transform_7(%arg0: i32) -> (i32, i32) {
    %c0_i32 = arith.constant 0 : i32
    %c0_i32_0 = arith.constant 0 : i32
    return %arg0, %c0_i32 : i32, i32
  }
  func.func @transform_8(%arg0: i32) -> (i32, i32) {
    %c0_i32 = arith.constant 0 : i32
    %c0_i32_0 = arith.constant 0 : i32
    return %arg0, %c0_i32 : i32, i32
  }
}

</mosaic_0001>

<bundles_post_ra>
// kernel: tpu_custom_call.1
= control target key start
LH: loop header
LB: loop body
LE: loop exit
PB: predicated region body
PF: predicated region fallthrough
CT: control target
= control target key end

     0   :  { %s11713_s0 = inlined_call_operand.hbm [shape: bf16[256,1920], index: 0, kind: input, shape index: {}]   ;;  %s11714_s1 = inlined_call_operand.hbm [shape: bf16[1920,256], index: 1, kind: input, shape index: {}]   ;;  %s11715_s2 = inlined_call_operand.hbm [shape: f32[1,256], index: 2, kind: input, shape index: {}]   ;;  %s11716_s3 = inlined_call_operand.hbm [shape: bf16[256,256], index: 3, kind: input, shape index: {}]   ;;  %s11717_s4 = inlined_call_operand.vmem [shape: f32[1,256], index: 4, kind: input, shape index: {}]   ;;  %s11718_s5 = inlined_call_operand.hbm [shape: bf16[256,128], index: 5, kind: input, shape index: {}]   ;;  %s11719_s6 = inlined_call_operand.vmem [shape: f32[1,128], index: 6, kind: input, shape index: {}]   ;;  %s11720_s7 = inlined_call_operand.hbm [shape: f32[16,128], index: 7, kind: input, shape index: {}]   ;;  %s11721_s8 = inlined_call_operand.hbm [shape: f32[16,128], index: 8, kind: output, shape index: {}]  }
   0x1   :  { %11809 = sst [smem:[#allocation104_spill]] %s11713_s0 }
   0x2   :  { %11810 = sst [smem:[#allocation105_spill]] %s11714_s1 }
   0x3   :  { %11811 = sst [smem:[#allocation106_spill]] %s11715_s2 }
   0x4   :  { %11812 = sst [smem:[#allocation107_spill]] %s11716_s3 }
   0x5   :  { %11813 = sst [smem:[#allocation108_spill]] %s11718_s5 }
   0x6   :  { %13 = vsyncpa [#allocation3], 0 }
   0x7   :  { %15 = vsyncpa [#allocation3 + $0x1], 0 }
   0x8   :  { %16 = vsyncpa [#allocation6], 0 }
   0x9   :  { %17 = vsyncpa [#allocation9], 0 }
   0xa   :  { %18 = vsyncpa [#allocation12], 0 }
   0xb   :  { %20 = vsyncpa [#allocation12 + $0x1], 0 }
   0xc   :  { %21 = vsyncpa [#allocation4], 0 }
   0xd   :  { %23 = vsyncpa [#allocation4 + $0x1], 0  ;;  %s8980_s27 = smov 0   ;;  %s8982_s28 = smov 0  }
   0xe   :  { %s8984_s29 = smov 0   ;;  %s8986_s30 = smov 0  }
   0xf LB: > { %11814 = sst [smem:[#allocation19_spill]] %s8917_s29  ;;  %s9001_s9 = sadd.s32 4294967295, %s8921_s30   ;;  %s8921_s30 = sphi %s8986_s30, %s12034_s30   ;;  %s8917_s29 = sphi %s8984_s29, %s12031_s29   ;;  %s8913_s28 = sphi %s8982_s28, %s12033_s28   ;;  %s8909_s27 = sphi %s8980_s27, %s12032_s27  }
  0x10   : > { %s6338_s10 = sadd.s32 4294967294, %s8921_s30   ;;  %p49_p0 = scmp.ne.s32.totalorder %s8913_s28, %s8909_s27 }
  0x11   : > { %p50_p1 = scmp.eq.s32.totalorder %s9001_s9, 0  ;;  %p225_p2 = scmp.eq.s32.totalorder %s9001_s9, 1 }
  0x12   : > { %p231_p3 = scmp.eq.s32.totalorder %s6338_s10, 1  ;;  %p6339_p5 = scmp.ge.s32.totalorder %s8921_s30, 1 }
  0x13   : > { %p9010_p4 = por %p50_p1, %p49_p0  ;;  %p238_p7 = scmp.lt.s32.totalorder %s8921_s30, 3 }
  0x14   : > { %p9015_p6 = por %p231_p3, %p49_p0  ;;  %s11817_s1 = sld [smem:[#allocation105_spill]] }
  0x15   : > { %p9023_p8 = pnand %p6339_p5, %p238_p7  ;;  %s8923_s17 = smov [#allocation5]  }
  0x16   : > { %s251_s18 = sshll.u32 %s8923_s17, 4  ;;  %s11820_s3 = sld [smem:[#allocation107_spill]]  ;;  %s252_s18 = int_to_ptr.vmem [resolvable:$true] %s251_s18 }
  0x17   : > { %p8445_p9 = pneg %p9023_p8  ;;  %s8924_s23 = smov 128  }
  0x18   : > { %s8925_s24 = smov 8   ;;  %s8926_s25 = smov [#allocation8]  }
  0x19   : > { %p9031_p10 = pnand %p8445_p9, %p50_p1  ;;  %s277_s26 = sshll.u32 %s8926_s25, 4  ;;  %s278_s26 = int_to_ptr.vmem [resolvable:$true] %s277_s26 }
  0x1a   : > { %s249_s15 = sshll.u32 %s11817_s1, 4  ;;  %s11821_s2 = sld [smem:[#allocation106_spill]]  ;;  %s250_s15 = int_to_ptr.hbm [resolvable:$true] %s249_s15 }
  0x1b   : > { %8448 = dma.hbm_to_vmem [thread:$0]  (!%p9031_p10), %s250_s15, 30720, %s252_s18, [#allocation6], %s8924_s23, %s8924_s23, %s8925_s24  }
  0x1c   : > { %s275_s22 = sshll.u32 %s11820_s3, 4  ;;  %s11822_s5 = sld [smem:[#allocation108_spill]]  ;;  %s276_s22 = int_to_ptr.hbm [resolvable:$true] %s275_s22 }
  0x1d   : > { %8454 = dma.hbm_to_vmem [thread:$0]  (!%p9031_p10), %s276_s22, 4096, %s278_s26, [#allocation9], %s8924_s23, %s8924_s23, %s8925_s24  }
  0x1e   : > { %s8927_s15 = smov [#allocation7]   ;;  %s8928_s25 = smov [#allocation10]  }
  0x1f   : > { %s266_s18 = sshll.u32 %s8927_s15, 4  ;;  %s294_s22 = sshll.u32 %s8928_s25, 4  ;;  %s267_s18 = int_to_ptr.vmem [resolvable:$true] %s266_s18  ;;  %s295_s22 = int_to_ptr.vmem [resolvable:$true] %s294_s22 }
  0x20   : > { %s264_s14 = sshll.u32 %s11821_s2, 4  ;;  %s8929_s23 = smov 64   ;;  %s265_s14 = int_to_ptr.hbm [resolvable:$true] %s264_s14 }
  0x21   : > { %8451 = dma.hbm_to_vmem [thread:$0]  (!%p9031_p10), %s265_s14, 32, %s267_s18, [#allocation6]  }
  0x22   : > { %s292_s21 = sshll.u32 %s11822_s5, 4  ;;  %s8930_s24 = smov 4   ;;  %s293_s21 = int_to_ptr.hbm [resolvable:$true] %s292_s21 }
  0x23   : > { %8457 = dma.hbm_to_vmem [thread:$0]  (!%p9031_p10), %s293_s21, 2048, %s295_s22, [#allocation9], %s8929_s23, %s8929_s23, %s8930_s24  }
  0x24   : > { %s9054_s26 = sadd.s32 1, %s8921_s30   ;;  %s36_s13 = sadd.s32 1, %s8917_s29 }
  0x25   : > { %s33_s10 = ssub.s32 %s8921_s30, %s9054_s26  ;;  %p43_p13 = scmp.ne.s32.totalorder %s8917_s29, %s8913_s28 }
  0x26   : > { %p34_p12 = scmp.eq.s32.totalorder %s33_s10, 0  ;;  %p44_p0 = scmp.eq.s32.totalorder %s8921_s30, 0 }
  0x27   : > { %p9067_p5 = por %p225_p2, %p43_p13  ;;  %p8473_p7 = scmp.lt.s32.totalorder %s8921_s30, 2 }
  0x28   : > { %s9063_s17 = scalar_select %p34_p12, %s8917_s29, %s36_s13  }
  0x29   : > { %p45_p3 = por %p44_p0, %p43_p13  ;;  %s9073_s20 = sand.u32 1, %s8917_s29  }
  0x2a   : > { %11823 = sst [smem:[#allocation20_spill]] %s9063_s17  ;;  %s8420_s19 = smul.u32 960, %s9073_s20 }
  0x2b   : > { %s8421_s21 = smul.u32 960, %s8921_s30  ;;  %p9077_p9 = pnand %p8473_p7, %p45_p3 }
  0x2c   : > { %s11826_s0 = sld [smem:[#allocation104_spill]]  ;;  %s315_s23 = scalar_lea.vmem [#allocation2], %s8420_s19 }
  0x2d   : > { %s324_s24 = sshll.u32 %s315_s23, 4  ;;  %s312_s13 = scalar_lea.sflag [#allocation3], %s9073_s20  ;;  %s325_s24 = int_to_ptr.vmem [resolvable:$true] %s324_s24 }
  0x2e   : > { %p8787_p10 = pneg %p9077_p9 }
  0x32   : > { %s321_s22 = scalar_lea.hbm %s11826_s0, %s8421_s21  ;;  %s8790_s21 = scalar_lea.hbm %s11826_s0, 1920 }
  0x33   : > { %s322_s10 = sshll.u32 %s321_s22, 4  ;;  %s323_s10 = int_to_ptr.hbm [resolvable:$true] %s322_s10 }
  0x34   : > { %s8783_s1 = sshra.s32 %s323_s10, 4  ;;  %s8784_s1 = int_to_ptr.hbm [resolvable:$true] %s8783_s1 }
  0x35   : > { %s8785_s2 = scalar_lea.hbm %s8784_s1, 960  ;;  %p8791_p0 = scmp.lt.s32.totalorder %s8784_s1, %s11826_s0 }
  0x36   : > { %p8786_p2 = scmp.ne.s32.totalorder %s8784_s1, %s8785_s2  ;;  %p8792_p3 = scmp.lt.s32.totalorder %s8790_s21, %s8785_s2 }
  0x38   : > { %p8788_p12 = pnand %p8787_p10, %p8786_p2  ;;  %p8793_p7 = por %p8792_p3, %p8791_p0 }
  0x3a   : > { %p8789_p13 = pneg %p8788_p12 }
  0x3c   : > { %p8794_p11 = pnand %p8793_p7, %p8789_p13 }
  0x3e   : > { %8797 = shalt.err (!%p8794_p11)
}
  0x3f   : > { %s8931_s22 = smov 960   ;;  %s8932_s3 = smov 60  }
  0x40   : > { %8461 = dma.hbm_to_vmem [thread:$0]  (!%p9077_p9), %s323_s10, 15360, %s325_s24, %s312_s13, %s8931_s22, %s8931_s22, %s8932_s3  }
  0x41   : > { %s6348_s5 = sshll.u32 %s9073_s20, 3  ;;  %s6349_s18 = sshll.u32 %s8921_s30, 3 }
  0x42   : > { %s342_s19 = scalar_lea.hbm %s11720_s7, %s6349_s18  ;;  %s338_s2 = scalar_lea.vmem [#allocation11], %s6348_s5 }
  0x43   : > { %s344_s1 = sshll.u32 %s342_s19, 4  ;;  %s346_s21 = sshll.u32 %s338_s2, 4  ;;  %s345_s1 = int_to_ptr.hbm [resolvable:$true] %s344_s1  ;;  %s347_s21 = int_to_ptr.vmem [resolvable:$true] %s346_s21 }
  0x44   : > { %s335_s23 = scalar_lea.sflag [#allocation12], %s9073_s20  ;;  %s8813_s0 = sshra.s32 %s345_s1, 4  ;;  %s8814_s0 = int_to_ptr.hbm [resolvable:$true] %s8813_s0 }
  0x45   : > { %s8815_s29 = scalar_lea.hbm %s8814_s0, 8  ;;  %s8820_s10 = scalar_lea.hbm %s11720_s7, 16 }
  0x46   : > { %p8816_p11 = scmp.ne.s32.totalorder %s8814_s0, %s8815_s29  ;;  %p8821_p13 = scmp.lt.s32.totalorder %s8814_s0, %s11720_s7 }
  0x47   : > { %p8822_p0 = scmp.lt.s32.totalorder %s8820_s10, %s8815_s29 }
  0x48   : > { %p8818_p2 = pnand %p8816_p11, %p8787_p10 }
  0x49   : > { %p8823_p3 = por %p8822_p0, %p8821_p13 }
  0x4a   : > { %p8819_p12 = pneg %p8818_p2 }
  0x4c   : > { %p8824_p7 = pnand %p8823_p3, %p8819_p12 }
  0x4e   : > { %8827 = shalt.err (!%p8824_p7)
}
  0x4f   : > { %8464 = dma.hbm_to_vmem [thread:$0]  (!%p9077_p9), %s345_s1, 128, %s347_s21, %s335_s23  }
  0x50   : > { %355 = sbr.rel (%p9023_p8) target bundleno = 1945 (0x799), region = 52 }
  0x55   : > { %s9118_s5 = sand.u32 1, %s8913_s28  }
  0x56   : > { %s8422_s20 = smul.u32 960, %s9118_s5  ;;  %s358_s22 = scalar_lea.sflag [#allocation3], %s9118_s5 }
  0x58   : > { %s9122_s18 = scalar_lea.vmem [#allocation2], %s8422_s20 }
  0x59   : > { %8888 = dma.done.wait (%p9010_p4), %s358_s22, 15360  }
  0x5a   : > { %8890 = vsyncadd (%p9010_p4), %s358_s22, 4294951936 }
  0x5b   : > { %8892 = dma.done.wait (%p50_p1), [#allocation6], 30752  }
  0x5c   : > { %8894 = vsyncadd (%p50_p1), [#allocation6], 4294936544 }
  0x5d   : > { %8896 = dma.done.wait (%p50_p1), [#allocation9], 6144  }
  0x5e   : > { %8898 = vsyncadd (%p50_p1), [#allocation9], 4294961152  ;;  %s6355_s0 = sshll.u32 %s9118_s5, 3  ;;  %s388_s29 = scalar_lea.sflag [#allocation12], %s9118_s5 }
  0x5f   : > { %s9140_s16 = scalar_lea.vmem [#allocation11], %s6355_s0 }
  0x60   : > { %8900 = dma.done.wait (%p9010_p4), %s388_s29, 128  }
  0x61   : > { %8902 = vsyncadd (%p9010_p4), %s388_s29, 4294967168  ;;  %v6895_v0 = vld [vmem:[#allocation5 + $0x70] sm:$0xf]  ;;  %v8131_v1 = vld [vmem:[#allocation5 + $0x74] sm:$0xf0]  ;;  %s7990_s1 = sshll.u32 %s9001_s9, 3 }
  0x62   : > { %v6959_v2 = vld [vmem:[#allocation5 + $0xf0] sm:$0xf]  ;;  %v6896_v3 = vor.u32 %v8131_v1, %v6895_v0  ;;  %v8147_v4 = vld [vmem:[#allocation5 + $0xf4] sm:$0xf0]  ;;  %v6887_v5 = vld [vmem:[#allocation5 + $0x60] sm:$0xf]  ;;  %s6202_s23 = scalar_lea.hbm %s11721_s8, %s7990_s1 }
  0x63   : > { %v8129_v6 = vld [vmem:[#allocation5 + $0x64] sm:$0xf0]  ;;  %v6960_v7 = vor.u32 %v8147_v4, %v6959_v2  ;;  %v6951_v8 = vld [vmem:[#allocation5 + $0xe0] sm:$0xf]  ;;  %v6879_v12 = vld [vmem:[#allocation5 + $0x50] sm:$0xf] }
  0x64   : > { %v8145_v9 = vld [vmem:[#allocation5 + $0xe4] sm:$0xf0]  ;;  %2613 = vmatpush.bf16.msra.mxu0 %v6896_v3  ;;  %8404 = vmatpush.bf16.msra.mxu2 %v6896_v3  ;;  %v6888_v10 = vor.u32 %v8129_v6, %v6887_v5  ;;  %v8127_v13 = vld [vmem:[#allocation5 + $0x54] sm:$0xf0]  ;;  %v6943_v14 = vld [vmem:[#allocation5 + $0xd0] sm:$0xf] }
  0x65   : > { %2662 = vmatpush.bf16.msra.mxu1 %v6960_v7  ;;  %8412 = vmatpush.bf16.msra.mxu3 %v6960_v7  ;;  %v6952_v11 = vor.u32 %v8145_v9, %v6951_v8  ;;  %v8143_v15 = vld [vmem:[#allocation5 + $0xd4] sm:$0xf0]  ;;  %v6880_v16 = vor.u32 %v8127_v13, %v6879_v12  ;;  %v6871_v18 = vld [vmem:[#allocation5 + $0x40] sm:$0xf]  ;;  %v8125_v19 = vld [vmem:[#allocation5 + $0x44] sm:$0xf0] }
  0x66   : > { %v6944_v17 = vor.u32 %v8143_v15, %v6943_v14  ;;  %v6935_v20 = vld [vmem:[#allocation5 + $0xc0] sm:$0xf]  ;;  %v8141_v21 = vld [vmem:[#allocation5 + $0xc4] sm:$0xf0]  ;;  %v6872_v22 = vor.u32 %v8125_v19, %v6871_v18  ;;  %v6863_v24 = vld [vmem:[#allocation5 + $0x30] sm:$0xf] }
  0x67   : > { %v6936_v23 = vor.u32 %v8141_v21, %v6935_v20  ;;  %v8123_v25 = vld [vmem:[#allocation5 + $0x34] sm:$0xf0]  ;;  %v6927_v26 = vld [vmem:[#allocation5 + $0xb0] sm:$0xf]  ;;  %v6855_v30 = vld [vmem:[#allocation5 + $0x20] sm:$0xf] }
  0x68   : > { %2614 = vmatpush.bf16.msra.mxu0 %v6888_v10  ;;  %8405 = vmatpush.bf16.msra.mxu2 %v6888_v10  ;;  %v8139_v27 = vld [vmem:[#allocation5 + $0xb4] sm:$0xf0]  ;;  %v6864_v28 = vor.u32 %v8123_v25, %v6863_v24  ;;  %v8121_v31 = vld [vmem:[#allocation5 + $0x24] sm:$0xf0]  ;;  %v6919_v32 = vld [vmem:[#allocation5 + $0xa0] sm:$0xf] }
  0x69   : > { %2663 = vmatpush.bf16.msra.mxu1 %v6952_v11  ;;  %8413 = vmatpush.bf16.msra.mxu3 %v6952_v11  ;;  %v6928_v29 = vor.u32 %v8139_v27, %v6927_v26  ;;  %v8137_v33 = vld [vmem:[#allocation5 + $0xa4] sm:$0xf0]  ;;  %v6856_v34 = vor.u32 %v8121_v31, %v6855_v30  ;;  %v6847_v36 = vld [vmem:[#allocation5 + $0x10] sm:$0xf]  ;;  %v8119_v37 = vld [vmem:[#allocation5 + $0x14] sm:$0xf0] }
  0x6a   : > { %v6920_v35 = vor.u32 %v8137_v33, %v6919_v32  ;;  %v6911_v38 = vld [vmem:[#allocation5 + $0x90] sm:$0xf]  ;;  %v8135_v39 = vld [vmem:[#allocation5 + $0x94] sm:$0xf0]  ;;  %v6848_v40 = vor.u32 %v8119_v37, %v6847_v36  ;;  %v6839_v41 = vld [vmem:[#allocation5] sm:$0xf] }
  0x6b   : > { %v6912_v42 = vor.u32 %v8135_v39, %v6911_v38  ;;  %v8117_v43 = vld [vmem:[#allocation5 + $0x4] sm:$0xf0]  ;;  %v6903_v44 = vld [vmem:[#allocation5 + $0x80] sm:$0xf]  ;;  %v8003_v47 = vld [vmem:[%s9122_s18 + $0x38] sm:$0xf0] }
  0x6c   : > { %2615 = vmatpush.bf16.msra.mxu0 %v6880_v16  ;;  %8406 = vmatpush.bf16.msra.mxu2 %v6880_v16  ;;  %v8133_v45 = vld [vmem:[#allocation5 + $0x84] sm:$0xf0]  ;;  %v6359_v46 = vld [vmem:[%s9122_s18] sm:$0xf]  ;;  %v6659_v48 = vld [vmem:[%s9122_s18 + $0x258] sm:$0xf]  ;;  %v6840_v54 = vor.u32 %v8117_v43, %v6839_v41 }
  0x6d   : > { %2664 = vmatpush.bf16.msra.mxu1 %v6944_v17  ;;  %8414 = vmatpush.bf16.msra.mxu3 %v6944_v17  ;;  %v8078_v49 = vld [vmem:[%s9122_s18 + $0x290] sm:$0xf0]  ;;  %v7151_v50 = vld [vmem:[#allocation5 + $0x270] sm:$0xf]  ;;  %v8195_v51 = vld [vmem:[#allocation5 + $0x274] sm:$0xf0]  ;;  %v6904_v58 = vor.u32 %v8133_v45, %v6903_v44  ;;  %v9154_v3 = vor.u32 %v8003_v47, %v6359_v46 }
  0x6e   : > { %v7215_v52 = vld [vmem:[#allocation5 + $0x2f0] sm:$0xf]  ;;  %v8211_v53 = vld [vmem:[#allocation5 + $0x2f4] sm:$0xf0]  ;;  %v7996_v55 = vld [vmem:[%s9122_s18 + $0x4] sm:$0xf]  ;;  %v7152_v62 = vor.u32 %v8195_v51, %v7151_v50  ;;  %v9156_v4 = vor.u32 %v8078_v49, %v6659_v48 }
  0x6f   : > { %v6361_v56 = vld [vmem:[%s9122_s18 + $0x3c] sm:$0xf0]  ;;  %v8071_v57 = vld [vmem:[%s9122_s18 + $0x25c] sm:$0xf]  ;;  %v6661_v59 = vld [vmem:[%s9122_s18 + $0x294] sm:$0xf0]  ;;  %v7216_v63 = vor.u32 %v8211_v53, %v7215_v52 }
  0x70   : > { %2616 = vmatpush.bf16.msra.mxu0 %v6872_v22  ;;  %8407 = vmatpush.bf16.msra.mxu2 %v6872_v22  ;;  %v7143_v60 = vld [vmem:[#allocation5 + $0x260] sm:$0xf]  ;;  %v7023_v61 = vld [vmem:[#allocation5 + $0x170] sm:$0xf]  ;;  %v8163_v0 = vld [vmem:[#allocation5 + $0x174] sm:$0xf0]  ;;  %v9158_v8 = vor.u32 %v7996_v55, %v6361_v56  ;;  %v9160_v9 = vor.u32 %v8071_v57, %v6661_v59 }
  0x71   : > { %2665 = vmatpush.bf16.msra.mxu1 %v6936_v23  ;;  %8415 = vmatpush.bf16.msra.mxu3 %v6936_v23  ;;  %v7087_v1 = vld [vmem:[#allocation5 + $0x1f0] sm:$0xf]  ;;  %v8179_v2 = vld [vmem:[#allocation5 + $0x1f4] sm:$0xf0]  ;;  %v8193_v5 = vld [vmem:[#allocation5 + $0x264] sm:$0xf0]  ;;  %v7024_v10 = vor.u32 %v8163_v0, %v7023_v61 }
  0x72   : > { %v7207_v6 = vld [vmem:[#allocation5 + $0x2e0] sm:$0xf]  ;;  %v8209_v7 = vld [vmem:[#allocation5 + $0x2e4] sm:$0xf0]  ;;  %v7088_v11 = vor.u32 %v8179_v2, %v7087_v1  ;;  %v7135_v12 = vld [vmem:[#allocation5 + $0x250] sm:$0xf]  ;;  %v7144_v14 = vor.u32 %v8193_v5, %v7143_v60 }
  0x73   : > { %v7015_v13 = vld [vmem:[#allocation5 + $0x160] sm:$0xf]  ;;  %v7208_v15 = vor.u32 %v8209_v7, %v7207_v6  ;;  %v8161_v16 = vld [vmem:[#allocation5 + $0x164] sm:$0xf0]  ;;  %v8191_v19 = vld [vmem:[#allocation5 + $0x254] sm:$0xf0] }
  0x74   : > { %2617 = vmatpush.bf16.msra.mxu0 %v6864_v28  ;;  %8408 = vmatpush.bf16.msra.mxu2 %v6864_v28  ;;  %v7079_v17 = vld [vmem:[#allocation5 + $0x1e0] sm:$0xf]  ;;  %v8177_v18 = vld [vmem:[#allocation5 + $0x1e4] sm:$0xf0]  ;;  %v7199_v20 = vld [vmem:[#allocation5 + $0x2d0] sm:$0xf]  ;;  %v7016_v22 = vor.u32 %v8161_v16, %v7015_v13  ;;  %v7136_v26 = vor.u32 %v8191_v19, %v7135_v12 }
  0x75   : > { %2666 = vmatpush.bf16.msra.mxu1 %v6928_v29  ;;  %8416 = vmatpush.bf16.msra.mxu3 %v6928_v29  ;;  %v8207_v21 = vld [vmem:[#allocation5 + $0x2d4] sm:$0xf0]  ;;  %v7080_v23 = vor.u32 %v8177_v18, %v7079_v17  ;;  %v7007_v24 = vld [vmem:[#allocation5 + $0x150] sm:$0xf]  ;;  %v7127_v30 = vld [vmem:[#allocation5 + $0x240] sm:$0xf] }
  0x76   : > { %v8159_v25 = vld [vmem:[#allocation5 + $0x154] sm:$0xf0]  ;;  %v7200_v27 = vor.u32 %v8207_v21, %v7199_v20  ;;  %v7071_v28 = vld [vmem:[#allocation5 + $0x1d0] sm:$0xf]  ;;  %v8189_v31 = vld [vmem:[#allocation5 + $0x244] sm:$0xf0] }
  0x77   : > { %v8175_v29 = vld [vmem:[#allocation5 + $0x1d4] sm:$0xf0]  ;;  %v7191_v32 = vld [vmem:[#allocation5 + $0x2c0] sm:$0xf]  ;;  %v8205_v33 = vld [vmem:[#allocation5 + $0x2c4] sm:$0xf0]  ;;  %v7128_v41 = vor.u32 %v8189_v31, %v7127_v30 }
  0x78   : > { %2618 = vmatpush.bf16.msra.mxu0 %v6856_v34  ;;  %8409 = vmatpush.bf16.msra.mxu2 %v6856_v34  ;;  %v7008_v34 = vor.u32 %v8159_v25, %v7007_v24  ;;  %v6999_v36 = vld [vmem:[#allocation5 + $0x140] sm:$0xf]  ;;  %v8157_v37 = vld [vmem:[#allocation5 + $0x144] sm:$0xf0]  ;;  %v6419_v38 = vld [vmem:[%s9122_s18 + $0x78] sm:$0xf]  ;;  %v7192_v44 = vor.u32 %v8205_v33, %v7191_v32 }
  0x79   : > { %2667 = vmatpush.bf16.msra.mxu1 %v6920_v35  ;;  %8417 = vmatpush.bf16.msra.mxu3 %v6920_v35  ;;  %v7072_v35 = vor.u32 %v8175_v29, %v7071_v28  ;;  %v8018_v39 = vld [vmem:[%s9122_s18 + $0xb0] sm:$0xf0]  ;;  %v8173_v43 = vld [vmem:[#allocation5 + $0x1c4] sm:$0xf0]  ;;  %v7119_v45 = vld [vmem:[#allocation5 + $0x230] sm:$0xf] }
  0x7a   : > { %v8187_v46 = vld [vmem:[#allocation5 + $0x234] sm:$0xf0]  ;;  %v7183_v47 = vld [vmem:[#allocation5 + $0x2b0] sm:$0xf]  ;;  %v8093_v49 = vld [vmem:[%s9122_s18 + $0x308] sm:$0xf0] }
  0x7b   : > { %v8203_v48 = vld [vmem:[#allocation5 + $0x2b4] sm:$0xf0]  ;;  %v8011_v50 = vld [vmem:[%s9122_s18 + $0x7c] sm:$0xf]  ;;  %v8086_v52 = vld [vmem:[%s9122_s18 + $0x2d4] sm:$0xf]  ;;  %v7120_v60 = vor.u32 %v8187_v46, %v7119_v45 }
  0x7c   : > { %2619 = vmatpush.bf16.msra.mxu0 %v6848_v40  ;;  %8410 = vmatpush.bf16.msra.mxu2 %v6848_v40  ;;  %v6719_v40 = vld [vmem:[%s9122_s18 + $0x2d0] sm:$0xf]  ;;  %v6421_v51 = vld [vmem:[%s9122_s18 + $0xb4] sm:$0xf0]  ;;  %v7184_v61 = vor.u32 %v8203_v48, %v7183_v47  ;;  %v6983_v6 = vld [vmem:[#allocation5 + $0x120] sm:$0xf] }
  0x7d   : > { %2668 = vmatpush.bf16.msra.mxu1 %v6912_v42  ;;  %8418 = vmatpush.bf16.msra.mxu3 %v6912_v42  ;;  %v7063_v42 = vld [vmem:[#allocation5 + $0x1c0] sm:$0xf]  ;;  %v6721_v53 = vld [vmem:[%s9122_s18 + $0x30c] sm:$0xf0]  ;;  %v8155_v57 = vld [vmem:[#allocation5 + $0x134] sm:$0xf0]  ;;  %v9178_v0 = vor.u32 %v8011_v50, %v6421_v51 }
  0x7e   : > { %v7064_v55 = vor.u32 %v8173_v43, %v7063_v42  ;;  %v6991_v56 = vld [vmem:[#allocation5 + $0x130] sm:$0xf]  ;;  %v8171_v59 = vld [vmem:[#allocation5 + $0x1b4] sm:$0xf0]  ;;  %v9180_v1 = vor.u32 %v8086_v52, %v6721_v53  ;;  %v8153_v7 = vld [vmem:[#allocation5 + $0x124] sm:$0xf0] }
  0x7f   : > { %v6992_v2 = vor.u32 %v8155_v57, %v6991_v56  ;;  %v6975_v12 = vld [vmem:[#allocation5 + $0x110] sm:$0xf]  ;;  %v8151_v13 = vld [vmem:[#allocation5 + $0x114] sm:$0xf0]  ;;  %v8185_v16 = vld [vmem:[#allocation5 + $0x224] sm:$0xf0]  ;;  %v6984_v18 = vor.u32 %v8153_v7, %v6983_v6 }
  0x80   : > { %2620 = vmatpush.bf16.msra.mxu0 %v6840_v54  ;;  %8411 = vmatpush.bf16.msra.mxu2 %v6840_v54  ;;  %v7000_v54 = vor.u32 %v8157_v37, %v6999_v36  ;;  %v7175_v17 = vld [vmem:[#allocation5 + $0x2a0] sm:$0xf]  ;;  %v8201_v21 = vld [vmem:[#allocation5 + $0x2a4] sm:$0xf0]  ;;  %v8167_v24 = vld [vmem:[#allocation5 + $0x194] sm:$0xf0]  ;;  %v6976_v30 = vor.u32 %v8151_v13, %v6975_v12 }
  0x81   : > { %2669 = vmatpush.bf16.msra.mxu1 %v6904_v58  ;;  %8419 = vmatpush.bf16.msra.mxu3 %v6904_v58  ;;  %v7055_v58 = vld [vmem:[#allocation5 + $0x1b0] sm:$0xf]  ;;  %v7176_v25 = vor.u32 %v8201_v21, %v7175_v17  ;;  %v6967_v32 = vld [vmem:[#allocation5 + $0x100] sm:$0xf]  ;;  %v8149_v33 = vld [vmem:[#allocation5 + $0x104] sm:$0xf0] }
  0x82   : > { %v7056_v5 = vor.u32 %v8171_v59, %v7055_v58  ;;  %v6479_v36 = vld [vmem:[%s9122_s18 + $0xf0] sm:$0xf]  ;;  %v8033_v37 = vld [vmem:[%s9122_s18 + $0x128] sm:$0xf0]  ;;  %v6781_v43 = vld [vmem:[%s9122_s18 + $0x384] sm:$0xf0] }
  0x83   : > { %2621 = vmatmul.bf16.vlgmr.msra.gmra.mxu0 %v9154_v3  ;;  %2646 = vmatmul.bf16.vlgmr.msra.gmra.mxu2 %v9156_v4  ;;  %v8101_v42 = vld [vmem:[%s9122_s18 + $0x34c] sm:$0xf]  ;;  %v9194_v46 = vor.u32 %v8033_v37, %v6479_v36  ;;  %v7095_v50 = vld [vmem:[#allocation5 + $0x200] sm:$0xf]  ;;  %v8181_v51 = vld [vmem:[#allocation5 + $0x204] sm:$0xf0] }
  0x84   : > { %2809 = vmatpush.bf16.msrb.mxu0 %v7152_v62  ;;  %2670 = vmatmul.bf16.vlgmr.msra.gmra.mxu1 %v9158_v8  ;;  %v9174_v62 = vor.u32 %v8018_v39, %v6419_v38  ;;  %v6779_v38 = vld [vmem:[%s9122_s18 + $0x348] sm:$0xf]  ;;  %v8108_v39 = vld [vmem:[%s9122_s18 + $0x380] sm:$0xf0]  ;;  %v7279_v52 = vld [vmem:[#allocation5 + $0x370] sm:$0xf]  ;;  %v7096_v53 = vor.u32 %v8181_v51, %v7095_v50 }
  0x85   : > { %2858 = vmatpush.bf16.msrb.mxu1 %v7216_v63  ;;  %2695 = vmatmul.bf16.vlgmr.msra.gmra.mxu3 %v9160_v9  ;;  %v9176_v63 = vor.u32 %v8093_v49, %v6719_v40  ;;  %v8026_v40 = vld [vmem:[%s9122_s18 + $0xf4] sm:$0xf]  ;;  %v9196_v47 = vor.u32 %v8108_v39, %v6779_v38  ;;  %v9200_v49 = vor.u32 %v8101_v42, %v6781_v43  ;;  %v8197_v56 = vld [vmem:[#allocation5 + $0x284] sm:$0xf0]  ;;  %v7343_v59 = vld [vmem:[#allocation5 + $0x3f0] sm:$0xf] }
  0x86   : > { %2711 = vmatpush.bf16.msrb.mxu2 %v7024_v10  ;;  %2760 = vmatpush.bf16.msrb.mxu3 %v7088_v11  ;;  %v7047_v10 = vld [vmem:[#allocation5 + $0x1a0] sm:$0xf]  ;;  %v8169_v11 = vld [vmem:[#allocation5 + $0x1a4] sm:$0xf0]  ;;  %v8041_v6 = vld [vmem:[%s9122_s18 + $0x16c] sm:$0xf] }
  0x87   : > { %v7048_v19 = vor.u32 %v8169_v11, %v7047_v10  ;;  %11827 = vst [vmem:[#allocation21_spill] sm:$0xff] %v9200_v49  ;;  %v6367_v7 = vld [vmem:[%s9122_s18 + $0x8] sm:$0xf]  ;;  %v8004_v10 = vld [vmem:[%s9122_s18 + $0x40] sm:$0xf0]  ;;  %s429_s3 = scalar_lea.vmem [#allocation13], %s6355_s0 }
  0x88   : > { %2810 = vmatpush.bf16.msrb.mxu0 %v7144_v14  ;;  %v7039_v14 = vld [vmem:[#allocation5 + $0x190] sm:$0xf]  ;;  %v6541_v11 = vld [vmem:[%s9122_s18 + $0x1a4] sm:$0xf0]  ;;  %v7997_v12 = vld [vmem:[%s9122_s18 + $0xc] sm:$0xf] }
  0x89   : > { %2859 = vmatpush.bf16.msrb.mxu1 %v7208_v15  ;;  %v7111_v15 = vld [vmem:[#allocation5 + $0x220] sm:$0xf]  ;;  %v7040_v31 = vor.u32 %v8167_v24, %v7039_v14  ;;  %v6369_v13 = vld [vmem:[%s9122_s18 + $0x44] sm:$0xf0]  ;;  %v8012_v36 = vld [vmem:[%s9122_s18 + $0x84] sm:$0xf] }
  0x8a   : > { %2712 = vmatpush.bf16.msrb.mxu2 %v7016_v22  ;;  %2761 = vmatpush.bf16.msrb.mxu3 %v7080_v23  ;;  %v7112_v20 = vor.u32 %v8185_v16, %v7111_v15  ;;  %v7103_v22 = vld [vmem:[#allocation5 + $0x210] sm:$0xf]  ;;  %v8183_v23 = vld [vmem:[#allocation5 + $0x214] sm:$0xf0]  ;;  %v9216_v15 = vor.u32 %v8004_v10, %v6367_v7  ;;  %v9218_v16 = vor.u32 %v8041_v6, %v6541_v11  ;;  %v8225_v24 = vld [vmem:[#allocation5 + $0x364] sm:$0xf0] }
  0x8b   : > { %v7104_v28 = vor.u32 %v8183_v23, %v7103_v22  ;;  %v9220_v17 = vor.u32 %v7997_v12, %v6369_v13  ;;  %v8275_v22 = vld [vmem:[#allocation5 + $0x4f4] sm:$0xf0]  ;;  %v7271_v23 = vld [vmem:[#allocation5 + $0x360] sm:$0xf]  ;;  %v8257_v43 = vld [vmem:[#allocation5 + $0x464] sm:$0xf0] }
  0x8c   : > { %2811 = vmatpush.bf16.msrb.mxu0 %v7136_v26  ;;  %v7167_v26 = vld [vmem:[#allocation5 + $0x290] sm:$0xf]  ;;  %v6429_v37 = vld [vmem:[%s9122_s18 + $0xbc] sm:$0xf0]  ;;  %v8273_v50 = vld [vmem:[#allocation5 + $0x4e4] sm:$0xf0] }
  0x8d   : > { %2860 = vmatpush.bf16.msrb.mxu1 %v7200_v27  ;;  %v8199_v27 = vld [vmem:[#allocation5 + $0x294] sm:$0xf0]  ;;  %v7399_v42 = vld [vmem:[#allocation5 + $0x460] sm:$0xf]  ;;  %v7263_v51 = vld [vmem:[#allocation5 + $0x350] sm:$0xf] }
  0x8e   : > { %2713 = vmatpush.bf16.msrb.mxu2 %v7008_v34  ;;  %2762 = vmatpush.bf16.msrb.mxu3 %v7072_v35  ;;  %v7168_v29 = vor.u32 %v8199_v27, %v7167_v26  ;;  %v7031_v34 = vld [vmem:[#allocation5 + $0x180] sm:$0xf]  ;;  %v8165_v35 = vld [vmem:[#allocation5 + $0x184] sm:$0xf0]  ;;  %v7272_v26 = vor.u32 %v8225_v24, %v7271_v23  ;;  %v8027_v6 = vld [vmem:[%s9122_s18 + $0xfc] sm:$0xf] }
  0x8f   : > { %v7032_v45 = vor.u32 %v8165_v35, %v7031_v34  ;;  %v7335_v27 = vld [vmem:[#allocation5 + $0x3e0] sm:$0xf]  ;;  %v8019_v34 = vld [vmem:[%s9122_s18 + $0xb8] sm:$0xf0]  ;;  %v6489_v7 = vld [vmem:[%s9122_s18 + $0x134] sm:$0xf0] }
  0x90   : > { %2812 = vmatpush.bf16.msrb.mxu0 %v7128_v41  ;;  %v6481_v41 = vld [vmem:[%s9122_s18 + $0x12c] sm:$0xf0]  ;;  %v6601_v35 = vld [vmem:[%s9122_s18 + $0x21c] sm:$0xf0]  ;;  %v9260_v13 = vor.u32 %v8027_v6, %v6489_v7  ;;  %v8221_v24 = vld [vmem:[#allocation5 + $0x344] sm:$0xf0] }
  0x91   : > { %2861 = vmatpush.bf16.msrb.mxu1 %v7192_v44  ;;  %v6968_v44 = vor.u32 %v8149_v33, %v6967_v32  ;;  %v9198_v48 = vor.u32 %v8026_v40, %v6481_v41  ;;  %v8056_v32 = vld [vmem:[%s9122_s18 + $0x1e4] sm:$0xf]  ;;  %v6427_v33 = vld [vmem:[%s9122_s18 + $0x80] sm:$0xf]  ;;  %v9240_v41 = vor.u32 %v8012_v36, %v6429_v37  ;;  %v8042_v36 = vld [vmem:[%s9122_s18 + $0x174] sm:$0xf] }
  0x92   : > { %2714 = vmatpush.bf16.msrb.mxu2 %v7000_v54  ;;  %2763 = vmatpush.bf16.msrb.mxu3 %v7064_v55  ;;  %v8227_v54 = vld [vmem:[#allocation5 + $0x374] sm:$0xf0]  ;;  %v7159_v55 = vld [vmem:[#allocation5 + $0x280] sm:$0xf]  ;;  %v9236_v39 = vor.u32 %v8019_v34, %v6427_v33  ;;  %v9238_v40 = vor.u32 %v8056_v32, %v6601_v35  ;;  %11830 = vst [vmem:[#allocation24_spill] sm:$0xff] %v9260_v13  ;;  %s6204_s24 = sshll.u32 %s429_s3, 4  ;;  %s6205_s24 = int_to_ptr.vmem [resolvable:$true] %s6204_s24 }
  0x93   : > { %2626 = vmatmul.bf16.gmra.mxu0 %v9174_v62  ;;  %2651 = vmatmul.bf16.gmra.mxu2 %v9176_v63  ;;  %v7280_v57 = vor.u32 %v8227_v54, %v7279_v52  ;;  %v7160_v58 = vor.u32 %v8197_v56, %v7159_v55  ;;  %11828 = vst [vmem:[#allocation22_spill] sm:$0xff] %v9240_v41  ;;  %v8223_v52 = vld [vmem:[#allocation5 + $0x354] sm:$0xf0]  ;;  %v7327_v55 = vld [vmem:[#allocation5 + $0x3d0] sm:$0xf]  ;;  %s6206_s10 = sshll.u32 %s6202_s23, 4  ;;  %s6207_s10 = int_to_ptr.hbm [resolvable:$true] %s6206_s10 }
  0x94   : > { %2813 = vmatpush.bf16.msrb.mxu0 %v7120_v60  ;;  %2675 = vmatmul.bf16.gmra.mxu1 %v9178_v0  ;;  %v8243_v60 = vld [vmem:[#allocation5 + $0x3f4] sm:$0xf0]  ;;  %v7264_v54 = vor.u32 %v8223_v52, %v7263_v51  ;;  %v7255_v23 = vld [vmem:[#allocation5 + $0x340] sm:$0xf]  ;;  %v6435_v32 = vld [vmem:[%s9122_s18 + $0x88] sm:$0xf] }
  0x95   : > { %2862 = vmatpush.bf16.msrb.mxu1 %v7184_v61  ;;  %2700 = vmatmul.bf16.gmra.mxu3 %v9180_v1  ;;  %v7344_v61 = vor.u32 %v8243_v60, %v7343_v59  ;;  %v8239_v56 = vld [vmem:[#allocation5 + $0x3d4] sm:$0xf0]  ;;  %v8034_v59 = vld [vmem:[%s9122_s18 + $0x130] sm:$0xf0]  ;;  %v6375_v60 = vld [vmem:[%s9122_s18 + $0x10] sm:$0xf] }
  0x96   : > { %2715 = vmatpush.bf16.msrb.mxu2 %v6992_v2  ;;  %2764 = vmatpush.bf16.msrb.mxu3 %v7056_v5  ;;  %v6539_v2 = vld [vmem:[%s9122_s18 + $0x168] sm:$0xf]  ;;  %v8048_v5 = vld [vmem:[%s9122_s18 + $0x1a0] sm:$0xf0]  ;;  %v8013_v34 = vld [vmem:[%s9122_s18 + $0x8c] sm:$0xf] }
  0x97   : > { %v9214_v14 = vor.u32 %v8048_v5, %v6539_v2  ;;  %v7998_v2 = vld [vmem:[%s9122_s18 + $0x14] sm:$0xf]  ;;  %v6377_v5 = vld [vmem:[%s9122_s18 + $0x4c] sm:$0xf0]  ;;  %v8020_v33 = vld [vmem:[%s9122_s18 + $0xc0] sm:$0xf0] }
  0x98   : > { %2814 = vmatpush.bf16.msrb.mxu0 %v7112_v20  ;;  %v7471_v20 = vld [vmem:[#allocation5 + $0x4f0] sm:$0xf]  ;;  %v9258_v12 = vor.u32 %v7998_v2, %v6377_v5  ;;  %v6437_v35 = vld [vmem:[%s9122_s18 + $0xc4] sm:$0xf0]  ;;  %v7447_v52 = vld [vmem:[#allocation5 + $0x4c0] sm:$0xf] }
  0x99   : > { %2863 = vmatpush.bf16.msrb.mxu1 %v7176_v25  ;;  %v7472_v25 = vor.u32 %v8275_v22, %v7471_v20  ;;  %v7455_v20 = vld [vmem:[#allocation5 + $0x4d0] sm:$0xf]  ;;  %v8271_v22 = vld [vmem:[#allocation5 + $0x4d4] sm:$0xf0]  ;;  %v8253_v51 = vld [vmem:[#allocation5 + $0x444] sm:$0xf0] }
  0x9a   : > { %2716 = vmatpush.bf16.msrb.mxu2 %v6984_v18  ;;  %2765 = vmatpush.bf16.msrb.mxu3 %v7048_v19  ;;  %v7407_v18 = vld [vmem:[#allocation5 + $0x470] sm:$0xf]  ;;  %v8259_v19 = vld [vmem:[#allocation5 + $0x474] sm:$0xf0]  ;;  %11829 = vst [vmem:[#allocation23_spill] sm:$0xff] %v9258_v12  ;;  %s6192_s17 = scalar_lea.sflag [#allocation4], %s9118_s5 }
  0x9b   : > { %v7408_v21 = vor.u32 %v8259_v19, %v7407_v18  ;;  %v7391_v18 = vld [vmem:[#allocation5 + $0x450] sm:$0xf]  ;;  %v8255_v19 = vld [vmem:[#allocation5 + $0x454] sm:$0xf0]  ;;  %v8035_v2 = vld [vmem:[%s9122_s18 + $0x138] sm:$0xf0] }
  0x9c   : > { %2815 = vmatpush.bf16.msrb.mxu0 %v7104_v28  ;;  %v8241_v28 = vld [vmem:[#allocation5 + $0x3e4] sm:$0xf0]  ;;  %v6549_v37 = vld [vmem:[%s9122_s18 + $0x1ac] sm:$0xf0]  ;;  %v8028_v5 = vld [vmem:[%s9122_s18 + $0x104] sm:$0xf] }
  0x9d   : > { %2864 = vmatpush.bf16.msrb.mxu1 %v7168_v29  ;;  %v7336_v29 = vor.u32 %v8241_v28, %v7335_v27  ;;  %v7319_v27 = vld [vmem:[#allocation5 + $0x3c0] sm:$0xf]  ;;  %v8237_v28 = vld [vmem:[#allocation5 + $0x3c4] sm:$0xf0]  ;;  %v8235_v7 = vld [vmem:[#allocation5 + $0x3b4] sm:$0xf0] }
  0x9e   : > { %2717 = vmatpush.bf16.msrb.mxu2 %v6976_v30  ;;  %2766 = vmatpush.bf16.msrb.mxu3 %v7040_v31  ;;  %v6599_v30 = vld [vmem:[%s9122_s18 + $0x1e0] sm:$0xf]  ;;  %v8063_v31 = vld [vmem:[%s9122_s18 + $0x218] sm:$0xf0]  ;;  %s8857_s13 = sshra.s32 %s6207_s10, 4  ;;  %s8858_s13 = int_to_ptr.hbm [resolvable:$true] %s8857_s13 }
  0x9f   : > { %v9234_v38 = vor.u32 %v8063_v31, %v6599_v30  ;;  %v6547_v30 = vld [vmem:[%s9122_s18 + $0x170] sm:$0xf]  ;;  %v8049_v31 = vld [vmem:[%s9122_s18 + $0x1a8] sm:$0xf0]  ;;  %s8859_s9 = scalar_lea.hbm %s8858_s13, 8  ;;  %p8864_p9 = scmp.lt.s32.totalorder %s8858_s13, %s11721_s8 }
  0xa0   : > { %2816 = vmatpush.bf16.msrb.mxu0 %v7096_v53  ;;  %p8860_p1 = scmp.ne.s32.totalorder %s8858_s13, %s8859_s9 }
  0xa1   : > { %2865 = vmatpush.bf16.msrb.mxu1 %v7160_v58  ;;  %v6487_v58 = vld [vmem:[%s9122_s18 + $0xf8] sm:$0xf] }
  0xa2   : > { %2718 = vmatpush.bf16.msrb.mxu2 %v6968_v44  ;;  %2767 = vmatpush.bf16.msrb.mxu3 %v7032_v45  ;;  %v7463_v44 = vld [vmem:[#allocation5 + $0x4e0] sm:$0xf]  ;;  %v7400_v45 = vor.u32 %v8257_v43, %v7399_v42  ;;  %v9254_v10 = vor.u32 %v8034_v59, %v6487_v58  ;;  %v9274_v42 = vor.u32 %v8049_v31, %v6547_v30  ;;  %v7247_v59 = vld [vmem:[#allocation5 + $0x330] sm:$0xf]  ;;  %v8267_v30 = vld [vmem:[#allocation5 + $0x4b4] sm:$0xf0]  ;;  %p8861_p4 = pnand %p8860_p1, %p9067_p5 }
  0xa3   : > { %2631 = vmatmul.bf16.gmra.mxu0 %v9194_v46  ;;  %2656 = vmatmul.bf16.gmra.mxu2 %v9196_v47  ;;  %v7464_v53 = vor.u32 %v8273_v50, %v7463_v44  ;;  %v9276_v43 = vor.u32 %v8020_v33, %v6435_v32  ;;  %v9278_v44 = vor.u32 %v8013_v34, %v6437_v35  ;;  %v7383_v50 = vld [vmem:[#allocation5 + $0x440] sm:$0xf]  ;;  %v8079_v35 = vld [vmem:[%s9122_s18 + $0x298] sm:$0xf0] }
  0xa4   : > { %2680 = vmatmul.bf16.gmra.mxu1 %v9198_v48  ;;  %3005 = vmatpush.bf16.msra.mxu0 %v7408_v21  ;;  %v7392_v21 = vor.u32 %v8255_v19, %v7391_v18  ;;  %v6495_v58 = vld [vmem:[%s9122_s18 + $0x100] sm:$0xf]  ;;  %v8057_v19 = vld [vmem:[%s9122_s18 + $0x1ec] sm:$0xf]  ;;  %p8862_p8 = pneg %p8861_p4 }
  0xa5   : > { %2705 = vmatmul.bf16.gmra.mxu3 %v9200_v49  ;;  %3054 = vmatpush.bf16.msra.mxu1 %v7472_v25  ;;  %v7456_v25 = vor.u32 %v8271_v22, %v7455_v20  ;;  %11831 = vst [vmem:[#allocation25_spill] sm:$0xff] %v9276_v43  ;;  %v6497_v18 = vld [vmem:[%s9122_s18 + $0x13c] sm:$0xf0]  ;;  %v6609_v20 = vld [vmem:[%s9122_s18 + $0x224] sm:$0xf0] }
  0xa6   : > { %2907 = vmatpush.bf16.msra.mxu2 %v7280_v57  ;;  %2956 = vmatpush.bf16.msra.mxu3 %v7344_v61  ;;  %v7328_v57 = vor.u32 %v8239_v56, %v7327_v55  ;;  %v8005_v61 = vld [vmem:[%s9122_s18 + $0x48] sm:$0xf0]  ;;  %11832 = vst [vmem:[#allocation26_spill] sm:$0xff] %v9278_v44  ;;  %v6607_v56 = vld [vmem:[%s9122_s18 + $0x1e8] sm:$0xf] }
  0xa7   : > { %v9256_v11 = vor.u32 %v8005_v61, %v6375_v60  ;;  %v8219_v60 = vld [vmem:[#allocation5 + $0x334] sm:$0xf0]  ;;  %v7311_v61 = vld [vmem:[#allocation5 + $0x3b0] sm:$0xf]  ;;  %v799_v31 = vld [vmem:[#allocation7] sm:$0x3] }
  0xa8   : > { %3006 = vmatpush.bf16.msra.mxu0 %v7400_v45  ;;  %v9280_v45 = vor.u32 %v8042_v36, %v6549_v37  ;;  %v7248_v6 = vor.u32 %v8219_v60, %v7247_v59  ;;  %v9306_v33 = vperm.slane %v799_v31, 0  ;;  %v6667_v34 = vld [vmem:[%s9122_s18 + $0x260] sm:$0xf]  ;;  %v6555_v36 = vld [vmem:[%s9122_s18 + $0x178] sm:$0xf] }
  0xa9   : > { %3055 = vmatpush.bf16.msra.mxu1 %v7464_v53  ;;  %v7384_v53 = vor.u32 %v8253_v51, %v7383_v50  ;;  %v7239_v37 = vld [vmem:[#allocation5 + $0x320] sm:$0xf]  ;;  %v8217_v50 = vld [vmem:[#allocation5 + $0x324] sm:$0xf0]  ;;  %v9316_v60 = vor.u32 %v8079_v35, %v6667_v34 }
  0xaa   : > { %2908 = vmatpush.bf16.msra.mxu2 %v7272_v26  ;;  %2957 = vmatpush.bf16.msra.mxu3 %v7336_v29  ;;  %v7256_v26 = vor.u32 %v8221_v24, %v7255_v23  ;;  %v7320_v29 = vor.u32 %v8237_v28, %v7319_v27  ;;  %11833 = vst [vmem:[#allocation27_spill] sm:$0xff] %v9280_v45  ;;  %v8251_v27 = vld [vmem:[#allocation5 + $0x434] sm:$0xf0]  ;;  %v7439_v28 = vld [vmem:[#allocation5 + $0x4b0] sm:$0xf] }
  0xab   : > { %v9296_v23 = vor.u32 %v8035_v2, %v6495_v58  ;;  %v9298_v24 = vor.u32 %v8028_v5, %v6497_v18  ;;  %v7440_v32 = vor.u32 %v8267_v30, %v7439_v28  ;;  %v7303_v51 = vld [vmem:[#allocation5 + $0x3a0] sm:$0xf]  ;;  %v8265_v28 = vld [vmem:[#allocation5 + $0x4a4] sm:$0xf0] }
  0xac   : > { %3007 = vmatpush.bf16.msra.mxu0 %v7392_v21  ;;  %v7312_v21 = vor.u32 %v8235_v7, %v7311_v61  ;;  %v6669_v58 = vld [vmem:[%s9122_s18 + $0x29c] sm:$0xf0] }
  0xad   : > { %3056 = vmatpush.bf16.msra.mxu1 %v7456_v25  ;;  %11834 = vst [vmem:[#allocation28_spill] sm:$0xff] %v9296_v23  ;;  %v9300_v25 = vor.u32 %v8057_v19, %v6609_v20  ;;  %v7367_v20 = vld [vmem:[#allocation5 + $0x420] sm:$0xf] }
  0xae   : > { %2909 = vmatpush.bf16.msra.mxu2 %v7264_v54  ;;  %2958 = vmatpush.bf16.msra.mxu3 %v7328_v57  ;;  %v8269_v54 = vld [vmem:[#allocation5 + $0x4c4] sm:$0xf0]  ;;  %v8064_v57 = vld [vmem:[%s9122_s18 + $0x220] sm:$0xf0]  ;;  %11835 = vst [vmem:[#allocation29_spill] sm:$0xff] %v9298_v24 }
  0xaf   : > { %v7448_v55 = vor.u32 %v8269_v54, %v7447_v52  ;;  %v9294_v22 = vor.u32 %v8064_v57, %v6607_v56  ;;  %11836 = vst [vmem:[#allocation30_spill] sm:$0xff] %v9300_v25  ;;  %v8050_v52 = vld [vmem:[%s9122_s18 + $0x1b0] sm:$0xf0]  ;;  %v7240_v54 = vor.u32 %v8217_v50, %v7239_v37  ;;  %v6557_v56 = vld [vmem:[%s9122_s18 + $0x1b4] sm:$0xf0] }
  0xb0   : > { %3008 = vmatpush.bf16.msra.mxu0 %v7384_v53  ;;  %v8043_v53 = vld [vmem:[%s9122_s18 + $0x17c] sm:$0xf]  ;;  %v8072_v57 = vld [vmem:[%s9122_s18 + $0x264] sm:$0xf]  ;;  %v9318_v61 = vor.u32 %v8050_v52, %v6555_v36  ;;  %v6727_v50 = vld [vmem:[%s9122_s18 + $0x2d8] sm:$0xf] }
  0xb1   : > { %3057 = vmatpush.bf16.msra.mxu1 %v7448_v55  ;;  %v8233_v55 = vld [vmem:[#allocation5 + $0x3a4] sm:$0xf0]  ;;  %v9320_v5 = vor.u32 %v8043_v53, %v6557_v56  ;;  %v8215_v52 = vld [vmem:[#allocation5 + $0x314] sm:$0xf0]  ;;  %v7295_v56 = vld [vmem:[#allocation5 + $0x390] sm:$0xf] }
  0xb2   : > { %2910 = vmatpush.bf16.msra.mxu2 %v7256_v26  ;;  %2959 = vmatpush.bf16.msra.mxu3 %v7320_v29  ;;  %v7375_v26 = vld [vmem:[#allocation5 + $0x430] sm:$0xf]  ;;  %v7304_v59 = vor.u32 %v8233_v55, %v7303_v51  ;;  %11837 = vst [vmem:[#allocation31_spill] sm:$0xff] %v9318_v61 }
  0xb3   : > { %2636 = vmatmul.bf16.gmra.mxu0 %v9214_v14  ;;  %2719 = vmatmul.bf16.vlgmr.msrb.gmra.mxu2 %v9216_v15  ;;  %v7376_v29 = vor.u32 %v8251_v27, %v7375_v26  ;;  %11838 = vst [vmem:[#allocation32_spill] sm:$0xff] %v9320_v5  ;;  %v7431_v26 = vld [vmem:[#allocation5 + $0x4a0] sm:$0xf]  ;;  %v7231_v51 = vld [vmem:[#allocation5 + $0x310] sm:$0xf] }
  0xb4   : > { %2685 = vmatmul.bf16.gmra.mxu1 %v9218_v16  ;;  %v7432_v30 = vor.u32 %v8265_v28, %v7431_v26  ;;  %v7232_v55 = vor.u32 %v8215_v52, %v7231_v51  ;;  %v8213_v28 = vld [vmem:[#allocation5 + $0x304] sm:$0xf0]  ;;  %v7287_v52 = vld [vmem:[#allocation5 + $0x380] sm:$0xf] }
  0xb5   : > { %2768 = vmatmul.bf16.vlgmr.msrb.gmra.mxu3 %v9220_v17  ;;  %3009 = vmatpush.bf16.msra.mxu0 %v7376_v29 }
  0xb6   : > { %2911 = vmatpush.bf16.msra.mxu2 %v7248_v6  ;;  %2960 = vmatpush.bf16.msra.mxu3 %v7312_v21  ;;  %v9322_v6 = vor.u32 %v8072_v57, %v6669_v58  ;;  %v8249_v21 = vld [vmem:[#allocation5 + $0x424] sm:$0xf0]  ;;  %v8231_v57 = vld [vmem:[#allocation5 + $0x394] sm:$0xf0]  ;;  %v6615_v58 = vld [vmem:[%s9122_s18 + $0x1f0] sm:$0xf] }
  0xb7   : > { %3058 = vmatpush.bf16.msra.mxu1 %v7440_v32  ;;  %v7368_v27 = vor.u32 %v8249_v21, %v7367_v20  ;;  %v8087_v20 = vld [vmem:[%s9122_s18 + $0x2dc] sm:$0xf]  ;;  %v6729_v21 = vld [vmem:[%s9122_s18 + $0x314] sm:$0xf0] }
  0xb8   : > { %11839 = vst [vmem:[#allocation33_spill] sm:$0xff] %v9322_v6  ;;  %v9352_v51 = vor.u32 %v8087_v20, %v6729_v21 }
  0xb9   : > { %3010 = vmatpush.bf16.msra.mxu0 %v7368_v27  ;;  %v7223_v27 = vld [vmem:[#allocation5 + $0x300] sm:$0xf] }
  0xba   : > { %2912 = vmatpush.bf16.msra.mxu2 %v7240_v54  ;;  %2961 = vmatpush.bf16.msra.mxu3 %v7304_v59  ;;  %v8094_v54 = vld [vmem:[%s9122_s18 + $0x310] sm:$0xf0]  ;;  %v8065_v59 = vld [vmem:[%s9122_s18 + $0x228] sm:$0xf0]  ;;  %11842 = vst [vmem:[#allocation36_spill] sm:$0xff] %v9352_v51 }
  0xbb   : > { %3059 = vmatpush.bf16.msra.mxu1 %v7432_v30 }
  0xbe   : > { %2913 = vmatpush.bf16.msra.mxu2 %v7232_v55 }
  0xc3   : > { %2641 = vmatmul.bf16.gmra.mxu0 %v9234_v38  ;;  %2724 = vmatmul.bf16.gmra.mxu2 %v9236_v39 }
  0xc4   : > { %2690 = vmatmul.bf16.gmra.mxu1 %v9238_v40 }
  0xc5   : > { %2773 = vmatmul.bf16.gmra.mxu3 %v9240_v41  ;;  %v8293_v41 = vld [vmem:[#allocation5 + $0x584] sm:$0xf0] }
  0xd3   : > { %2729 = vmatmul.bf16.gmra.mxu2 %v9254_v10  ;;  %2817 = vmatmul.bf16.vlgmr.msrb.gmra.mxu0 %v9256_v11 }
  0xd4   : > { %2866 = vmatmul.bf16.vlgmr.msrb.gmra.mxu1 %v9258_v12 }
  0xd5   : > { %2778 = vmatmul.bf16.gmra.mxu3 %v9260_v13 }
  0xe3   : > { %2734 = vmatmul.bf16.gmra.mxu2 %v9274_v42  ;;  %2822 = vmatmul.bf16.gmra.mxu0 %v9276_v43 }
  0xe4   : > { %2871 = vmatmul.bf16.gmra.mxu1 %v9278_v44 }
  0xe5   : > { %2783 = vmatmul.bf16.gmra.mxu3 %v9280_v45 }
  0xf3   : > { %2739 = vmatmul.bf16.gmra.mxu2 %v9294_v22  ;;  %2827 = vmatmul.bf16.gmra.mxu0 %v9296_v23 }
  0xf4   : > { %2876 = vmatmul.bf16.gmra.mxu1 %v9298_v24  ;;  %v7999_v24 = vld [vmem:[%s9122_s18 + $0x1c] sm:$0xf] }
  0xf5   : > { %2788 = vmatmul.bf16.gmra.mxu3 %v9300_v25  ;;  %v6385_v25 = vld [vmem:[%s9122_s18 + $0x54] sm:$0xf0] }
  0xf6   : > { %v9416_v23 = vor.u32 %v7999_v24, %v6385_v25  ;;  %v8323_v24 = vld [vmem:[#allocation5 + $0x674] sm:$0xf0]  ;;  %v7727_v25 = vld [vmem:[#allocation5 + $0x6f0] sm:$0xf] }
  0xf8   : > { %11850 = vst [vmem:[#allocation44_spill] sm:$0xff] %v9416_v23 }
 0x100   : > { %v2622_v2 = vpop.f32.mrf.mxu0 }
 0x101   : > { %v2623_v7 = vadd.f32 %v2622_v2, %v9306_v33  ;;  %v2671_v18 = vpop.f32.mrf.mxu1  ;;  %v8058_v2 = vld [vmem:[%s9122_s18 + $0x1f4] sm:$0xf] }
 0x103   : > { %v9325_v19 = vadd.f32 %v2671_v18, %v2623_v7  ;;  %2744 = vmatmul.bf16.gmra.mxu2 %v9316_v60  ;;  %2832 = vmatmul.bf16.gmra.mxu0 %v9318_v61  ;;  %v7296_v7 = vor.u32 %v8231_v57, %v7295_v56  ;;  %v6617_v18 = vld [vmem:[%s9122_s18 + $0x22c] sm:$0xf0]  ;;  %v8229_v56 = vld [vmem:[#allocation5 + $0x384] sm:$0xf0] }
 0x104   : > { %2881 = vmatmul.bf16.gmra.mxu1 %v9320_v5 }
 0x105   : > { %2793 = vmatmul.bf16.gmra.mxu3 %v9322_v6 }
 0x106   : > { %v2647_v29 = vpop.f32.mrf.mxu2  ;;  %2962 = vmatpush.bf16.msra.mxu3 %v7296_v7 }
 0x107   : > { %v2648_v31 = vadd.f32 %v2647_v29, %v9306_v33 }
 0x108   : > { %v2696_v32 = vpop.f32.mrf.mxu3  ;;  %v2624_v34 = vpop.f32.mrf.mxu0 }
 0x109   : > { %v2625_v35 = vadd.f32 %v2624_v34, %v9306_v33  ;;  %v2673_v36 = vpop.f32.mrf.mxu1  ;;  %v9333_v37 = vadd.f32 %v2696_v32, %v2648_v31  ;;  %v9346_v31 = vor.u32 %v8094_v54, %v6727_v50  ;;  %v9348_v32 = vor.u32 %v8065_v59, %v6615_v58  ;;  %v7359_v50 = vld [vmem:[#allocation5 + $0x410] sm:$0xf]  ;;  %v8247_v54 = vld [vmem:[#allocation5 + $0x414] sm:$0xf0] }
 0x10a   : > { %v7224_v34 = vor.u32 %v8213_v28, %v7223_v27  ;;  %v7423_v58 = vld [vmem:[#allocation5 + $0x490] sm:$0xf]  ;;  %v7360_v59 = vor.u32 %v8247_v54, %v7359_v50  ;;  %v6677_v50 = vld [vmem:[%s9122_s18 + $0x2a4] sm:$0xf0]  ;;  %v8102_v54 = vld [vmem:[%s9122_s18 + $0x354] sm:$0xf] }
 0x10b   : > { %v9336_v53 = vadd.f32 %v2673_v36, %v2625_v35  ;;  %11840 = vst [vmem:[#allocation34_spill] sm:$0xff] %v9348_v32  ;;  %v9350_v36 = vor.u32 %v8058_v2, %v6617_v18  ;;  %v8263_v2 = vld [vmem:[#allocation5 + $0x494] sm:$0xf0] }
 0x10c   : > { %2914 = vmatpush.bf16.msra.mxu2 %v7224_v34  ;;  %v7424_v20 = vor.u32 %v8263_v2, %v7423_v58  ;;  %3011 = vmatpush.bf16.msra.mxu0 %v7360_v59  ;;  %v6789_v58 = vld [vmem:[%s9122_s18 + $0x38c] sm:$0xf0] }
 0x10d   : > { %11841 = vst [vmem:[#allocation35_spill] sm:$0xff] %v9350_v36 }
 0x10e   : > { %v2649_v26 = vpop.f32.mrf.mxu2  ;;  %3060 = vmatpush.bf16.msra.mxu1 %v7424_v20 }
 0x10f   : > { %v2650_v29 = vadd.f32 %v2649_v26, %v9306_v33  ;;  %v7288_v26 = vor.u32 %v8229_v56, %v7287_v52  ;;  %v6787_v52 = vld [vmem:[%s9122_s18 + $0x350] sm:$0xf]  ;;  %v8109_v56 = vld [vmem:[%s9122_s18 + $0x388] sm:$0xf0] }
 0x110   : > { %v2698_v30 = vpop.f32.mrf.mxu3  ;;  %v2627_v35 = vpop.f32.mrf.mxu0  ;;  %v9378_v20 = vor.u32 %v8109_v56, %v6787_v52  ;;  %v7351_v52 = vld [vmem:[#allocation5 + $0x400] sm:$0xf]  ;;  %v8245_v56 = vld [vmem:[#allocation5 + $0x404] sm:$0xf0] }
 0x111   : > { %v2628_v55 = vadd.f32 %v2627_v35, %v9306_v33  ;;  %v2676_v57 = vpop.f32.mrf.mxu1  ;;  %v9355_v7 = vadd.f32 %v2698_v30, %v2650_v29  ;;  %2963 = vmatpush.bf16.msra.mxu3 %v7288_v26  ;;  %v8073_v26 = vld [vmem:[%s9122_s18 + $0x26c] sm:$0xf] }
 0x112   : > { %11843 = vst [vmem:[#allocation37_spill] sm:$0xff] %v9378_v20 }
 0x113   : > { %v9357_v5 = vadd.f32 %v2676_v57, %v2628_v55  ;;  %2749 = vmatmul.bf16.gmra.mxu2 %v9346_v31  ;;  %2837 = vmatmul.bf16.gmra.mxu0 %v9348_v32  ;;  %v6675_v55 = vld [vmem:[%s9122_s18 + $0x268] sm:$0xf]  ;;  %v8080_v57 = vld [vmem:[%s9122_s18 + $0x2a0] sm:$0xf0]  ;;  %v8307_v32 = vld [vmem:[#allocation5 + $0x5f4] sm:$0xf0] }
 0x114   : > { %2886 = vmatmul.bf16.gmra.mxu1 %v9350_v36 }
 0x115   : > { %2798 = vmatmul.bf16.gmra.mxu3 %v9352_v51 }
 0x116   : > { %v2652_v18 = vpop.f32.mrf.mxu2 }
 0x117   : > { %v2653_v21 = vadd.f32 %v2652_v18, %v9306_v33 }
 0x118   : > { %v2701_v27 = vpop.f32.mrf.mxu3  ;;  %v2629_v28 = vpop.f32.mrf.mxu0 }
 0x119   : > { %v2630_v29 = vadd.f32 %v2629_v28, %v9306_v33  ;;  %v2678_v30 = vpop.f32.mrf.mxu1  ;;  %v9365_v34 = vadd.f32 %v2701_v27, %v2653_v21  ;;  %v9380_v28 = vor.u32 %v8080_v57, %v6675_v55  ;;  %v9382_v27 = vor.u32 %v8073_v26, %v6677_v50  ;;  %v7415_v55 = vld [vmem:[#allocation5 + $0x480] sm:$0xf]  ;;  %v8261_v26 = vld [vmem:[#allocation5 + $0x484] sm:$0xf0] }
 0x11a   : > { %v7352_v57 = vor.u32 %v8245_v56, %v7351_v52  ;;  %v8095_v52 = vld [vmem:[%s9122_s18 + $0x318] sm:$0xf0] }
 0x11b   : > { %v9367_v35 = vadd.f32 %v2678_v30, %v2630_v29  ;;  %11844 = vst [vmem:[#allocation38_spill] sm:$0xff] %v9380_v28  ;;  %v9384_v29 = vor.u32 %v8102_v54, %v6789_v58  ;;  %v7416_v54 = vor.u32 %v8261_v26, %v7415_v55  ;;  %v8088_v55 = vld [vmem:[%s9122_s18 + $0x2e4] sm:$0xf]  ;;  %v7535_v26 = vld [vmem:[#allocation5 + $0x570] sm:$0xf] }
 0x11c   : > { %11845 = vst [vmem:[#allocation39_spill] sm:$0xff] %v9382_v27  ;;  %3012 = vmatpush.bf16.msra.mxu0 %v7352_v57  ;;  %v8006_v57 = vld [vmem:[%s9122_s18 + $0x50] sm:$0xf0] }
 0x11d   : > { %11846 = vst [vmem:[#allocation40_spill] sm:$0xff] %v9384_v29  ;;  %3061 = vmatpush.bf16.msra.mxu1 %v7416_v54  ;;  %v6737_v54 = vld [vmem:[%s9122_s18 + $0x31c] sm:$0xf0] }
 0x11e   : > { %v2654_v2 = vpop.f32.mrf.mxu2  ;;  %v9414_v45 = vor.u32 %v8088_v55, %v6737_v54 }
 0x11f   : > { %v2655_v59 = vadd.f32 %v2654_v2, %v9306_v33 }
 0x120   : > { %v2703_v18 = vpop.f32.mrf.mxu3  ;;  %v2632_v21 = vpop.f32.mrf.mxu0  ;;  %11849 = vst [vmem:[#allocation43_spill] sm:$0xff] %v9414_v45 }
 0x121   : > { %v2633_v30 = vadd.f32 %v2632_v21, %v9306_v33  ;;  %v2681_v36 = vpop.f32.mrf.mxu1  ;;  %v9387_v51 = vadd.f32 %v2703_v18, %v2655_v59 }
 0x123   : > { %v9389_v6 = vadd.f32 %v2681_v36, %v2633_v30  ;;  %2754 = vmatmul.bf16.gmra.mxu2 %v9378_v20  ;;  %2842 = vmatmul.bf16.gmra.mxu0 %v9380_v28  ;;  %v6735_v30 = vld [vmem:[%s9122_s18 + $0x2e0] sm:$0xf] }
 0x124   : > { %2891 = vmatmul.bf16.gmra.mxu1 %v9382_v27  ;;  %v7599_v27 = vld [vmem:[#allocation5 + $0x5f0] sm:$0xf]  ;;  %v9410_v44 = vor.u32 %v8095_v52, %v6735_v30 }
 0x125   : > { %2803 = vmatmul.bf16.gmra.mxu3 %v9384_v29  ;;  %v6383_v29 = vld [vmem:[%s9122_s18 + $0x18] sm:$0xf] }
 0x126   : > { %v2657_v50 = vpop.f32.mrf.mxu2  ;;  %11847 = vst [vmem:[#allocation41_spill] sm:$0xff] %v9410_v44 }
 0x127   : > { %v2658_v36 = vadd.f32 %v2657_v50, %v9306_v33  ;;  %v8291_v50 = vld [vmem:[#allocation5 + $0x574] sm:$0xf0] }
 0x128   : > { %v2706_v58 = vpop.f32.mrf.mxu3  ;;  %v2634_v2 = vpop.f32.mrf.mxu0  ;;  %v7536_v28 = vor.u32 %v8291_v50, %v7535_v26 }
 0x129   : > { %v2635_v59 = vadd.f32 %v2634_v2, %v9306_v33  ;;  %v2683_v18 = vpop.f32.mrf.mxu1  ;;  %v9397_v21 = vadd.f32 %v2706_v58, %v2658_v36  ;;  %v7600_v2 = vor.u32 %v8307_v32, %v7599_v27  ;;  %v8339_v27 = vld [vmem:[#allocation5 + $0x6f4] sm:$0xf0] }
 0x12a   : > { %3103 = vmatpush.bf16.msrb.mxu2 %v7536_v28  ;;  %v7728_v30 = vor.u32 %v8339_v27, %v7727_v25  ;;  %v6443_v25 = vld [vmem:[%s9122_s18 + $0x90] sm:$0xf] }
 0x12b   : > { %v9401_v56 = vadd.f32 %v2683_v18, %v2635_v59  ;;  %v9412_v59 = vor.u32 %v8006_v57, %v6383_v29  ;;  %3152 = vmatpush.bf16.msrb.mxu3 %v7600_v2 }
 0x12c   : > { %3250 = vmatpush.bf16.msrb.mxu1 %v7728_v30  ;;  %v6797_v30 = vld [vmem:[%s9122_s18 + $0x394] sm:$0xf0] }
 0x12d   : > { %11848 = vst [vmem:[#allocation42_spill] sm:$0xff] %v9412_v59 }
 0x12e   : > { %v2659_v61 = vpop.f32.mrf.mxu2 }
 0x12f   : > { %v2660_v36 = vadd.f32 %v2659_v61, %v9306_v33  ;;  %v7663_v61 = vld [vmem:[#allocation5 + $0x670] sm:$0xf] }
 0x130   : > { %v2708_v58 = vpop.f32.mrf.mxu3  ;;  %v2637_v18 = vpop.f32.mrf.mxu0  ;;  %v7664_v28 = vor.u32 %v8323_v24, %v7663_v61  ;;  %v7527_v61 = vld [vmem:[#allocation5 + $0x560] sm:$0xf] }
 0x131   : > { %v2638_v26 = vadd.f32 %v2637_v18, %v9306_v33  ;;  %v2686_v50 = vpop.f32.mrf.mxu1  ;;  %v9419_v12 = vadd.f32 %v2708_v58, %v2660_v36  ;;  %v6795_v58 = vld [vmem:[%s9122_s18 + $0x358] sm:$0xf]  ;;  %v8110_v18 = vld [vmem:[%s9122_s18 + $0x390] sm:$0xf0]  ;;  %v7591_v24 = vld [vmem:[#allocation5 + $0x5e0] sm:$0xf] }
 0x132   : > { %3201 = vmatpush.bf16.msrb.mxu0 %v7664_v28  ;;  %v8021_v28 = vld [vmem:[%s9122_s18 + $0xc8] sm:$0xf0] }
 0x133   : > { %v9421_v32 = vadd.f32 %v2686_v50, %v2638_v26  ;;  %2847 = vmatmul.bf16.gmra.mxu0 %v9410_v44  ;;  %2915 = vmatmul.bf16.vlgmr.msra.gmra.mxu2 %v9412_v59  ;;  %v8103_v50 = vld [vmem:[%s9122_s18 + $0x35c] sm:$0xf]  ;;  %v9442_v59 = vor.u32 %v8110_v18, %v6795_v58  ;;  %v8337_v58 = vld [vmem:[#allocation5 + $0x6e4] sm:$0xf0] }
 0x134   : > { %2896 = vmatmul.bf16.gmra.mxu1 %v9414_v45  ;;  %v6445_v45 = vld [vmem:[%s9122_s18 + $0xcc] sm:$0xf0]  ;;  %v9446_v13 = vor.u32 %v8103_v50, %v6797_v30 }
 0x135   : > { %2964 = vmatmul.bf16.vlgmr.msra.gmra.mxu3 %v9416_v23  ;;  %v8014_v23 = vld [vmem:[%s9122_s18 + $0x94] sm:$0xf]  ;;  %11851 = vst [vmem:[#allocation45_spill] sm:$0xff] %v9442_v59 }
 0x136   : > { %v2720_v29 = vpop.f32.mrf.mxu2  ;;  %11853 = vst [vmem:[#allocation47_spill] sm:$0xff] %v9446_v13  ;;  %v9448_v43 = vor.u32 %v8014_v23, %v6445_v45  ;;  %v8321_v45 = vld [vmem:[#allocation5 + $0x664] sm:$0xf0]  ;;  %v7719_v23 = vld [vmem:[#allocation5 + $0x6e0] sm:$0xf] }
 0x137   : > { %v2721_v52 = vadd.f32 %v2720_v29, %v9325_v19  ;;  %v8289_v19 = vld [vmem:[#allocation5 + $0x564] sm:$0xf0]  ;;  %v7720_v50 = vor.u32 %v8337_v58, %v7719_v23  ;;  %v8000_v23 = vld [vmem:[%s9122_s18 + $0x24] sm:$0xf]  ;;  %v8303_v58 = vld [vmem:[#allocation5 + $0x5d4] sm:$0xf0] }
 0x138   : > { %v2769_v55 = vpop.f32.mrf.mxu3  ;;  %v2639_v57 = vpop.f32.mrf.mxu0  ;;  %v7528_v27 = vor.u32 %v8289_v19, %v7527_v61  ;;  %v8305_v29 = vld [vmem:[#allocation5 + $0x5e4] sm:$0xf0]  ;;  %11854 = vst [vmem:[#allocation48_spill] sm:$0xff] %v9448_v43 }
 0x139   : > { %v2640_v54 = vadd.f32 %v2639_v57, %v9306_v33  ;;  %v2688_v2 = vpop.f32.mrf.mxu1  ;;  %v9429_v36 = vadd.f32 %v2769_v55, %v2721_v52  ;;  %v7592_v57 = vor.u32 %v8305_v29, %v7591_v24  ;;  %3251 = vmatpush.bf16.msrb.mxu1 %v7720_v50  ;;  %v8029_v50 = vld [vmem:[%s9122_s18 + $0x10c] sm:$0xf] }
 0x13a   : > { %3104 = vmatpush.bf16.msrb.mxu2 %v7528_v27 }
 0x13b   : > { %v9433_v26 = vadd.f32 %v2688_v2, %v2640_v54  ;;  %v9444_v54 = vor.u32 %v8021_v28, %v6443_v25  ;;  %3153 = vmatpush.bf16.msrb.mxu3 %v7592_v57 }
 0x13d   : > { %11852 = vst [vmem:[#allocation46_spill] sm:$0xff] %v9444_v54 }
 0x13e   : > { %v2722_v44 = vpop.f32.mrf.mxu2 }
 0x13f   : > { %v2723_v52 = vadd.f32 %v2722_v44, %v9336_v53  ;;  %v7655_v44 = vld [vmem:[#allocation5 + $0x660] sm:$0xf] }
 0x140   : > { %v2771_v55 = vpop.f32.mrf.mxu3  ;;  %v2642_v2 = vpop.f32.mrf.mxu0  ;;  %v7656_v53 = vor.u32 %v8321_v45, %v7655_v44  ;;  %v7583_v44 = vld [vmem:[#allocation5 + $0x5d0] sm:$0xf]  ;;  %v8007_v45 = vld [vmem:[%s9122_s18 + $0x58] sm:$0xf0] }
 0x141   : > { %v2643_v61 = vadd.f32 %v2642_v2, %v9306_v33  ;;  %v2691_v19 = vpop.f32.mrf.mxu1  ;;  %v9451_v20 = vadd.f32 %v2771_v55, %v2723_v52  ;;  %v6503_v52 = vld [vmem:[%s9122_s18 + $0x108] sm:$0xf]  ;;  %v8036_v55 = vld [vmem:[%s9122_s18 + $0x140] sm:$0xf0]  ;;  %v6391_v2 = vld [vmem:[%s9122_s18 + $0x20] sm:$0xf] }
 0x142   : > { %3202 = vmatpush.bf16.msrb.mxu0 %v7656_v53 }
 0x143   : > { %v9453_v24 = vadd.f32 %v2691_v19, %v2643_v61  ;;  %2852 = vmatmul.bf16.gmra.mxu0 %v9442_v59  ;;  %2920 = vmatmul.bf16.gmra.mxu2 %v9444_v54  ;;  %v7519_v19 = vld [vmem:[#allocation5 + $0x550] sm:$0xf] }
 0x144   : > { %2901 = vmatmul.bf16.gmra.mxu1 %v9446_v13  ;;  %v9474_v13 = vor.u32 %v8036_v55, %v6503_v52  ;;  %v7711_v52 = vld [vmem:[#allocation5 + $0x6d0] sm:$0xf] }
 0x145   : > { %2969 = vmatmul.bf16.gmra.mxu3 %v9448_v43  ;;  %v6505_v43 = vld [vmem:[%s9122_s18 + $0x144] sm:$0xf0] }
 0x146   : > { %v2725_v18 = vpop.f32.mrf.mxu2  ;;  %11855 = vst [vmem:[#allocation49_spill] sm:$0xff] %v9474_v13  ;;  %v9480_v54 = vor.u32 %v8029_v50, %v6505_v43  ;;  %v8319_v43 = vld [vmem:[#allocation5 + $0x654] sm:$0xf0] }
 0x147   : > { %v2726_v25 = vadd.f32 %v2725_v18, %v9357_v5  ;;  %v8287_v5 = vld [vmem:[#allocation5 + $0x554] sm:$0xf0]  ;;  %v6393_v18 = vld [vmem:[%s9122_s18 + $0x5c] sm:$0xf0] }
 0x148   : > { %v2774_v28 = vpop.f32.mrf.mxu3  ;;  %v2644_v27 = vpop.f32.mrf.mxu0  ;;  %v7520_v53 = vor.u32 %v8287_v5, %v7519_v19  ;;  %v9478_v59 = vor.u32 %v8000_v23, %v6393_v18  ;;  %11858 = vst [vmem:[#allocation52_spill] sm:$0xff] %v9480_v54 }
 0x149   : > { %v2645_v29 = vadd.f32 %v2644_v27, %v9306_v33  ;;  %v2693_v30 = vpop.f32.mrf.mxu1  ;;  %v9461_v57 = vadd.f32 %v2774_v28, %v2726_v25  ;;  %v7584_v33 = vor.u32 %v8303_v58, %v7583_v44 }
 0x14a   : > { %3105 = vmatpush.bf16.msrb.mxu2 %v7520_v53  ;;  %11857 = vst [vmem:[#allocation51_spill] sm:$0xff] %v9478_v59 }
 0x14b   : > { %v9466_v61 = vadd.f32 %v2693_v30, %v2645_v29  ;;  %v9476_v29 = vor.u32 %v8007_v45, %v6391_v2  ;;  %3154 = vmatpush.bf16.msrb.mxu3 %v7584_v33  ;;  %v8335_v2 = vld [vmem:[#allocation5 + $0x6d4] sm:$0xf0] }
 0x14c   : > { %v7712_v45 = vor.u32 %v8335_v2, %v7711_v52  ;;  %v8015_v52 = vld [vmem:[%s9122_s18 + $0x9c] sm:$0xf]  ;;  %v8301_v2 = vld [vmem:[#allocation5 + $0x5c4] sm:$0xf0] }
 0x14d   : > { %11856 = vst [vmem:[#allocation50_spill] sm:$0xff] %v9476_v29 }
 0x14e   : > { %v2727_v27 = vpop.f32.mrf.mxu2  ;;  %3252 = vmatpush.bf16.msrb.mxu1 %v7712_v45  ;;  %v8044_v45 = vld [vmem:[%s9122_s18 + $0x184] sm:$0xf] }
 0x14f   : > { %v2728_v25 = vadd.f32 %v2727_v27, %v9367_v35  ;;  %v7647_v35 = vld [vmem:[#allocation5 + $0x650] sm:$0xf] }
 0x150   : > { %v2776_v28 = vpop.f32.mrf.mxu3  ;;  %v2818_v30 = vpop.f32.mrf.mxu0  ;;  %v7648_v55 = vor.u32 %v8319_v43, %v7647_v35  ;;  %v7575_v35 = vld [vmem:[#allocation5 + $0x5c0] sm:$0xf]  ;;  %v8022_v43 = vld [vmem:[%s9122_s18 + $0xd0] sm:$0xf0] }
 0x151   : > { %v9482_v19 = vadd.f32 %v2776_v28, %v2728_v25  ;;  %v2819_v5 = vadd.f32 %v2818_v30, %v9429_v36  ;;  %v2867_v44 = vpop.f32.mrf.mxu1  ;;  %v6563_v25 = vld [vmem:[%s9122_s18 + $0x180] sm:$0xf]  ;;  %v8051_v28 = vld [vmem:[%s9122_s18 + $0x1b8] sm:$0xf0]  ;;  %v6451_v30 = vld [vmem:[%s9122_s18 + $0x98] sm:$0xf] }
 0x152   : > { %3203 = vmatpush.bf16.msrb.mxu0 %v7648_v55 }
 0x153   : > { %v9485_v58 = vadd.f32 %v2867_v44, %v2819_v5  ;;  %2925 = vmatmul.bf16.gmra.mxu2 %v9474_v13  ;;  %3013 = vmatmul.bf16.vlgmr.msra.gmra.mxu0 %v9476_v29  ;;  %v7511_v44 = vld [vmem:[#allocation5 + $0x540] sm:$0xf] }
 0x154   : > { %3062 = vmatmul.bf16.vlgmr.msra.gmra.mxu1 %v9478_v59 }
 0x155   : > { %2974 = vmatmul.bf16.gmra.mxu3 %v9480_v54  ;;  %v9506_v54 = vor.u32 %v8051_v28, %v6563_v25  ;;  %v7703_v25 = vld [vmem:[#allocation5 + $0x6c0] sm:$0xf] }
 0x156   : > { %v2730_v36 = vpop.f32.mrf.mxu2 }
 0x157   : > { %v2731_v23 = vadd.f32 %v2730_v36, %v9389_v6  ;;  %v8285_v6 = vld [vmem:[#allocation5 + $0x544] sm:$0xf0]  ;;  %v6453_v36 = vld [vmem:[%s9122_s18 + $0xd4] sm:$0xf0]  ;;  %11859 = vst [vmem:[#allocation53_spill] sm:$0xff] %v9506_v54 }
 0x158   : > { %v2779_v53 = vpop.f32.mrf.mxu3  ;;  %v2820_v18 = vpop.f32.mrf.mxu0  ;;  %v7512_v55 = vor.u32 %v8285_v6, %v7511_v44  ;;  %v9510_v29 = vor.u32 %v8015_v52, %v6453_v36 }
 0x159   : > { %v9492_v50 = vadd.f32 %v2779_v53, %v2731_v23  ;;  %v2821_v33 = vadd.f32 %v2820_v18, %v9451_v20  ;;  %v2869_v27 = vpop.f32.mrf.mxu1  ;;  %v6565_v23 = vld [vmem:[%s9122_s18 + $0x1bc] sm:$0xf0]  ;;  %v7576_v53 = vor.u32 %v8301_v2, %v7575_v35 }
 0x15a   : > { %3106 = vmatpush.bf16.msrb.mxu2 %v7512_v55  ;;  %11861 = vst [vmem:[#allocation55_spill] sm:$0xff] %v9510_v29  ;;  %v9512_v13 = vor.u32 %v8044_v45, %v6565_v23 }
 0x15b   : > { %v9498_v5 = vadd.f32 %v2869_v27, %v2821_v33  ;;  %v9508_v33 = vor.u32 %v8022_v43, %v6451_v30  ;;  %3155 = vmatpush.bf16.msrb.mxu3 %v7576_v53  ;;  %v8333_v30 = vld [vmem:[#allocation5 + $0x6c4] sm:$0xf0] }
 0x15c   : > { %11862 = vst [vmem:[#allocation56_spill] sm:$0xff] %v9512_v13  ;;  %v7704_v43 = vor.u32 %v8333_v30, %v7703_v25  ;;  %v8030_v25 = vld [vmem:[%s9122_s18 + $0x114] sm:$0xf]  ;;  %v8299_v30 = vld [vmem:[#allocation5 + $0x5b4] sm:$0xf0] }
 0x15d   : > { %11860 = vst [vmem:[#allocation54_spill] sm:$0xff] %v9508_v33 }
 0x15e   : > { %v2732_v59 = vpop.f32.mrf.mxu2  ;;  %3253 = vmatpush.bf16.msrb.mxu1 %v7704_v43  ;;  %v8059_v43 = vld [vmem:[%s9122_s18 + $0x1fc] sm:$0xf] }
 0x15f   : > { %v2733_v20 = vadd.f32 %v2732_v59, %v9401_v56  ;;  %v7639_v56 = vld [vmem:[#allocation5 + $0x640] sm:$0xf]  ;;  %v8317_v59 = vld [vmem:[#allocation5 + $0x644] sm:$0xf0] }
 0x160   : > { %v2781_v18 = vpop.f32.mrf.mxu3  ;;  %v2823_v27 = vpop.f32.mrf.mxu0  ;;  %v7640_v28 = vor.u32 %v8317_v59, %v7639_v56  ;;  %v7567_v56 = vld [vmem:[#allocation5 + $0x5b0] sm:$0xf]  ;;  %v8037_v59 = vld [vmem:[%s9122_s18 + $0x148] sm:$0xf0] }
 0x161   : > { %v9514_v44 = vadd.f32 %v2781_v18, %v2733_v20  ;;  %v2824_v6 = vadd.f32 %v2823_v27, %v9461_v57  ;;  %v2872_v35 = vpop.f32.mrf.mxu1  ;;  %v6623_v20 = vld [vmem:[%s9122_s18 + $0x1f8] sm:$0xf]  ;;  %v8066_v18 = vld [vmem:[%s9122_s18 + $0x230] sm:$0xf0]  ;;  %v6511_v27 = vld [vmem:[%s9122_s18 + $0x110] sm:$0xf] }
 0x162   : > { %3204 = vmatpush.bf16.msrb.mxu0 %v7640_v28 }
 0x163   : > { %v9517_v2 = vadd.f32 %v2872_v35, %v2824_v6  ;;  %2930 = vmatmul.bf16.gmra.mxu2 %v9506_v54  ;;  %3018 = vmatmul.bf16.gmra.mxu0 %v9508_v33  ;;  %v7503_v35 = vld [vmem:[#allocation5 + $0x530] sm:$0xf] }
 0x164   : > { %3067 = vmatmul.bf16.gmra.mxu1 %v9510_v29 }
 0x165   : > { %2979 = vmatmul.bf16.gmra.mxu3 %v9512_v13  ;;  %v9538_v13 = vor.u32 %v8066_v18, %v6623_v20  ;;  %v7695_v20 = vld [vmem:[#allocation5 + $0x6b0] sm:$0xf] }
 0x166   : > { %v2735_v57 = vpop.f32.mrf.mxu2 }
 0x167   : > { %v2736_v52 = vadd.f32 %v2735_v57, %v9421_v32  ;;  %v8283_v32 = vld [vmem:[#allocation5 + $0x534] sm:$0xf0]  ;;  %v6513_v57 = vld [vmem:[%s9122_s18 + $0x14c] sm:$0xf0]  ;;  %11863 = vst [vmem:[#allocation57_spill] sm:$0xff] %v9538_v13 }
 0x168   : > { %v2784_v55 = vpop.f32.mrf.mxu3  ;;  %v2825_v36 = vpop.f32.mrf.mxu0  ;;  %v7504_v28 = vor.u32 %v8283_v32, %v7503_v35  ;;  %v9542_v33 = vor.u32 %v8030_v25, %v6513_v57 }
 0x169   : > { %v9524_v45 = vadd.f32 %v2784_v55, %v2736_v52  ;;  %v2826_v23 = vadd.f32 %v2825_v36, %v9482_v19  ;;  %v2874_v53 = vpop.f32.mrf.mxu1  ;;  %v6625_v52 = vld [vmem:[%s9122_s18 + $0x234] sm:$0xf0]  ;;  %v7568_v55 = vor.u32 %v8299_v30, %v7567_v56 }
 0x16a   : > { %3107 = vmatpush.bf16.msrb.mxu2 %v7504_v28  ;;  %11865 = vst [vmem:[#allocation59_spill] sm:$0xff] %v9542_v33  ;;  %v9544_v54 = vor.u32 %v8059_v43, %v6625_v52 }
 0x16b   : > { %v9530_v6 = vadd.f32 %v2874_v53, %v2826_v23  ;;  %v9540_v23 = vor.u32 %v8037_v59, %v6511_v27  ;;  %3156 = vmatpush.bf16.msrb.mxu3 %v7568_v55  ;;  %v8331_v27 = vld [vmem:[#allocation5 + $0x6b4] sm:$0xf0] }
 0x16c   : > { %11866 = vst [vmem:[#allocation60_spill] sm:$0xff] %v9544_v54  ;;  %v7696_v59 = vor.u32 %v8331_v27, %v7695_v20  ;;  %v8045_v20 = vld [vmem:[%s9122_s18 + $0x18c] sm:$0xf]  ;;  %v8297_v27 = vld [vmem:[#allocation5 + $0x5a4] sm:$0xf0] }
 0x16d   : > { %11864 = vst [vmem:[#allocation58_spill] sm:$0xff] %v9540_v23 }
 0x16e   : > { %v2737_v29 = vpop.f32.mrf.mxu2  ;;  %3254 = vmatpush.bf16.msrb.mxu1 %v7696_v59  ;;  %v8074_v59 = vld [vmem:[%s9122_s18 + $0x274] sm:$0xf] }
 0x16f   : > { %v2738_v19 = vadd.f32 %v2737_v29, %v9433_v26  ;;  %v7631_v26 = vld [vmem:[#allocation5 + $0x630] sm:$0xf]  ;;  %v8315_v29 = vld [vmem:[#allocation5 + $0x634] sm:$0xf0] }
 0x170   : > { %v2786_v36 = vpop.f32.mrf.mxu3  ;;  %v2828_v53 = vpop.f32.mrf.mxu0  ;;  %v7632_v18 = vor.u32 %v8315_v29, %v7631_v26  ;;  %v7559_v26 = vld [vmem:[#allocation5 + $0x5a0] sm:$0xf]  ;;  %v8052_v29 = vld [vmem:[%s9122_s18 + $0x1c0] sm:$0xf0] }
 0x171   : > { %v9546_v35 = vadd.f32 %v2786_v36, %v2738_v19  ;;  %v2829_v32 = vadd.f32 %v2828_v53, %v9492_v50  ;;  %v2877_v56 = vpop.f32.mrf.mxu1  ;;  %v6683_v19 = vld [vmem:[%s9122_s18 + $0x270] sm:$0xf]  ;;  %v8081_v36 = vld [vmem:[%s9122_s18 + $0x2a8] sm:$0xf0]  ;;  %v6571_v53 = vld [vmem:[%s9122_s18 + $0x188] sm:$0xf] }
 0x172   : > { %3205 = vmatpush.bf16.msrb.mxu0 %v7632_v18 }
 0x173   : > { %v9549_v30 = vadd.f32 %v2877_v56, %v2829_v32  ;;  %2935 = vmatmul.bf16.gmra.mxu2 %v9538_v13  ;;  %3023 = vmatmul.bf16.gmra.mxu0 %v9540_v23  ;;  %v7495_v56 = vld [vmem:[#allocation5 + $0x520] sm:$0xf] }
 0x174   : > { %3072 = vmatmul.bf16.gmra.mxu1 %v9542_v33 }
 0x175   : > { %2984 = vmatmul.bf16.gmra.mxu3 %v9544_v54  ;;  %v9570_v54 = vor.u32 %v8081_v36, %v6683_v19  ;;  %v7687_v19 = vld [vmem:[#allocation5 + $0x6a0] sm:$0xf] }
 0x176   : > { %v2740_v50 = vpop.f32.mrf.mxu2 }
 0x177   : > { %v2741_v25 = vadd.f32 %v2740_v50, %v9453_v24  ;;  %v8281_v24 = vld [vmem:[#allocation5 + $0x524] sm:$0xf0]  ;;  %11867 = vst [vmem:[#allocation61_spill] sm:$0xff] %v9570_v54 }
 0x178   : > { %v2789_v28 = vpop.f32.mrf.mxu3  ;;  %v2830_v57 = vpop.f32.mrf.mxu0  ;;  %v7496_v18 = vor.u32 %v8281_v24, %v7495_v56  ;;  %v6573_v50 = vld [vmem:[%s9122_s18 + $0x1c4] sm:$0xf0] }
 0x179   : > { %v9556_v43 = vadd.f32 %v2789_v28, %v2741_v25  ;;  %v2831_v52 = vadd.f32 %v2830_v57, %v9514_v44  ;;  %v2879_v55 = vpop.f32.mrf.mxu1  ;;  %v6685_v25 = vld [vmem:[%s9122_s18 + $0x2ac] sm:$0xf0]  ;;  %v7560_v28 = vor.u32 %v8297_v27, %v7559_v26  ;;  %v9574_v23 = vor.u32 %v8045_v20, %v6573_v50 }
 0x17a   : > { %3108 = vmatpush.bf16.msrb.mxu2 %v7496_v18  ;;  %v9576_v13 = vor.u32 %v8074_v59, %v6685_v25 }
 0x17b   : > { %v9562_v32 = vadd.f32 %v2879_v55, %v2831_v52  ;;  %v9572_v52 = vor.u32 %v8052_v29, %v6571_v53  ;;  %3157 = vmatpush.bf16.msrb.mxu3 %v7560_v28  ;;  %11869 = vst [vmem:[#allocation63_spill] sm:$0xff] %v9574_v23  ;;  %v8329_v53 = vld [vmem:[#allocation5 + $0x6a4] sm:$0xf0] }
 0x17c   : > { %11870 = vst [vmem:[#allocation64_spill] sm:$0xff] %v9576_v13 }
 0x17d   : > { %11868 = vst [vmem:[#allocation62_spill] sm:$0xff] %v9572_v52 }
 0x17e   : > { %v2742_v33 = vpop.f32.mrf.mxu2 }
 0x17f   : > { %v2743_v44 = vadd.f32 %v2742_v33, %v9466_v61  ;;  %v7623_v61 = vld [vmem:[#allocation5 + $0x620] sm:$0xf]  ;;  %v8313_v33 = vld [vmem:[#allocation5 + $0x624] sm:$0xf0] }
 0x180   : > { %v2791_v57 = vpop.f32.mrf.mxu3  ;;  %v2833_v55 = vpop.f32.mrf.mxu0  ;;  %v7624_v36 = vor.u32 %v8313_v33, %v7623_v61  ;;  %v7551_v61 = vld [vmem:[#allocation5 + $0x590] sm:$0xf]  ;;  %v8295_v33 = vld [vmem:[#allocation5 + $0x594] sm:$0xf0] }
 0x181   : > { %v9578_v56 = vadd.f32 %v2791_v57, %v2743_v44  ;;  %v2834_v24 = vadd.f32 %v2833_v55, %v9524_v45  ;;  %v2882_v26 = vpop.f32.mrf.mxu1  ;;  %v7688_v45 = vor.u32 %v8329_v53, %v7687_v19  ;;  %v6743_v44 = vld [vmem:[%s9122_s18 + $0x2e8] sm:$0xf]  ;;  %v7487_v57 = vld [vmem:[#allocation5 + $0x510] sm:$0xf]  ;;  %v8279_v55 = vld [vmem:[#allocation5 + $0x514] sm:$0xf0] }
 0x182   : > { %3206 = vmatpush.bf16.msrb.mxu0 %v7624_v36  ;;  %v6631_v19 = vld [vmem:[%s9122_s18 + $0x200] sm:$0xf]  ;;  %v8067_v36 = vld [vmem:[%s9122_s18 + $0x238] sm:$0xf0]  ;;  %v8060_v53 = vld [vmem:[%s9122_s18 + $0x204] sm:$0xf] }
 0x183   : > { %v9581_v27 = vadd.f32 %v2882_v26, %v2834_v24  ;;  %2940 = vmatmul.bf16.gmra.mxu2 %v9570_v54  ;;  %3028 = vmatmul.bf16.gmra.mxu0 %v9572_v52  ;;  %v7488_v26 = vor.u32 %v8279_v55, %v7487_v57  ;;  %v9604_v57 = vor.u32 %v8067_v36, %v6631_v19 }
 0x184   : > { %3077 = vmatmul.bf16.gmra.mxu1 %v9574_v23  ;;  %v8277_v23 = vld [vmem:[#allocation5 + $0x504] sm:$0xf0] }
 0x185   : > { %2989 = vmatmul.bf16.gmra.mxu3 %v9576_v13  ;;  %3255 = vmatpush.bf16.msrb.mxu1 %v7688_v45  ;;  %v6633_v45 = vld [vmem:[%s9122_s18 + $0x23c] sm:$0xf0]  ;;  %11872 = vst [vmem:[#allocation66_spill] sm:$0xff] %v9604_v57 }
 0x186   : > { %v2745_v29 = vpop.f32.mrf.mxu2  ;;  %3109 = vmatpush.bf16.msrb.mxu2 %v7488_v26  ;;  %v9606_v54 = vor.u32 %v8060_v53, %v6633_v45 }
 0x187   : > { %v2746_v20 = vadd.f32 %v2745_v29, %v9333_v37  ;;  %v8096_v37 = vld [vmem:[%s9122_s18 + $0x320] sm:$0xf0]  ;;  %v7552_v29 = vor.u32 %v8295_v33, %v7551_v61  ;;  %v7543_v33 = vld [vmem:[#allocation5 + $0x580] sm:$0xf] }
 0x188   : > { %v2794_v18 = vpop.f32.mrf.mxu3  ;;  %v2835_v50 = vpop.f32.mrf.mxu0  ;;  %11873 = vst [vmem:[#allocation67_spill] sm:$0xff] %v9606_v54 }
 0x189   : > { %v9588_v59 = vadd.f32 %v2794_v18, %v2746_v20  ;;  %v2836_v25 = vadd.f32 %v2835_v50, %v9546_v35  ;;  %v2884_v28 = vpop.f32.mrf.mxu1  ;;  %v8089_v20 = vld [vmem:[%s9122_s18 + $0x2ec] sm:$0xf]  ;;  %v6745_v18 = vld [vmem:[%s9122_s18 + $0x324] sm:$0xf0]  ;;  %3158 = vmatpush.bf16.msrb.mxu3 %v7552_v29  ;;  %v7479_v50 = vld [vmem:[#allocation5 + $0x500] sm:$0xf] }
 0x18a   : > { %v7480_v55 = vor.u32 %v8277_v23, %v7479_v50  ;;  %v9608_v61 = vor.u32 %v8089_v20, %v6745_v18  ;;  %v7615_v23 = vld [vmem:[#allocation5 + $0x610] sm:$0xf]  ;;  %v6803_v50 = vld [vmem:[%s9122_s18 + $0x360] sm:$0xf] }
 0x18b   : > { %v9592_v24 = vadd.f32 %v2884_v28, %v2836_v25  ;;  %v9602_v28 = vor.u32 %v8096_v37, %v6743_v44  ;;  %v8311_v44 = vld [vmem:[#allocation5 + $0x614] sm:$0xf0] }
 0x18c   : > { %11874 = vst [vmem:[#allocation68_spill] sm:$0xff] %v9608_v61  ;;  %3110 = vmatpush.bf16.msrb.mxu2 %v7480_v55  ;;  %v6691_v55 = vld [vmem:[%s9122_s18 + $0x278] sm:$0xf] }
 0x18d   : > { %11871 = vst [vmem:[#allocation65_spill] sm:$0xff] %v9602_v28 }
 0x18e   : > { %v2747_v35 = vpop.f32.mrf.mxu2 }
 0x18f   : > { %v2748_v13 = vadd.f32 %v2747_v35, %v9355_v7  ;;  %v7544_v7 = vor.u32 %v8293_v41, %v7543_v33  ;;  %v8327_v41 = vld [vmem:[#allocation5 + $0x694] sm:$0xf0]  ;;  %v8082_v33 = vld [vmem:[%s9122_s18 + $0x2b0] sm:$0xf0] }
 0x190   : > { %v2796_v25 = vpop.f32.mrf.mxu3  ;;  %v2838_v52 = vpop.f32.mrf.mxu0 }
 0x191   : > { %v9610_v26 = vadd.f32 %v2796_v25, %v2748_v13  ;;  %v2839_v29 = vadd.f32 %v2838_v52, %v9556_v43  ;;  %v2887_v49 = vpop.f32.mrf.mxu1  ;;  %v7679_v13 = vld [vmem:[#allocation5 + $0x690] sm:$0xf]  ;;  %3159 = vmatpush.bf16.msrb.mxu3 %v7544_v7  ;;  %v7616_v43 = vor.u32 %v8311_v44, %v7615_v23  ;;  %v8111_v25 = vld [vmem:[%s9122_s18 + $0x398] sm:$0xf0]  ;;  %v6693_v7 = vld [vmem:[%s9122_s18 + $0x2b4] sm:$0xf0] }
 0x192   : > { %v7680_v52 = vor.u32 %v8327_v41, %v7679_v13  ;;  %v8104_v23 = vld [vmem:[%s9122_s18 + $0x364] sm:$0xf]  ;;  %v9634_v41 = vor.u32 %v8111_v25, %v6803_v50  ;;  %v8309_v50 = vld [vmem:[#allocation5 + $0x604] sm:$0xf0]  ;;  %v7671_v25 = vld [vmem:[#allocation5 + $0x680] sm:$0xf] }
 0x193   : > { %v9613_v35 = vadd.f32 %v2887_v49, %v2839_v29  ;;  %2945 = vmatmul.bf16.gmra.mxu2 %v9602_v28  ;;  %3033 = vmatmul.bf16.gmra.mxu0 %v9604_v57  ;;  %v8075_v29 = vld [vmem:[%s9122_s18 + $0x27c] sm:$0xf] }
 0x194   : > { %3082 = vmatmul.bf16.gmra.mxu1 %v9606_v54  ;;  %3207 = vmatpush.bf16.msrb.mxu0 %v7616_v43  ;;  %11875 = vst [vmem:[#allocation69_spill] sm:$0xff] %v9634_v41 }
 0x195   : > { %2994 = vmatmul.bf16.gmra.mxu3 %v9608_v61  ;;  %3256 = vmatpush.bf16.msrb.mxu1 %v7680_v52  ;;  %v9638_v52 = vor.u32 %v8075_v29, %v6693_v7 }
 0x196   : > { %v2750_v49 = vpop.f32.mrf.mxu2 }
 0x197   : > { %v2751_v37 = vadd.f32 %v2750_v49, %v9365_v34  ;;  %v6805_v34 = vld [vmem:[%s9122_s18 + $0x39c] sm:$0xf0]  ;;  %v9636_v49 = vor.u32 %v8082_v33, %v6691_v55  ;;  %11877 = vst [vmem:[#allocation71_spill] sm:$0xff] %v9638_v52  ;;  %v8325_v33 = vld [vmem:[#allocation5 + $0x684] sm:$0xf0] }
 0x198   : > { %v2799_v19 = vpop.f32.mrf.mxu3  ;;  %v2840_v36 = vpop.f32.mrf.mxu0  ;;  %v7672_v29 = vor.u32 %v8325_v33, %v7671_v25  ;;  %v8130_v25 = vld [vmem:[#allocation5 + $0x74] sm:$0xf]  ;;  %v6399_v33 = vld [vmem:[%s9122_s18 + $0x28] sm:$0xf] }
 0x199   : > { %v9620_v53 = vadd.f32 %v2799_v19, %v2751_v37  ;;  %v2841_v45 = vadd.f32 %v2840_v36, %v9578_v56  ;;  %v2889_v20 = vpop.f32.mrf.mxu1  ;;  %11876 = vst [vmem:[#allocation70_spill] sm:$0xff] %v9636_v49  ;;  %v9640_v37 = vor.u32 %v8104_v23, %v6805_v34 }
 0x19a   : > { %3257 = vmatpush.bf16.msrb.mxu1 %v7672_v29  ;;  %v6753_v29 = vld [vmem:[%s9122_s18 + $0x32c] sm:$0xf0] }
 0x19b   : > { %v9623_v18 = vadd.f32 %v2889_v20, %v2841_v45  ;;  %11878 = vst [vmem:[#allocation72_spill] sm:$0xff] %v9640_v37 }
 0x19e   : > { %v2752_v44 = vpop.f32.mrf.mxu2 }
 0x19f   : > { %v2753_v13 = vadd.f32 %v2752_v44, %v9387_v51  ;;  %v7607_v51 = vld [vmem:[#allocation5 + $0x600] sm:$0xf] }
 0x1a0   : > { %v2801_v43 = vpop.f32.mrf.mxu3  ;;  %v2843_v56 = vpop.f32.mrf.mxu0  ;;  %v7608_v55 = vor.u32 %v8309_v50, %v7607_v51  ;;  %v8090_v51 = vld [vmem:[%s9122_s18 + $0x2f4] sm:$0xf]  ;;  %v7791_v50 = vld [vmem:[#allocation5 + $0x770] sm:$0xf] }
 0x1a1   : > { %v9642_v19 = vadd.f32 %v2801_v43, %v2753_v13  ;;  %v2844_v36 = vadd.f32 %v2843_v56, %v9588_v59  ;;  %v2892_v45 = vpop.f32.mrf.mxu1  ;;  %v6751_v56 = vld [vmem:[%s9122_s18 + $0x2f0] sm:$0xf] }
 0x1a2   : > { %3208 = vmatpush.bf16.msrb.mxu0 %v7608_v55  ;;  %v8008_v55 = vld [vmem:[%s9122_s18 + $0x60] sm:$0xf0] }
 0x1a3   : > { %v9645_v20 = vadd.f32 %v2892_v45, %v2844_v36  ;;  %2950 = vmatmul.bf16.gmra.mxu2 %v9634_v41  ;;  %3038 = vmatmul.bf16.gmra.mxu0 %v9636_v49  ;;  %v8097_v36 = vld [vmem:[%s9122_s18 + $0x328] sm:$0xf0]  ;;  %v9670_v49 = vor.u32 %v8090_v51, %v6753_v29 }
 0x1a4   : > { %3087 = vmatmul.bf16.gmra.mxu1 %v9638_v52  ;;  %v6897_v52 = vld [vmem:[#allocation5 + $0x78] sm:$0xf0]  ;;  %v9666_v61 = vor.u32 %v8097_v36, %v6751_v56 }
 0x1a5   : > { %2999 = vmatmul.bf16.gmra.mxu3 %v9640_v37  ;;  %v8001_v37 = vld [vmem:[%s9122_s18 + $0x2c] sm:$0xf]  ;;  %11881 = vst [vmem:[#allocation75_spill] sm:$0xff] %v9670_v49  ;;  %v7025_v36 = vld [vmem:[#allocation5 + $0x178] sm:$0xf0] }
 0x1a6   : > { %v2755_v59 = vpop.f32.mrf.mxu2  ;;  %11879 = vst [vmem:[#allocation73_spill] sm:$0xff] %v9666_v61 }
 0x1a7   : > { %v2756_v7 = vadd.f32 %v2755_v59, %v9397_v21  ;;  %v8355_v21 = vld [vmem:[#allocation5 + $0x774] sm:$0xf0] }
 0x1a8   : > { %v2804_v23 = vpop.f32.mrf.mxu3  ;;  %v2845_v34 = vpop.f32.mrf.mxu0  ;;  %v7792_v59 = vor.u32 %v8355_v21, %v7791_v50 }
 0x1a9   : > { %v9652_v44 = vadd.f32 %v2804_v23, %v2756_v7  ;;  %v2846_v13 = vadd.f32 %v2845_v34, %v9610_v26  ;;  %v2894_v43 = vpop.f32.mrf.mxu1  ;;  %v6401_v7 = vld [vmem:[%s9122_s18 + $0x64] sm:$0xf0]  ;;  %v6900_v23 = vor.u32 %v8130_v25, %v6897_v52 }
 0x1aa   : > { %3299 = vmatpush.bf16.msra.mxu2 %v7792_v59  ;;  %v9672_v57 = vor.u32 %v8001_v37, %v6401_v7  ;;  %v8162_v37 = vld [vmem:[#allocation5 + $0x174] sm:$0xf] }
 0x1ab   : > { %v9657_v45 = vadd.f32 %v2894_v43, %v2846_v13  ;;  %v9668_v13 = vor.u32 %v8008_v55, %v6399_v33  ;;  %3348 = vmatpush.bf16.msra.mxu3 %v6900_v23  ;;  %v7028_v51 = vor.u32 %v8162_v37, %v7025_v36  ;;  %v8023_v37 = vld [vmem:[%s9122_s18 + $0xd8] sm:$0xf0]  ;;  %v6889_v36 = vld [vmem:[#allocation5 + $0x68] sm:$0xf0] }
 0x1ac   : > { %11882 = vst [vmem:[#allocation76_spill] sm:$0xff] %v9672_v57 }
 0x1ad   : > { %11880 = vst [vmem:[#allocation74_spill] sm:$0xff] %v9668_v13  ;;  %3446 = vmatpush.bf16.msra.mxu1 %v7028_v51  ;;  %v8016_v51 = vld [vmem:[%s9122_s18 + $0xa4] sm:$0xf] }
 0x1ae   : > { %v2757_v54 = vpop.f32.mrf.mxu2 }
 0x1af   : > { %v2758_v26 = vadd.f32 %v2757_v54, %v9419_v12  ;;  %v8146_v12 = vld [vmem:[#allocation5 + $0xf4] sm:$0xf]  ;;  %v6961_v54 = vld [vmem:[#allocation5 + $0xf8] sm:$0xf0] }
 0x1b0   : > { %v2806_v34 = vpop.f32.mrf.mxu3  ;;  %v2848_v43 = vpop.f32.mrf.mxu0  ;;  %v6964_v56 = vor.u32 %v8146_v12, %v6961_v54  ;;  %v8128_v12 = vld [vmem:[#allocation5 + $0x64] sm:$0xf]  ;;  %v6459_v54 = vld [vmem:[%s9122_s18 + $0xa0] sm:$0xf] }
 0x1b1   : > { %v9674_v50 = vadd.f32 %v2806_v34, %v2758_v26  ;;  %v2849_v21 = vadd.f32 %v2848_v43, %v9620_v53  ;;  %v2897_v52 = vpop.f32.mrf.mxu1  ;;  %v6811_v26 = vld [vmem:[%s9122_s18 + $0x368] sm:$0xf]  ;;  %v8112_v34 = vld [vmem:[%s9122_s18 + $0x3a0] sm:$0xf0] }
 0x1b2   : > { %3397 = vmatpush.bf16.msra.mxu0 %v6964_v56 }
 0x1b3   : > { %v9677_v25 = vadd.f32 %v2897_v52, %v2849_v21  ;;  %3043 = vmatmul.bf16.gmra.mxu0 %v9666_v61  ;;  %3111 = vmatmul.bf16.vlgmr.msrb.gmra.mxu2 %v9668_v13  ;;  %v8105_v21 = vld [vmem:[%s9122_s18 + $0x36c] sm:$0xf]  ;;  %v7783_v52 = vld [vmem:[#allocation5 + $0x760] sm:$0xf] }
 0x1b4   : > { %3092 = vmatmul.bf16.gmra.mxu1 %v9670_v49  ;;  %v9698_v49 = vor.u32 %v8112_v34, %v6811_v26  ;;  %v8160_v26 = vld [vmem:[#allocation5 + $0x164] sm:$0xf]  ;;  %v7017_v34 = vld [vmem:[#allocation5 + $0x168] sm:$0xf0] }
 0x1b5   : > { %3160 = vmatmul.bf16.vlgmr.msrb.gmra.mxu3 %v9672_v57  ;;  %v6461_v57 = vld [vmem:[%s9122_s18 + $0xdc] sm:$0xf0] }
 0x1b6   : > { %v2916_v53 = vpop.f32.mrf.mxu2  ;;  %11883 = vst [vmem:[#allocation77_spill] sm:$0xff] %v9698_v49  ;;  %v9704_v13 = vor.u32 %v8016_v51, %v6461_v57  ;;  %v6953_v57 = vld [vmem:[#allocation5 + $0xe8] sm:$0xf0] }
 0x1b7   : > { %v2917_v33 = vadd.f32 %v2916_v53, %v9485_v58  ;;  %v8353_v58 = vld [vmem:[#allocation5 + $0x764] sm:$0xf0] }
 0x1b8   : > { %v2965_v55 = vpop.f32.mrf.mxu3  ;;  %v2850_v59 = vpop.f32.mrf.mxu0  ;;  %v7784_v56 = vor.u32 %v8353_v58, %v7783_v52  ;;  %v6813_v53 = vld [vmem:[%s9122_s18 + $0x3a4] sm:$0xf0]  ;;  %11886 = vst [vmem:[#allocation80_spill] sm:$0xff] %v9704_v13 }
 0x1b9   : > { %v2851_v29 = vadd.f32 %v2850_v59, %v9642_v19  ;;  %v2899_v7 = vpop.f32.mrf.mxu1  ;;  %v9685_v23 = vadd.f32 %v2965_v55, %v2917_v33  ;;  %v6892_v19 = vor.u32 %v8128_v12, %v6889_v36  ;;  %v9702_v61 = vor.u32 %v8105_v21, %v6813_v53 }
 0x1ba   : > { %3300 = vmatpush.bf16.msra.mxu2 %v7784_v56 }
 0x1bb   : > { %v9689_v43 = vadd.f32 %v2899_v7, %v2851_v29  ;;  %v9700_v29 = vor.u32 %v8023_v37, %v6459_v54  ;;  %3349 = vmatpush.bf16.msra.mxu3 %v6892_v19  ;;  %11885 = vst [vmem:[#allocation79_spill] sm:$0xff] %v9702_v61  ;;  %v7020_v54 = vor.u32 %v8160_v26, %v7017_v34  ;;  %v6409_v34 = vld [vmem:[%s9122_s18 + $0x6c] sm:$0xf0] }
 0x1bd   : > { %11884 = vst [vmem:[#allocation78_spill] sm:$0xff] %v9700_v29  ;;  %3447 = vmatpush.bf16.msra.mxu1 %v7020_v54  ;;  %v6521_v54 = vld [vmem:[%s9122_s18 + $0x154] sm:$0xf0] }
 0x1be   : > { %v2918_v59 = vpop.f32.mrf.mxu2 }
 0x1bf   : > { %v2919_v33 = vadd.f32 %v2918_v59, %v9498_v5  ;;  %v8144_v5 = vld [vmem:[#allocation5 + $0xe4] sm:$0xf]  ;;  %v6519_v59 = vld [vmem:[%s9122_s18 + $0x118] sm:$0xf] }
 0x1c0   : > { %v2967_v55 = vpop.f32.mrf.mxu3  ;;  %v2853_v7 = vpop.f32.mrf.mxu0 }
 0x1c1   : > { %v2854_v52 = vadd.f32 %v2853_v7, %v9652_v44  ;;  %v2902_v58 = vpop.f32.mrf.mxu1  ;;  %v9707_v41 = vadd.f32 %v2967_v55, %v2919_v33  ;;  %v6956_v44 = vor.u32 %v8144_v5, %v6953_v57  ;;  %v8038_v33 = vld [vmem:[%s9122_s18 + $0x150] sm:$0xf0]  ;;  %v6407_v55 = vld [vmem:[%s9122_s18 + $0x30] sm:$0xf]  ;;  %v8009_v5 = vld [vmem:[%s9122_s18 + $0x68] sm:$0xf0] }
 0x1c2   : > { %v8002_v57 = vld [vmem:[%s9122_s18 + $0x34] sm:$0xf] }
 0x1c3   : > { %v9709_v12 = vadd.f32 %v2902_v58, %v2854_v52  ;;  %3048 = vmatmul.bf16.gmra.mxu0 %v9698_v49  ;;  %3116 = vmatmul.bf16.gmra.mxu2 %v9700_v29  ;;  %v7775_v52 = vld [vmem:[#allocation5 + $0x750] sm:$0xf]  ;;  %v8126_v58 = vld [vmem:[#allocation5 + $0x54] sm:$0xf]  ;;  %v6841_v29 = vld [vmem:[#allocation5 + $0x8] sm:$0xf0] }
 0x1c4   : > { %3097 = vmatmul.bf16.gmra.mxu1 %v9702_v61  ;;  %3398 = vmatpush.bf16.msra.mxu0 %v6956_v44  ;;  %v6881_v44 = vld [vmem:[#allocation5 + $0x58] sm:$0xf0]  ;;  %v9734_v61 = vor.u32 %v8002_v57, %v6409_v34 }
 0x1c5   : > { %3165 = vmatmul.bf16.gmra.mxu3 %v9704_v13  ;;  %v9730_v13 = vor.u32 %v8038_v33, %v6519_v59  ;;  %v6945_v59 = vld [vmem:[#allocation5 + $0xd8] sm:$0xf0]  ;;  %v8158_v33 = vld [vmem:[#allocation5 + $0x154] sm:$0xf] }
 0x1c6   : > { %v2921_v21 = vpop.f32.mrf.mxu2  ;;  %11889 = vst [vmem:[#allocation83_spill] sm:$0xff] %v9734_v61 }
 0x1c7   : > { %v2922_v37 = vadd.f32 %v2921_v21, %v9517_v2  ;;  %v8351_v2 = vld [vmem:[#allocation5 + $0x754] sm:$0xf0]  ;;  %v8031_v21 = vld [vmem:[%s9122_s18 + $0x11c] sm:$0xf]  ;;  %11887 = vst [vmem:[#allocation81_spill] sm:$0xff] %v9730_v13 }
 0x1c8   : > { %v2970_v56 = vpop.f32.mrf.mxu3  ;;  %v2855_v36 = vpop.f32.mrf.mxu0  ;;  %v7776_v26 = vor.u32 %v8351_v2, %v7775_v52  ;;  %v9736_v49 = vor.u32 %v8031_v21, %v6521_v54 }
 0x1c9   : > { %v2856_v53 = vadd.f32 %v2855_v36, %v9674_v50  ;;  %v2904_v51 = vpop.f32.mrf.mxu1  ;;  %v9717_v19 = vadd.f32 %v2970_v56, %v2922_v37  ;;  %v6884_v50 = vor.u32 %v8126_v58, %v6881_v44 }
 0x1ca   : > { %3301 = vmatpush.bf16.msra.mxu2 %v7776_v26  ;;  %11890 = vst [vmem:[#allocation84_spill] sm:$0xff] %v9736_v49 }
 0x1cb   : > { %v9722_v7 = vadd.f32 %v2904_v51, %v2856_v53  ;;  %v9732_v53 = vor.u32 %v8009_v5, %v6407_v55  ;;  %3350 = vmatpush.bf16.msra.mxu3 %v6884_v50  ;;  %v7009_v5 = vld [vmem:[#allocation5 + $0x158] sm:$0xf0] }
 0x1cc   : > { %v7012_v57 = vor.u32 %v8158_v33, %v7009_v5  ;;  %v8017_v33 = vld [vmem:[%s9122_s18 + $0xac] sm:$0xf] }
 0x1cd   : > { %11888 = vst [vmem:[#allocation82_spill] sm:$0xff] %v9732_v53  ;;  %v6873_v5 = vld [vmem:[#allocation5 + $0x48] sm:$0xf0] }
 0x1ce   : > { %v2923_v36 = vpop.f32.mrf.mxu2  ;;  %3448 = vmatpush.bf16.msra.mxu1 %v7012_v57  ;;  %v8046_v57 = vld [vmem:[%s9122_s18 + $0x194] sm:$0xf] }
 0x1cf   : > { %v2924_v37 = vadd.f32 %v2923_v36, %v9530_v6  ;;  %v8142_v6 = vld [vmem:[#allocation5 + $0xd4] sm:$0xf] }
 0x1d0   : > { %v2972_v56 = vpop.f32.mrf.mxu3  ;;  %v3014_v51 = vpop.f32.mrf.mxu0  ;;  %v6948_v55 = vor.u32 %v8142_v6, %v6945_v59  ;;  %v8124_v6 = vld [vmem:[#allocation5 + $0x44] sm:$0xf] }
 0x1d1   : > { %v9738_v52 = vadd.f32 %v2972_v56, %v2924_v37  ;;  %v3015_v2 = vadd.f32 %v3014_v51, %v9685_v23  ;;  %v3063_v58 = vpop.f32.mrf.mxu1  ;;  %v6579_v37 = vld [vmem:[%s9122_s18 + $0x190] sm:$0xf]  ;;  %v8053_v56 = vld [vmem:[%s9122_s18 + $0x1c8] sm:$0xf0]  ;;  %v6467_v51 = vld [vmem:[%s9122_s18 + $0xa8] sm:$0xf] }
 0x1d2   : > { %3399 = vmatpush.bf16.msra.mxu0 %v6948_v55  ;;  %v8024_v59 = vld [vmem:[%s9122_s18 + $0xe0] sm:$0xf0] }
 0x1d3   : > { %v9741_v44 = vadd.f32 %v3063_v58, %v3015_v2  ;;  %3121 = vmatmul.bf16.gmra.mxu2 %v9730_v13  ;;  %3209 = vmatmul.bf16.vlgmr.msrb.gmra.mxu0 %v9732_v53  ;;  %v7767_v58 = vld [vmem:[#allocation5 + $0x740] sm:$0xf] }
 0x1d4   : > { %3258 = vmatmul.bf16.vlgmr.msrb.gmra.mxu1 %v9734_v61 }
 0x1d5   : > { %3170 = vmatmul.bf16.gmra.mxu3 %v9736_v49  ;;  %v9762_v49 = vor.u32 %v8053_v56, %v6579_v37  ;;  %v8156_v37 = vld [vmem:[#allocation5 + $0x144] sm:$0xf] }
 0x1d6   : > { %v2926_v23 = vpop.f32.mrf.mxu2 }
 0x1d7   : > { %v2927_v26 = vadd.f32 %v2926_v23, %v9549_v30  ;;  %v8349_v30 = vld [vmem:[#allocation5 + $0x744] sm:$0xf0]  ;;  %11891 = vst [vmem:[#allocation85_spill] sm:$0xff] %v9762_v49 }
 0x1d8   : > { %v2975_v34 = vpop.f32.mrf.mxu3  ;;  %v3016_v21 = vpop.f32.mrf.mxu0  ;;  %v7768_v55 = vor.u32 %v8349_v30, %v7767_v58  ;;  %v6469_v23 = vld [vmem:[%s9122_s18 + $0xe4] sm:$0xf0] }
 0x1d9   : > { %v9748_v54 = vadd.f32 %v2975_v34, %v2927_v26  ;;  %v3017_v50 = vadd.f32 %v3016_v21, %v9707_v41  ;;  %v3065_v36 = vpop.f32.mrf.mxu1  ;;  %v6581_v26 = vld [vmem:[%s9122_s18 + $0x1cc] sm:$0xf0]  ;;  %v6876_v34 = vor.u32 %v8124_v6, %v6873_v5  ;;  %v9766_v53 = vor.u32 %v8017_v33, %v6469_v23 }
 0x1da   : > { %3302 = vmatpush.bf16.msra.mxu2 %v7768_v55  ;;  %v9768_v13 = vor.u32 %v8046_v57, %v6581_v26 }
 0x1db   : > { %v9754_v2 = vadd.f32 %v3065_v36, %v3017_v50  ;;  %v9764_v50 = vor.u32 %v8024_v59, %v6467_v51  ;;  %3351 = vmatpush.bf16.msra.mxu3 %v6876_v34  ;;  %11893 = vst [vmem:[#allocation87_spill] sm:$0xff] %v9766_v53  ;;  %v7001_v51 = vld [vmem:[#allocation5 + $0x148] sm:$0xf0] }
 0x1dc   : > { %11894 = vst [vmem:[#allocation88_spill] sm:$0xff] %v9768_v13  ;;  %v7004_v59 = vor.u32 %v8156_v37, %v7001_v51  ;;  %v8032_v37 = vld [vmem:[%s9122_s18 + $0x124] sm:$0xf]  ;;  %v6865_v51 = vld [vmem:[#allocation5 + $0x38] sm:$0xf0] }
 0x1dd   : > { %11892 = vst [vmem:[#allocation86_spill] sm:$0xff] %v9764_v50 }
 0x1de   : > { %v2928_v61 = vpop.f32.mrf.mxu2  ;;  %3449 = vmatpush.bf16.msra.mxu1 %v7004_v59  ;;  %v8061_v59 = vld [vmem:[%s9122_s18 + $0x20c] sm:$0xf] }
 0x1df   : > { %v2929_v41 = vadd.f32 %v2928_v61, %v9562_v32  ;;  %v8140_v32 = vld [vmem:[#allocation5 + $0xc4] sm:$0xf]  ;;  %v6937_v61 = vld [vmem:[#allocation5 + $0xc8] sm:$0xf0] }
 0x1e0   : > { %v2977_v21 = vpop.f32.mrf.mxu3  ;;  %v3019_v36 = vpop.f32.mrf.mxu0  ;;  %v6940_v56 = vor.u32 %v8140_v32, %v6937_v61  ;;  %v8122_v32 = vld [vmem:[#allocation5 + $0x34] sm:$0xf]  ;;  %v8039_v61 = vld [vmem:[%s9122_s18 + $0x158] sm:$0xf0] }
 0x1e1   : > { %v9770_v58 = vadd.f32 %v2977_v21, %v2929_v41  ;;  %v3020_v30 = vadd.f32 %v3019_v36, %v9717_v19  ;;  %v3068_v6 = vpop.f32.mrf.mxu1  ;;  %v6639_v41 = vld [vmem:[%s9122_s18 + $0x208] sm:$0xf]  ;;  %v8068_v21 = vld [vmem:[%s9122_s18 + $0x240] sm:$0xf0]  ;;  %v6527_v36 = vld [vmem:[%s9122_s18 + $0x120] sm:$0xf] }
 0x1e2   : > { %3400 = vmatpush.bf16.msra.mxu0 %v6940_v56 }
 0x1e3   : > { %v9773_v5 = vadd.f32 %v3068_v6, %v3020_v30  ;;  %3126 = vmatmul.bf16.gmra.mxu2 %v9762_v49  ;;  %3214 = vmatmul.bf16.gmra.mxu0 %v9764_v50  ;;  %v7759_v6 = vld [vmem:[#allocation5 + $0x730] sm:$0xf] }
 0x1e4   : > { %3263 = vmatmul.bf16.gmra.mxu1 %v9766_v53 }
 0x1e5   : > { %3175 = vmatmul.bf16.gmra.mxu3 %v9768_v13  ;;  %v9794_v13 = vor.u32 %v8068_v21, %v6639_v41  ;;  %v8154_v41 = vld [vmem:[#allocation5 + $0x134] sm:$0xf] }
 0x1e6   : > { %v2931_v19 = vpop.f32.mrf.mxu2 }
 0x1e7   : > { %v2932_v33 = vadd.f32 %v2931_v19, %v9581_v27  ;;  %v8347_v27 = vld [vmem:[#allocation5 + $0x734] sm:$0xf0]  ;;  %v6529_v19 = vld [vmem:[%s9122_s18 + $0x15c] sm:$0xf0]  ;;  %11895 = vst [vmem:[#allocation89_spill] sm:$0xff] %v9794_v13 }
 0x1e8   : > { %v2980_v55 = vpop.f32.mrf.mxu3  ;;  %v3021_v23 = vpop.f32.mrf.mxu0  ;;  %v7760_v56 = vor.u32 %v8347_v27, %v7759_v6  ;;  %v9798_v50 = vor.u32 %v8032_v37, %v6529_v19 }
 0x1e9   : > { %v9780_v57 = vadd.f32 %v2980_v55, %v2932_v33  ;;  %v3022_v26 = vadd.f32 %v3021_v23, %v9738_v52  ;;  %v3070_v34 = vpop.f32.mrf.mxu1  ;;  %v6641_v33 = vld [vmem:[%s9122_s18 + $0x244] sm:$0xf0]  ;;  %v6868_v55 = vor.u32 %v8122_v32, %v6865_v51 }
 0x1ea   : > { %3303 = vmatpush.bf16.msra.mxu2 %v7760_v56  ;;  %11897 = vst [vmem:[#allocation91_spill] sm:$0xff] %v9798_v50  ;;  %v9800_v49 = vor.u32 %v8061_v59, %v6641_v33 }
 0x1eb   : > { %v9786_v30 = vadd.f32 %v3070_v34, %v3022_v26  ;;  %v9796_v26 = vor.u32 %v8039_v61, %v6527_v36  ;;  %3352 = vmatpush.bf16.msra.mxu3 %v6868_v55  ;;  %v6993_v36 = vld [vmem:[#allocation5 + $0x138] sm:$0xf0] }
 0x1ec   : > { %11898 = vst [vmem:[#allocation92_spill] sm:$0xff] %v9800_v49  ;;  %v6996_v61 = vor.u32 %v8154_v41, %v6993_v36  ;;  %v8047_v41 = vld [vmem:[%s9122_s18 + $0x19c] sm:$0xf]  ;;  %v6857_v36 = vld [vmem:[#allocation5 + $0x28] sm:$0xf0] }
 0x1ed   : > { %11896 = vst [vmem:[#allocation90_spill] sm:$0xff] %v9796_v26 }
 0x1ee   : > { %v2933_v53 = vpop.f32.mrf.mxu2  ;;  %3450 = vmatpush.bf16.msra.mxu1 %v6996_v61  ;;  %v8076_v61 = vld [vmem:[%s9122_s18 + $0x284] sm:$0xf] }
 0x1ef   : > { %v2934_v52 = vadd.f32 %v2933_v53, %v9592_v24  ;;  %v8138_v24 = vld [vmem:[#allocation5 + $0xb4] sm:$0xf]  ;;  %v6929_v53 = vld [vmem:[#allocation5 + $0xb8] sm:$0xf0] }
 0x1f0   : > { %v2982_v23 = vpop.f32.mrf.mxu3  ;;  %v3024_v34 = vpop.f32.mrf.mxu0  ;;  %v6932_v21 = vor.u32 %v8138_v24, %v6929_v53  ;;  %v8120_v24 = vld [vmem:[#allocation5 + $0x24] sm:$0xf]  ;;  %v8054_v53 = vld [vmem:[%s9122_s18 + $0x1d0] sm:$0xf0] }
 0x1f1   : > { %v9802_v6 = vadd.f32 %v2982_v23, %v2934_v52  ;;  %v3025_v27 = vadd.f32 %v3024_v34, %v9748_v54  ;;  %v3073_v32 = vpop.f32.mrf.mxu1  ;;  %v6699_v52 = vld [vmem:[%s9122_s18 + $0x280] sm:$0xf]  ;;  %v8083_v23 = vld [vmem:[%s9122_s18 + $0x2b8] sm:$0xf0]  ;;  %v6587_v34 = vld [vmem:[%s9122_s18 + $0x198] sm:$0xf] }
 0x1f2   : > { %3401 = vmatpush.bf16.msra.mxu0 %v6932_v21 }
 0x1f3   : > { %v9805_v51 = vadd.f32 %v3073_v32, %v3025_v27  ;;  %3131 = vmatmul.bf16.gmra.mxu2 %v9794_v13  ;;  %3219 = vmatmul.bf16.gmra.mxu0 %v9796_v26  ;;  %v7751_v32 = vld [vmem:[#allocation5 + $0x720] sm:$0xf] }
 0x1f4   : > { %3268 = vmatmul.bf16.gmra.mxu1 %v9798_v50 }
 0x1f5   : > { %3180 = vmatmul.bf16.gmra.mxu3 %v9800_v49  ;;  %v9826_v49 = vor.u32 %v8083_v23, %v6699_v52  ;;  %v8152_v52 = vld [vmem:[#allocation5 + $0x124] sm:$0xf] }
 0x1f6   : > { %v2936_v54 = vpop.f32.mrf.mxu2 }
 0x1f7   : > { %v2937_v37 = vadd.f32 %v2936_v54, %v9613_v35  ;;  %v8345_v35 = vld [vmem:[#allocation5 + $0x724] sm:$0xf0]  ;;  %v6589_v54 = vld [vmem:[%s9122_s18 + $0x1d4] sm:$0xf0]  ;;  %11899 = vst [vmem:[#allocation93_spill] sm:$0xff] %v9826_v49 }
 0x1f8   : > { %v2985_v56 = vpop.f32.mrf.mxu3  ;;  %v3026_v19 = vpop.f32.mrf.mxu0  ;;  %v7752_v21 = vor.u32 %v8345_v35, %v7751_v32  ;;  %v9830_v26 = vor.u32 %v8047_v41, %v6589_v54 }
 0x1f9   : > { %v9812_v59 = vadd.f32 %v2985_v56, %v2937_v37  ;;  %v3027_v33 = vadd.f32 %v3026_v19, %v9770_v58  ;;  %v3075_v55 = vpop.f32.mrf.mxu1  ;;  %v6701_v37 = vld [vmem:[%s9122_s18 + $0x2bc] sm:$0xf0]  ;;  %v6860_v56 = vor.u32 %v8120_v24, %v6857_v36 }
 0x1fa   : > { %3304 = vmatpush.bf16.msra.mxu2 %v7752_v21  ;;  %11901 = vst [vmem:[#allocation95_spill] sm:$0xff] %v9830_v26  ;;  %v9832_v13 = vor.u32 %v8076_v61, %v6701_v37 }
 0x1fb   : > { %v9818_v27 = vadd.f32 %v3075_v55, %v3027_v33  ;;  %v9828_v33 = vor.u32 %v8054_v53, %v6587_v34  ;;  %3353 = vmatpush.bf16.msra.mxu3 %v6860_v56  ;;  %v6985_v34 = vld [vmem:[#allocation5 + $0x128] sm:$0xf0] }
 0x1fc   : > { %11902 = vst [vmem:[#allocation96_spill] sm:$0xff] %v9832_v13 }
 0x1fd   : > { %11900 = vst [vmem:[#allocation94_spill] sm:$0xff] %v9828_v33 }
 0x1fe   : > { %v2938_v50 = vpop.f32.mrf.mxu2 }
 0x1ff   : > { %v2939_v58 = vadd.f32 %v2938_v50, %v9623_v18  ;;  %v8136_v18 = vld [vmem:[#allocation5 + $0xa4] sm:$0xf]  ;;  %v6921_v50 = vld [vmem:[#allocation5 + $0xa8] sm:$0xf0] }
 0x200   : > { %v2987_v19 = vpop.f32.mrf.mxu3  ;;  %v3029_v55 = vpop.f32.mrf.mxu0  ;;  %v6924_v23 = vor.u32 %v8136_v18, %v6921_v50  ;;  %v8118_v18 = vld [vmem:[#allocation5 + $0x14] sm:$0xf]  ;;  %v6849_v50 = vld [vmem:[#allocation5 + $0x18] sm:$0xf0] }
 0x201   : > { %v9834_v32 = vadd.f32 %v2987_v19, %v2939_v58  ;;  %v3030_v35 = vadd.f32 %v3029_v55, %v9780_v57  ;;  %v3078_v24 = vpop.f32.mrf.mxu1  ;;  %v6988_v57 = vor.u32 %v8152_v52, %v6985_v34  ;;  %v6759_v58 = vld [vmem:[%s9122_s18 + $0x2f8] sm:$0xf]  ;;  %v7743_v19 = vld [vmem:[#allocation5 + $0x710] sm:$0xf]  ;;  %v8062_v34 = vld [vmem:[%s9122_s18 + $0x214] sm:$0xf] }
 0x202   : > { %3402 = vmatpush.bf16.msra.mxu0 %v6924_v23  ;;  %v8343_v55 = vld [vmem:[#allocation5 + $0x714] sm:$0xf0]  ;;  %v6647_v52 = vld [vmem:[%s9122_s18 + $0x210] sm:$0xf]  ;;  %v8069_v23 = vld [vmem:[%s9122_s18 + $0x248] sm:$0xf0] }
 0x203   : > { %v9837_v36 = vadd.f32 %v3078_v24, %v3030_v35  ;;  %3136 = vmatmul.bf16.gmra.mxu2 %v9826_v49  ;;  %3224 = vmatmul.bf16.gmra.mxu0 %v9828_v33  ;;  %v7744_v24 = vor.u32 %v8343_v55, %v7743_v19  ;;  %v9860_v19 = vor.u32 %v8069_v23, %v6647_v52 }
 0x204   : > { %3273 = vmatmul.bf16.gmra.mxu1 %v9830_v26  ;;  %v8341_v26 = vld [vmem:[#allocation5 + $0x704] sm:$0xf0] }
 0x205   : > { %3185 = vmatmul.bf16.gmra.mxu3 %v9832_v13  ;;  %3451 = vmatpush.bf16.msra.mxu1 %v6988_v57  ;;  %v6649_v57 = vld [vmem:[%s9122_s18 + $0x24c] sm:$0xf0] }
 0x206   : > { %v2941_v53 = vpop.f32.mrf.mxu2  ;;  %3305 = vmatpush.bf16.msra.mxu2 %v7744_v24  ;;  %v9862_v49 = vor.u32 %v8062_v34, %v6649_v57 }
 0x207   : > { %v2942_v41 = vadd.f32 %v2941_v53, %v9645_v20  ;;  %v8098_v20 = vld [vmem:[%s9122_s18 + $0x330] sm:$0xf0]  ;;  %v6852_v53 = vor.u32 %v8118_v18, %v6849_v50  ;;  %v8116_v50 = vld [vmem:[#allocation5 + $0x4] sm:$0xf] }
 0x208   : > { %v2990_v21 = vpop.f32.mrf.mxu3  ;;  %v3031_v54 = vpop.f32.mrf.mxu0  ;;  %11903 = vst [vmem:[#allocation97_spill] sm:$0xff] %v9862_v49 }
 0x209   : > { %v9844_v61 = vadd.f32 %v2990_v21, %v2942_v41  ;;  %v3032_v37 = vadd.f32 %v3031_v54, %v9802_v6  ;;  %v3080_v56 = vpop.f32.mrf.mxu1  ;;  %v8091_v41 = vld [vmem:[%s9122_s18 + $0x2fc] sm:$0xf]  ;;  %v6761_v21 = vld [vmem:[%s9122_s18 + $0x334] sm:$0xf0]  ;;  %3354 = vmatpush.bf16.msra.mxu3 %v6852_v53  ;;  %v7735_v54 = vld [vmem:[#allocation5 + $0x700] sm:$0xf] }
 0x20a   : > { %v7736_v55 = vor.u32 %v8341_v26, %v7735_v54  ;;  %v9864_v18 = vor.u32 %v8091_v41, %v6761_v21  ;;  %v8134_v26 = vld [vmem:[#allocation5 + $0x94] sm:$0xf]  ;;  %v6819_v54 = vld [vmem:[%s9122_s18 + $0x370] sm:$0xf] }
 0x20b   : > { %v9848_v35 = vadd.f32 %v3080_v56, %v3032_v37  ;;  %v9858_v56 = vor.u32 %v8098_v20, %v6759_v58  ;;  %v6913_v58 = vld [vmem:[#allocation5 + $0x98] sm:$0xf0] }
 0x20c   : > { %11904 = vst [vmem:[#allocation98_spill] sm:$0xff] %v9864_v18  ;;  %3306 = vmatpush.bf16.msra.mxu2 %v7736_v55  ;;  %v6707_v55 = vld [vmem:[%s9122_s18 + $0x288] sm:$0xf] }
 0x20e   : > { %v2943_v6 = vpop.f32.mrf.mxu2 }
 0x20f   : > { %v2944_v13 = vadd.f32 %v2943_v6, %v9657_v45  ;;  %v6844_v45 = vor.u32 %v8116_v50, %v6841_v29  ;;  %v6977_v29 = vld [vmem:[#allocation5 + $0x118] sm:$0xf0]  ;;  %v8084_v50 = vld [vmem:[%s9122_s18 + $0x2c0] sm:$0xf0] }
 0x210   : > { %v2992_v37 = vpop.f32.mrf.mxu3  ;;  %v3034_v33 = vpop.f32.mrf.mxu0 }
 0x211   : > { %v9866_v24 = vadd.f32 %v2992_v37, %v2944_v13  ;;  %v3035_v53 = vadd.f32 %v3034_v33, %v9812_v59  ;;  %v3083_v28 = vpop.f32.mrf.mxu1  ;;  %v8150_v13 = vld [vmem:[#allocation5 + $0x114] sm:$0xf]  ;;  %3355 = vmatpush.bf16.msra.mxu3 %v6844_v45  ;;  %v6916_v59 = vor.u32 %v8134_v26, %v6913_v58  ;;  %v8113_v37 = vld [vmem:[%s9122_s18 + $0x3a8] sm:$0xf0]  ;;  %v6709_v45 = vld [vmem:[%s9122_s18 + $0x2c4] sm:$0xf0] }
 0x212   : > { %v6980_v33 = vor.u32 %v8150_v13, %v6977_v29  ;;  %v8106_v26 = vld [vmem:[%s9122_s18 + $0x374] sm:$0xf]  ;;  %v9890_v29 = vor.u32 %v8113_v37, %v6819_v54  ;;  %v6905_v54 = vld [vmem:[#allocation5 + $0x88] sm:$0xf0]  ;;  %v8148_v37 = vld [vmem:[#allocation5 + $0x104] sm:$0xf] }
 0x213   : > { %v9869_v6 = vadd.f32 %v3083_v28, %v3035_v53  ;;  %3141 = vmatmul.bf16.gmra.mxu2 %v9858_v56  ;;  %3229 = vmatmul.bf16.gmra.mxu0 %v9860_v19  ;;  %v8077_v53 = vld [vmem:[%s9122_s18 + $0x28c] sm:$0xf] }
 0x214   : > { %3278 = vmatmul.bf16.gmra.mxu1 %v9862_v49  ;;  %3403 = vmatpush.bf16.msra.mxu0 %v6916_v59 }
 0x215   : > { %3190 = vmatmul.bf16.gmra.mxu3 %v9864_v18  ;;  %3452 = vmatpush.bf16.msra.mxu1 %v6980_v33  ;;  %v9894_v33 = vor.u32 %v8077_v53, %v6709_v45 }
 0x216   : > { %v2946_v28 = vpop.f32.mrf.mxu2 }
 0x217   : > { %v2947_v20 = vadd.f32 %v2946_v28, %v9677_v25  ;;  %v6821_v25 = vld [vmem:[%s9122_s18 + $0x3ac] sm:$0xf0]  ;;  %v9892_v28 = vor.u32 %v8084_v50, %v6707_v55  ;;  %11906 = vst [vmem:[#allocation100_spill] sm:$0xff] %v9894_v33  ;;  %v6969_v50 = vld [vmem:[#allocation5 + $0x108] sm:$0xf0] }
 0x218   : > { %v2995_v52 = vpop.f32.mrf.mxu3  ;;  %v3036_v23 = vpop.f32.mrf.mxu0 }
 0x219   : > { %v9876_v34 = vadd.f32 %v2995_v52, %v2947_v20  ;;  %v3037_v57 = vadd.f32 %v3036_v23, %v9834_v32  ;;  %v3085_v41 = vpop.f32.mrf.mxu1  ;;  %11905 = vst [vmem:[#allocation99_spill] sm:$0xff] %v9892_v28  ;;  %v9896_v20 = vor.u32 %v8106_v26, %v6821_v25 }
 0x21b   : > { %v9879_v21 = vadd.f32 %v3085_v41, %v3037_v57  ;;  %11907 = vst [vmem:[#allocation101_spill] sm:$0xff] %v9896_v20 }
 0x21e   : > { %v2948_v58 = vpop.f32.mrf.mxu2 }
 0x21f   : > { %v2949_v13 = vadd.f32 %v2948_v58, %v9689_v43  ;;  %v8132_v43 = vld [vmem:[#allocation5 + $0x84] sm:$0xf] }
 0x220   : > { %v2997_v59 = vpop.f32.mrf.mxu3  ;;  %v3039_v32 = vpop.f32.mrf.mxu0  ;;  %v6908_v55 = vor.u32 %v8132_v43, %v6905_v54  ;;  %v8178_v43 = vld [vmem:[#allocation5 + $0x1f4] sm:$0xf]  ;;  %v7089_v54 = vld [vmem:[#allocation5 + $0x1f8] sm:$0xf0] }
 0x221   : > { %v9898_v52 = vadd.f32 %v2997_v59, %v2949_v13  ;;  %v3040_v23 = vadd.f32 %v3039_v32, %v9844_v61  ;;  %v3088_v57 = vpop.f32.mrf.mxu1  ;;  %v6972_v61 = vor.u32 %v8148_v37, %v6969_v50  ;;  %v6767_v32 = vld [vmem:[%s9122_s18 + $0x300] sm:$0xf]  ;;  %v8194_v37 = vld [vmem:[#allocation5 + $0x274] sm:$0xf]  ;;  %v6415_v50 = vld [vmem:[%s9122_s18 + $0x38] sm:$0xf] }
 0x222   : > { %3404 = vmatpush.bf16.msra.mxu0 %v6908_v55  ;;  %v7153_v55 = vld [vmem:[#allocation5 + $0x278] sm:$0xf0] }
 0x223   : > { %v9901_v41 = vadd.f32 %v3088_v57, %v3040_v23  ;;  %3146 = vmatmul.bf16.gmra.mxu2 %v9890_v29  ;;  %3234 = vmatmul.bf16.gmra.mxu0 %v9892_v28  ;;  %v8099_v23 = vld [vmem:[%s9122_s18 + $0x338] sm:$0xf0]  ;;  %v7156_v49 = vor.u32 %v8194_v37, %v7153_v55 }
 0x224   : > { %3283 = vmatmul.bf16.gmra.mxu1 %v9894_v33  ;;  %v8092_v33 = vld [vmem:[%s9122_s18 + $0x304] sm:$0xf] }
 0x225   : > { %3195 = vmatmul.bf16.gmra.mxu3 %v9896_v20  ;;  %3453 = vmatpush.bf16.msra.mxu1 %v6972_v61  ;;  %v6769_v20 = vld [vmem:[%s9122_s18 + $0x33c] sm:$0xf0] }
 0x226   : > { %v2951_v53 = vpop.f32.mrf.mxu2  ;;  %3544 = vmatpush.bf16.msrb.mxu3 %v7156_v49  ;;  %v8210_v49 = vld [vmem:[#allocation5 + $0x2f4] sm:$0xf] }
 0x227   : > { %v2952_v45 = vadd.f32 %v2951_v53, %v9709_v12  ;;  %v8010_v12 = vld [vmem:[%s9122_s18 + $0x70] sm:$0xf0]  ;;  %v7092_v53 = vor.u32 %v8178_v43, %v7089_v54 }
 0x228   : > { %v3000_v26 = vpop.f32.mrf.mxu3  ;;  %v3041_v25 = vpop.f32.mrf.mxu0 }
 0x229   : > { %v9908_v58 = vadd.f32 %v3000_v26, %v2952_v45  ;;  %v3042_v13 = vadd.f32 %v3041_v25, %v9866_v24  ;;  %v3090_v59 = vpop.f32.mrf.mxu1  ;;  %3495 = vmatpush.bf16.msrb.mxu2 %v7092_v53  ;;  %v9920_v26 = vor.u32 %v8099_v23, %v6767_v32  ;;  %v9922_v25 = vor.u32 %v8010_v12, %v6415_v50  ;;  %v7281_v32 = vld [vmem:[#allocation5 + $0x378] sm:$0xf0] }
 0x22b   : > { %v9913_v57 = vadd.f32 %v3090_v59, %v3042_v13  ;;  %11908 = vst [vmem:[#allocation102_spill] sm:$0xff] %v9920_v26  ;;  %v9924_v59 = vor.u32 %v8092_v33, %v6769_v20  ;;  %v8226_v33 = vld [vmem:[#allocation5 + $0x374] sm:$0xf] }
 0x22d   : > { %11909 = vst [vmem:[#allocation103_spill] sm:$0xff] %v9924_v59 }
 0x22e   : > { %v2953_v61 = vpop.f32.mrf.mxu2 }
 0x22f   : > { %v2954_v45 = vadd.f32 %v2953_v61, %v9722_v7  ;;  %v7217_v7 = vld [vmem:[#allocation5 + $0x2f8] sm:$0xf0]  ;;  %v6827_v61 = vld [vmem:[%s9122_s18 + $0x378] sm:$0xf] }
 0x230   : > { %v3002_v24 = vpop.f32.mrf.mxu3  ;;  %v3044_v13 = vpop.f32.mrf.mxu0  ;;  %v7220_v20 = vor.u32 %v8210_v49, %v7217_v7  ;;  %v6475_v49 = vld [vmem:[%s9122_s18 + $0xb0] sm:$0xf] }
 0x231   : > { %v9926_v18 = vadd.f32 %v3002_v24, %v2954_v45  ;;  %v3045_v43 = vadd.f32 %v3044_v13, %v9876_v34  ;;  %v3093_v54 = vpop.f32.mrf.mxu1  ;;  %v7284_v34 = vor.u32 %v8226_v33, %v7281_v32  ;;  %v8114_v45 = vld [vmem:[%s9122_s18 + $0x3b0] sm:$0xf0]  ;;  %v8176_v13 = vld [vmem:[#allocation5 + $0x1e4] sm:$0xf]  ;;  %v7145_v33 = vld [vmem:[#allocation5 + $0x268] sm:$0xf0] }
 0x232   : > { %3593 = vmatpush.bf16.msrb.mxu0 %v7220_v20  ;;  %v8107_v20 = vld [vmem:[%s9122_s18 + $0x37c] sm:$0xf]  ;;  %v6829_v32 = vld [vmem:[%s9122_s18 + $0x3b4] sm:$0xf0] }
 0x233   : > { %v9929_v28 = vadd.f32 %v3093_v54, %v3045_v43  ;;  %3239 = vmatmul.bf16.gmra.mxu0 %v9920_v26  ;;  %3307 = vmatmul.bf16.vlgmr.msra.gmra.mxu2 %v9922_v25  ;;  %v7081_v43 = vld [vmem:[#allocation5 + $0x1e8] sm:$0xf0]  ;;  %v8192_v54 = vld [vmem:[#allocation5 + $0x264] sm:$0xf] }
 0x234   : > { %3288 = vmatmul.bf16.gmra.mxu1 %v9924_v59  ;;  %v7084_v7 = vor.u32 %v8176_v13, %v7081_v43 }
 0x235   : > { %3356 = vmatmul.bf16.vlgmr.msra.gmra.mxu3 %v9154_v3  ;;  %3642 = vmatpush.bf16.msrb.mxu1 %v7284_v34 }
 0x236   : > { %v3112_v23 = vpop.f32.mrf.mxu2  ;;  %3496 = vmatpush.bf16.msrb.mxu2 %v7084_v7 }
 0x237   : > { %v3113_v37 = vadd.f32 %v3112_v23, %v9741_v44  ;;  %v8025_v44 = vld [vmem:[%s9122_s18 + $0xe8] sm:$0xf0]  ;;  %v7148_v23 = vor.u32 %v8192_v54, %v7145_v33 }
 0x238   : > { %v3161_v50 = vpop.f32.mrf.mxu3  ;;  %v3046_v12 = vpop.f32.mrf.mxu0 }
 0x239   : > { %v3047_v3 = vadd.f32 %v3046_v12, %v9898_v52  ;;  %v3095_v53 = vpop.f32.mrf.mxu1  ;;  %v9937_v55 = vadd.f32 %v3161_v50, %v3113_v37  ;;  %v9948_v50 = vor.u32 %v8114_v45, %v6827_v61  ;;  %v9950_v12 = vor.u32 %v8025_v44, %v6475_v49  ;;  %3545 = vmatpush.bf16.msrb.mxu3 %v7148_v23  ;;  %v7209_v61 = vld [vmem:[#allocation5 + $0x2e8] sm:$0xf0]  ;;  %v8224_v45 = vld [vmem:[#allocation5 + $0x364] sm:$0xf] }
 0x23a   : > { %v7273_v49 = vld [vmem:[#allocation5 + $0x368] sm:$0xf0] }
 0x23b   : > { %v9941_v24 = vadd.f32 %v3095_v53, %v3047_v3  ;;  %v9952_v53 = vor.u32 %v8107_v20, %v6829_v32  ;;  %v7276_v44 = vor.u32 %v8224_v45, %v7273_v49 }
 0x23d   : > { %3643 = vmatpush.bf16.msrb.mxu1 %v7276_v44 }
 0x23e   : > { %v3114_v34 = vpop.f32.mrf.mxu2 }
 0x23f   : > { %v3115_v52 = vadd.f32 %v3114_v34, %v9754_v2  ;;  %v8208_v2 = vld [vmem:[#allocation5 + $0x2e4] sm:$0xf]  ;;  %v8174_v34 = vld [vmem:[#allocation5 + $0x1d4] sm:$0xf] }
 0x240   : > { %v3163_v37 = vpop.f32.mrf.mxu3  ;;  %v3049_v3 = vpop.f32.mrf.mxu0  ;;  %v7212_v54 = vor.u32 %v8208_v2, %v7209_v61  ;;  %v7137_v61 = vld [vmem:[#allocation5 + $0x258] sm:$0xf0] }
 0x241   : > { %v3050_v59 = vadd.f32 %v3049_v3, %v9908_v58  ;;  %v3098_v13 = vpop.f32.mrf.mxu1  ;;  %v3164_v43 = vadd.f32 %v3163_v37, %v3115_v52  ;;  %v7073_v52 = vld [vmem:[#allocation5 + $0x1d8] sm:$0xf0]  ;;  %v8190_v37 = vld [vmem:[#allocation5 + $0x254] sm:$0xf]  ;;  %v6535_v3 = vld [vmem:[%s9122_s18 + $0x128] sm:$0xf] }
 0x242   : > { %3594 = vmatpush.bf16.msrb.mxu0 %v7212_v54  ;;  %v7076_v2 = vor.u32 %v8174_v34, %v7073_v52  ;;  %v7140_v45 = vor.u32 %v8190_v37, %v7137_v61  ;;  %v7265_v52 = vld [vmem:[#allocation5 + $0x358] sm:$0xf0] }
 0x243   : > { %v9955_v26 = vadd.f32 %v3098_v13, %v3050_v59  ;;  %3244 = vmatmul.bf16.gmra.mxu0 %v9948_v50  ;;  %3312 = vmatmul.bf16.gmra.mxu2 %v9950_v12  ;;  %v8040_v13 = vld [vmem:[%s9122_s18 + $0x160] sm:$0xf0] }
 0x244   : > { %3293 = vmatmul.bf16.gmra.mxu1 %v9952_v53  ;;  %3497 = vmatpush.bf16.msrb.mxu2 %v7076_v2 }
 0x245   : > { %3361 = vmatmul.bf16.gmra.mxu3 %v9174_v62 }
 0x246   : > { %v3117_v58 = vpop.f32.mrf.mxu2  ;;  %3546 = vmatpush.bf16.msrb.mxu3 %v7140_v45 }
 0x247   : > { %v3118_v59 = vadd.f32 %v3117_v58, %v9773_v5  ;;  %v9968_v58 = vor.u32 %v8040_v13, %v6535_v3 }
 0x248   : > { %v3166_v7 = vpop.f32.mrf.mxu3  ;;  %v3051_v33 = vpop.f32.mrf.mxu0 }
 0x249   : > { %v3052_v20 = vadd.f32 %v3051_v33, %v9926_v18  ;;  %v3100_v32 = vpop.f32.mrf.mxu1  ;;  %v3167_v23 = vadd.f32 %v3166_v7, %v3118_v59 }
 0x24b   : > { %v9963_v62 = vadd.f32 %v3100_v32, %v3052_v20  ;;  %v7201_v20 = vld [vmem:[#allocation5 + $0x2d8] sm:$0xf0]  ;;  %v8222_v32 = vld [vmem:[#allocation5 + $0x354] sm:$0xf] }
 0x24e   : > { %v3119_v49 = vpop.f32.mrf.mxu2 }
 0x24f   : > { %v3120_v5 = vadd.f32 %v3119_v49, %v9786_v30  ;;  %v8206_v30 = vld [vmem:[#allocation5 + $0x2d4] sm:$0xf]  ;;  %v7065_v49 = vld [vmem:[#allocation5 + $0x1c8] sm:$0xf0] }
 0x250   : > { %v3168_v54 = vpop.f32.mrf.mxu3  ;;  %v3210_v18 = vpop.f32.mrf.mxu0  ;;  %v7204_v34 = vor.u32 %v8206_v30, %v7201_v20 }
 0x251   : > { %v3169_v44 = vadd.f32 %v3168_v54, %v3120_v5  ;;  %v3211_v59 = vadd.f32 %v3210_v18, %v9937_v55  ;;  %v3259_v7 = vpop.f32.mrf.mxu1  ;;  %v7268_v55 = vor.u32 %v8222_v32, %v7265_v52  ;;  %v8188_v5 = vld [vmem:[#allocation5 + $0x244] sm:$0xf]  ;;  %v6595_v54 = vld [vmem:[%s9122_s18 + $0x1a0] sm:$0xf]  ;;  %v8055_v18 = vld [vmem:[%s9122_s18 + $0x1d8] sm:$0xf0] }
 0x252   : > { %3595 = vmatpush.bf16.msrb.mxu0 %v7204_v34  ;;  %v9983_v34 = vor.u32 %v8055_v18, %v6595_v54 }
 0x253   : > { %v9971_v33 = vadd.f32 %v3259_v7, %v3211_v59  ;;  %3317 = vmatmul.bf16.gmra.mxu2 %v9968_v58  ;;  %3405 = vmatmul.bf16.vlgmr.msra.gmra.mxu0 %v9158_v8  ;;  %v7129_v7 = vld [vmem:[#allocation5 + $0x248] sm:$0xf0] }
 0x254   : > { %3454 = vmatmul.bf16.vlgmr.msra.gmra.mxu1 %v9216_v15  ;;  %v7132_v30 = vor.u32 %v8188_v5, %v7129_v7  ;;  %v7057_v7 = vld [vmem:[#allocation5 + $0x1b8] sm:$0xf0] }
 0x255   : > { %3366 = vmatmul.bf16.gmra.mxu3 %v9194_v46  ;;  %3644 = vmatpush.bf16.msrb.mxu1 %v7268_v55  ;;  %v8172_v46 = vld [vmem:[#allocation5 + $0x1c4] sm:$0xf] }
 0x256   : > { %v3122_v37 = vpop.f32.mrf.mxu2  ;;  %v7068_v59 = vor.u32 %v8172_v46, %v7065_v49  ;;  %3547 = vmatpush.bf16.msrb.mxu3 %v7132_v30  ;;  %v8186_v30 = vld [vmem:[#allocation5 + $0x234] sm:$0xf] }
 0x257   : > { %v3123_v3 = vadd.f32 %v3122_v37, %v9805_v51 }
 0x258   : > { %v3171_v13 = vpop.f32.mrf.mxu3  ;;  %v3212_v2 = vpop.f32.mrf.mxu0  ;;  %3498 = vmatpush.bf16.msrb.mxu2 %v7068_v59 }
 0x259   : > { %v3172_v8 = vadd.f32 %v3171_v13, %v3123_v3  ;;  %v3213_v61 = vadd.f32 %v3212_v2, %v3164_v43  ;;  %v3261_v15 = vpop.f32.mrf.mxu1  ;;  %v8204_v13 = vld [vmem:[#allocation5 + $0x2c4] sm:$0xf] }
 0x25a   : > { %v8220_v2 = vld [vmem:[#allocation5 + $0x344] sm:$0xf] }
 0x25b   : > { %v9978_v45 = vadd.f32 %v3261_v15, %v3213_v61  ;;  %v7257_v15 = vld [vmem:[#allocation5 + $0x348] sm:$0xf0] }
 0x25e   : > { %v3124_v20 = vpop.f32.mrf.mxu2 }
 0x25f   : > { %v3125_v51 = vadd.f32 %v3124_v20, %v9818_v27  ;;  %v7193_v27 = vld [vmem:[#allocation5 + $0x2c8] sm:$0xf0]  ;;  %v6655_v20 = vld [vmem:[%s9122_s18 + $0x218] sm:$0xf] }
 0x260   : > { %v3173_v32 = vpop.f32.mrf.mxu3  ;;  %v3215_v43 = vpop.f32.mrf.mxu0  ;;  %v7196_v61 = vor.u32 %v8204_v13, %v7193_v27 }
 0x261   : > { %v3174_v52 = vadd.f32 %v3173_v32, %v3125_v51  ;;  %v3216_v37 = vadd.f32 %v3215_v43, %v3167_v23  ;;  %v3264_v55 = vpop.f32.mrf.mxu1  ;;  %v7260_v23 = vor.u32 %v8220_v2, %v7257_v15  ;;  %v8070_v51 = vld [vmem:[%s9122_s18 + $0x250] sm:$0xf0]  ;;  %v7121_v43 = vld [vmem:[#allocation5 + $0x238] sm:$0xf0] }
 0x262   : > { %3596 = vmatpush.bf16.msrb.mxu0 %v7196_v61  ;;  %v9997_v27 = vor.u32 %v8070_v51, %v6655_v20  ;;  %v8168_v20 = vld [vmem:[#allocation5 + $0x1a4] sm:$0xf]  ;;  %v7049_v51 = vld [vmem:[#allocation5 + $0x1a8] sm:$0xf0] }
 0x263   : > { %v9985_v3 = vadd.f32 %v3264_v55, %v3216_v37  ;;  %3322 = vmatmul.bf16.gmra.mxu2 %v9983_v34  ;;  %3410 = vmatmul.bf16.gmra.mxu0 %v9178_v0  ;;  %v7124_v37 = vor.u32 %v8186_v30, %v7121_v43  ;;  %v6715_v43 = vld [vmem:[%s9122_s18 + $0x290] sm:$0xf] }
 0x264   : > { %3459 = vmatmul.bf16.gmra.mxu1 %v9236_v39 }
 0x265   : > { %3371 = vmatmul.bf16.gmra.mxu3 %v9214_v14  ;;  %3645 = vmatpush.bf16.msrb.mxu1 %v7260_v23  ;;  %v8170_v14 = vld [vmem:[#allocation5 + $0x1b4] sm:$0xf] }
 0x266   : > { %v3127_v46 = vpop.f32.mrf.mxu2  ;;  %v7060_v32 = vor.u32 %v8170_v14, %v7057_v7  ;;  %3548 = vmatpush.bf16.msrb.mxu3 %v7124_v37  ;;  %v8202_v23 = vld [vmem:[#allocation5 + $0x2b4] sm:$0xf]  ;;  %v8085_v37 = vld [vmem:[%s9122_s18 + $0x2c8] sm:$0xf0] }
 0x267   : > { %v3128_v49 = vadd.f32 %v3127_v46, %v9837_v36 }
 0x268   : > { %v3176_v5 = vpop.f32.mrf.mxu3  ;;  %v3217_v54 = vpop.f32.mrf.mxu0  ;;  %3499 = vmatpush.bf16.msrb.mxu2 %v7060_v32  ;;  %v8184_v32 = vld [vmem:[#allocation5 + $0x224] sm:$0xf] }
 0x269   : > { %v3177_v0 = vadd.f32 %v3176_v5, %v3128_v49  ;;  %v3218_v18 = vadd.f32 %v3217_v54, %v3169_v44  ;;  %v3266_v39 = vpop.f32.mrf.mxu1  ;;  %v8218_v49 = vld [vmem:[#allocation5 + $0x334] sm:$0xf]  ;;  %v7249_v54 = vld [vmem:[#allocation5 + $0x338] sm:$0xf0] }
 0x26b   : > { %v9992_v59 = vadd.f32 %v3266_v39, %v3218_v18 }
 0x26e   : > { %v3129_v55 = vpop.f32.mrf.mxu2 }
 0x26f   : > { %v3130_v36 = vadd.f32 %v3129_v55, %v9848_v35  ;;  %v7185_v35 = vld [vmem:[#allocation5 + $0x2b8] sm:$0xf0]  ;;  %v7052_v55 = vor.u32 %v8168_v20, %v7049_v51  ;;  %v8166_v51 = vld [vmem:[#allocation5 + $0x194] sm:$0xf] }
 0x270   : > { %v3178_v13 = vpop.f32.mrf.mxu3  ;;  %v3220_v44 = vpop.f32.mrf.mxu0  ;;  %v7188_v5 = vor.u32 %v8202_v23, %v7185_v35 }
 0x271   : > { %v3179_v2 = vadd.f32 %v3178_v13, %v3130_v36  ;;  %v3221_v61 = vadd.f32 %v3220_v44, %v3172_v8  ;;  %v3269_v15 = vpop.f32.mrf.mxu1  ;;  %v7252_v8 = vor.u32 %v8218_v49, %v7249_v54  ;;  %v7113_v36 = vld [vmem:[#allocation5 + $0x228] sm:$0xf0]  ;;  %3500 = vmatpush.bf16.msrb.mxu2 %v7052_v55  ;;  %v7105_v55 = vld [vmem:[#allocation5 + $0x218] sm:$0xf0] }
 0x272   : > { %3597 = vmatpush.bf16.msrb.mxu0 %v7188_v5  ;;  %v7116_v13 = vor.u32 %v8184_v32, %v7113_v36  ;;  %v7177_v54 = vld [vmem:[#allocation5 + $0x2a8] sm:$0xf0]  ;;  %v6775_v36 = vld [vmem:[%s9122_s18 + $0x308] sm:$0xf] }
 0x273   : > { %v9999_v46 = vadd.f32 %v3269_v15, %v3221_v61  ;;  %3327 = vmatmul.bf16.gmra.mxu2 %v9997_v27  ;;  %3415 = vmatmul.bf16.gmra.mxu0 %v9198_v48  ;;  %v10013_v15 = vor.u32 %v8085_v37, %v6715_v43  ;;  %v8182_v37 = vld [vmem:[#allocation5 + $0x214] sm:$0xf] }
 0x274   : > { %3464 = vmatmul.bf16.gmra.mxu1 %v9254_v10  ;;  %3549 = vmatpush.bf16.msrb.mxu3 %v7116_v13  ;;  %v8100_v13 = vld [vmem:[%s9122_s18 + $0x340] sm:$0xf0] }
 0x275   : > { %3376 = vmatmul.bf16.gmra.mxu3 %v9234_v38  ;;  %3646 = vmatpush.bf16.msrb.mxu1 %v7252_v8 }
 0x276   : > { %v3132_v18 = vpop.f32.mrf.mxu2 }
 0x277   : > { %v3133_v39 = vadd.f32 %v3132_v18, %v9869_v6  ;;  %v8216_v18 = vld [vmem:[#allocation5 + $0x324] sm:$0xf] }
 0x278   : > { %v3181_v14 = vpop.f32.mrf.mxu3  ;;  %v3222_v7 = vpop.f32.mrf.mxu0 }
 0x279   : > { %v10006_v48 = vadd.f32 %v3181_v14, %v3133_v39  ;;  %v3223_v10 = vadd.f32 %v3222_v7, %v3174_v52  ;;  %v3271_v30 = vpop.f32.mrf.mxu1  ;;  %v7241_v39 = vld [vmem:[#allocation5 + $0x328] sm:$0xf0] }
 0x27a   : > { %v7244_v7 = vor.u32 %v8216_v18, %v7241_v39  ;;  %v7097_v18 = vld [vmem:[#allocation5 + $0x208] sm:$0xf0] }
 0x27b   : > { %v10008_v38 = vadd.f32 %v3271_v30, %v3223_v10 }
 0x27c   : > { %3647 = vmatpush.bf16.msrb.mxu1 %v7244_v7 }
 0x27e   : > { %v3134_v44 = vpop.f32.mrf.mxu2 }
 0x27f   : > { %v3135_v6 = vadd.f32 %v3134_v44, %v9879_v21  ;;  %v8200_v21 = vld [vmem:[#allocation5 + $0x2a4] sm:$0xf]  ;;  %v7108_v44 = vor.u32 %v8182_v37, %v7105_v55 }
 0x280   : > { %v3183_v61 = vpop.f32.mrf.mxu3  ;;  %v3225_v52 = vpop.f32.mrf.mxu0  ;;  %v7180_v8 = vor.u32 %v8200_v21, %v7177_v54  ;;  %v8180_v54 = vld [vmem:[#allocation5 + $0x204] sm:$0xf] }
 0x281   : > { %v10015_v23 = vadd.f32 %v3183_v61, %v3135_v6  ;;  %v3226_v35 = vadd.f32 %v3225_v52, %v3177_v0  ;;  %v3274_v49 = vpop.f32.mrf.mxu1  ;;  %3550 = vmatpush.bf16.msrb.mxu3 %v7108_v44  ;;  %v7033_v61 = vld [vmem:[#allocation5 + $0x188] sm:$0xf0]  ;;  %v7100_v7 = vor.u32 %v8180_v54, %v7097_v18 }
 0x282   : > { %3598 = vmatpush.bf16.msrb.mxu0 %v7180_v8  ;;  %v7161_v54 = vld [vmem:[#allocation5 + $0x288] sm:$0xf0] }
 0x283   : > { %v10017_v5 = vadd.f32 %v3274_v49, %v3226_v35  ;;  %3332 = vmatmul.bf16.gmra.mxu2 %v10013_v15  ;;  %3420 = vmatmul.bf16.gmra.mxu0 %v9218_v16 }
 0x284   : > { %3469 = vmatmul.bf16.gmra.mxu1 %v9274_v42 }
 0x285   : > { %3381 = vmatmul.bf16.gmra.mxu3 %v9156_v4  ;;  %v7041_v4 = vld [vmem:[#allocation5 + $0x198] sm:$0xf0] }
 0x286   : > { %v3137_v14 = vpop.f32.mrf.mxu2  ;;  %v7044_v43 = vor.u32 %v8166_v51, %v7041_v4  ;;  %3551 = vmatpush.bf16.msrb.mxu3 %v7100_v7 }
 0x287   : > { %v3138_v0 = vadd.f32 %v3137_v14, %v9901_v41  ;;  %v8164_v41 = vld [vmem:[#allocation5 + $0x184] sm:$0xf] }
 0x288   : > { %v3186_v10 = vpop.f32.mrf.mxu3  ;;  %v3227_v30 = vpop.f32.mrf.mxu0  ;;  %3501 = vmatpush.bf16.msrb.mxu2 %v7044_v43  ;;  %v7036_v49 = vor.u32 %v8164_v41, %v7033_v61 }
 0x289   : > { %v3187_v16 = vadd.f32 %v3186_v10, %v3138_v0  ;;  %v3228_v20 = vadd.f32 %v3227_v30, %v3179_v2  ;;  %v3276_v42 = vpop.f32.mrf.mxu1  ;;  %v10029_v2 = vor.u32 %v8100_v13, %v6775_v36  ;;  %v7169_v10 = vld [vmem:[#allocation5 + $0x298] sm:$0xf0]  ;;  %v8214_v30 = vld [vmem:[#allocation5 + $0x314] sm:$0xf]  ;;  %v6835_v36 = vld [vmem:[%s9122_s18 + $0x380] sm:$0xf] }
 0x28a   : > { %v8115_v13 = vld [vmem:[%s9122_s18 + $0x3b8] sm:$0xf0]  ;;  %s8863_s18 = scalar_lea.hbm %s11721_s8, 16 }
 0x28b   : > { %v10024_v32 = vadd.f32 %v3276_v42, %v3228_v20  ;;  %v7233_v20 = vld [vmem:[#allocation5 + $0x318] sm:$0xf0]  ;;  %v10045_v61 = vor.u32 %v8115_v13, %v6835_v36  ;;  %p8865_p10 = scmp.lt.s32.totalorder %s8863_s18, %s8859_s9 }
 0x28c   : > { %3502 = vmatpush.bf16.msrb.mxu2 %v7036_v49  ;;  %v7236_v51 = vor.u32 %v8214_v30, %v7233_v20 }
 0x28d   : > { %p8866_p11 = por %p8865_p10, %p8864_p9 }
 0x28e   : > { %v3139_v6 = vpop.f32.mrf.mxu2  ;;  %3648 = vmatpush.bf16.msrb.mxu1 %v7236_v51 }
 0x28f   : > { %v3140_v52 = vadd.f32 %v3139_v6, %v9913_v57  ;;  %v8198_v57 = vld [vmem:[#allocation5 + $0x294] sm:$0xf]  ;;  %p8867_p2 = pnand %p8866_p11, %p8862_p8 }
 0x290   : > { %v3188_v35 = vpop.f32.mrf.mxu3  ;;  %v3230_v21 = vpop.f32.mrf.mxu0 }
 0x291   : > { %v3189_v8 = vadd.f32 %v3188_v35, %v3140_v52  ;;  %v3231_v39 = vadd.f32 %v3230_v21, %v10006_v48  ;;  %v3279_v14 = vpop.f32.mrf.mxu1  ;;  %v7172_v48 = vor.u32 %v8198_v57, %v7169_v10 }
 0x293   : > { %v10032_v0 = vadd.f32 %v3279_v14, %v3231_v39  ;;  %3337 = vmatmul.bf16.gmra.mxu2 %v10029_v2  ;;  %3425 = vmatmul.bf16.gmra.mxu0 %v9238_v40  ;;  %v7225_v39 = vld [vmem:[#allocation5 + $0x308] sm:$0xf0] }
 0x294   : > { %3474 = vmatmul.bf16.gmra.mxu1 %v9294_v22  ;;  %3599 = vmatpush.bf16.msrb.mxu0 %v7172_v48 }
 0x295   : > { %3386 = vmatmul.bf16.gmra.mxu3 %v9176_v63 }
 0x296   : > { %v3142_v42 = vpop.f32.mrf.mxu2 }
 0x297   : > { %v3143_v4 = vadd.f32 %v3142_v42, %v9929_v28  ;;  %v8258_v42 = vld [vmem:[#allocation5 + $0x474] sm:$0xf] }
 0x298   : > { %v3191_v43 = vpop.f32.mrf.mxu3  ;;  %v3232_v37 = vpop.f32.mrf.mxu0 }
 0x299   : > { %v3192_v40 = vadd.f32 %v3191_v43, %v3143_v4  ;;  %v3233_v22 = vadd.f32 %v3232_v37, %v10015_v23  ;;  %v3281_v63 = vpop.f32.mrf.mxu1  ;;  %v8196_v23 = vld [vmem:[#allocation5 + $0x284] sm:$0xf]  ;;  %v7409_v4 = vld [vmem:[#allocation5 + $0x478] sm:$0xf0] }
 0x29a   : > { %v7164_v18 = vor.u32 %v8196_v23, %v7161_v54  ;;  %v7412_v43 = vor.u32 %v8258_v42, %v7409_v4  ;;  %v11910_v42 = vld [vmem:[#allocation21_spill] sm:$0xff] }
 0x29b   : > { %v10040_v55 = vadd.f32 %v3281_v63, %v3233_v22  ;;  %v11912_v4 = vld [vmem:[#allocation37_spill] sm:$0xff] }
 0x29c   : > { %3600 = vmatpush.bf16.msrb.mxu0 %v7164_v18  ;;  %3740 = vmatpush.bf16.msra.mxu3 %v7412_v43  ;;  %v11913_v43 = vld [vmem:[#allocation25_spill] sm:$0xff] }
 0x29e   : > { %v3144_v44 = vpop.f32.mrf.mxu2 }
 0x29f   : > { %v3145_v6 = vadd.f32 %v3144_v44, %v9941_v24  ;;  %v8212_v24 = vld [vmem:[#allocation5 + $0x304] sm:$0xf] }
 0x2a0   : > { %v3193_v41 = vpop.f32.mrf.mxu3  ;;  %v3235_v52 = vpop.f32.mrf.mxu0  ;;  %v7228_v7 = vor.u32 %v8212_v24, %v7225_v39  ;;  %v7337_v39 = vld [vmem:[#allocation5 + $0x3e8] sm:$0xf0] }
 0x2a1   : > { %v3194_v28 = vadd.f32 %v3193_v41, %v3145_v6  ;;  %v3236_v35 = vadd.f32 %v3235_v52, %v3187_v16  ;;  %v3284_v49 = vpop.f32.mrf.mxu1  ;;  %v8274_v6 = vld [vmem:[#allocation5 + $0x4f4] sm:$0xf]  ;;  %v7473_v41 = vld [vmem:[#allocation5 + $0x4f8] sm:$0xf0] }
 0x2a2   : > { %3649 = vmatpush.bf16.msrb.mxu1 %v7228_v7  ;;  %v8290_v52 = vld [vmem:[#allocation5 + $0x574] sm:$0xf]  ;;  %v7401_v7 = vld [vmem:[#allocation5 + $0x468] sm:$0xf0] }
 0x2a3   : > { %v10047_v21 = vadd.f32 %v3284_v49, %v3236_v35  ;;  %3342 = vmatmul.bf16.gmra.mxu2 %v10045_v61  ;;  %3430 = vmatmul.bf16.gmra.mxu0 %v9160_v9  ;;  %v7537_v35 = vld [vmem:[#allocation5 + $0x578] sm:$0xf0] }
 0x2a4   : > { %3479 = vmatmul.bf16.gmra.mxu1 %v9316_v60  ;;  %v8242_v60 = vld [vmem:[#allocation5 + $0x3f4] sm:$0xf]  ;;  %v7540_v23 = vor.u32 %v8290_v52, %v7537_v35  ;;  %v8662_v52 = vld [vmem:[#allocation7] sm:$0x3] }
 0x2a5   : > { %3391 = vmatmul.bf16.gmra.mxu3 %v9196_v47  ;;  %v7345_v47 = vld [vmem:[#allocation5 + $0x3f8] sm:$0xf0] }
 0x2a6   : > { %v3147_v14 = vpop.f32.mrf.mxu2  ;;  %v7348_v51 = vor.u32 %v8242_v60, %v7345_v47  ;;  %3838 = vmatpush.bf16.msra.mxu1 %v7540_v23 }
 0x2a7   : > { %v3148_v16 = vadd.f32 %v3147_v14, %v9955_v26 }
 0x2a8   : > { %v3196_v57 = vpop.f32.mrf.mxu3  ;;  %v3237_v10 = vpop.f32.mrf.mxu0  ;;  %3691 = vmatpush.bf16.msra.mxu2 %v7348_v51  ;;  %v11911_v51 = vld [vmem:[#allocation22_spill] sm:$0xff] }
 0x2a9   : > { %v3197_v30 = vadd.f32 %v3196_v57, %v3148_v16  ;;  %v3238_v48 = vadd.f32 %v3237_v10, %v3189_v8  ;;  %v3286_v9 = vpop.f32.mrf.mxu1 }
 0x2ab   : > { %v10054_v20 = vadd.f32 %v3286_v9, %v3238_v48 }
 0x2ae   : > { %v3149_v37 = vpop.f32.mrf.mxu2 }
 0x2af   : > { %v3150_v22 = vadd.f32 %v3149_v37, %v9963_v62  ;;  %v7476_v62 = vor.u32 %v8274_v6, %v7473_v41  ;;  %v8272_v37 = vld [vmem:[#allocation5 + $0x4e4] sm:$0xf] }
 0x2b0   : > { %v3198_v26 = vpop.f32.mrf.mxu3  ;;  %v3240_v63 = vpop.f32.mrf.mxu0 }
 0x2b1   : > { %v3199_v36 = vadd.f32 %v3198_v26, %v3150_v22  ;;  %v3241_v13 = vadd.f32 %v3240_v63, %v3192_v40  ;;  %v3289_v44 = vpop.f32.mrf.mxu1  ;;  %3789 = vmatpush.bf16.msra.mxu0 %v7476_v62  ;;  %v7465_v22 = vld [vmem:[#allocation5 + $0x4e8] sm:$0xf0]  ;;  %v10076_v62 = vperm.slane %v8662_v52, 1 }
 0x2b2   : > { %v7468_v26 = vor.u32 %v8272_v37, %v7465_v22  ;;  %v7529_v63 = vld [vmem:[#allocation5 + $0x568] sm:$0xf0]  ;;  %v7521_v37 = vld [vmem:[#allocation5 + $0x558] sm:$0xf0] }
 0x2b3   : > { %v10057_v8 = vadd.f32 %v3289_v44, %v3241_v13  ;;  %3435 = vmatmul.bf16.gmra.mxu0 %v9180_v1  ;;  %3503 = vmatmul.bf16.vlgmr.msrb.gmra.mxu2 %v9220_v17 }
 0x2b4   : > { %3484 = vmatmul.bf16.gmra.mxu1 %v9346_v31  ;;  %v8240_v31 = vld [vmem:[#allocation5 + $0x3e4] sm:$0xf] }
 0x2b5   : > { %3552 = vmatmul.bf16.vlgmr.msrb.gmra.mxu3 %v9256_v11  ;;  %v8256_v11 = vld [vmem:[#allocation5 + $0x464] sm:$0xf]  ;;  %v7340_v14 = vor.u32 %v8240_v31, %v7337_v39  ;;  %3790 = vmatpush.bf16.msra.mxu0 %v7468_v26  ;;  %v7393_v31 = vld [vmem:[#allocation5 + $0x458] sm:$0xf0] }
 0x2b6   : > { %v3308_v49 = vpop.f32.mrf.mxu2  ;;  %v7404_v16 = vor.u32 %v8256_v11, %v7401_v7 }
 0x2b7   : > { %v3309_v40 = vadd.f32 %v3308_v49, %v9971_v33  ;;  %3692 = vmatpush.bf16.msra.mxu2 %v7340_v14 }
 0x2b8   : > { %v3357_v54 = vpop.f32.mrf.mxu3  ;;  %v3242_v24 = vpop.f32.mrf.mxu0  ;;  %3741 = vmatpush.bf16.msra.mxu3 %v7404_v16 }
 0x2b9   : > { %v3243_v1 = vadd.f32 %v3242_v24, %v3194_v28  ;;  %v3291_v18 = vpop.f32.mrf.mxu1  ;;  %v7329_v24 = vld [vmem:[#allocation5 + $0x3d8] sm:$0xf0]  ;;  %v3358_v39 = vadd.f32 %v3357_v54, %v10076_v62 }
 0x2ba   : > { %v11917_v54 = vld [vmem:[#allocation28_spill] sm:$0xff] }
 0x2bb   : > { %v10064_v17 = vadd.f32 %v3291_v18, %v3243_v1  ;;  %v8254_v1 = vld [vmem:[#allocation5 + $0x454] sm:$0xf] }
 0x2bc   : > { %v7396_v11 = vor.u32 %v8254_v1, %v7393_v31  ;;  %v7385_v1 = vld [vmem:[#allocation5 + $0x448] sm:$0xf0] }
 0x2be   : > { %v3310_v57 = vpop.f32.mrf.mxu2  ;;  %3742 = vmatpush.bf16.msra.mxu3 %v7396_v11 }
 0x2bf   : > { %v3311_v10 = vadd.f32 %v3310_v57, %v9978_v45  ;;  %v8288_v45 = vld [vmem:[#allocation5 + $0x564] sm:$0xf] }
 0x2c0   : > { %v3359_v48 = vpop.f32.mrf.mxu3  ;;  %v3245_v33 = vpop.f32.mrf.mxu0  ;;  %v7532_v44 = vor.u32 %v8288_v45, %v7529_v63 }
 0x2c1   : > { %v10067_v9 = vpack.c.bf16 %v3311_v10, %v3309_v40  ;;  %v3246_v60 = vadd.f32 %v3245_v33, %v3197_v30  ;;  %v3294_v28 = vpop.f32.mrf.mxu1  ;;  %v8238_v40 = vld [vmem:[#allocation5 + $0x3d4] sm:$0xf]  ;;  %v3360_v26 = vadd.f32 %v3359_v48, %v10076_v62 }
 0x2c2   : > { %3839 = vmatpush.bf16.msra.mxu1 %v7532_v44  ;;  %v7332_v18 = vor.u32 %v8238_v40, %v7329_v24  ;;  %v8252_v40 = vld [vmem:[#allocation5 + $0x444] sm:$0xf] }
 0x2c3   : > { %v10069_v47 = vadd.f32 %v3294_v28, %v3246_v60  ;;  %3440 = vmatmul.bf16.gmra.mxu0 %v11910_v42  ;;  %3508 = vmatmul.bf16.gmra.mxu2 %v11911_v51  ;;  %v11914_v60 = vld [vmem:[#allocation24_spill] sm:$0xff]  ;;  %v11915_v28 = vld [vmem:[#allocation23_spill] sm:$0xff]  ;;  %v11916_v42 = vld [vmem:[#allocation42_spill] sm:$0xff]  ;;  %v7388_v31 = vor.u32 %v8252_v40, %v7385_v1 }
 0x2c4   : > { %3489 = vmatmul.bf16.gmra.mxu1 %v11912_v4  ;;  %3693 = vmatpush.bf16.msra.mxu2 %v7332_v18  ;;  %v8270_v51 = vld [vmem:[#allocation5 + $0x4d4] sm:$0xf]  ;;  %v7457_v4 = vld [vmem:[#allocation5 + $0x4d8] sm:$0xf0] }
 0x2c5   : > { %3557 = vmatmul.bf16.gmra.mxu3 %v11913_v43  ;;  %v7460_v43 = vor.u32 %v8270_v51, %v7457_v4  ;;  %v7513_v4 = vld [vmem:[#allocation5 + $0x548] sm:$0xf0] }
 0x2c6   : > { %v3313_v13 = vpop.f32.mrf.mxu2  ;;  %3743 = vmatpush.bf16.msra.mxu3 %v7388_v31 }
 0x2c7   : > { %v3314_v30 = vadd.f32 %v3313_v13, %v9985_v3  ;;  %3791 = vmatpush.bf16.msra.mxu0 %v7460_v43 }
 0x2c8   : > { %v3362_v6 = vpop.f32.mrf.mxu3  ;;  %v3247_v41 = vpop.f32.mrf.mxu0 }
 0x2c9   : > { %v3248_v35 = vadd.f32 %v3247_v41, %v3199_v36  ;;  %v3296_v49 = vpop.f32.mrf.mxu1  ;;  %v3363_v18 = vadd.f32 %v3362_v6, %v10076_v62  ;;  %v11921_v6 = vld [vmem:[#allocation31_spill] sm:$0xff] }
 0x2cb   : > { %v10078_v23 = vadd.f32 %v3296_v49, %v3248_v35  ;;  %v8236_v35 = vld [vmem:[#allocation5 + $0x3c4] sm:$0xf]  ;;  %v7321_v49 = vld [vmem:[#allocation5 + $0x3c8] sm:$0xf0] }
 0x2cc   : > { %v7324_v24 = vor.u32 %v8236_v35, %v7321_v49  ;;  %v7313_v35 = vld [vmem:[#allocation5 + $0x3b8] sm:$0xf0]  ;;  %v8250_v49 = vld [vmem:[#allocation5 + $0x434] sm:$0xf] }
 0x2ce   : > { %v3315_v3 = vpop.f32.mrf.mxu2  ;;  %3694 = vmatpush.bf16.msra.mxu2 %v7324_v24  ;;  %v7377_v24 = vld [vmem:[#allocation5 + $0x438] sm:$0xf0] }
 0x2cf   : > { %v3316_v14 = vadd.f32 %v3315_v3, %v9992_v59  ;;  %v8286_v59 = vld [vmem:[#allocation5 + $0x554] sm:$0xf] }
 0x2d0   : > { %v3364_v7 = vpop.f32.mrf.mxu3  ;;  %v3406_v16 = vpop.f32.mrf.mxu0  ;;  %v7524_v45 = vor.u32 %v8286_v59, %v7521_v37 }
 0x2d1   : > { %v10082_v57 = vpack.c.bf16 %v3316_v14, %v3314_v30  ;;  %v3407_v36 = vadd.f32 %v3406_v16, %v3358_v39  ;;  %v3455_v10 = vpop.f32.mrf.mxu1  ;;  %v3365_v37 = vadd.f32 %v3364_v7, %v10076_v62 }
 0x2d2   : > { %3840 = vmatpush.bf16.msra.mxu1 %v7524_v45 }
 0x2d3   : > { %v10084_v33 = vadd.f32 %v3455_v10, %v3407_v36  ;;  %3513 = vmatmul.bf16.gmra.mxu2 %v11914_v60  ;;  %3601 = vmatmul.bf16.vlgmr.msrb.gmra.mxu0 %v11915_v28  ;;  %v11918_v10 = vld [vmem:[#allocation27_spill] sm:$0xff]  ;;  %v11919_v60 = vld [vmem:[#allocation26_spill] sm:$0xff] }
 0x2d4   : > { %3650 = vmatmul.bf16.vlgmr.msrb.gmra.mxu1 %v11916_v42  ;;  %v11920_v28 = vld [vmem:[#allocation46_spill] sm:$0xff]  ;;  %v8268_v42 = vld [vmem:[#allocation5 + $0x4c4] sm:$0xf] }
 0x2d5   : > { %3562 = vmatmul.bf16.gmra.mxu3 %v11917_v54  ;;  %v7449_v54 = vld [vmem:[#allocation5 + $0x4c8] sm:$0xf0] }
 0x2d6   : > { %v3318_v22 = vpop.f32.mrf.mxu2  ;;  %v7452_v51 = vor.u32 %v8268_v42, %v7449_v54  ;;  %v7441_v42 = vld [vmem:[#allocation5 + $0x4b8] sm:$0xf0] }
 0x2d7   : > { %v3319_v63 = vadd.f32 %v3318_v22, %v9999_v46 }
 0x2d8   : > { %v3367_v13 = vpop.f32.mrf.mxu3  ;;  %v3408_v44 = vpop.f32.mrf.mxu0  ;;  %3792 = vmatpush.bf16.msra.mxu0 %v7452_v51 }
 0x2d9   : > { %v3409_v30 = vadd.f32 %v3408_v44, %v3360_v26  ;;  %v3457_v41 = vpop.f32.mrf.mxu1  ;;  %v3368_v1 = vadd.f32 %v3367_v13, %v10076_v62  ;;  %v11925_v13 = vld [vmem:[#allocation34_spill] sm:$0xff] }
 0x2db   : > { %v10092_v52 = vadd.f32 %v3457_v41, %v3409_v30  ;;  %v8234_v41 = vld [vmem:[#allocation5 + $0x3b4] sm:$0xf] }
 0x2dc   : > { %v7316_v40 = vor.u32 %v8234_v41, %v7313_v35  ;;  %v8232_v41 = vld [vmem:[#allocation5 + $0x3a4] sm:$0xf]  ;;  %v7305_v35 = vld [vmem:[#allocation5 + $0x3a8] sm:$0xf0] }
 0x2de   : > { %v3320_v39 = vpop.f32.mrf.mxu2  ;;  %3695 = vmatpush.bf16.msra.mxu2 %v7316_v40  ;;  %v7308_v40 = vor.u32 %v8232_v41, %v7305_v35  ;;  %v8230_v41 = vld [vmem:[#allocation5 + $0x394] sm:$0xf]  ;;  %v7297_v35 = vld [vmem:[#allocation5 + $0x398] sm:$0xf0] }
 0x2df   : > { %v3321_v46 = vadd.f32 %v3320_v39, %v10008_v38  ;;  %v8284_v38 = vld [vmem:[#allocation5 + $0x544] sm:$0xf] }
 0x2e0   : > { %v3369_v48 = vpop.f32.mrf.mxu3  ;;  %v3411_v11 = vpop.f32.mrf.mxu0  ;;  %v7516_v43 = vor.u32 %v8284_v38, %v7513_v4  ;;  %v7505_v38 = vld [vmem:[#allocation5 + $0x538] sm:$0xf0] }
 0x2e1   : > { %v10096_v3 = vpack.c.bf16 %v3321_v46, %v3319_v63  ;;  %v3412_v14 = vadd.f32 %v3411_v11, %v3363_v18  ;;  %v3460_v16 = vpop.f32.mrf.mxu1  ;;  %v7380_v18 = vor.u32 %v8250_v49, %v7377_v24  ;;  %v8248_v49 = vld [vmem:[#allocation5 + $0x424] sm:$0xf]  ;;  %v7369_v24 = vld [vmem:[#allocation5 + $0x428] sm:$0xf0] }
 0x2e2   : > { %3841 = vmatpush.bf16.msra.mxu1 %v7516_v43  ;;  %3696 = vmatpush.bf16.msra.mxu2 %v7308_v40  ;;  %v7300_v40 = vor.u32 %v8230_v41, %v7297_v35 }
 0x2e3   : > { %v10098_v36 = vadd.f32 %v3460_v16, %v3412_v14  ;;  %3518 = vmatmul.bf16.gmra.mxu2 %v11918_v10  ;;  %3606 = vmatmul.bf16.gmra.mxu0 %v11919_v60  ;;  %v11922_v10 = vld [vmem:[#allocation30_spill] sm:$0xff]  ;;  %v11923_v60 = vld [vmem:[#allocation29_spill] sm:$0xff] }
 0x2e4   : > { %3655 = vmatmul.bf16.gmra.mxu1 %v11920_v28  ;;  %3744 = vmatpush.bf16.msra.mxu3 %v7380_v18  ;;  %v11924_v28 = vld [vmem:[#allocation49_spill] sm:$0xff]  ;;  %v7372_v18 = vor.u32 %v8248_v49, %v7369_v24  ;;  %v8246_v24 = vld [vmem:[#allocation5 + $0x414] sm:$0xf] }
 0x2e5   : > { %3567 = vmatmul.bf16.gmra.mxu3 %v11921_v6  ;;  %v8266_v6 = vld [vmem:[#allocation5 + $0x4b4] sm:$0xf] }
 0x2e6   : > { %v3323_v59 = vpop.f32.mrf.mxu2  ;;  %v7444_v54 = vor.u32 %v8266_v6, %v7441_v42  ;;  %v8264_v6 = vld [vmem:[#allocation5 + $0x4a4] sm:$0xf]  ;;  %3697 = vmatpush.bf16.msra.mxu2 %v7300_v40 }
 0x2e7   : > { %v3324_v22 = vadd.f32 %v3323_v59, %v10017_v5  ;;  %v3370_v59 = vadd.f32 %v3369_v48, %v10076_v62  ;;  %v8280_v42 = vld [vmem:[#allocation5 + $0x524] sm:$0xf] }
 0x2e8   : > { %v3372_v45 = vpop.f32.mrf.mxu3  ;;  %v3413_v26 = vpop.f32.mrf.mxu0  ;;  %3793 = vmatpush.bf16.msra.mxu0 %v7444_v54  ;;  %3745 = vmatpush.bf16.msra.mxu3 %v7372_v18  ;;  %v7497_v54 = vld [vmem:[#allocation5 + $0x528] sm:$0xf0] }
 0x2e9   : > { %v3414_v63 = vadd.f32 %v3413_v26, %v3365_v37  ;;  %v3462_v44 = vpop.f32.mrf.mxu1 }
 0x2eb   : > { %v10106_v30 = vadd.f32 %v3462_v44, %v3414_v63 }
 0x2ee   : > { %v3325_v31 = vpop.f32.mrf.mxu2 }
 0x2ef   : > { %v3326_v5 = vadd.f32 %v3325_v31, %v10024_v32  ;;  %v8282_v32 = vld [vmem:[#allocation5 + $0x534] sm:$0xf] }
 0x2f0   : > { %v3374_v7 = vpop.f32.mrf.mxu3  ;;  %v3416_v39 = vpop.f32.mrf.mxu0  ;;  %v7508_v4 = vor.u32 %v8282_v32, %v7505_v38 }
 0x2f1   : > { %v10110_v46 = vpack.c.bf16 %v3326_v5, %v3324_v22  ;;  %v3417_v11 = vadd.f32 %v3416_v39, %v3368_v1  ;;  %v3465_v14 = vpop.f32.mrf.mxu1  ;;  %v3373_v1 = vadd.f32 %v3372_v45, %v10076_v62  ;;  %v11928_v45 = vld [vmem:[#allocation53_spill] sm:$0xff] }
 0x2f2   : > { %3842 = vmatpush.bf16.msra.mxu1 %v7508_v4  ;;  %v3375_v4 = vadd.f32 %v3374_v7, %v10076_v62 }
 0x2f3   : > { %v10112_v16 = vadd.f32 %v3465_v14, %v3417_v11  ;;  %3523 = vmatmul.bf16.gmra.mxu2 %v11922_v10  ;;  %3611 = vmatmul.bf16.gmra.mxu0 %v11923_v60  ;;  %v11926_v60 = vld [vmem:[#allocation33_spill] sm:$0xff] }
 0x2f4   : > { %3660 = vmatmul.bf16.gmra.mxu1 %v11924_v28  ;;  %v11927_v28 = vld [vmem:[#allocation32_spill] sm:$0xff] }
 0x2f5   : > { %3572 = vmatmul.bf16.gmra.mxu3 %v11925_v13  ;;  %v11929_v13 = vld [vmem:[#allocation38_spill] sm:$0xff] }
 0x2f6   : > { %v3328_v51 = vpop.f32.mrf.mxu2 }
 0x2f7   : > { %v3329_v43 = vadd.f32 %v3328_v51, %v10032_v0  ;;  %v7500_v51 = vor.u32 %v8280_v42, %v7497_v54  ;;  %v11931_v54 = vld [vmem:[#allocation35_spill] sm:$0xff] }
 0x2f8   : > { %v3377_v37 = vpop.f32.mrf.mxu3  ;;  %v3418_v22 = vpop.f32.mrf.mxu0 }
 0x2f9   : > { %v3419_v26 = vadd.f32 %v3418_v22, %v3370_v59  ;;  %v3467_v63 = vpop.f32.mrf.mxu1  ;;  %3843 = vmatpush.bf16.msra.mxu1 %v7500_v51  ;;  %v8262_v51 = vld [vmem:[#allocation5 + $0x494] sm:$0xf] }
 0x2fb   : > { %v10120_v44 = vadd.f32 %v3467_v63, %v3419_v26 }
 0x2fe   : > { %v3330_v31 = vpop.f32.mrf.mxu2 }
 0x2ff   : > { %v3331_v0 = vadd.f32 %v3330_v31, %v10040_v55  ;;  %v7433_v55 = vld [vmem:[#allocation5 + $0x4a8] sm:$0xf0]  ;;  %v3378_v31 = vadd.f32 %v3377_v37, %v10076_v62  ;;  %v11930_v37 = vld [vmem:[#allocation36_spill] sm:$0xff] }
 0x300   : > { %v10124_v48 = vpop.f32.mrf.mxu3  ;;  %v3421_v5 = vpop.f32.mrf.mxu0  ;;  %v7436_v32 = vor.u32 %v8264_v6, %v7433_v55 }
 0x301   : > { %v10126_v39 = vpack.c.bf16 %v3331_v0, %v3329_v43  ;;  %v3422_v11 = vadd.f32 %v3421_v5, %v3373_v1  ;;  %v3470_v14 = vpop.f32.mrf.mxu1  ;;  %v7361_v1 = vld [vmem:[#allocation5 + $0x418] sm:$0xf0]  ;;  %v7289_v0 = vld [vmem:[#allocation5 + $0x388] sm:$0xf0]  ;;  %v3380_v35 = vadd.f32 %v10124_v48, %v10076_v62 }
 0x302   : > { %3794 = vmatpush.bf16.msra.mxu0 %v7436_v32  ;;  %v7364_v18 = vor.u32 %v8246_v24, %v7361_v1 }
 0x303   : > { %v10128_v10 = vadd.f32 %v3470_v14, %v3422_v11  ;;  %3528 = vmatmul.bf16.gmra.mxu2 %v11926_v60  ;;  %3616 = vmatmul.bf16.gmra.mxu0 %v11927_v28  ;;  %v8244_v28 = vld [vmem:[#allocation5 + $0x404] sm:$0xf] }
 0x304   : > { %3665 = vmatmul.bf16.gmra.mxu1 %v11928_v45  ;;  %3746 = vmatpush.bf16.msra.mxu3 %v7364_v18  ;;  %v7353_v45 = vld [vmem:[#allocation5 + $0x408] sm:$0xf0] }
 0x305   : > { %3577 = vmatmul.bf16.gmra.mxu3 %v11929_v13  ;;  %v7356_v42 = vor.u32 %v8244_v28, %v7353_v45 }
 0x306   : > { %v3333_v38 = vpop.f32.mrf.mxu2 }
 0x307   : > { %v3334_v59 = vadd.f32 %v3333_v38, %v10047_v21  ;;  %v8228_v21 = vld [vmem:[#allocation5 + $0x384] sm:$0xf] }
 0x308   : > { %v3382_v43 = vpop.f32.mrf.mxu3  ;;  %v3423_v22 = vpop.f32.mrf.mxu0  ;;  %v7292_v14 = vor.u32 %v8228_v21, %v7289_v0  ;;  %v11932_v38 = vld [vmem:[#allocation57_spill] sm:$0xff]  ;;  %3747 = vmatpush.bf16.msra.mxu3 %v7356_v42 }
 0x309   : > { %v3424_v26 = vadd.f32 %v3423_v22, %v3375_v4  ;;  %v3472_v63 = vpop.f32.mrf.mxu1  ;;  %v7425_v4 = vld [vmem:[#allocation5 + $0x498] sm:$0xf0]  ;;  %v8278_v22 = vld [vmem:[#allocation5 + $0x514] sm:$0xf]  ;;  %v3383_v21 = vadd.f32 %v3382_v43, %v10076_v62  ;;  %v11936_v42 = vld [vmem:[#allocation61_spill] sm:$0xff] }
 0x30a   : > { %3698 = vmatpush.bf16.msra.mxu2 %v7292_v14  ;;  %v8260_v43 = vld [vmem:[#allocation5 + $0x484] sm:$0xf] }
 0x30b   : > { %v10136_v49 = vadd.f32 %v3472_v63, %v3424_v26  ;;  %v7489_v26 = vld [vmem:[#allocation5 + $0x518] sm:$0xf0] }
 0x30c   : > { %v7492_v41 = vor.u32 %v8278_v22, %v7489_v26 }
 0x30e   : > { %v3335_v7 = vpop.f32.mrf.mxu2  ;;  %3844 = vmatpush.bf16.msra.mxu1 %v7492_v41 }
 0x30f   : > { %v3336_v5 = vadd.f32 %v3335_v7, %v10054_v20  ;;  %v11933_v20 = vld [vmem:[#allocation41_spill] sm:$0xff] }
 0x310   : > { %v3384_v11 = vpop.f32.mrf.mxu3  ;;  %v3426_v60 = vpop.f32.mrf.mxu0 }
 0x311   : > { %v10140_v13 = vpack.c.bf16 %v3336_v5, %v3334_v59  ;;  %v3427_v6 = vadd.f32 %v3426_v60, %v3378_v31  ;;  %v3475_v55 = vpop.f32.mrf.mxu1  ;;  %v7428_v59 = vor.u32 %v8262_v51, %v7425_v4  ;;  %v3385_v22 = vadd.f32 %v3384_v11, %v10076_v62 }
 0x313   : > { %v10142_v32 = vadd.f32 %v3475_v55, %v3427_v6  ;;  %3533 = vmatmul.bf16.gmra.mxu2 %v11930_v37  ;;  %3621 = vmatmul.bf16.gmra.mxu0 %v11931_v54  ;;  %v11934_v6 = vld [vmem:[#allocation40_spill] sm:$0xff]  ;;  %v11935_v55 = vld [vmem:[#allocation39_spill] sm:$0xff]  ;;  %v11937_v37 = vld [vmem:[#allocation45_spill] sm:$0xff] }
 0x314   : > { %3670 = vmatmul.bf16.gmra.mxu1 %v11932_v38  ;;  %3795 = vmatpush.bf16.msra.mxu0 %v7428_v59  ;;  %v7417_v54 = vld [vmem:[#allocation5 + $0x488] sm:$0xf0]  ;;  %v8276_v38 = vld [vmem:[#allocation5 + $0x504] sm:$0xf] }
 0x315   : > { %3582 = vmatmul.bf16.gmra.mxu3 %v11933_v20  ;;  %v7481_v20 = vld [vmem:[#allocation5 + $0x508] sm:$0xf0] }
 0x316   : > { %v3338_v63 = vpop.f32.mrf.mxu2  ;;  %v7484_v4 = vor.u32 %v8276_v38, %v7481_v20  ;;  %v11940_v38 = vld [vmem:[#allocation65_spill] sm:$0xff]  ;;  %v7729_v20 = vld [vmem:[#allocation5 + $0x6f8] sm:$0xf0] }
 0x317   : > { %v3339_v40 = vadd.f32 %v3338_v63, %v10057_v8 }
 0x318   : > { %v3387_v24 = vpop.f32.mrf.mxu3  ;;  %v3428_v1 = vpop.f32.mrf.mxu0  ;;  %3845 = vmatpush.bf16.msra.mxu1 %v7484_v4  ;;  %v7793_v4 = vld [vmem:[#allocation5 + $0x778] sm:$0xf0] }
 0x319   : > { %v3429_v18 = vadd.f32 %v3428_v1, %v3380_v35  ;;  %v3477_v31 = vpop.f32.mrf.mxu1  ;;  %v8306_v1 = vld [vmem:[#allocation5 + $0x5f4] sm:$0xf] }
 0x31b   : > { %v10151_v7 = vadd.f32 %v3477_v31, %v3429_v18  ;;  %v7601_v18 = vld [vmem:[#allocation5 + $0x5f8] sm:$0xf0]  ;;  %v8322_v31 = vld [vmem:[#allocation5 + $0x674] sm:$0xf] }
 0x31e   : > { %v3340_v0 = vpop.f32.mrf.mxu2 }
 0x31f   : > { %v3341_v5 = vadd.f32 %v3340_v0, %v10064_v17  ;;  %v7420_v17 = vor.u32 %v8260_v43, %v7417_v54  ;;  %v7665_v0 = vld [vmem:[#allocation5 + $0x678] sm:$0xf0]  ;;  %v11938_v43 = vld [vmem:[#allocation43_spill] sm:$0xff] }
 0x320   : > { %v3389_v14 = vpop.f32.mrf.mxu3  ;;  %v3431_v60 = vpop.f32.mrf.mxu0  ;;  %v11939_v54 = vld [vmem:[#allocation44_spill] sm:$0xff] }
 0x321   : > { %v10155_v28 = vpack.c.bf16 %v3341_v5, %v3339_v40  ;;  %v3432_v48 = vadd.f32 %v3431_v60, %v3383_v21  ;;  %v3480_v45 = vpop.f32.mrf.mxu1  ;;  %3796 = vmatpush.bf16.msra.mxu0 %v7420_v17  ;;  %v7604_v21 = vor.u32 %v8306_v1, %v7601_v18  ;;  %v3388_v5 = vadd.f32 %v3387_v24, %v10076_v62  ;;  %v11941_v24 = vld [vmem:[#allocation50_spill] sm:$0xff]  ;;  %v8338_v17 = vld [vmem:[#allocation5 + $0x6f4] sm:$0xf] }
 0x322   : > { %v7668_v60 = vor.u32 %v8322_v31, %v7665_v0 }
 0x323   : > { %v10157_v8 = vadd.f32 %v3480_v45, %v3432_v48  ;;  %3538 = vmatmul.bf16.gmra.mxu2 %v11934_v6  ;;  %3626 = vmatmul.bf16.gmra.mxu0 %v11935_v55 }
 0x324   : > { %3675 = vmatmul.bf16.gmra.mxu1 %v11936_v42  ;;  %3887 = vmatpush.bf16.msrb.mxu2 %v7604_v21 }
 0x325   : > { %3587 = vmatmul.bf16.gmra.mxu3 %v11937_v37 }
 0x326   : > { %v3343_v51 = vpop.f32.mrf.mxu2  ;;  %3936 = vmatpush.bf16.msrb.mxu3 %v7668_v60  ;;  %v7593_v60 = vld [vmem:[#allocation5 + $0x5e8] sm:$0xf0] }
 0x327   : > { %v3344_v59 = vadd.f32 %v3343_v51, %v10069_v47  ;;  %v7732_v51 = vor.u32 %v8338_v17, %v7729_v20 }
 0x328   : > { %v3392_v26 = vpop.f32.mrf.mxu3  ;;  %v3433_v63 = vpop.f32.mrf.mxu0 }
 0x329   : > { %v3434_v41 = vadd.f32 %v3433_v63, %v3385_v22  ;;  %v3482_v35 = vpop.f32.mrf.mxu1  ;;  %v3390_v63 = vadd.f32 %v3389_v14, %v10076_v62  ;;  %3985 = vmatpush.bf16.msrb.mxu0 %v7732_v51  ;;  %v11943_v51 = vld [vmem:[#allocation48_spill] sm:$0xff] }
 0x32b   : > { %v10165_v40 = vadd.f32 %v3482_v35, %v3434_v41 }
 0x32e   : > { %v3345_v48 = vpop.f32.mrf.mxu2 }
 0x32f   : > { %v3346_v47 = vadd.f32 %v3345_v48, %v10078_v23  ;;  %v8354_v23 = vld [vmem:[#allocation5 + $0x774] sm:$0xf]  ;;  %v8320_v48 = vld [vmem:[#allocation5 + $0x664] sm:$0xf] }
 0x330   : > { %v3394_v11 = vpop.f32.mrf.mxu3  ;;  %v3436_v45 = vpop.f32.mrf.mxu0 }
 0x331   : > { %v10169_v6 = vpack.c.bf16 %v3346_v47, %v3344_v59  ;;  %v3437_v55 = vadd.f32 %v3436_v45, %v3388_v5  ;;  %v3485_v42 = vpop.f32.mrf.mxu1  ;;  %v7796_v59 = vor.u32 %v8354_v23, %v7793_v4  ;;  %v8304_v5 = vld [vmem:[#allocation5 + $0x5e4] sm:$0xf]  ;;  %v7657_v45 = vld [vmem:[#allocation5 + $0x668] sm:$0xf0]  ;;  %v11942_v23 = vld [vmem:[#allocation47_spill] sm:$0xff] }
 0x332   : > { %v7596_v47 = vor.u32 %v8304_v5, %v7593_v60  ;;  %v11944_v4 = vld [vmem:[#allocation69_spill] sm:$0xff] }
 0x333   : > { %v10171_v37 = vadd.f32 %v3485_v42, %v3437_v55  ;;  %3631 = vmatmul.bf16.gmra.mxu0 %v11938_v43  ;;  %3699 = vmatmul.bf16.vlgmr.msra.gmra.mxu2 %v11939_v54  ;;  %v3393_v55 = vadd.f32 %v3392_v26, %v10076_v62  ;;  %v7660_v42 = vor.u32 %v8320_v48, %v7657_v45  ;;  %v11945_v26 = vld [vmem:[#allocation54_spill] sm:$0xff] }
 0x334   : > { %3680 = vmatmul.bf16.gmra.mxu1 %v11940_v38  ;;  %3888 = vmatpush.bf16.msrb.mxu2 %v7596_v47 }
 0x335   : > { %3748 = vmatmul.bf16.vlgmr.msra.gmra.mxu3 %v11941_v24  ;;  %4034 = vmatpush.bf16.msrb.mxu1 %v7796_v59  ;;  %v7721_v59 = vld [vmem:[#allocation5 + $0x6e8] sm:$0xf0] }
 0x336   : > { %v3504_v22 = vpop.f32.mrf.mxu2  ;;  %3937 = vmatpush.bf16.msrb.mxu3 %v7660_v42  ;;  %v8302_v42 = vld [vmem:[#allocation5 + $0x5d4] sm:$0xf] }
 0x337   : > { %v3505_v41 = vadd.f32 %v3504_v22, %v10084_v33  ;;  %v8336_v22 = vld [vmem:[#allocation5 + $0x6e4] sm:$0xf] }
 0x338   : > { %v3553_v35 = vpop.f32.mrf.mxu3  ;;  %v3438_v1 = vpop.f32.mrf.mxu0 }
 0x339   : > { %v3439_v18 = vadd.f32 %v3438_v1, %v3390_v63  ;;  %v3487_v31 = vpop.f32.mrf.mxu1  ;;  %v3554_v21 = vadd.f32 %v3553_v35, %v3505_v41  ;;  %v8352_v63 = vld [vmem:[#allocation5 + $0x764] sm:$0xf]  ;;  %v7785_v41 = vld [vmem:[#allocation5 + $0x768] sm:$0xf0] }
 0x33a   : > { %v7788_v1 = vor.u32 %v8352_v63, %v7785_v41  ;;  %v11948_v63 = vld [vmem:[#allocation74_spill] sm:$0xff]  ;;  %v8334_v41 = vld [vmem:[#allocation5 + $0x6d4] sm:$0xf] }
 0x33b   : > { %v10179_v0 = vadd.f32 %v3487_v31, %v3439_v18  ;;  %v3395_v18 = vadd.f32 %v3394_v11, %v10076_v62 }
 0x33c   : > { %4035 = vmatpush.bf16.msrb.mxu1 %v7788_v1  ;;  %v8350_v1 = vld [vmem:[#allocation5 + $0x754] sm:$0xf] }
 0x33e   : > { %v3506_v14 = vpop.f32.mrf.mxu2 }
 0x33f   : > { %v3507_v33 = vadd.f32 %v3506_v14, %v10092_v52  ;;  %v7724_v52 = vor.u32 %v8336_v22, %v7721_v59  ;;  %v7585_v14 = vld [vmem:[#allocation5 + $0x5d8] sm:$0xf0]  ;;  %v11947_v59 = vld [vmem:[#allocation51_spill] sm:$0xff] }
 0x340   : > { %v3555_v43 = vpop.f32.mrf.mxu3  ;;  %v3441_v54 = vpop.f32.mrf.mxu0  ;;  %v11946_v22 = vld [vmem:[#allocation52_spill] sm:$0xff] }
 0x341   : > { %v3442_v38 = vadd.f32 %v3441_v54, %v3393_v55  ;;  %v3490_v24 = vpop.f32.mrf.mxu1  ;;  %v3556_v17 = vadd.f32 %v3555_v43, %v3507_v33  ;;  %3986 = vmatpush.bf16.msrb.mxu0 %v7724_v52  ;;  %v8318_v33 = vld [vmem:[#allocation5 + $0x654] sm:$0xf]  ;;  %v7588_v43 = vor.u32 %v8302_v42, %v7585_v14  ;;  %v7649_v54 = vld [vmem:[#allocation5 + $0x658] sm:$0xf0]  ;;  %v11949_v52 = vld [vmem:[#allocation58_spill] sm:$0xff] }
 0x343   : > { %v10183_v20 = vadd.f32 %v3490_v24, %v3442_v38  ;;  %3636 = vmatmul.bf16.gmra.mxu0 %v11942_v23  ;;  %3704 = vmatmul.bf16.gmra.mxu2 %v11943_v51  ;;  %v7652_v38 = vor.u32 %v8318_v33, %v7649_v54  ;;  %v7577_v54 = vld [vmem:[#allocation5 + $0x5c8] sm:$0xf0] }
 0x344   : > { %3685 = vmatmul.bf16.gmra.mxu1 %v11944_v4  ;;  %3889 = vmatpush.bf16.msrb.mxu2 %v7588_v43  ;;  %v8300_v43 = vld [vmem:[#allocation5 + $0x5c4] sm:$0xf] }
 0x345   : > { %3753 = vmatmul.bf16.gmra.mxu3 %v11945_v26 }
 0x346   : > { %v3509_v35 = vpop.f32.mrf.mxu2  ;;  %3938 = vmatpush.bf16.msrb.mxu3 %v7652_v38  ;;  %v8316_v38 = vld [vmem:[#allocation5 + $0x644] sm:$0xf] }
 0x347   : > { %v3510_v31 = vadd.f32 %v3509_v35, %v10098_v36  ;;  %v7713_v35 = vld [vmem:[#allocation5 + $0x6d8] sm:$0xf0] }
 0x348   : > { %v3558_v5 = vpop.f32.mrf.mxu3  ;;  %v3443_v60 = vpop.f32.mrf.mxu0 }
 0x349   : > { %v3444_v48 = vadd.f32 %v3443_v60, %v3395_v18  ;;  %v3492_v47 = vpop.f32.mrf.mxu1  ;;  %v3559_v45 = vadd.f32 %v3558_v5, %v3510_v31  ;;  %v7777_v18 = vld [vmem:[#allocation5 + $0x758] sm:$0xf0] }
 0x34a   : > { %v7780_v5 = vor.u32 %v8350_v1, %v7777_v18  ;;  %v11953_v1 = vld [vmem:[#allocation62_spill] sm:$0xff] }
 0x34b   : > { %v10191_v55 = vadd.f32 %v3492_v47, %v3444_v48  ;;  %v7705_v18 = vld [vmem:[#allocation5 + $0x6c8] sm:$0xf0] }
 0x34c   : > { %4036 = vmatpush.bf16.msrb.mxu1 %v7780_v5  ;;  %v7769_v5 = vld [vmem:[#allocation5 + $0x748] sm:$0xf0] }
 0x34e   : > { %v3511_v24 = vpop.f32.mrf.mxu2 }
 0x34f   : > { %v3512_v62 = vadd.f32 %v3511_v24, %v10106_v30  ;;  %v7716_v30 = vor.u32 %v8334_v41, %v7713_v35  ;;  %v7580_v24 = vor.u32 %v8300_v43, %v7577_v54  ;;  %v11951_v41 = vld [vmem:[#allocation55_spill] sm:$0xff]  ;;  %v11952_v35 = vld [vmem:[#allocation78_spill] sm:$0xff] }
 0x350   : > { %v3560_v36 = vpop.f32.mrf.mxu3  ;;  %v3602_v11 = vpop.f32.mrf.mxu0 }
 0x351   : > { %v3561_v23 = vadd.f32 %v3560_v36, %v3512_v62  ;;  %v3603_v51 = vadd.f32 %v3602_v11, %v3554_v21  ;;  %v3651_v4 = vpop.f32.mrf.mxu1  ;;  %3987 = vmatpush.bf16.msrb.mxu0 %v7716_v30  ;;  %v7641_v62 = vld [vmem:[#allocation5 + $0x648] sm:$0xf0]  ;;  %3890 = vmatpush.bf16.msrb.mxu2 %v7580_v24  ;;  %v8332_v30 = vld [vmem:[#allocation5 + $0x6c4] sm:$0xf]  ;;  %v8298_v24 = vld [vmem:[#allocation5 + $0x5b4] sm:$0xf] }
 0x352   : > { %v7644_v36 = vor.u32 %v8316_v38, %v7641_v62  ;;  %v7569_v62 = vld [vmem:[#allocation5 + $0x5b8] sm:$0xf0] }
 0x353   : > { %v10194_v26 = vadd.f32 %v3651_v4, %v3603_v51  ;;  %3709 = vmatmul.bf16.gmra.mxu2 %v11946_v22  ;;  %3797 = vmatmul.bf16.vlgmr.msra.gmra.mxu0 %v11947_v59 }
 0x354   : > { %3846 = vmatmul.bf16.vlgmr.msra.gmra.mxu1 %v11948_v63  ;;  %3939 = vmatpush.bf16.msrb.mxu3 %v7644_v36  ;;  %v8314_v36 = vld [vmem:[#allocation5 + $0x634] sm:$0xf] }
 0x355   : > { %3758 = vmatmul.bf16.gmra.mxu3 %v11949_v52  ;;  %v11950_v52 = vld [vmem:[#allocation56_spill] sm:$0xff] }
 0x356   : > { %v3514_v31 = vpop.f32.mrf.mxu2 }
 0x357   : > { %v3515_v21 = vadd.f32 %v3514_v31, %v10112_v16  ;;  %v8348_v31 = vld [vmem:[#allocation5 + $0x744] sm:$0xf] }
 0x358   : > { %v3563_v60 = vpop.f32.mrf.mxu3  ;;  %v3604_v48 = vpop.f32.mrf.mxu0 }
 0x359   : > { %v3564_v47 = vadd.f32 %v3563_v60, %v3515_v21  ;;  %v3605_v42 = vadd.f32 %v3604_v48, %v3556_v17  ;;  %v3653_v14 = vpop.f32.mrf.mxu1  ;;  %v7772_v60 = vor.u32 %v8348_v31, %v7769_v5  ;;  %v11957_v31 = vld [vmem:[#allocation66_spill] sm:$0xff]  ;;  %v7697_v5 = vld [vmem:[#allocation5 + $0x6b8] sm:$0xf0] }
 0x35b   : > { %v10201_v33 = vadd.f32 %v3653_v14, %v3605_v42  ;;  %4037 = vmatpush.bf16.msrb.mxu1 %v7772_v60  ;;  %v7761_v60 = vld [vmem:[#allocation5 + $0x738] sm:$0xf0] }
 0x35e   : > { %v3516_v11 = vpop.f32.mrf.mxu2 }
 0x35f   : > { %v3517_v51 = vadd.f32 %v3516_v11, %v10120_v44  ;;  %v7708_v44 = vor.u32 %v8332_v30, %v7705_v18  ;;  %v7572_v11 = vor.u32 %v8298_v24, %v7569_v62  ;;  %v11955_v30 = vld [vmem:[#allocation59_spill] sm:$0xff]  ;;  %v11956_v18 = vld [vmem:[#allocation81_spill] sm:$0xff] }
 0x360   : > { %v3565_v16 = vpop.f32.mrf.mxu3  ;;  %v3607_v4 = vpop.f32.mrf.mxu0 }
 0x361   : > { %v3566_v22 = vadd.f32 %v3565_v16, %v3517_v51  ;;  %v3608_v59 = vadd.f32 %v3607_v4, %v3559_v45  ;;  %v3656_v63 = vpop.f32.mrf.mxu1  ;;  %3988 = vmatpush.bf16.msrb.mxu0 %v7708_v44  ;;  %v7633_v51 = vld [vmem:[#allocation5 + $0x638] sm:$0xf0]  ;;  %3891 = vmatpush.bf16.msrb.mxu2 %v7572_v11  ;;  %v8330_v44 = vld [vmem:[#allocation5 + $0x6b4] sm:$0xf]  ;;  %v8296_v11 = vld [vmem:[#allocation5 + $0x5a4] sm:$0xf] }
 0x362   : > { %v7636_v16 = vor.u32 %v8314_v36, %v7633_v51  ;;  %v7561_v51 = vld [vmem:[#allocation5 + $0x5a8] sm:$0xf0] }
 0x363   : > { %v10204_v17 = vadd.f32 %v3656_v63, %v3608_v59  ;;  %3714 = vmatmul.bf16.gmra.mxu2 %v11950_v52  ;;  %3802 = vmatmul.bf16.gmra.mxu0 %v11951_v41 }
 0x364   : > { %3851 = vmatmul.bf16.gmra.mxu1 %v11952_v35  ;;  %3940 = vmatpush.bf16.msrb.mxu3 %v7636_v16  ;;  %v8312_v16 = vld [vmem:[#allocation5 + $0x624] sm:$0xf] }
 0x365   : > { %3763 = vmatmul.bf16.gmra.mxu3 %v11953_v1  ;;  %v11954_v1 = vld [vmem:[#allocation60_spill] sm:$0xff] }
 0x366   : > { %v3519_v21 = vpop.f32.mrf.mxu2 }
 0x367   : > { %v3520_v45 = vadd.f32 %v3519_v21, %v10128_v10  ;;  %v8346_v21 = vld [vmem:[#allocation5 + $0x734] sm:$0xf] }
 0x368   : > { %v3568_v48 = vpop.f32.mrf.mxu3  ;;  %v3609_v42 = vpop.f32.mrf.mxu0 }
 0x369   : > { %v3569_v14 = vadd.f32 %v3568_v48, %v3520_v45  ;;  %v3610_v43 = vadd.f32 %v3609_v42, %v3561_v23  ;;  %v3658_v54 = vpop.f32.mrf.mxu1  ;;  %v7764_v48 = vor.u32 %v8346_v21, %v7761_v60  ;;  %v11961_v21 = vld [vmem:[#allocation70_spill] sm:$0xff] }
 0x36a   : > { %v7689_v60 = vld [vmem:[#allocation5 + $0x6a8] sm:$0xf0] }
 0x36b   : > { %v10211_v38 = vadd.f32 %v3658_v54, %v3610_v43  ;;  %4038 = vmatpush.bf16.msrb.mxu1 %v7764_v48  ;;  %v7753_v48 = vld [vmem:[#allocation5 + $0x728] sm:$0xf0] }
 0x36e   : > { %v3521_v4 = vpop.f32.mrf.mxu2 }
 0x36f   : > { %v3522_v59 = vadd.f32 %v3521_v4, %v10136_v49  ;;  %v7700_v49 = vor.u32 %v8330_v44, %v7697_v5  ;;  %v7564_v4 = vor.u32 %v8296_v11, %v7561_v51  ;;  %v11959_v44 = vld [vmem:[#allocation63_spill] sm:$0xff]  ;;  %v11960_v5 = vld [vmem:[#allocation85_spill] sm:$0xff] }
 0x370   : > { %v3570_v10 = vpop.f32.mrf.mxu3  ;;  %v3612_v63 = vpop.f32.mrf.mxu0 }
 0x371   : > { %v3571_v52 = vadd.f32 %v3570_v10, %v3522_v59  ;;  %v3613_v41 = vadd.f32 %v3612_v63, %v3564_v47  ;;  %v3661_v35 = vpop.f32.mrf.mxu1  ;;  %3989 = vmatpush.bf16.msrb.mxu0 %v7700_v49  ;;  %v7625_v59 = vld [vmem:[#allocation5 + $0x628] sm:$0xf0]  ;;  %3892 = vmatpush.bf16.msrb.mxu2 %v7564_v4  ;;  %v8328_v49 = vld [vmem:[#allocation5 + $0x6a4] sm:$0xf]  ;;  %v7553_v4 = vld [vmem:[#allocation5 + $0x598] sm:$0xf0] }
 0x372   : > { %v7628_v10 = vor.u32 %v8312_v16, %v7625_v59  ;;  %v8294_v16 = vld [vmem:[#allocation5 + $0x594] sm:$0xf] }
 0x373   : > { %v10214_v23 = vadd.f32 %v3661_v35, %v3613_v41  ;;  %3719 = vmatmul.bf16.gmra.mxu2 %v11954_v1  ;;  %3807 = vmatmul.bf16.gmra.mxu0 %v11955_v30 }
 0x374   : > { %3856 = vmatmul.bf16.gmra.mxu1 %v11956_v18  ;;  %3941 = vmatpush.bf16.msrb.mxu3 %v7628_v10  ;;  %v7556_v10 = vor.u32 %v8294_v16, %v7553_v4  ;;  %v7745_v16 = vld [vmem:[#allocation5 + $0x718] sm:$0xf0] }
 0x375   : > { %3768 = vmatmul.bf16.gmra.mxu3 %v11957_v31  ;;  %v11958_v31 = vld [vmem:[#allocation64_spill] sm:$0xff] }
 0x376   : > { %v3524_v45 = vpop.f32.mrf.mxu2  ;;  %3893 = vmatpush.bf16.msrb.mxu2 %v7556_v10 }
 0x377   : > { %v3525_v47 = vadd.f32 %v3524_v45, %v10142_v32  ;;  %v7692_v45 = vor.u32 %v8328_v49, %v7689_v60 }
 0x378   : > { %v3573_v42 = vpop.f32.mrf.mxu3  ;;  %v3614_v43 = vpop.f32.mrf.mxu0 }
 0x379   : > { %v3574_v54 = vadd.f32 %v3573_v42, %v3525_v47  ;;  %v3615_v24 = vadd.f32 %v3614_v43, %v3566_v22  ;;  %v3663_v62 = vpop.f32.mrf.mxu1  ;;  %3990 = vmatpush.bf16.msrb.mxu0 %v7692_v45 }
 0x37b   : > { %v10221_v36 = vadd.f32 %v3663_v62, %v3615_v24 }
 0x37e   : > { %v3526_v63 = vpop.f32.mrf.mxu2 }
 0x37f   : > { %v3527_v41 = vadd.f32 %v3526_v63, %v10151_v7  ;;  %v8344_v7 = vld [vmem:[#allocation5 + $0x724] sm:$0xf]  ;;  %v8310_v63 = vld [vmem:[#allocation5 + $0x614] sm:$0xf] }
 0x380   : > { %v3575_v32 = vpop.f32.mrf.mxu3  ;;  %v3617_v35 = vpop.f32.mrf.mxu0  ;;  %v7756_v42 = vor.u32 %v8344_v7, %v7753_v48 }
 0x381   : > { %v10224_v1 = vadd.f32 %v3575_v32, %v3527_v41  ;;  %v3618_v30 = vadd.f32 %v3617_v35, %v3569_v14  ;;  %v3666_v22 = vpop.f32.mrf.mxu1  ;;  %v7617_v41 = vld [vmem:[#allocation5 + $0x618] sm:$0xf0] }
 0x382   : > { %4039 = vmatpush.bf16.msrb.mxu1 %v7756_v42  ;;  %v7620_v32 = vor.u32 %v8310_v63, %v7617_v41  ;;  %v11963_v42 = vld [vmem:[#allocation67_spill] sm:$0xff] }
 0x383   : > { %v10226_v18 = vadd.f32 %v3666_v22, %v3618_v30  ;;  %3724 = vmatmul.bf16.gmra.mxu2 %v11958_v31  ;;  %3812 = vmatmul.bf16.gmra.mxu0 %v11959_v44  ;;  %v8292_v30 = vld [vmem:[#allocation5 + $0x584] sm:$0xf] }
 0x384   : > { %3861 = vmatmul.bf16.gmra.mxu1 %v11960_v5  ;;  %3942 = vmatpush.bf16.msrb.mxu3 %v7620_v32 }
 0x385   : > { %3773 = vmatmul.bf16.gmra.mxu3 %v11961_v21  ;;  %v7609_v21 = vld [vmem:[#allocation5 + $0x608] sm:$0xf0] }
 0x386   : > { %v3529_v47 = vpop.f32.mrf.mxu2 }
 0x387   : > { %v3530_v14 = vadd.f32 %v3529_v47, %v10157_v8  ;;  %v7545_v8 = vld [vmem:[#allocation5 + $0x588] sm:$0xf0]  ;;  %v11962_v47 = vld [vmem:[#allocation68_spill] sm:$0xff] }
 0x388   : > { %v3578_v43 = vpop.f32.mrf.mxu3  ;;  %v3619_v24 = vpop.f32.mrf.mxu0  ;;  %v7548_v44 = vor.u32 %v8292_v30, %v7545_v8 }
 0x389   : > { %v3579_v62 = vadd.f32 %v3578_v43, %v3530_v14  ;;  %v3620_v11 = vadd.f32 %v3619_v24, %v3571_v52  ;;  %v3668_v51 = vpop.f32.mrf.mxu1  ;;  %v8308_v52 = vld [vmem:[#allocation5 + $0x604] sm:$0xf]  ;;  %v7681_v24 = vld [vmem:[#allocation5 + $0x698] sm:$0xf0] }
 0x38a   : > { %3894 = vmatpush.bf16.msrb.mxu2 %v7548_v44  ;;  %v7612_v45 = vor.u32 %v8308_v52, %v7609_v21  ;;  %v11964_v14 = vld [vmem:[#allocation89_spill] sm:$0xff] }
 0x38b   : > { %v10233_v59 = vadd.f32 %v3668_v51, %v3620_v11  ;;  %v11965_v43 = vld [vmem:[#allocation73_spill] sm:$0xff]  ;;  %v8342_v11 = vld [vmem:[#allocation5 + $0x714] sm:$0xf] }
 0x38c   : > { %3943 = vmatpush.bf16.msrb.mxu3 %v7612_v45  ;;  %v7748_v4 = vor.u32 %v8342_v11, %v7745_v16  ;;  %v11967_v45 = vld [vmem:[#allocation71_spill] sm:$0xff] }
 0x38e   : > { %v3531_v35 = vpop.f32.mrf.mxu2  ;;  %4040 = vmatpush.bf16.msrb.mxu1 %v7748_v4 }
 0x38f   : > { %v3532_v22 = vadd.f32 %v3531_v35, %v10165_v40  ;;  %v8326_v40 = vld [vmem:[#allocation5 + $0x694] sm:$0xf] }
 0x390   : > { %v3580_v31 = vpop.f32.mrf.mxu3  ;;  %v3622_v5 = vpop.f32.mrf.mxu0  ;;  %v7684_v51 = vor.u32 %v8326_v40, %v7681_v24 }
 0x391   : > { %v3581_v49 = vadd.f32 %v3580_v31, %v3532_v22  ;;  %v3623_v60 = vadd.f32 %v3622_v5, %v3574_v54  ;;  %v3671_v7 = vpop.f32.mrf.mxu1 }
 0x392   : > { %3991 = vmatpush.bf16.msrb.mxu0 %v7684_v51 }
 0x393   : > { %v10236_v48 = vadd.f32 %v3671_v7, %v3623_v60  ;;  %3729 = vmatmul.bf16.gmra.mxu2 %v11962_v47  ;;  %3817 = vmatmul.bf16.gmra.mxu0 %v11963_v42  ;;  %v11968_v47 = vld [vmem:[#allocation93_spill] sm:$0xff] }
 0x394   : > { %3866 = vmatmul.bf16.gmra.mxu1 %v11964_v14  ;;  %v8324_v42 = vld [vmem:[#allocation5 + $0x684] sm:$0xf]  ;;  %v7673_v14 = vld [vmem:[#allocation5 + $0x688] sm:$0xf0] }
 0x395   : > { %3778 = vmatmul.bf16.gmra.mxu3 %v11965_v43  ;;  %v8340_v43 = vld [vmem:[#allocation5 + $0x704] sm:$0xf]  ;;  %v7676_v40 = vor.u32 %v8324_v42, %v7673_v14 }
 0x396   : > { %v3534_v54 = vpop.f32.mrf.mxu2 }
 0x397   : > { %v3535_v10 = vadd.f32 %v3534_v54, %v10171_v37  ;;  %v11966_v37 = vld [vmem:[#allocation72_spill] sm:$0xff]  ;;  %3992 = vmatpush.bf16.msrb.mxu0 %v7676_v40 }
 0x398   : > { %v3583_v63 = vpop.f32.mrf.mxu3  ;;  %v3624_v41 = vpop.f32.mrf.mxu0  ;;  %v8371_v40 = vld [vmem:[#allocation8 + $0x74] sm:$0xf0] }
 0x399   : > { %v3584_v32 = vadd.f32 %v3583_v63, %v3535_v10  ;;  %v3625_v35 = vadd.f32 %v3624_v41, %v10224_v1  ;;  %v3673_v30 = vpop.f32.mrf.mxu1  ;;  %v11969_v1 = vld [vmem:[#allocation77_spill] sm:$0xff] }
 0x39b   : > { %v10244_v8 = vadd.f32 %v3673_v30, %v3625_v35 }
 0x39e   : > { %v3536_v22 = vpop.f32.mrf.mxu2 }
 0x39f   : > { %v3537_v31 = vadd.f32 %v3536_v22, %v10179_v0  ;;  %v7737_v0 = vld [vmem:[#allocation5 + $0x708] sm:$0xf0] }
 0x3a0   : > { %v3585_v44 = vpop.f32.mrf.mxu3  ;;  %v3627_v5 = vpop.f32.mrf.mxu0  ;;  %v7740_v11 = vor.u32 %v8340_v43, %v7737_v0  ;;  %v7855_v43 = vld [vmem:[#allocation8 + $0x70] sm:$0xf] }
 0x3a1   : > { %v3586_v52 = vadd.f32 %v3585_v44, %v3537_v31  ;;  %v3628_v21 = vadd.f32 %v3627_v5, %v3579_v62  ;;  %v3676_v60 = vpop.f32.mrf.mxu1  ;;  %v7856_v0 = vor.u32 %v8371_v40, %v7855_v43  ;;  %v8369_v40 = vld [vmem:[#allocation8 + $0x64] sm:$0xf0] }
 0x3a2   : > { %4041 = vmatpush.bf16.msrb.mxu1 %v7740_v11 }
 0x3a3   : > { %v10247_v7 = vadd.f32 %v3676_v60, %v3628_v21  ;;  %3734 = vmatmul.bf16.gmra.mxu2 %v11966_v37  ;;  %3822 = vmatmul.bf16.gmra.mxu0 %v11967_v45  ;;  %v11971_v60 = vld [vmem:[#allocation76_spill] sm:$0xff] }
 0x3a4   : > { %3871 = vmatmul.bf16.gmra.mxu1 %v11968_v47  ;;  %4297 = vmatpush.bf16.msra.mxu2 %v7856_v0 }
 0x3a5   : > { %3783 = vmatmul.bf16.gmra.mxu3 %v11969_v1 }
 0x3a6   : > { %v3539_v24 = vpop.f32.mrf.mxu2 }
 0x3a7   : > { %v3540_v62 = vadd.f32 %v3539_v24, %v10183_v20  ;;  %v11970_v20 = vld [vmem:[#allocation75_spill] sm:$0xff] }
 0x3a8   : > { %v3588_v51 = vpop.f32.mrf.mxu3  ;;  %v3629_v16 = vpop.f32.mrf.mxu0 }
 0x3a9   : > { %v3589_v54 = vadd.f32 %v3588_v51, %v3540_v62  ;;  %v3630_v4 = vadd.f32 %v3629_v16, %v3581_v49  ;;  %v3678_v10 = vpop.f32.mrf.mxu1  ;;  %v11972_v49 = vld [vmem:[#allocation82_spill] sm:$0xff]  ;;  %v7919_v62 = vld [vmem:[#allocation8 + $0xf0] sm:$0xf]  ;;  %v8387_v51 = vld [vmem:[#allocation8 + $0xf4] sm:$0xf0] }
 0x3ab   : > { %v10254_v63 = vadd.f32 %v3678_v10, %v3630_v4  ;;  %v7920_v4 = vor.u32 %v8387_v51, %v7919_v62  ;;  %v8385_v62 = vld [vmem:[#allocation8 + $0xe4] sm:$0xf0] }
 0x3ad   : > { %4346 = vmatpush.bf16.msra.mxu3 %v7920_v4 }
 0x3ae   : > { %v3541_v41 = vpop.f32.mrf.mxu2 }
 0x3af   : > { %v3542_v35 = vadd.f32 %v3541_v41, %v10191_v55 }
 0x3b0   : > { %v3590_v30 = vpop.f32.mrf.mxu3  ;;  %v3632_v22 = vpop.f32.mrf.mxu0 }
 0x3b1   : > { %v3591_v31 = vadd.f32 %v3590_v30, %v3542_v35  ;;  %v3633_v44 = vadd.f32 %v3632_v22, %v3584_v32  ;;  %v3681_v5 = vpop.f32.mrf.mxu1  ;;  %v11973_v35 = vld [vmem:[#allocation79_spill] sm:$0xff]  ;;  %v11974_v30 = vld [vmem:[#allocation80_spill] sm:$0xff]  ;;  %v11975_v22 = vld [vmem:[#allocation86_spill] sm:$0xff] }
 0x3b3   : > { %v10257_v21 = vadd.f32 %v3681_v5, %v3633_v44  ;;  %3827 = vmatmul.bf16.gmra.mxu0 %v11970_v20  ;;  %3895 = vmatmul.bf16.vlgmr.msrb.gmra.mxu2 %v11971_v60  ;;  %v7857_v44 = vld [vmem:[#allocation8 + $0x78] sm:$0xf0] }
 0x3b4   : > { %3876 = vmatmul.bf16.gmra.mxu1 %v9858_v56 }
 0x3b5   : > { %3944 = vmatmul.bf16.vlgmr.msrb.gmra.mxu3 %v11972_v49  ;;  %v8386_v49 = vld [vmem:[#allocation8 + $0xf4] sm:$0xf] }
 0x3b6   : > { %v3700_v37 = vpop.f32.mrf.mxu2 }
 0x3b7   : > { %v3701_v45 = vadd.f32 %v3700_v37, %v10194_v26  ;;  %v7921_v37 = vld [vmem:[#allocation8 + $0xf8] sm:$0xf0] }
 0x3b8   : > { %v3749_v47 = vpop.f32.mrf.mxu3  ;;  %v3634_v55 = vpop.f32.mrf.mxu0 }
 0x3b9   : > { %v3635_v1 = vadd.f32 %v3634_v55, %v3586_v52  ;;  %v3683_v42 = vpop.f32.mrf.mxu1  ;;  %v3750_v14 = vadd.f32 %v3749_v47, %v3701_v45  ;;  %v7924_v47 = vor.u32 %v8386_v49, %v7921_v37 }
 0x3bb   : > { %v10264_v32 = vadd.f32 %v3683_v42, %v3635_v1  ;;  %4444 = vmatpush.bf16.msra.mxu1 %v7924_v47 }
 0x3be   : > { %v3702_v24 = vpop.f32.mrf.mxu2 }
 0x3bf   : > { %v3703_v11 = vadd.f32 %v3702_v24, %v10201_v33  ;;  %v8370_v33 = vld [vmem:[#allocation8 + $0x74] sm:$0xf] }
 0x3c0   : > { %v3751_v56 = vpop.f32.mrf.mxu3  ;;  %v3637_v16 = vpop.f32.mrf.mxu0  ;;  %v7860_v5 = vor.u32 %v8370_v33, %v7857_v44  ;;  %v7849_v33 = vld [vmem:[#allocation8 + $0x68] sm:$0xf0] }
 0x3c1   : > { %v3638_v26 = vadd.f32 %v3637_v16, %v3589_v54  ;;  %v3686_v10 = vpop.f32.mrf.mxu1  ;;  %v3752_v41 = vadd.f32 %v3751_v56, %v3703_v11  ;;  %v7911_v56 = vld [vmem:[#allocation8 + $0xe0] sm:$0xf] }
 0x3c2   : > { %4395 = vmatpush.bf16.msra.mxu0 %v7860_v5  ;;  %v7912_v16 = vor.u32 %v8385_v62, %v7911_v56 }
 0x3c3   : > { %v10267_v52 = vadd.f32 %v3686_v10, %v3638_v26  ;;  %3832 = vmatmul.bf16.gmra.mxu0 %v11973_v35  ;;  %3900 = vmatmul.bf16.gmra.mxu2 %v11974_v30  ;;  %v11976_v35 = vld [vmem:[#allocation84_spill] sm:$0xff]  ;;  %v11977_v30 = vld [vmem:[#allocation83_spill] sm:$0xff] }
 0x3c4   : > { %3881 = vmatmul.bf16.gmra.mxu1 %v9890_v29  ;;  %v7847_v29 = vld [vmem:[#allocation8 + $0x60] sm:$0xf]  ;;  %4347 = vmatpush.bf16.msra.mxu3 %v7912_v16 }
 0x3c5   : > { %3949 = vmatmul.bf16.gmra.mxu3 %v11975_v22  ;;  %v7848_v0 = vor.u32 %v8369_v40, %v7847_v29  ;;  %v11978_v22 = vld [vmem:[#allocation90_spill] sm:$0xff]  ;;  %v8367_v29 = vld [vmem:[#allocation8 + $0x54] sm:$0xf0] }
 0x3c6   : > { %v3705_v20 = vpop.f32.mrf.mxu2 }
 0x3c7   : > { %v3706_v60 = vadd.f32 %v3705_v20, %v10204_v17  ;;  %4298 = vmatpush.bf16.msra.mxu2 %v7848_v0 }
 0x3c8   : > { %v3754_v54 = vpop.f32.mrf.mxu3  ;;  %v3639_v45 = vpop.f32.mrf.mxu0 }
 0x3c9   : > { %v3640_v55 = vadd.f32 %v3639_v45, %v3591_v31  ;;  %v3688_v1 = vpop.f32.mrf.mxu1  ;;  %v3755_v42 = vadd.f32 %v3754_v54, %v3706_v60  ;;  %v7913_v54 = vld [vmem:[#allocation8 + $0xe8] sm:$0xf0] }
 0x3cb   : > { %v10274_v43 = vadd.f32 %v3688_v1, %v3640_v55 }
 0x3ce   : > { %v3707_v24 = vpop.f32.mrf.mxu2 }
 0x3cf   : > { %v3708_v11 = vadd.f32 %v3707_v24, %v10211_v38  ;;  %v8368_v38 = vld [vmem:[#allocation8 + $0x64] sm:$0xf] }
 0x3d0   : > { %v3756_v17 = vpop.f32.mrf.mxu3  ;;  %v3798_v51 = vpop.f32.mrf.mxu0  ;;  %v7852_v44 = vor.u32 %v8368_v38, %v7849_v33 }
 0x3d1   : > { %v3757_v4 = vadd.f32 %v3756_v17, %v3708_v11  ;;  %v3799_v26 = vadd.f32 %v3798_v51, %v3750_v14  ;;  %v3847_v31 = vpop.f32.mrf.mxu1  ;;  %v8384_v14 = vld [vmem:[#allocation8 + $0xe4] sm:$0xf]  ;;  %v7903_v11 = vld [vmem:[#allocation8 + $0xd0] sm:$0xf]  ;;  %v8383_v17 = vld [vmem:[#allocation8 + $0xd4] sm:$0xf0] }
 0x3d2   : > { %4396 = vmatpush.bf16.msra.mxu0 %v7852_v44  ;;  %v7916_v37 = vor.u32 %v8384_v14, %v7913_v54  ;;  %v7904_v62 = vor.u32 %v8383_v17, %v7903_v11 }
 0x3d3   : > { %v10277_v10 = vadd.f32 %v3847_v31, %v3799_v26  ;;  %3905 = vmatmul.bf16.gmra.mxu2 %v11976_v35  ;;  %3993 = vmatmul.bf16.vlgmr.msrb.gmra.mxu0 %v11977_v30  ;;  %v11979_v31 = vld [vmem:[#allocation88_spill] sm:$0xff]  ;;  %v11980_v35 = vld [vmem:[#allocation87_spill] sm:$0xff]  ;;  %v11981_v30 = vld [vmem:[#allocation94_spill] sm:$0xff] }
 0x3d4   : > { %4042 = vmatmul.bf16.vlgmr.msrb.gmra.mxu1 %v9922_v25  ;;  %v7839_v25 = vld [vmem:[#allocation8 + $0x50] sm:$0xf]  ;;  %4348 = vmatpush.bf16.msra.mxu3 %v7904_v62 }
 0x3d5   : > { %3954 = vmatmul.bf16.gmra.mxu3 %v11978_v22  ;;  %4445 = vmatpush.bf16.msra.mxu1 %v7916_v37  ;;  %v7840_v40 = vor.u32 %v8367_v29, %v7839_v25  ;;  %v7841_v22 = vld [vmem:[#allocation8 + $0x58] sm:$0xf0] }
 0x3d6   : > { %v3710_v5 = vpop.f32.mrf.mxu2 }
 0x3d7   : > { %v3711_v20 = vadd.f32 %v3710_v5, %v10214_v23  ;;  %4299 = vmatpush.bf16.msra.mxu2 %v7840_v40 }
 0x3d8   : > { %v3759_v60 = vpop.f32.mrf.mxu3  ;;  %v3800_v49 = vpop.f32.mrf.mxu0 }
 0x3d9   : > { %v3760_v45 = vadd.f32 %v3759_v60, %v3711_v20  ;;  %v3801_v47 = vadd.f32 %v3800_v49, %v3752_v41  ;;  %v3849_v55 = vpop.f32.mrf.mxu1  ;;  %v7905_v20 = vld [vmem:[#allocation8 + $0xd8] sm:$0xf0] }
 0x3db   : > { %v10284_v1 = vadd.f32 %v3849_v55, %v3801_v47  ;;  %v8365_v55 = vld [vmem:[#allocation8 + $0x44] sm:$0xf0] }
 0x3de   : > { %v3712_v0 = vpop.f32.mrf.mxu2 }
 0x3df   : > { %v3713_v24 = vadd.f32 %v3712_v0, %v10221_v36  ;;  %v8366_v36 = vld [vmem:[#allocation8 + $0x54] sm:$0xf]  ;;  %v7895_v0 = vld [vmem:[#allocation8 + $0xc0] sm:$0xf] }
 0x3e0   : > { %v3761_v23 = vpop.f32.mrf.mxu3  ;;  %v3803_v56 = vpop.f32.mrf.mxu0  ;;  %v7844_v38 = vor.u32 %v8366_v36, %v7841_v22 }
 0x3e1   : > { %v3762_v51 = vadd.f32 %v3761_v23, %v3713_v24  ;;  %v3804_v16 = vadd.f32 %v3803_v56, %v3755_v42  ;;  %v3852_v26 = vpop.f32.mrf.mxu1  ;;  %v8382_v42 = vld [vmem:[#allocation8 + $0xd4] sm:$0xf]  ;;  %v8381_v24 = vld [vmem:[#allocation8 + $0xc4] sm:$0xf0] }
 0x3e2   : > { %4397 = vmatpush.bf16.msra.mxu0 %v7844_v38  ;;  %v7908_v14 = vor.u32 %v8382_v42, %v7905_v20  ;;  %v7896_v11 = vor.u32 %v8381_v24, %v7895_v0  ;;  %v7897_v38 = vld [vmem:[#allocation8 + $0xc8] sm:$0xf0]  ;;  %v11984_v0 = vld [vmem:[#allocation96_spill] sm:$0xff]  ;;  %v11985_v24 = vld [vmem:[#allocation95_spill] sm:$0xff] }
 0x3e3   : > { %v10287_v41 = vadd.f32 %v3852_v26, %v3804_v16  ;;  %3910 = vmatmul.bf16.gmra.mxu2 %v11979_v31  ;;  %3998 = vmatmul.bf16.gmra.mxu0 %v11980_v35  ;;  %v11982_v16 = vld [vmem:[#allocation92_spill] sm:$0xff]  ;;  %v11983_v26 = vld [vmem:[#allocation91_spill] sm:$0xff]  ;;  %v7833_v31 = vld [vmem:[#allocation8 + $0x48] sm:$0xf0] }
 0x3e4   : > { %4047 = vmatmul.bf16.gmra.mxu1 %v9950_v12  ;;  %v7831_v12 = vld [vmem:[#allocation8 + $0x40] sm:$0xf]  ;;  %4349 = vmatpush.bf16.msra.mxu3 %v7896_v11  ;;  %v8362_v11 = vld [vmem:[#allocation8 + $0x34] sm:$0xf] }
 0x3e5   : > { %3959 = vmatmul.bf16.gmra.mxu3 %v11981_v30  ;;  %4446 = vmatpush.bf16.msra.mxu1 %v7908_v14  ;;  %v7832_v25 = vor.u32 %v8365_v55, %v7831_v12  ;;  %v7887_v12 = vld [vmem:[#allocation8 + $0xb0] sm:$0xf]  ;;  %v8379_v55 = vld [vmem:[#allocation8 + $0xb4] sm:$0xf0] }
 0x3e6   : > { %v3715_v33 = vpop.f32.mrf.mxu2 }
 0x3e7   : > { %v3716_v44 = vadd.f32 %v3715_v33, %v10226_v18  ;;  %4300 = vmatpush.bf16.msra.mxu2 %v7832_v25 }
 0x3e8   : > { %v3764_v5 = vpop.f32.mrf.mxu3  ;;  %v3805_v60 = vpop.f32.mrf.mxu0 }
 0x3e9   : > { %v3765_v54 = vadd.f32 %v3764_v5, %v3716_v44  ;;  %v3806_v49 = vadd.f32 %v3805_v60, %v3757_v4  ;;  %v3854_v37 = vpop.f32.mrf.mxu1 }
 0x3eb   : > { %v10294_v47 = vadd.f32 %v3854_v37, %v3806_v49 }
 0x3ee   : > { %v3717_v29 = vpop.f32.mrf.mxu2 }
 0x3ef   : > { %v3718_v40 = vadd.f32 %v3717_v29, %v10233_v59  ;;  %v8364_v59 = vld [vmem:[#allocation8 + $0x44] sm:$0xf]  ;;  %v7888_v29 = vor.u32 %v8379_v55, %v7887_v12  ;;  %v7879_v12 = vld [vmem:[#allocation8 + $0xa0] sm:$0xf]  ;;  %v8377_v55 = vld [vmem:[#allocation8 + $0xa4] sm:$0xf0] }
 0x3f0   : > { %v3766_v18 = vpop.f32.mrf.mxu3  ;;  %v3808_v23 = vpop.f32.mrf.mxu0  ;;  %v7836_v35 = vor.u32 %v8364_v59, %v7833_v31  ;;  %v8378_v31 = vld [vmem:[#allocation8 + $0xb4] sm:$0xf] }
 0x3f1   : > { %v3767_v17 = vadd.f32 %v3766_v18, %v3718_v40  ;;  %v3809_v56 = vadd.f32 %v3808_v23, %v3760_v45  ;;  %v3857_v62 = vpop.f32.mrf.mxu1  ;;  %v8380_v45 = vld [vmem:[#allocation8 + $0xc4] sm:$0xf]  ;;  %4350 = vmatpush.bf16.msra.mxu3 %v7888_v29  ;;  %v11986_v23 = vld [vmem:[#allocation99_spill] sm:$0xff] }
 0x3f2   : > { %4398 = vmatpush.bf16.msra.mxu0 %v7836_v35  ;;  %v7900_v44 = vor.u32 %v8380_v45, %v7897_v38  ;;  %v7889_v35 = vld [vmem:[#allocation8 + $0xb8] sm:$0xf0] }
 0x3f3   : > { %v10297_v4 = vadd.f32 %v3857_v62, %v3809_v56  ;;  %3915 = vmatmul.bf16.gmra.mxu2 %v11982_v16  ;;  %4003 = vmatmul.bf16.gmra.mxu0 %v11983_v26  ;;  %v7815_v16 = vld [vmem:[#allocation8 + $0x20] sm:$0xf]  ;;  %v8361_v26 = vld [vmem:[#allocation8 + $0x24] sm:$0xf0] }
 0x3f4   : > { %4052 = vmatmul.bf16.gmra.mxu1 %v9968_v58  ;;  %v7823_v58 = vld [vmem:[#allocation8 + $0x30] sm:$0xf] }
 0x3f5   : > { %3964 = vmatmul.bf16.gmra.mxu3 %v9860_v19  ;;  %4447 = vmatpush.bf16.msra.mxu1 %v7900_v44  ;;  %v8363_v19 = vld [vmem:[#allocation8 + $0x34] sm:$0xf0] }
 0x3f6   : > { %v3720_v30 = vpop.f32.mrf.mxu2  ;;  %v7824_v14 = vor.u32 %v8363_v19, %v7823_v58  ;;  %v8359_v44 = vld [vmem:[#allocation8 + $0x14] sm:$0xf0]  ;;  %v8357_v19 = vld [vmem:[#allocation8 + $0x4] sm:$0xf0] }
 0x3f7   : > { %v3721_v36 = vadd.f32 %v3720_v30, %v10236_v48  ;;  %v7816_v30 = vor.u32 %v8361_v26, %v7815_v16 }
 0x3f8   : > { %v3769_v22 = vpop.f32.mrf.mxu3  ;;  %v3810_v33 = vpop.f32.mrf.mxu0  ;;  %4301 = vmatpush.bf16.msra.mxu2 %v7824_v14 }
 0x3f9   : > { %v3770_v5 = vadd.f32 %v3769_v22, %v3721_v36  ;;  %v3811_v42 = vadd.f32 %v3810_v33, %v3762_v51  ;;  %v3859_v20 = vpop.f32.mrf.mxu1  ;;  %v7892_v22 = vor.u32 %v8378_v31, %v7889_v35  ;;  %v7807_v33 = vld [vmem:[#allocation8 + $0x10] sm:$0xf] }
 0x3fb   : > { %v10304_v60 = vadd.f32 %v3859_v20, %v3811_v42  ;;  %4448 = vmatpush.bf16.msra.mxu1 %v7892_v22  ;;  %v7808_v20 = vor.u32 %v8359_v44, %v7807_v33  ;;  %v7871_v33 = vld [vmem:[#allocation8 + $0x90] sm:$0xf] }
 0x3fc   : > { %4302 = vmatpush.bf16.msra.mxu2 %v7816_v30 }
 0x3fe   : > { %v3722_v49 = vpop.f32.mrf.mxu2 }
 0x3ff   : > { %v3723_v37 = vadd.f32 %v3722_v49, %v10244_v8  ;;  %v7825_v8 = vld [vmem:[#allocation8 + $0x38] sm:$0xf0] }
 0x400   : > { %v3771_v48 = vpop.f32.mrf.mxu3  ;;  %v3813_v25 = vpop.f32.mrf.mxu0  ;;  %v7828_v56 = vor.u32 %v8362_v11, %v7825_v8  ;;  %4303 = vmatpush.bf16.msra.mxu2 %v7808_v20  ;;  %v11989_v11 = vld [vmem:[#allocation102_spill] sm:$0xff] }
 0x401   : > { %v3814_v40 = vadd.f32 %v3813_v25, %v3765_v54  ;;  %v3862_v18 = vpop.f32.mrf.mxu1  ;;  %v7817_v8 = vld [vmem:[#allocation8 + $0x28] sm:$0xf0]  ;;  %v3772_v16 = vadd.f32 %v3771_v48, %v3723_v37  ;;  %v8375_v37 = vld [vmem:[#allocation8 + $0x94] sm:$0xf0] }
 0x402   : > { %4399 = vmatpush.bf16.msra.mxu0 %v7828_v56 }
 0x403   : > { %v10307_v51 = vadd.f32 %v3862_v18, %v3814_v40  ;;  %3920 = vmatmul.bf16.gmra.mxu2 %v11984_v0  ;;  %4008 = vmatmul.bf16.gmra.mxu0 %v11985_v24  ;;  %v11987_v24 = vld [vmem:[#allocation98_spill] sm:$0xff] }
 0x404   : > { %4057 = vmatmul.bf16.gmra.mxu1 %v9983_v34 }
 0x405   : > { %3969 = vmatmul.bf16.gmra.mxu3 %v11986_v23  ;;  %v11988_v23 = vld [vmem:[#allocation97_spill] sm:$0xff] }
 0x406   : > { %v3725_v62 = vpop.f32.mrf.mxu2 }
 0x407   : > { %v3726_v54 = vadd.f32 %v3725_v62, %v10247_v7  ;;  %v7799_v7 = vld [vmem:[#allocation8] sm:$0xf] }
 0x408   : > { %v3774_v59 = vpop.f32.mrf.mxu3  ;;  %v3815_v36 = vpop.f32.mrf.mxu0  ;;  %v7800_v25 = vor.u32 %v8357_v19, %v7799_v7  ;;  %v11990_v7 = vld [vmem:[#allocation101_spill] sm:$0xff]  ;;  %v11991_v19 = vld [vmem:[#allocation100_spill] sm:$0xff] }
 0x409   : > { %v3775_v45 = vadd.f32 %v3774_v59, %v3726_v54  ;;  %v3816_v38 = vadd.f32 %v3815_v36, %v3767_v17  ;;  %v3864_v34 = vpop.f32.mrf.mxu1  ;;  %v7880_v17 = vor.u32 %v8377_v55, %v7879_v12  ;;  %v8376_v54 = vld [vmem:[#allocation8 + $0xa4] sm:$0xf]  ;;  %v7881_v59 = vld [vmem:[#allocation8 + $0xa8] sm:$0xf0]  ;;  %v8358_v12 = vld [vmem:[#allocation8 + $0x14] sm:$0xf] }
 0x40a   : > { %4304 = vmatpush.bf16.msra.mxu2 %v7800_v25  ;;  %v7884_v35 = vor.u32 %v8376_v54, %v7881_v59 }
 0x40b   : > { %v10314_v42 = vadd.f32 %v3864_v34, %v3816_v38  ;;  %4351 = vmatpush.bf16.msra.mxu3 %v7880_v17 }
 0x40c   : > { %4449 = vmatpush.bf16.msra.mxu1 %v7884_v35  ;;  %v11992_v35 = vld [vmem:[#allocation103_spill] sm:$0xff] }
 0x40e   : > { %v3727_v58 = vpop.f32.mrf.mxu2 }
 0x40f   : > { %v3728_v14 = vadd.f32 %v3727_v58, %v10254_v63  ;;  %v8360_v63 = vld [vmem:[#allocation8 + $0x24] sm:$0xf] }
 0x410   : > { %v3776_v49 = vpop.f32.mrf.mxu3  ;;  %v3818_v29 = vpop.f32.mrf.mxu0  ;;  %v7820_v56 = vor.u32 %v8360_v63, %v7817_v8 }
 0x411   : > { %v3819_v40 = vadd.f32 %v3818_v29, %v3770_v5  ;;  %v3867_v18 = vpop.f32.mrf.mxu1  ;;  %v3777_v29 = vadd.f32 %v3776_v49, %v3728_v14  ;;  %v7863_v49 = vld [vmem:[#allocation8 + $0x80] sm:$0xf] }
 0x412   : > { %4400 = vmatpush.bf16.msra.mxu0 %v7820_v56  ;;  %v7801_v56 = vld [vmem:[#allocation8 + $0x8] sm:$0xf0] }
 0x413   : > { %v10317_v0 = vadd.f32 %v3867_v18, %v3819_v40  ;;  %3925 = vmatmul.bf16.gmra.mxu2 %v11987_v24  ;;  %4013 = vmatmul.bf16.gmra.mxu0 %v11988_v23  ;;  %v8374_v40 = vld [vmem:[#allocation8 + $0x94] sm:$0xf]  ;;  %v7873_v18 = vld [vmem:[#allocation8 + $0x98] sm:$0xf0] }
 0x414   : > { %4062 = vmatmul.bf16.gmra.mxu1 %v9997_v27  ;;  %v7876_v23 = vor.u32 %v8374_v40, %v7873_v18 }
 0x415   : > { %3974 = vmatmul.bf16.gmra.mxu3 %v11989_v11 }
 0x416   : > { %v3730_v62 = vpop.f32.mrf.mxu2  ;;  %4450 = vmatpush.bf16.msra.mxu1 %v7876_v23 }
 0x417   : > { %v3731_v5 = vadd.f32 %v3730_v62, %v10257_v21  ;;  %v7872_v21 = vor.u32 %v8375_v37, %v7871_v33  ;;  %v8372_v37 = vld [vmem:[#allocation8 + $0x84] sm:$0xf] }
 0x418   : > { %v3779_v26 = vpop.f32.mrf.mxu3  ;;  %v3820_v31 = vpop.f32.mrf.mxu0 }
 0x419   : > { %v3780_v30 = vadd.f32 %v3779_v26, %v3731_v5  ;;  %v10324_v36 = vadd.f32 %v3820_v31, %v3772_v16  ;;  %v10326_v22 = vpop.f32.mrf.mxu1  ;;  %4352 = vmatpush.bf16.msra.mxu3 %v7872_v21 }
 0x41e   : > { %v3732_v27 = vpop.f32.mrf.mxu2 }
 0x41f   : > { %v3733_v38 = vadd.f32 %v3732_v27, %v10264_v32  ;;  %v7809_v32 = vld [vmem:[#allocation8 + $0x18] sm:$0xf0] }
 0x420   : > { %v3781_v34 = vpop.f32.mrf.mxu3  ;;  %v3823_v48 = vpop.f32.mrf.mxu0  ;;  %v7812_v55 = vor.u32 %v8358_v12, %v7809_v32 }
 0x421   : > { %v3824_v44 = vadd.f32 %v3823_v48, %v3775_v45  ;;  %v3872_v20 = vpop.f32.mrf.mxu1  ;;  %v7865_v48 = vld [vmem:[#allocation8 + $0x88] sm:$0xf0] }
 0x422   : > { %4401 = vmatpush.bf16.msra.mxu0 %v7812_v55 }
 0x423   : > { %v10329_v58 = vadd.f32 %v3872_v20, %v3824_v44  ;;  %3930 = vmatmul.bf16.gmra.mxu2 %v11990_v7  ;;  %4018 = vmatmul.bf16.gmra.mxu0 %v11991_v19  ;;  %v7868_v44 = vor.u32 %v8372_v37, %v7865_v48 }
 0x424   : > { %4067 = vmatmul.bf16.gmra.mxu1 %v10013_v15  ;;  %v8356_v15 = vld [vmem:[#allocation8 + $0x4] sm:$0xf] }
 0x425   : > { %3979 = vmatmul.bf16.gmra.mxu3 %v9948_v50  ;;  %v7804_v16 = vor.u32 %v8356_v15, %v7801_v56  ;;  %4451 = vmatpush.bf16.msra.mxu1 %v7868_v44 }
 0x426   : > { %v3735_v25 = vpop.f32.mrf.mxu2 }
 0x427   : > { %v3736_v17 = vadd.f32 %v3735_v25, %v10267_v52  ;;  %v8373_v52 = vld [vmem:[#allocation8 + $0x84] sm:$0xf0]  ;;  %4402 = vmatpush.bf16.msra.mxu0 %v7804_v16 }
 0x428   : > { %v3784_v45 = vpop.f32.mrf.mxu3  ;;  %v3825_v24 = vpop.f32.mrf.mxu0  ;;  %v7864_v26 = vor.u32 %v8373_v52, %v7863_v49 }
 0x429   : > { %v3785_v11 = vadd.f32 %v3784_v45, %v3736_v17  ;;  %v10336_v63 = vadd.f32 %v3825_v24, %v3777_v29  ;;  %v10338_v8 = vpop.f32.mrf.mxu1 }
 0x42a   : > { %4353 = vmatpush.bf16.msra.mxu3 %v7864_v26 }
 0x42e   : > { %v3737_v50 = vpop.f32.mrf.mxu2 }
 0x42f   : > { %v3738_v62 = vadd.f32 %v3737_v50, %v10274_v43  ;;  %v3782_v43 = vadd.f32 %v3781_v34, %v3733_v38 }
 0x430   : > { %v3786_v14 = vpop.f32.mrf.mxu3  ;;  %v3828_v5 = vpop.f32.mrf.mxu0 }
 0x431   : > { %v3829_v54 = vadd.f32 %v3828_v5, %v3780_v30  ;;  %v3877_v59 = vpop.f32.mrf.mxu1  ;;  %v3787_v38 = vadd.f32 %v3786_v14, %v3738_v62 }
 0x433   : > { %v10341_v31 = vadd.f32 %v3877_v59, %v3829_v54  ;;  %4023 = vmatmul.bf16.gmra.mxu0 %v11992_v35  ;;  %4305 = vmatmul.bf16.vlgmr.msra.gmra.mxu2 %v10067_v9 }
 0x434   : > { %4072 = vmatmul.bf16.gmra.mxu1 %v10029_v2 }
 0x436   : > { %v3896_v27 = vpop.f32.mrf.mxu2 }
 0x437   : > { %v3897_v23 = vadd.f32 %v3896_v27, %v10277_v10 }
 0x438   : > { %v3945_v33 = vpop.f32.mrf.mxu3  ;;  %v3830_v21 = vpop.f32.mrf.mxu0 }
 0x439   : > { %v10346_v20 = vadd.f32 %v3830_v21, %v3782_v43  ;;  %v10348_v30 = vpop.f32.mrf.mxu1 }
 0x43e   : > { %v3898_v7 = vpop.f32.mrf.mxu2 }
 0x440   : > { %v3947_v19 = vpop.f32.mrf.mxu3  ;;  %v3833_v12 = vpop.f32.mrf.mxu0 }
 0x441   : > { %v3834_v32 = vadd.f32 %v3833_v12, %v3785_v11  ;;  %v3882_v55 = vpop.f32.mrf.mxu1 }
 0x443   : > { %v10350_v25 = vadd.f32 %v3882_v55, %v3834_v32  ;;  %4028 = vmatmul.bf16.gmra.mxu0 %v9952_v53  ;;  %4310 = vmatmul.bf16.gmra.mxu2 %v10082_v57  ;;  %v3899_v53 = vadd.f32 %v3898_v7, %v10284_v1 }
 0x444   : > { %4077 = vmatmul.bf16.gmra.mxu1 %v10045_v61  ;;  %v3946_v61 = vadd.f32 %v3945_v33, %v3897_v23 }
 0x445   : > { %v3948_v15 = vadd.f32 %v3947_v19, %v3899_v53 }
 0x446   : > { %v3901_v2 = vpop.f32.mrf.mxu2 }
 0x447   : > { %v3902_v59 = vadd.f32 %v3901_v2, %v10287_v41 }
 0x448   : > { %v3950_v34 = vpop.f32.mrf.mxu3  ;;  %v3835_v29 = vpop.f32.mrf.mxu0 }
 0x449   : > { %v10355_v17 = vadd.f32 %v3835_v29, %v3787_v38  ;;  %v10357_v45 = vpop.f32.mrf.mxu1  ;;  %v3951_v27 = vadd.f32 %v3950_v34, %v3902_v59 }
 0x44e   : > { %v3903_v40 = vpop.f32.mrf.mxu2 }
 0x450   : > { %v3952_v18 = vpop.f32.mrf.mxu3  ;;  %v3994_v24 = vpop.f32.mrf.mxu0 }
 0x451   : > { %v4043_v11 = vpop.f32.mrf.mxu1  ;;  %v3995_v56 = vadd.f32 %v3994_v24, %v3946_v61 }
 0x453   : > { %4315 = vmatmul.bf16.gmra.mxu2 %v10096_v3  ;;  %4403 = vmatmul.bf16.vlgmr.msra.gmra.mxu0 %v10067_v9  ;;  %v4044_v16 = vadd.f32 %v4043_v11, %v3995_v56  ;;  %v3904_v9 = vadd.f32 %v3903_v40, %v10294_v47 }
 0x455   : > { %v3953_v33 = vadd.f32 %v3952_v18, %v3904_v9 }
 0x456   : > { %v3906_v50 = vpop.f32.mrf.mxu2 }
 0x457   : > { %v3907_v47 = vadd.f32 %v3906_v50, %v10297_v4 }
 0x458   : > { %v3955_v62 = vpop.f32.mrf.mxu3  ;;  %v3996_v14 = vpop.f32.mrf.mxu0 }
 0x459   : > { %v3997_v49 = vadd.f32 %v3996_v14, %v3948_v15  ;;  %v4045_v52 = vpop.f32.mrf.mxu1  ;;  %v3956_v34 = vadd.f32 %v3955_v62, %v3907_v47 }
 0x45b   : > { %v4046_v5 = vadd.f32 %v4045_v52, %v3997_v49 }
 0x45d   : > { %v4084_v26 = vpack.c.bf16 %v4046_v5, %v4044_v16 }
 0x45e   : > { %v3908_v54 = vpop.f32.mrf.mxu2 }
 0x45f   : > { %4354 = vmatmul.bf16.vlgmr.msra.gmra.mxu3 %v4084_v26  ;;  %4452 = vmatmul.bf16.vlgmr.msra.gmra.mxu1 %v4084_v26 }
 0x460   : > { %v3957_v10 = vpop.f32.mrf.mxu3  ;;  %v3999_v1 = vpop.f32.mrf.mxu0 }
 0x461   : > { %v4048_v35 = vpop.f32.mrf.mxu1  ;;  %v4000_v37 = vadd.f32 %v3999_v1, %v3951_v27 }
 0x463   : > { %4320 = vmatmul.bf16.gmra.mxu2 %v10110_v46  ;;  %4408 = vmatmul.bf16.gmra.mxu0 %v10082_v57  ;;  %v4049_v19 = vadd.f32 %v4048_v35, %v4000_v37  ;;  %v3909_v57 = vadd.f32 %v3908_v54, %v10304_v60 }
 0x465   : > { %v3958_v29 = vadd.f32 %v3957_v10, %v3909_v57 }
 0x466   : > { %v3911_v43 = vpop.f32.mrf.mxu2 }
 0x467   : > { %v3912_v60 = vadd.f32 %v3911_v43, %v10307_v51 }
 0x468   : > { %v4001_v48 = vpop.f32.mrf.mxu0  ;;  %v3960_v7 = vpop.f32.mrf.mxu3 }
 0x469   : > { %v4002_v21 = vadd.f32 %v4001_v48, %v3953_v33  ;;  %v4050_v44 = vpop.f32.mrf.mxu1  ;;  %v3961_v14 = vadd.f32 %v3960_v7, %v3912_v60 }
 0x46b   : > { %v4051_v12 = vadd.f32 %v4050_v44, %v4002_v21 }
 0x46d   : > { %v4086_v32 = vpack.c.bf16 %v4051_v12, %v4049_v19 }
 0x46e   : > { %v3913_v41 = vpop.f32.mrf.mxu2 }
 0x46f   : > { %4359 = vmatmul.bf16.gmra.mxu3 %v4086_v32  ;;  %4457 = vmatmul.bf16.gmra.mxu1 %v4086_v32 }
 0x470   : > { %v4004_v55 = vpop.f32.mrf.mxu0  ;;  %v3962_v38 = vpop.f32.mrf.mxu3 }
 0x471   : > { %v4053_v2 = vpop.f32.mrf.mxu1  ;;  %v4005_v40 = vadd.f32 %v4004_v55, %v3956_v34 }
 0x473   : > { %4325 = vmatmul.bf16.gmra.mxu2 %v10126_v39  ;;  %4413 = vmatmul.bf16.gmra.mxu0 %v10096_v3  ;;  %v4054_v53 = vadd.f32 %v4053_v2, %v4005_v40  ;;  %v3914_v3 = vadd.f32 %v3913_v41, %v10314_v42  ;;  %v3870_v42 = vadd.f32 %v10326_v22, %v10324_v36 }
 0x474   : > { %v3875_v22 = vadd.f32 %v10338_v8, %v10336_v63 }
 0x475   : > { %v3963_v49 = vadd.f32 %v3962_v38, %v3914_v3 }
 0x476   : > { %v3916_v11 = vpop.f32.mrf.mxu2 }
 0x478   : > { %v4006_v18 = vpop.f32.mrf.mxu0  ;;  %v3965_v56 = vpop.f32.mrf.mxu3 }
 0x479   : > { %v4007_v24 = vadd.f32 %v4006_v18, %v3958_v29  ;;  %v4055_v23 = vpop.f32.mrf.mxu1 }
 0x47b   : > { %v4056_v61 = vadd.f32 %v4055_v23, %v4007_v24 }
 0x47d   : > { %v4088_v15 = vpack.c.bf16 %v4056_v61, %v4054_v53  ;;  %v3880_v61 = vadd.f32 %v10348_v30, %v10346_v20 }
 0x47e   : > { %v3918_v62 = vpop.f32.mrf.mxu2 }
 0x47f   : > { %4364 = vmatmul.bf16.gmra.mxu3 %v4088_v15  ;;  %4462 = vmatmul.bf16.gmra.mxu1 %v4088_v15  ;;  %v3919_v43 = vadd.f32 %v3918_v62, %v3870_v42 }
 0x480   : > { %v4009_v4 = vpop.f32.mrf.mxu0  ;;  %v3967_v16 = vpop.f32.mrf.mxu3 }
 0x481   : > { %v4058_v50 = vpop.f32.mrf.mxu1  ;;  %v4010_v52 = vadd.f32 %v4009_v4, %v3961_v14  ;;  %v3968_v37 = vadd.f32 %v3967_v16, %v3919_v43 }
 0x483   : > { %4330 = vmatmul.bf16.gmra.mxu2 %v10140_v13  ;;  %4418 = vmatmul.bf16.gmra.mxu0 %v10110_v46  ;;  %v4059_v10 = vadd.f32 %v4058_v50, %v4010_v52  ;;  %v3917_v46 = vadd.f32 %v3916_v11, %v10317_v0 }
 0x485   : > { %v3966_v33 = vadd.f32 %v3965_v56, %v3917_v46 }
 0x486   : > { %v3921_v35 = vpop.f32.mrf.mxu2 }
 0x487   : > { %v3922_v55 = vadd.f32 %v3921_v35, %v10329_v58 }
 0x488   : > { %v4011_v5 = vpop.f32.mrf.mxu0  ;;  %v3970_v27 = vpop.f32.mrf.mxu3 }
 0x489   : > { %v4012_v26 = vadd.f32 %v4011_v5, %v3963_v49  ;;  %v4060_v54 = vpop.f32.mrf.mxu1  ;;  %v3971_v57 = vadd.f32 %v3970_v27, %v3922_v55 }
 0x48b   : > { %v4061_v1 = vadd.f32 %v4060_v54, %v4012_v26 }
 0x48d   : > { %v4090_v59 = vpack.c.bf16 %v4061_v1, %v4059_v10 }
 0x48e   : > { %v3923_v21 = vpop.f32.mrf.mxu2 }
 0x48f   : > { %4369 = vmatmul.bf16.gmra.mxu3 %v4090_v59  ;;  %4467 = vmatmul.bf16.gmra.mxu1 %v4090_v59  ;;  %v3924_v2 = vadd.f32 %v3923_v21, %v3875_v22 }
 0x490   : > { %v4014_v51 = vpop.f32.mrf.mxu0  ;;  %v3972_v41 = vpop.f32.mrf.mxu3 }
 0x491   : > { %v4063_v9 = vpop.f32.mrf.mxu1  ;;  %v4015_v48 = vadd.f32 %v4014_v51, %v3966_v33  ;;  %v3973_v34 = vadd.f32 %v3972_v41, %v3924_v2 }
 0x493   : > { %4335 = vmatmul.bf16.gmra.mxu2 %v10155_v28  ;;  %4423 = vmatmul.bf16.gmra.mxu0 %v10126_v39  ;;  %v4064_v12 = vadd.f32 %v4063_v9, %v4015_v48 }
 0x496   : > { %v3926_v47 = vpop.f32.mrf.mxu2 }
 0x498   : > { %v4016_v44 = vpop.f32.mrf.mxu0  ;;  %v3975_v38 = vpop.f32.mrf.mxu3 }
 0x499   : > { %v4017_v7 = vadd.f32 %v4016_v44, %v3968_v37  ;;  %v4065_v19 = vpop.f32.mrf.mxu1 }
 0x49b   : > { %v4066_v32 = vadd.f32 %v4065_v19, %v4017_v7 }
 0x49d   : > { %v4092_v36 = vpack.c.bf16 %v4066_v32, %v4064_v12 }
 0x49e   : > { %v3928_v53 = vpop.f32.mrf.mxu2 }
 0x49f   : > { %4374 = vmatmul.bf16.gmra.mxu3 %v4092_v36  ;;  %4472 = vmatmul.bf16.gmra.mxu1 %v4092_v36  ;;  %v3929_v56 = vadd.f32 %v3928_v53, %v3880_v61 }
 0x4a0   : > { %v4019_v0 = vpop.f32.mrf.mxu0  ;;  %v3977_v58 = vpop.f32.mrf.mxu3 }
 0x4a1   : > { %v4068_v39 = vpop.f32.mrf.mxu1  ;;  %v4020_v29 = vadd.f32 %v4019_v0, %v3971_v57  ;;  %v3978_v50 = vadd.f32 %v3977_v58, %v3929_v56 }
 0x4a3   : > { %4340 = vmatmul.bf16.gmra.mxu2 %v10169_v6  ;;  %4428 = vmatmul.bf16.gmra.mxu0 %v10140_v13  ;;  %v4069_v23 = vadd.f32 %v4068_v39, %v4020_v29  ;;  %v3927_v13 = vadd.f32 %v3926_v47, %v10341_v31  ;;  %v3885_v31 = vadd.f32 %v10357_v45, %v10355_v17 }
 0x4a5   : > { %v3976_v4 = vadd.f32 %v3975_v38, %v3927_v13 }
 0x4a6   : > { %v3931_v60 = vpop.f32.mrf.mxu2 }
 0x4a8   : > { %v4021_v40 = vpop.f32.mrf.mxu0  ;;  %v3980_v52 = vpop.f32.mrf.mxu3 }
 0x4a9   : > { %v4022_v18 = vadd.f32 %v4021_v40, %v3973_v34  ;;  %v4070_v24 = vpop.f32.mrf.mxu1 }
 0x4ab   : > { %v4071_v11 = vadd.f32 %v4070_v24, %v4022_v18 }
 0x4ad   : > { %v4094_v63 = vpack.c.bf16 %v4071_v11, %v4069_v23 }
 0x4ae   : > { %v3933_v20 = vpop.f32.mrf.mxu2 }
 0x4af   : > { %4379 = vmatmul.bf16.gmra.mxu3 %v4094_v63  ;;  %4477 = vmatmul.bf16.gmra.mxu1 %v4094_v63  ;;  %v3934_v10 = vadd.f32 %v3933_v20, %v3885_v31 }
 0x4b0   : > { %v4024_v8 = vpop.f32.mrf.mxu0  ;;  %v3982_v1 = vpop.f32.mrf.mxu3 }
 0x4b1   : > { %v4073_v15 = vpop.f32.mrf.mxu1  ;;  %v4025_v3 = vadd.f32 %v4024_v8, %v3976_v4  ;;  %v3983_v35 = vadd.f32 %v3982_v1, %v3934_v10 }
 0x4b3   : > { %4433 = vmatmul.bf16.gmra.mxu0 %v10155_v28  ;;  %v4074_v16 = vadd.f32 %v4073_v15, %v4025_v3  ;;  %v3932_v28 = vadd.f32 %v3931_v60, %v10350_v25  ;;  %v4131_v25 = vld [vmem:[%s11717_s4] sm:$0x3] }
 0x4b4   : > { %v10396_v17 = vperm.slane %v4131_v25, 1  ;;  %v10399_v21 = vperm.slane %v4131_v25, 0 }
 0x4b5   : > { %v3981_v59 = vadd.f32 %v3980_v52, %v3932_v28 }
 0x4b6   : > { %v4306_v37 = vpop.f32.mrf.mxu2 }
 0x4b7   : > { %v4307_v19 = vadd.f32 %v4306_v37, %v10399_v21 }
 0x4b8   : > { %v4026_v62 = vpop.f32.mrf.mxu0 }
 0x4b9   : > { %v4027_v14 = vadd.f32 %v4026_v62, %v3978_v50  ;;  %v4075_v49 = vpop.f32.mrf.mxu1 }
 0x4bb   : > { %v4076_v5 = vadd.f32 %v4075_v49, %v4027_v14 }
 0x4bd   : > { %v4096_v26 = vpack.c.bf16 %v4076_v5, %v4074_v16 }
 0x4be   : > { %v4308_v2 = vpop.f32.mrf.mxu2 }
 0x4bf   : > { %4384 = vmatmul.bf16.gmra.mxu3 %v4096_v26  ;;  %4482 = vmatmul.bf16.gmra.mxu1 %v4096_v26  ;;  %v4309_v34 = vadd.f32 %v4308_v2, %v10399_v21 }
 0x4c0   : > { %v4029_v30 = vpop.f32.mrf.mxu0 }
 0x4c1   : > { %v4078_v54 = vpop.f32.mrf.mxu1  ;;  %v4030_v51 = vadd.f32 %v4029_v30, %v3981_v59 }
 0x4c3   : > { %4438 = vmatmul.bf16.gmra.mxu0 %v10169_v6  ;;  %v4079_v27 = vadd.f32 %v4078_v54, %v4030_v51 }
 0x4c6   : > { %v4311_v20 = vpop.f32.mrf.mxu2 }
 0x4c8   : > { %v4031_v42 = vpop.f32.mrf.mxu0 }
 0x4c9   : > { %v4032_v46 = vadd.f32 %v4031_v42, %v3983_v35  ;;  %v4080_v9 = vpop.f32.mrf.mxu1 }
 0x4cb   : > { %v4081_v43 = vadd.f32 %v4080_v9, %v4032_v46  ;;  %v4312_v46 = vadd.f32 %v4311_v20, %v10399_v21 }
 0x4cd   : > { %v4098_v33 = vpack.c.bf16 %v4081_v43, %v4079_v27 }
 0x4cf   : > { %4389 = vmatmul.bf16.gmra.mxu3 %v4098_v33  ;;  %4487 = vmatmul.bf16.gmra.mxu1 %v4098_v33 }
 0x4d0   : > { %v4404_v45 = vpop.f32.mrf.mxu0 }
 0x4d1   : > { %v4405_v6 = vadd.f32 %v4404_v45, %v10396_v17 }
 0x4d8   : > { %v4406_v12 = vpop.f32.mrf.mxu0 }
 0x4d9   : > { %v4407_v22 = vadd.f32 %v4406_v12, %v10396_v17 }
 0x4dc   : > { %v4453_v48 = vpop.f32.mrf.mxu1 }
 0x4dd   : > { %v10401_v44 = vadd.f32 %v4453_v48, %v4405_v6 }
 0x4df   : > { %v10404_v7 = vmul.f32 0.70710677, %v10401_v44 }
 0x4e0   : > { %v4409_v23 = vpop.f32.mrf.mxu0 }
 0x4e1   : > { %v4558_v32 = vand.u32 2147483647, %v10404_v7  ;;  %v4410_v49 = vadd.f32 %v4409_v23, %v10396_v17 }
 0x4e2   : > { %v4355_v41 = vpop.f32.mrf.mxu3 }
 0x4e3   : > { %v4590_v36 = vmul.f32 0.3275911, %v4558_v32  ;;  %v10408_v0 = vadd.f32 %v4355_v41, %v4307_v19  ;;  %v5422_v29 = vsub.f32 0.0, %v4558_v32 }
 0x4e4   : > { %v4455_v55 = vpop.f32.mrf.mxu1 }
 0x4e5   : > { %v4622_v39 = vadd.f32 1.0, %v4590_v36  ;;  %v10412_v47 = vmul.f32 0.70710677, %v10408_v0  ;;  %v10414_v57 = vadd.f32 %v4455_v55, %v4407_v22  ;;  %v5454_v8 = vmul.f32 %v5422_v29, %v4558_v32 }
 0x4e7   : > { %8524 = vrcp.f32 %v4622_v39  ;;  %v4557_v38 = vand.u32 2147483647, %v10412_v47  ;;  %v10419_v40 = vmul.f32 0.70710677, %v10414_v57  ;;  %v4677_v60 = vand.u32 2147483647, %v4622_v39 }
 0x4e8   : > { %v4679_v62 = vand.u32 2147483648, %v4622_v39  ;;  %v5487_v14 = vmul.f32 1.442695, %v5454_v8  ;;  %vm4673_vm1 = vweird.f32 %v4622_v39  ;;  %v4411_v10 = vpop.f32.mrf.mxu0 }
 0x4e9   : > { %v4589_v18 = vmul.f32 0.3275911, %v4557_v38  ;;  %v4560_v11 = vand.u32 2147483647, %v10419_v40  ;;  %vm4678_vm2 = vcmp.eq.f32.partialorder %v4677_v60, 8.507059e+37  ;;  %v5421_v31 = vsub.f32 0.0, %v4557_v38 }
 0x4ea   : > { %v4357_v24 = vpop.f32.mrf.mxu3  ;;  %v4680_v28 = vor.u32 1.1754944e-38, %v4679_v62  ;;  %v4412_v6 = vadd.f32 %v4411_v10, %v10396_v17 }
 0x4eb   : > { %v10422_v53 = vadd.f32 %v4357_v24, %v4309_v34  ;;  %v4621_v63 = vadd.f32 1.0, %v4589_v18  ;;  %v4592_v61 = vmul.f32 0.3275911, %v4560_v11  ;;  %v5424_v51 = vsub.f32 0.0, %v4560_v11 }
 0x4ec   : > { %v4458_v3 = vpop.f32.mrf.mxu1  ;;  %v5453_v45 = vmul.f32 %v5421_v31, %v4557_v38 }
 0x4ed   : > { %v8525_v58 = vpop.eup %8524  ;;  %v10425_v13 = vmul.f32 0.70710677, %v10422_v53  ;;  %8526 = vrcp.f32 %v4621_v63  ;;  %v10427_v56 = vadd.f32 1.0, %v4592_v61  ;;  %v10435_v5 = vadd.f32 %v4458_v3, %v4410_v49 }
 0x4ee   : > { %v4669_v15 = vmul.f32 %v8525_v58, %v4622_v39  ;;  %vm4674_vm0 = vweird.f32 %v8525_v58  ;;  %v4662_v35 = vand.u32 2147483647, %v4621_v63  ;;  %v4664_v25 = vand.u32 2147483648, %v4621_v63 }
 0x4ef   : > { %v10430_v50 = vand.u32 2147483647, %v10425_v13  ;;  %8528 = vrcp.f32 %v10427_v56  ;;  %vm4675_vm3 = vmor %vm4673_vm1, %vm4674_vm0  ;;  %v10440_v42 = vmul.f32 0.70710677, %v10435_v5  ;;  %vm4658_vm4 = vweird.f32 %v4621_v63 }
 0x4f0   : > { %v4670_v4 = vsub.f32 1.0, %v4669_v15  ;;  %8530 = vpow2.f32 %v5487_v14  ;;  %vm10449_vm6 = vcmp.eq.f32.partialorder %v4662_v35, 8.507059e+37  ;;  %v5456_v41 = vmul.f32 %v5424_v51, %v4560_v11 }
 0x4f1   : > { %v4591_v16 = vmul.f32 0.3275911, %v10430_v50  ;;  %v10454_v36 = vand.u32 2147483647, %v10440_v42  ;;  %v4707_v38 = vand.u32 2147483647, %v10427_v56  ;;  %vm4703_vm9 = vweird.f32 %v10427_v56 }
 0x4f2   : > { %v4671_v52 = vmul.f32 %v8525_v58, %v4670_v4  ;;  %v4360_v19 = vpop.f32.mrf.mxu3  ;;  %v4709_v34 = vand.u32 2147483648, %v10427_v56  ;;  %v4665_v18 = vor.u32 1.1754944e-38, %v4664_v25  ;;  %v5423_v51 = vsub.f32 0.0, %v10430_v50 }
 0x4f3   : > { %v8527_v26 = vpop.eup %8526  ;;  %v10437_v1 = vadd.f32 1.0, %v4591_v16  ;;  %v4594_v24 = vmul.f32 0.3275911, %v10454_v36  ;;  %v10463_v23 = vadd.f32 %v4360_v19, %v4312_v46  ;;  %vm4708_vm10 = vcmp.eq.f32.partialorder %v4707_v38, 8.507059e+37 }
 0x4f4   : > { %v4672_v30 = vadd.f32 %v8525_v58, %v4671_v52  ;;  %v4654_v54 = vmul.f32 %v8527_v26, %v4621_v63  ;;  %vm4659_vm5 = vweird.f32 %v8527_v26  ;;  %v4460_v22 = vpop.f32.mrf.mxu1  ;;  %v4710_v62 = vor.u32 1.1754944e-38, %v4709_v34 }
 0x4f5   : > { %8532 = vrcp.f32 %v10437_v1  ;;  %v8529_v43 = vpop.eup %8528  ;;  %vm4660_vm7 = vmor %vm4658_vm4, %vm4659_vm5  ;;  %v10465_v61 = vadd.f32 %v4460_v22, %v4412_v6  ;;  %v4692_v52 = vand.u32 2147483647, %v10437_v1  ;;  %v10476_v16 = vadd.f32 1.0, %v4594_v24 }
 0x4f6   : > { %v4676_v59 = vsel %vm4675_vm3, %v8525_v58, %v4672_v30  ;;  %v4655_v27 = vsub.f32 1.0, %v4654_v54  ;;  %v4699_v48 = vmul.f32 %v8529_v43, %v10427_v56  ;;  %v10456_v55 = vpop.eup %8530  ;;  %vm4704_vm8 = vweird.f32 %v8529_v43  ;;  %v4313_v30 = vpop.f32.mrf.mxu2 }
 0x4f7   : > { %v10443_v9 = vsel %vm4678_vm2, %v4680_v28, %v4676_v59  ;;  %vm4705_vm11 = vmor %vm4703_vm9, %vm4704_vm8  ;;  %v4694_v56 = vand.u32 2147483648, %v10437_v1  ;;  %8534 = vrcp.f32 %v10476_v16  ;;  %v5485_v59 = vmul.f32 1.442695, %v5453_v45 }
 0x4f8   : > { %v5134_v33 = vmul.f32 1.0614054, %v10443_v9  ;;  %v4656_v37 = vmul.f32 %v8527_v26, %v4655_v27  ;;  %v4700_v2 = vsub.f32 1.0, %v4699_v48  ;;  %vm4688_vm13 = vweird.f32 %v10437_v1 }
 0x4f9   : > { %v4695_v45 = vor.u32 1.1754944e-38, %v4694_v56  ;;  %v5491_v48 = vmul.f32 1.442695, %v5456_v41  ;;  %vm4693_vm15 = vcmp.eq.f32.partialorder %v4692_v52, 8.507059e+37  ;;  %v5455_v22 = vmul.f32 %v5423_v51, %v10430_v50 }
 0x4fa   : > { %v5166_v12 = vadd.f32 -1.4531521, %v5134_v33  ;;  %v4657_v39 = vadd.f32 %v8527_v26, %v4656_v37  ;;  %v4701_v8 = vmul.f32 %v8529_v43, %v4700_v2  ;;  %v10491_v33 = vadd.f32 %v4313_v30, %v10399_v21 }
 0x4fb   : > { %v8533_v11 = vpop.eup %8532  ;;  %v10500_v2 = vmul.f32 0.5, %v10401_v44  ;;  %8536 = vpow2.f32 %v5485_v59  ;;  %vm5614_vm1 = vcmp.ge.f32.partialorder %v10404_v7, 0.0  ;;  %vm4733_vm2 = vweird.f32 %v10476_v16 }
 0x4fc   : > { %v5198_v29 = vmul.f32 %v5166_v12, %v10443_v9  ;;  %v4661_v58 = vsel %vm4660_vm7, %v8527_v26, %v4657_v39  ;;  %v4684_v63 = vmul.f32 %v8533_v11, %v10437_v1  ;;  %v4702_v3 = vadd.f32 %v8529_v43, %v4701_v8 }
 0x4fd   : > { %v10469_v4 = vsel %vm10449_vm6, %v4665_v18, %v4661_v58  ;;  %vm4689_vm12 = vweird.f32 %v8533_v11  ;;  %v8535_v39 = vpop.eup %8534  ;;  %8538 = vpow2.f32 %v5491_v48  ;;  %v5489_v8 = vmul.f32 1.442695, %v5455_v22 }
 0x4fe   : > { %v5230_v15 = vadd.f32 1.4214138, %v5198_v29  ;;  %v5133_v60 = vmul.f32 1.0614054, %v10469_v4  ;;  %v4685_v49 = vsub.f32 1.0, %v4684_v63  ;;  %v4706_v20 = vsel %vm4705_vm11, %v8529_v43, %v4702_v3  ;;  %vm4690_vm14 = vmor %vm4688_vm13, %vm4689_vm12 }
 0x4ff   : > { %v10479_v28 = vsel %vm4708_vm10, %v4710_v62, %v4706_v20  ;;  %v10488_v43 = vmul.f32 0.70710677, %v10463_v23  ;;  %v4729_v24 = vmul.f32 %v8535_v39, %v10476_v16  ;;  %vm4734_vm0 = vweird.f32 %v8535_v39 }
 0x500   : > { %v5262_v14 = vmul.f32 %v5230_v15, %v10443_v9  ;;  %v5165_v26 = vadd.f32 -1.4531521, %v5133_v60  ;;  %v4686_v54 = vmul.f32 %v8533_v11, %v4685_v49  ;;  %v5136_v35 = vmul.f32 1.0614054, %v10479_v28  ;;  %vm4735_vm3 = vmor %vm4733_vm2, %vm4734_vm0 }
 0x501   : > { %v10505_v41 = vand.u32 2147483647, %v10488_v43  ;;  %v4730_v15 = vsub.f32 1.0, %v4729_v24  ;;  %v4737_v60 = vand.u32 2147483647, %v10476_v16  ;;  %v4739_v3 = vand.u32 2147483648, %v10476_v16  ;;  %v8537_v56 = vpop.eup %8536 }
 0x502   : > { %v5294_v31 = vadd.f32 -0.28449672, %v5262_v14  ;;  %v5197_v10 = vmul.f32 %v5165_v26, %v10469_v4  ;;  %v4687_v27 = vadd.f32 %v8533_v11, %v4686_v54  ;;  %v5168_v6 = vadd.f32 -1.4531521, %v5136_v35 }
 0x503   : > { %v4593_v58 = vmul.f32 0.3275911, %v10505_v41  ;;  %v4731_v14 = vmul.f32 %v8535_v39, %v4730_v15  ;;  %v5426_v20 = vsub.f32 0.0, %v10454_v36  ;;  %v10524_v59 = vmul.f32 0.5, %v10408_v0 }
 0x504   : > { %v5326_v46 = vmul.f32 %v5294_v31, %v10443_v9  ;;  %v5229_v25 = vadd.f32 1.4214138, %v5197_v10  ;;  %v4691_v19 = vsel %vm4690_vm14, %v8533_v11, %v4687_v27  ;;  %v5200_v32 = vmul.f32 %v5168_v6, %v10479_v28  ;;  %v8539_v10 = vpop.eup %8538 }
 0x505   : > { %v10496_v1 = vsel %vm4693_vm15, %v4695_v45, %v4691_v19  ;;  %v10516_v49 = vadd.f32 1.0, %v4593_v58  ;;  %v4732_v54 = vadd.f32 %v8535_v39, %v4731_v14  ;;  %v4740_v51 = vor.u32 1.1754944e-38, %v4739_v3  ;;  %v4362_v14 = vpop.f32.mrf.mxu3 }
 0x506   : > { %v5358_v37 = vadd.f32 0.2548296, %v5326_v46  ;;  %v5261_v12 = vmul.f32 %v5229_v25, %v10469_v4  ;;  %v5135_v34 = vmul.f32 1.0614054, %v10496_v1  ;;  %v5232_v18 = vadd.f32 1.4214138, %v5200_v32  ;;  %v4414_v25 = vpop.f32.mrf.mxu0 }
 0x507   : > { %8540 = vrcp.f32 %v10516_v49  ;;  %v4736_v27 = vsel %vm4735_vm3, %v8535_v39, %v4732_v54  ;;  %vm4738_vm4 = vcmp.eq.f32.partialorder %v4737_v60, 8.507059e+37  ;;  %vm5613_vm5 = vcmp.ge.f32.partialorder %v10412_v47, 0.0 }
 0x508   : > { %v5390_v38 = vmul.f32 %v5358_v37, %v10443_v9  ;;  %v5293_v29 = vadd.f32 -0.28449672, %v5261_v12  ;;  %v5167_v50 = vadd.f32 -1.4531521, %v5135_v34  ;;  %v5264_v9 = vmul.f32 %v5232_v18, %v10479_v28 }
 0x509   : > { %v10529_v45 = vsel %vm4738_vm4, %v4740_v51, %v4736_v27  ;;  %v5458_v37 = vmul.f32 %v5426_v20, %v10454_v36  ;;  %8542 = vpow2.f32 %v5489_v8  ;;  %v4496_v12 = vmul.f32 0.5, %v10414_v57 }
 0x50a   : > { %v5550_v11 = vmul.f32 %v10456_v55, %v5390_v38  ;;  %v5325_v44 = vmul.f32 %v5293_v29, %v10469_v4  ;;  %v5199_v63 = vmul.f32 %v5167_v50, %v10496_v1  ;;  %v5296_v62 = vadd.f32 -0.28449672, %v5264_v9  ;;  %v4316_v9 = vpop.f32.mrf.mxu2 }
 0x50b   : > { %v5138_v19 = vmul.f32 1.0614054, %v10529_v45  ;;  %vm5616_vm6 = vcmp.ge.f32.partialorder %v10419_v40, 0.0  ;;  %v10538_v22 = vadd.f32 %v4414_v25, %v10396_v17  ;;  %v8933_v34 = vmov 16.0  }
 0x50c   : > { %v5357_v55 = vadd.f32 0.2548296, %v5325_v44  ;;  %v5582_v52 = vsub.f32 1.0, %v5550_v11  ;;  %v5231_v26 = vadd.f32 1.4214138, %v5199_v63  ;;  %v5328_v31 = vmul.f32 %v5296_v62, %v10479_v28 }
 0x50d   : > { %v8541_v39 = vpop.eup %8540  ;;  %8544 = vrcp.f32 %v8933_v34  ;;  %v5170_v36 = vadd.f32 -1.4531521, %v5138_v19  ;;  %v10541_v29 = vmul.f32 0.70710677, %v10465_v61  ;;  %v5495_v57 = vmul.f32 1.442695, %v5458_v37 }
 0x50e   : > { %v5389_v30 = vmul.f32 %v5357_v55, %v10469_v4  ;;  %v5263_v35 = vmul.f32 %v5231_v26, %v10496_v1  ;;  %v5360_v46 = vadd.f32 0.2548296, %v5328_v31  ;;  %v5646_v4 = vsub.f32 0.0, %v5582_v52 }
 0x50f   : > { %v4714_v24 = vmul.f32 %v8541_v39, %v10516_v49  ;;  %vm5615_vm7 = vcmp.ge.f32.partialorder %v10425_v13, 0.0  ;;  %v5202_v58 = vmul.f32 %v5170_v36, %v10529_v45  ;;  %v10549_v44 = vand.u32 2147483647, %v10541_v29  ;;  %v8543_v63 = vpop.eup %8542 }
 0x510   : > { %v5549_v16 = vmul.f32 %v8537_v56, %v5389_v30  ;;  %v5295_v6 = vadd.f32 -0.28449672, %v5263_v35  ;;  %v5392_v48 = vmul.f32 %v5360_v46, %v10479_v28  ;;  %v5678_v28 = vsel %vm5614_vm1, %v5582_v52, %v5646_v4 }
 0x511   : > { %v4715_v15 = vsub.f32 1.0, %v4714_v24  ;;  %vm4718_vm8 = vweird.f32 %v10516_v49  ;;  %v4722_v7 = vand.u32 2147483647, %v10516_v49  ;;  %v5234_v3 = vadd.f32 1.4214138, %v5202_v58 }
 0x512   : > { %v5581_v0 = vsub.f32 1.0, %v5549_v16  ;;  %v5327_v32 = vmul.f32 %v5295_v6, %v10496_v1  ;;  %v5552_v38 = vmul.f32 %v8539_v10, %v5392_v48  ;;  %v4724_v55 = vand.u32 2147483648, %v10516_v49  ;;  %v4318_v34 = vpop.f32.mrf.mxu2 }
 0x513   : > { %v4596_v62 = vmul.f32 0.3275911, %v10549_v44  ;;  %v5710_v52 = vadd.f32 1.0, %v5678_v28  ;;  %v4716_v20 = vmul.f32 %v8541_v39, %v4715_v15  ;;  %vm4719_vm9 = vweird.f32 %v8541_v39  ;;  %v10556_v56 = vpop.eup %8544 }
 0x514   : > { %v5359_v18 = vadd.f32 0.2548296, %v5327_v32  ;;  %v5645_v11 = vsub.f32 0.0, %v5581_v0  ;;  %v5584_v50 = vsub.f32 1.0, %v5552_v38  ;;  %v5266_v31 = vmul.f32 %v5234_v3, %v10529_v45  ;;  %vm4720_vm10 = vmor %vm4718_vm8, %vm4719_vm9 }
 0x515   : > { %v10563_v54 = vadd.f32 1.0, %v4596_v62  ;;  %v4717_v51 = vadd.f32 %v8541_v39, %v4716_v20  ;;  %v10566_v16 = vadd.f32 %v4362_v14, %v10491_v33  ;;  %vm4723_vm11 = vcmp.eq.f32.partialorder %v4722_v7, 8.507059e+37  ;;  %v4463_v33 = vpop.f32.mrf.mxu1 }
 0x516   : > { %v5391_v8 = vmul.f32 %v5359_v18, %v10496_v1  ;;  %v5648_v60 = vsub.f32 0.0, %v5584_v50  ;;  %v5677_v1 = vsel %vm5613_vm5, %v5581_v0, %v5645_v11  ;;  %v5298_v46 = vadd.f32 -0.28449672, %v5266_v31 }
 0x517   : > { %v4725_v47 = vor.u32 1.1754944e-38, %v4724_v55  ;;  %8546 = vrcp.f32 %v10563_v54  ;;  %v5742_v40 = vmul.f32 %v5710_v52, %v10500_v2  ;;  %v4721_v4 = vsel %vm4720_vm10, %v8541_v39, %v4717_v51 }
 0x518   : > { %v5551_v26 = vmul.f32 %v8543_v63, %v5391_v8  ;;  %v5680_v30 = vsel %vm5616_vm6, %v5584_v50, %v5648_v60  ;;  %v5709_v6 = vadd.f32 1.0, %v5677_v1  ;;  %v5330_v37 = vmul.f32 %v5298_v46, %v10529_v45 }
 0x519   : > { %v5712_v10 = vadd.f32 1.0, %v5680_v30  ;;  %8548 = vpow2.f32 %v5495_v57  ;;  %v10573_v0 = vsel %vm4723_vm11, %v4725_v47, %v4721_v4  ;;  %v5886_v49 = vmul.f32 16.0, %v10556_v56 }
 0x51a   : > { %v5583_v35 = vsub.f32 1.0, %v5551_v26  ;;  %v5137_v32 = vmul.f32 1.0614054, %v10573_v0  ;;  %v4495_v2 = vmul.f32 0.5, %v10422_v53  ;;  %v5362_v38 = vadd.f32 0.2548296, %v5330_v37  ;;  %v4321_v37 = vpop.f32.mrf.mxu2 }
 0x51b   : > { %v5744_v27 = vmul.f32 %v5712_v10, %v4496_v12  ;;  %v5425_v39 = vsub.f32 0.0, %v10505_v41  ;;  %v10582_v18 = vmul.f32 0.70710677, %v10566_v16  ;;  %v10585_v57 = vadd.f32 %v4463_v33, %v10538_v22 }
 0x51c   : > { %v5647_v25 = vsub.f32 0.0, %v5583_v35  ;;  %v5169_v28 = vadd.f32 -1.4531521, %v5137_v32  ;;  %v10588_v13 = vadd.f32 %v4316_v9, %v10399_v21  ;;  %v5741_v11 = vmul.f32 %v5709_v6, %v10524_v59 }
 0x51d   : > { %v5780_v48 = vadd.f32 %v5744_v27, %v5742_v40  ;;  %v8547_v24 = vpop.eup %8546  ;;  %v5394_v50 = vmul.f32 %v5362_v38, %v10529_v45  ;;  %v5887_v8 = vsub.f32 1.0, %v5886_v49  ;;  %v5457_v22 = vmul.f32 %v5425_v39, %v10505_v41  ;;  %v4416_v27 = vpop.f32.mrf.mxu0 }
 0x51e   : > { %v5679_v19 = vsel %vm5615_vm7, %v5583_v35, %v5647_v25  ;;  %v5201_v15 = vmul.f32 %v5169_v28, %v10573_v0  ;;  %v4759_v7 = vmul.f32 %v8547_v24, %v10563_v54  ;;  %v5428_v3 = vsub.f32 0.0, %v10549_v44 }
 0x51f   : > { %v5711_v12 = vadd.f32 1.0, %v5679_v19  ;;  %v5781_v36 = vrot.slane %v5780_v48, 4  ;;  %v8549_v63 = vpop.eup %8548  ;;  %v10597_v9 = vand.u32 2147483647, %v10582_v18  ;;  %v10600_v59 = vadd.f32 %v4318_v34, %v10399_v21 }
 0x520   : > { %v5554_v55 = vmul.f32 %v8549_v63, %v5394_v50  ;;  %v5233_v45 = vadd.f32 1.4214138, %v5201_v15  ;;  %v4760_v62 = vsub.f32 1.0, %v4759_v7  ;;  %vm4764_vm12 = vweird.f32 %v8547_v24  ;;  %v4465_v63 = vpop.f32.mrf.mxu1 }
 0x521   : > { %v5743_v53 = vmul.f32 %v5711_v12, %v4495_v2  ;;  %v5782_v58 = vadd.f32 %v5781_v36, %v5780_v48  ;;  %v4767_v14 = vand.u32 2147483647, %v10563_v54  ;;  %v4769_v52 = vand.u32 2147483648, %v10563_v54 }
 0x522   : > { %v4595_v26 = vmul.f32 0.3275911, %v10597_v9  ;;  %v5265_v41 = vmul.f32 %v5233_v45, %v10573_v0  ;;  %v4761_v1 = vmul.f32 %v8547_v24, %v4760_v62  ;;  %v10607_v30 = vmul.f32 0.70710677, %v10585_v57 }
 0x523   : > { %v5773_v60 = vadd.f32 %v5743_v53, %v5741_v11  ;;  %v5783_v20 = vrot.slane %v5782_v58, 2  ;;  %v5888_v31 = vmul.f32 %v10556_v56, %v5887_v8  ;;  %v5493_v10 = vmul.f32 1.442695, %v5457_v22 }
 0x524   : > { %v5460_v35 = vmul.f32 %v5428_v3, %v10549_v44  ;;  %v10611_v51 = vadd.f32 1.0, %v4595_v26  ;;  %v5586_v46 = vsub.f32 1.0, %v5554_v55  ;;  %v5297_v47 = vadd.f32 -0.28449672, %v5265_v41 }
 0x525   : > { %v4762_v40 = vadd.f32 %v8547_v24, %v4761_v1  ;;  %vm4763_vm13 = vweird.f32 %v10563_v54  ;;  %v5774_v25 = vrot.slane %v5773_v60, 4  ;;  %vm4768_vm15 = vcmp.eq.f32.partialorder %v4767_v14, 8.507059e+37  ;;  %v4419_v62 = vpop.f32.mrf.mxu0 }
 0x526   : > { %vm4765_vm14 = vmor %vm4763_vm13, %vm4764_vm12  ;;  %v4770_v4 = vor.u32 1.1754944e-38, %v4769_v52  ;;  %8550 = vrcp.f32 %v10611_v51  ;;  %v5784_v6 = vadd.f32 %v5783_v20, %v5782_v58  ;;  %v5329_v33 = vmul.f32 %v5297_v47, %v10573_v0 }
 0x527   : > { %v4766_v44 = vsel %vm4765_vm14, %v8547_v24, %v4762_v40  ;;  %v10618_v48 = vand.u32 2147483647, %v10607_v30  ;;  %v5889_v49 = vadd.f32 %v10556_v56, %v5888_v31  ;;  %vm5890_vm0 = vweird.f32 %v10556_v56 }
 0x528   : > { %v10622_v54 = vsel %vm4768_vm15, %v4770_v4, %v4766_v44  ;;  %v5499_v19 = vmul.f32 1.442695, %v5460_v35  ;;  %v5650_v32 = vsub.f32 0.0, %v5586_v46  ;;  %v5361_v2 = vadd.f32 0.2548296, %v5329_v33 }
 0x529   : > { %8552 = vpow2.f32 %v5493_v10  ;;  %v5140_v12 = vmul.f32 1.0614054, %v10622_v54  ;;  %v10626_v38 = vadd.f32 %v4321_v37, %v10399_v21  ;;  %v5775_v39 = vadd.f32 %v5774_v25, %v5773_v60 }
 0x52a   : > { %v4498_v34 = vmul.f32 0.5, %v10435_v5  ;;  %vm5618_vm1 = vcmp.ge.f32.partialorder %v10440_v42, 0.0  ;;  %v5785_v36 = vrot.slane %v5784_v6, 1  ;;  %v10631_v28 = vmul.f32 0.5, %v10463_v23  ;;  %v4365_v42 = vpop.f32.mrf.mxu3 }
 0x52b   : > { %v5172_v24 = vadd.f32 -1.4531521, %v5140_v12  ;;  %v4598_v11 = vmul.f32 0.3275911, %v10618_v48  ;;  %v10637_v50 = vsel %vm5890_vm0, %v10556_v56, %v5889_v49  ;;  %v5393_v58 = vmul.f32 %v5361_v2, %v10573_v0 }
 0x52c   : > { %v8551_v53 = vpop.eup %8550  ;;  %11995 = vst [vmem:[#allocation21_spill] sm:$0xff] %v10637_v50  ;;  %v10641_v8 = vmul.f32 0.5, %v10465_v61  ;;  %v4417_v5 = vadd.f32 %v4416_v27, %v10396_v17  ;;  %v5682_v15 = vsel %vm5618_vm1, %v5586_v46, %v5650_v32  ;;  %8554 = vpow2.f32 %v5499_v19 }
 0x52d   : > { %v5204_v23 = vmul.f32 %v5172_v24, %v10622_v54  ;;  %v4744_v7 = vmul.f32 %v8551_v53, %v10611_v51  ;;  %v5776_v60 = vrot.slane %v5775_v39, 2  ;;  %v10647_v22 = vmul.f32 0.5, %v10566_v16 }
 0x52e   : > { %v5427_v56 = vsub.f32 0.0, %v10597_v9  ;;  %v10650_v0 = vadd.f32 1.0, %v4598_v11  ;;  %v5786_v3 = vadd.f32 %v5785_v36, %v5784_v6  ;;  %v10653_v14 = vadd.f32 %v4365_v42, %v10588_v13  ;;  %v4468_v11 = vpop.f32.mrf.mxu1 }
 0x52f   : > { %v8553_v61 = vpop.eup %8552  ;;  %v5236_v55 = vadd.f32 1.4214138, %v5204_v23  ;;  %v4745_v45 = vsub.f32 1.0, %v4744_v7  ;;  %v5714_v52 = vadd.f32 1.0, %v5682_v15  ;;  %v4754_v20 = vand.u32 2147483648, %v10611_v51 }
 0x530   : > { %v5553_v26 = vmul.f32 %v8553_v61, %v5393_v58  ;;  %8556 = vrcp.f32 %v10650_v0  ;;  %vm4749_vm2 = vweird.f32 %v8551_v53  ;;  %v4752_v1 = vand.u32 2147483647, %v10611_v51 }
 0x531   : > { %v5268_v16 = vmul.f32 %v5236_v55, %v10622_v54  ;;  %v4746_v41 = vmul.f32 %v8551_v53, %v4745_v45  ;;  %v5777_v31 = vadd.f32 %v5776_v60, %v5775_v39  ;;  %vm4748_vm3 = vweird.f32 %v10611_v51 }
 0x532   : > { %v5459_v10 = vmul.f32 %v5427_v56, %v10597_v9  ;;  %v4420_v13 = vadd.f32 %v4419_v62, %v10396_v17  ;;  %v8555_v35 = vpop.eup %8554  ;;  %v10663_v46 = vmul.f32 %v10637_v50, %v5786_v3  ;;  %v5430_v27 = vsub.f32 0.0, %v10618_v48  ;;  %vm4750_vm5 = vmor %vm4748_vm3, %vm4749_vm2 }
 0x533   : > { %v5300_v47 = vadd.f32 -0.28449672, %v5268_v16  ;;  %v4747_v40 = vadd.f32 %v8551_v53, %v4746_v41  ;;  %v5585_v25 = vsub.f32 1.0, %v5553_v26  ;;  %vm5617_vm4 = vcmp.ge.f32.partialorder %v10488_v43, 0.0 }
 0x534   : > { %v4755_v4 = vor.u32 1.1754944e-38, %v4754_v20  ;;  %v10668_v6 = vmul.f32 0.70710677, %v10653_v14  ;;  %v10670_v51 = vadd.f32 %v4465_v63, %v4417_v5  ;;  %v10672_v9 = vmul.f32 %v5714_v52, %v4498_v34  ;;  %v4367_v34 = vpop.f32.mrf.mxu3 }
 0x535   : > { %v5332_v37 = vmul.f32 %v5300_v47, %v10622_v54  ;;  %v4751_v33 = vsel %vm4750_vm5, %v8551_v53, %v4747_v40  ;;  %vm4753_vm6 = vcmp.eq.f32.partialorder %v4752_v1, 8.507059e+37  ;;  %v5778_v49 = vrot.slane %v5777_v31, 1 }
 0x536   : > { %v8557_v44 = vpop.eup %8556  ;;  %v10675_v19 = vsel %vm4753_vm6, %v4755_v4, %v4751_v33  ;;  %v5497_v32 = vmul.f32 1.442695, %v5459_v10  ;;  %v4565_v2 = vand.u32 2147483647, %v10668_v6  ;;  %v5462_v24 = vmul.f32 %v5430_v27, %v10618_v48 }
 0x537   : > { %v5364_v12 = vadd.f32 0.2548296, %v5332_v37  ;;  %v5139_v39 = vmul.f32 1.0614054, %v10675_v19  ;;  %v4789_v36 = vmul.f32 %v8557_v44, %v10650_v0  ;;  %v5649_v58 = vsub.f32 0.0, %v5585_v25 }
 0x538   : > { %vm5620_vm7 = vcmp.ge.f32.partialorder %v10541_v29, 0.0  ;;  %v4797_v53 = vand.u32 2147483647, %v10650_v0  ;;  %v4799_v5 = vand.u32 2147483648, %v10650_v0  ;;  %v4597_v42 = vmul.f32 0.3275911, %v4565_v2 }
 0x539   : > { %v5396_v15 = vmul.f32 %v5364_v12, %v10622_v54  ;;  %v5171_v23 = vadd.f32 -1.4531521, %v5139_v39  ;;  %v4790_v7 = vsub.f32 1.0, %v4789_v36  ;;  %v10686_v63 = vmul.f32 0.70710677, %v10670_v51 }
 0x53a   : > { %vm4794_vm8 = vweird.f32 %v8557_v44  ;;  %v10688_v60 = vadd.f32 1.0, %v4597_v42  ;;  %v10691_v48 = vadd.f32 %v4367_v34, %v10600_v59  ;;  %v10693_v56 = vadd.f32 %v4468_v11, %v4420_v13 }
 0x53b   : > { %v5556_v61 = vmul.f32 %v8555_v35, %v5396_v15  ;;  %v5203_v3 = vmul.f32 %v5171_v23, %v10675_v19  ;;  %v4791_v55 = vmul.f32 %v8557_v44, %v4790_v7  ;;  %v10697_v45 = vand.u32 2147483647, %v10686_v63 }
 0x53c   : > { %v5909_v54 = vpack.c.bf16 %v10663_v46, %v10663_v46  ;;  %v5779_v62 = vadd.f32 %v5778_v49, %v5777_v31  ;;  %vm4793_vm9 = vweird.f32 %v10650_v0  ;;  %8558 = vrcp.f32 %v10688_v60 }
 0x53d   : > { %v5681_v59 = vsel %vm5617_vm4, %v5585_v25, %v5649_v58  ;;  %v5588_v52 = vsub.f32 1.0, %v5556_v61  ;;  %v5235_v26 = vadd.f32 1.4214138, %v5203_v3  ;;  %v4792_v20 = vadd.f32 %v8557_v44, %v4791_v55  ;;  %vm4795_vm10 = vmor %vm4793_vm9, %vm4794_vm8 }
 0x53e   : > { %vm4798_vm11 = vcmp.eq.f32.partialorder %v4797_v53, 8.507059e+37  ;;  %v4800_v16 = vor.u32 1.1754944e-38, %v4799_v5  ;;  %v5429_v41 = vsub.f32 0.0, %v4565_v2  ;;  %v4600_v1 = vmul.f32 0.3275911, %v10697_v45 }
 0x53f   : > { %v5652_v10 = vsub.f32 0.0, %v5588_v52  ;;  %v5267_v31 = vmul.f32 %v5235_v26, %v10675_v19  ;;  %v4796_v13 = vsel %vm4795_vm10, %v8557_v44, %v4792_v20  ;;  %v5503_v0 = vmul.f32 1.442695, %v5462_v24 }
 0x540   : > { %v5713_v35 = vadd.f32 1.0, %v5681_v59  ;;  %8560 = vpow2.f32 %v5497_v32  ;;  %v10708_v46 = vsel %vm4798_vm11, %v4800_v16, %v4796_v13  ;;  %v10710_v43 = vadd.f32 1.0, %v4600_v1 }
 0x541   : > { %v10712_v47 = vunpack.c.l.b16 %v5909_v54  ;;  %v5684_v40 = vsel %vm5620_vm7, %v5588_v52, %v5652_v10  ;;  %v5299_v27 = vadd.f32 -0.28449672, %v5267_v31  ;;  %v5142_v25 = vmul.f32 1.0614054, %v10708_v46 }
 0x542   : > { %v8559_v4 = vpop.eup %8558  ;;  %v10718_v37 = vmul.f32 %v10637_v50, %v5779_v62  ;;  %v5716_v33 = vadd.f32 1.0, %v5684_v40  ;;  %v5461_v44 = vmul.f32 %v5429_v41, %v4565_v2  ;;  %8562 = vrcp.f32 %v10710_v43 }
 0x543   : > { %v5331_v49 = vmul.f32 %v5299_v27, %v10675_v19  ;;  %v5174_v32 = vadd.f32 -1.4531521, %v5142_v25  ;;  %8564 = vpow2.f32 %v5503_v0  ;;  %v4774_v12 = vmul.f32 %v8559_v4, %v10688_v60 }
 0x544   : > { %v10724_v29 = vmul.f32 %v5713_v35, %v10631_v28  ;;  %v5748_v39 = vmul.f32 %v5716_v33, %v10641_v8  ;;  %v4782_v36 = vand.u32 2147483647, %v10688_v60  ;;  %v4784_v24 = vand.u32 2147483648, %v10688_v60 }
 0x545   : > { %v5363_v34 = vadd.f32 0.2548296, %v5331_v49  ;;  %v5206_v2 = vmul.f32 %v5174_v32, %v10708_v46  ;;  %v4775_v11 = vsub.f32 1.0, %v4774_v12  ;;  %v10731_v58 = vmul.f32 0.70710677, %v10691_v48 }
 0x546   : > { %v8561_v53 = vpop.eup %8560  ;;  %v5794_v5 = vadd.f32 %v5748_v39, %v10672_v9  ;;  %vm5619_vm12 = vcmp.ge.f32.partialorder %v10582_v18, 0.0  ;;  %vm4778_vm13 = vweird.f32 %v10688_v60  ;;  %vm4779_vm14 = vweird.f32 %v8559_v4 }
 0x547   : > { %v5501_v28 = vmul.f32 1.442695, %v5461_v44  ;;  %v5395_v8 = vmul.f32 %v5363_v34, %v10675_v19  ;;  %v5238_v42 = vadd.f32 1.4214138, %v5206_v2  ;;  %v4776_v15 = vmul.f32 %v8559_v4, %v4775_v11  ;;  %vm4780_vm0 = vmor %vm4778_vm13, %vm4779_vm14 }
 0x548   : > { %v4567_v23 = vand.u32 2147483647, %v10731_v58  ;;  %v8563_v7 = vpop.eup %8562  ;;  %v5795_v61 = vrot.slane %v5794_v5, 4  ;;  %vm10738_vm15 = vcmp.eq.f32.partialorder %v4782_v36, 8.507059e+37  ;;  %v4785_v55 = vor.u32 1.1754944e-38, %v4784_v24 }
 0x549   : > { %v5432_v9 = vsub.f32 0.0, %v10697_v45  ;;  %v8565_v54 = vpop.eup %8564  ;;  %v5555_v62 = vmul.f32 %v8561_v53, %v5395_v8  ;;  %v5270_v59 = vmul.f32 %v5238_v42, %v10708_v46  ;;  %v4777_v52 = vadd.f32 %v8559_v4, %v4776_v15 }
 0x54a   : > { %v4819_v19 = vmul.f32 %v8563_v7, %v10710_v43  ;;  %v5796_v26 = vadd.f32 %v5795_v61, %v5794_v5  ;;  %v4827_v20 = vand.u32 2147483647, %v10710_v43  ;;  %v4829_v16 = vand.u32 2147483648, %v10710_v43 }
 0x54b   : > { %v4599_v41 = vmul.f32 0.3275911, %v4567_v23  ;;  %v5587_v1 = vsub.f32 1.0, %v5555_v62  ;;  %v5302_v10 = vadd.f32 -0.28449672, %v5270_v59  ;;  %v4781_v31 = vsel %vm4780_vm0, %v8559_v4, %v4777_v52 }
 0x54c   : > { %v4820_v13 = vsub.f32 1.0, %v4819_v19  ;;  %v5797_v0 = vrot.slane %v5796_v26, 2  ;;  %v10752_v35 = vsel %vm10738_vm15, %v4785_v55, %v4781_v31  ;;  %vm4824_vm1 = vweird.f32 %v8563_v7 }
 0x54d   : > { %v10754_v40 = vadd.f32 1.0, %v4599_v41  ;;  %v5651_v27 = vsub.f32 0.0, %v5587_v1  ;;  %v5334_v60 = vmul.f32 %v5302_v10, %v10708_v46  ;;  %v5141_v25 = vmul.f32 1.0614054, %v10752_v35 }
 0x54e   : > { %v4821_v33 = vmul.f32 %v8563_v7, %v4820_v13  ;;  %v5798_v44 = vadd.f32 %v5797_v0, %v5796_v26  ;;  %vm4823_vm2 = vweird.f32 %v10710_v43  ;;  %v5464_v4 = vmul.f32 %v5432_v9, %v10697_v45 }
 0x54f   : > { %8566 = vrcp.f32 %v10754_v40  ;;  %v5683_v49 = vsel %vm5619_vm12, %v5587_v1, %v5651_v27  ;;  %v5366_v32 = vadd.f32 0.2548296, %v5334_v60  ;;  %v5173_v12 = vadd.f32 -1.4531521, %v5141_v25  ;;  %vm4825_vm3 = vmor %vm4823_vm2, %vm4824_vm1 }
 0x550   : > { %v4822_v39 = vadd.f32 %v8563_v7, %v4821_v33  ;;  %v5799_v36 = vrot.slane %v5798_v44, 1  ;;  %v5715_v24 = vadd.f32 1.0, %v5683_v49  ;;  %v4830_v34 = vor.u32 1.1754944e-38, %v4829_v16 }
 0x551   : > { %v10765_v2 = vmul.f32 0.70710677, %v10693_v56  ;;  %v5205_v43 = vmul.f32 %v5173_v12, %v10752_v35  ;;  %vm4828_vm4 = vcmp.eq.f32.partialorder %v4827_v20, 8.507059e+37  ;;  %v5431_v45 = vsub.f32 0.0, %v4567_v23 }
 0x552   : > { %v4826_v11 = vsel %vm4825_vm3, %v8563_v7, %v4822_v39  ;;  %v5800_v53 = vadd.f32 %v5799_v36, %v5798_v44  ;;  %v5747_v18 = vmul.f32 %v5715_v24, %v10647_v22  ;;  %v5398_v5 = vmul.f32 %v5366_v32, %v10708_v46 }
 0x553   : > { %v10770_v8 = vsel %vm4828_vm4, %v4830_v34, %v4826_v11  ;;  %vm5992_vm5 = vcmask 1041409   ;;  %v5237_v42 = vadd.f32 1.4214138, %v5205_v43  ;;  %8568 = vpow2.f32 %v5501_v28  ;;  %v4370_v34 = vpop.f32.mrf.mxu3 }
 0x554   : > { %v5144_v15 = vmul.f32 1.0614054, %v10770_v8  ;;  %v5895_v3 = vmul.f32 %v10637_v50, %v5800_v53  ;;  %v5787_v55 = vadd.f32 %v5747_v18, %v10724_v29  ;;  %v5507_v7 = vmul.f32 1.442695, %v5464_v4 }
 0x555   : > { %v8567_v61 = vpop.eup %8566  ;;  %v10776_v9 = vand.u32 2147483647, %v10765_v2  ;;  %v5269_v22 = vmul.f32 %v5237_v42, %v10752_v35  ;;  %v5463_v59 = vmul.f32 %v5431_v45, %v4567_v23  ;;  %v5558_v28 = vmul.f32 %v8565_v54, %v5398_v5  ;;  %v4421_v45 = vpop.f32.mrf.mxu0 }
 0x556   : > { %v5176_v62 = vadd.f32 -1.4531521, %v5144_v15  ;;  %v4804_v46 = vmul.f32 %v8567_v61, %v10754_v40  ;;  %v5911_v52 = vpack.c.bf16 %v5895_v3, %v5895_v3  ;;  %v5788_v19 = vrot.slane %v5787_v55, 4 }
 0x557   : > { %v4602_v26 = vmul.f32 0.3275911, %v10776_v9  ;;  %v5301_v20 = vadd.f32 -0.28449672, %v5269_v22  ;;  %v4812_v29 = vand.u32 2147483647, %v10754_v40  ;;  %vm4809_vm6 = vweird.f32 %v8567_v61 }
 0x558   : > { %v5208_v16 = vmul.f32 %v5176_v62, %v10770_v8  ;;  %v4805_v41 = vsub.f32 1.0, %v4804_v46  ;;  %v5979_v1 = vunpack.c.l.b16 %v5911_v52  ;;  %v5789_v10 = vadd.f32 %v5788_v19, %v5787_v55  ;;  %v4470_v55 = vpop.f32.mrf.mxu1 }
 0x559   : > { %v4814_v31 = vand.u32 2147483648, %v10754_v40  ;;  %v10784_v13 = vadd.f32 1.0, %v4602_v26  ;;  %v8569_v0 = vpop.eup %8568  ;;  %v5333_v23 = vmul.f32 %v5301_v20, %v10752_v35  ;;  %v5590_v33 = vsub.f32 1.0, %v5558_v28 }
 0x55a   : > { %v5240_v27 = vadd.f32 1.4214138, %v5208_v16  ;;  %v4806_v60 = vmul.f32 %v8567_v61, %v4805_v41  ;;  %v10789_v54 = vsel %vm5992_vm5, %v5979_v1, %v10712_v47  ;;  %v5790_v25 = vrot.slane %v5789_v10, 2 }
 0x55b   : > { %8570 = vrcp.f32 %v10784_v13  ;;  %v5365_v44 = vadd.f32 0.2548296, %v5333_v23  ;;  %vm4808_vm7 = vweird.f32 %v10754_v40  ;;  %v5908_v32 = vpack.c.bf16 %v10718_v37, %v10718_v37 }
 0x55c   : > { %v5272_v4 = vmul.f32 %v5240_v27, %v10770_v8  ;;  %v4807_v49 = vadd.f32 %v8567_v61, %v4806_v60  ;;  %v5791_v12 = vadd.f32 %v5790_v25, %v5789_v10  ;;  %8572 = vpow2.f32 %v5507_v7  ;;  %vm4810_vm8 = vmor %vm4808_vm7, %vm4809_vm6 }
 0x55d   : > { %v4815_v39 = vor.u32 1.1754944e-38, %v4814_v31  ;;  %v5397_v47 = vmul.f32 %v5365_v44, %v10752_v35  ;;  %vm4813_vm9 = vcmp.eq.f32.partialorder %v4812_v29, 8.507059e+37  ;;  %v5654_v11 = vsub.f32 0.0, %v5590_v33 }
 0x55e   : > { %v5304_v36 = vadd.f32 -0.28449672, %v5272_v4  ;;  %v4811_v24 = vsel %vm4810_vm8, %v8567_v61, %v4807_v49  ;;  %v5792_v43 = vrot.slane %v5791_v12, 1  ;;  %v5505_v18 = vmul.f32 1.442695, %v5463_v59 }
 0x55f   : > { %v10797_v53 = vsel %vm4813_vm9, %v4815_v39, %v4811_v24  ;;  %v10800_v40 = vmul.f32 0.5, %v10585_v57  ;;  %vm5622_vm10 = vcmp.ge.f32.partialorder %v10607_v30, 0.0  ;;  %v5976_v42 = vunpack.c.l.b16 %v5908_v32 }
 0x560   : > { %v5336_v37 = vmul.f32 %v5304_v36, %v10770_v8  ;;  %v5143_v5 = vmul.f32 1.0614054, %v10797_v53  ;;  %v5793_v15 = vadd.f32 %v5792_v43, %v5791_v12  ;;  %v5557_v61 = vmul.f32 %v8569_v0, %v5397_v47 }
 0x561   : > { %v8571_v35 = vpop.eup %8570  ;;  %v10806_v3 = vadd.f32 %v4370_v34, %v10626_v38  ;;  %v4422_v22 = vadd.f32 %v4421_v45, %v10396_v17  ;;  %v5686_v59 = vsel %vm5622_vm10, %v5590_v33, %v5654_v11  ;;  %vm5624_vm11 = vcmp.ge.f32.partialorder %v10686_v63, 0.0 }
 0x562   : > { %v5368_v7 = vadd.f32 0.2548296, %v5336_v37  ;;  %v5175_v62 = vadd.f32 -1.4531521, %v5143_v5  ;;  %v4849_v57 = vmul.f32 %v8571_v35, %v10784_v13  ;;  %v8573_v46 = vpop.eup %8572  ;;  %v5894_v30 = vmul.f32 %v10637_v50, %v5793_v15  ;;  %v4323_v15 = vpop.f32.mrf.mxu2 }
 0x563   : > { %8574 = vpow2.f32 %v5505_v18  ;;  %v4857_v52 = vand.u32 2147483647, %v10784_v13  ;;  %v10815_v26 = vadd.f32 %v4470_v55, %v4422_v22  ;;  %v5589_v16 = vsub.f32 1.0, %v5557_v61 }
 0x564   : > { %v5400_v19 = vmul.f32 %v5368_v7, %v10770_v8  ;;  %v5207_v38 = vmul.f32 %v5175_v62, %v10797_v53  ;;  %v4850_v28 = vsub.f32 1.0, %v4849_v57  ;;  %v5910_v20 = vpack.c.bf16 %v5894_v30, %v5894_v30 }
 0x565   : > { %v4859_v41 = vand.u32 2147483648, %v10784_v13  ;;  %v10819_v29 = vmul.f32 0.70710677, %v10806_v3  ;;  %vm4854_vm12 = vweird.f32 %v8571_v35  ;;  %vm4853_vm13 = vweird.f32 %v10784_v13 }
 0x566   : > { %v5560_v1 = vmul.f32 %v8573_v46, %v5400_v19  ;;  %v5239_v10 = vadd.f32 1.4214138, %v5207_v38  ;;  %v4851_v31 = vmul.f32 %v8571_v35, %v4850_v28  ;;  %v5978_v0 = vunpack.c.l.b16 %v5910_v20  ;;  %vm4855_vm15 = vmor %vm4853_vm13, %vm4854_vm12  ;;  %v4372_v20 = vpop.f32.mrf.mxu3 }
 0x567   : > { %vm10822_vm14 = vcmp.eq.f32.partialorder %v4857_v52, 8.507059e+37  ;;  %v10827_v23 = vand.u32 2147483647, %v10819_v29  ;;  %v10831_v33 = vmul.f32 0.70710677, %v10815_v26  ;;  %v5653_v49 = vsub.f32 0.0, %v5589_v16 }
 0x568   : > { %v5592_v27 = vsub.f32 1.0, %v5560_v1  ;;  %v5271_v60 = vmul.f32 %v5239_v10, %v10797_v53  ;;  %v4852_v25 = vadd.f32 %v8571_v35, %v4851_v31  ;;  %v10834_v4 = vsel %vm5992_vm5, %v5978_v0, %v5976_v42 }
 0x569   : > { %v8575_v44 = vpop.eup %8574  ;;  %v4860_v13 = vor.u32 1.1754944e-38, %v4859_v41  ;;  %v4601_v32 = vmul.f32 0.3275911, %v10827_v23  ;;  %v10838_v36 = vand.u32 2147483647, %v10831_v33  ;;  %v5718_v24 = vadd.f32 1.0, %v5686_v59 }
 0x56a   : > { %v5656_v12 = vsub.f32 0.0, %v5592_v27  ;;  %v5303_v39 = vadd.f32 -0.28449672, %v5271_v60  ;;  %v4856_v47 = vsel %vm4855_vm15, %v8571_v35, %v4852_v25  ;;  %v5434_v43 = vsub.f32 0.0, %v10776_v9 }
 0x56b   : > { %v10842_v34 = vsel %vm10822_vm14, %v4860_v13, %v4856_v47  ;;  %v10845_v11 = vadd.f32 1.0, %v4601_v32  ;;  %v4604_v5 = vmul.f32 0.3275911, %v10838_v36  ;;  %vm5621_vm0 = vcmp.ge.f32.partialorder %v10668_v6, 0.0 }
 0x56c   : > { %v5688_v45 = vsel %vm5624_vm11, %v5592_v27, %v5656_v12  ;;  %v5335_v18 = vmul.f32 %v5303_v39, %v10797_v53  ;;  %v5146_v37 = vmul.f32 1.0614054, %v10842_v34  ;;  %v4504_v35 = vmul.f32 0.5, %v10670_v51 }
 0x56d   : > { %v5720_v42 = vadd.f32 1.0, %v5688_v45  ;;  %8576 = vrcp.f32 %v10845_v11  ;;  %v5685_v61 = vsel %vm5621_vm0, %v5589_v16, %v5653_v49  ;;  %v10855_v22 = vadd.f32 1.0, %v4604_v5 }
 0x56e   : > { %v5367_v55 = vadd.f32 0.2548296, %v5335_v18  ;;  %v5178_v7 = vadd.f32 -1.4531521, %v5146_v37  ;;  %v5750_v63 = vmul.f32 %v5718_v24, %v10800_v40  ;;  %v5466_v6 = vmul.f32 %v5434_v43, %v10776_v9  ;;  %v4424_v40 = vpop.f32.mrf.mxu0 }
 0x56f   : > { %v5752_v62 = vmul.f32 %v5720_v42, %v4504_v35  ;;  %8578 = vrcp.f32 %v10855_v22  ;;  %v4324_v51 = vadd.f32 %v4323_v15, %v10399_v21  ;;  %v5717_v30 = vadd.f32 1.0, %v5685_v61  ;;  %v4473_v35 = vpop.f32.mrf.mxu1 }
 0x570   : > { %v5399_v57 = vmul.f32 %v5367_v55, %v10797_v53  ;;  %v5210_v46 = vmul.f32 %v5178_v7, %v10842_v34  ;;  %v4501_v52 = vmul.f32 0.5, %v10653_v14  ;;  %v4503_v19 = vmul.f32 0.5, %v10691_v48 }
 0x571   : > { %v5808_v59 = vadd.f32 %v5752_v62, %v5750_v63  ;;  %vm5623_vm1 = vcmp.ge.f32.partialorder %v10731_v58, 0.0  ;;  %v4842_v9 = vand.u32 2147483647, %v10845_v11  ;;  %v4844_v41 = vand.u32 2147483648, %v10845_v11 }
 0x572   : > { %v5559_v38 = vmul.f32 %v8575_v44, %v5399_v57  ;;  %v5242_v28 = vadd.f32 1.4214138, %v5210_v46  ;;  %v5511_v31 = vmul.f32 1.442695, %v5466_v6  ;;  %v5749_v0 = vmul.f32 %v5717_v30, %v4501_v52 }
 0x573   : > { %v8577_v16 = vpop.eup %8576  ;;  %v5809_v53 = vrot.slane %v5808_v59, 4  ;;  %v4425_v8 = vadd.f32 %v4424_v40, %v10396_v17  ;;  %v10871_v27 = vadd.f32 %v4372_v20, %v4324_v51  ;;  %vm4838_vm2 = vweird.f32 %v10845_v11 }
 0x574   : > { %v5591_v1 = vsub.f32 1.0, %v5559_v38  ;;  %v5274_v10 = vmul.f32 %v5242_v28, %v10842_v34  ;;  %v4834_v14 = vmul.f32 %v8577_v16, %v10845_v11  ;;  %vm10874_vm3 = vcmp.eq.f32.partialorder %v4842_v9, 8.507059e+37 }
 0x575   : > { %v5810_v48 = vadd.f32 %v5809_v53, %v5808_v59  ;;  %v8579_v60 = vpop.eup %8578  ;;  %v4845_v12 = vor.u32 1.1754944e-38, %v4844_v41  ;;  %vm4839_vm4 = vweird.f32 %v8577_v16  ;;  %v4887_v43 = vand.u32 2147483647, %v10855_v22 }
 0x576   : > { %v5655_v25 = vsub.f32 0.0, %v5591_v1  ;;  %v5306_v44 = vadd.f32 -0.28449672, %v5274_v10  ;;  %v4835_v49 = vsub.f32 1.0, %v4834_v14  ;;  %v4879_v39 = vmul.f32 %v8579_v60, %v10855_v22  ;;  %vm4840_vm6 = vmor %vm4838_vm2, %vm4839_vm4 }
 0x577   : > { %v5811_v13 = vrot.slane %v5810_v48, 2  ;;  %v10883_v5 = vmul.f32 0.70710677, %v10871_v27  ;;  %vm4884_vm5 = vweird.f32 %v8579_v60  ;;  %v4889_v61 = vand.u32 2147483648, %v10855_v22 }
 0x578   : > { %v5687_v47 = vsel %vm5623_vm1, %v5591_v1, %v5655_v25  ;;  %v4836_v24 = vmul.f32 %v8577_v16, %v4835_v49  ;;  %v4880_v37 = vsub.f32 1.0, %v4879_v39  ;;  %v5338_v42 = vmul.f32 %v5306_v44, %v10842_v34 }
 0x579   : > { %v5812_v45 = vadd.f32 %v5811_v13, %v5810_v48  ;;  %v5719_v18 = vadd.f32 1.0, %v5687_v47  ;;  %v10890_v63 = vand.u32 2147483647, %v10883_v5  ;;  %vm4883_vm7 = vweird.f32 %v10855_v22 }
 0x57a   : > { %v4837_v15 = vadd.f32 %v8577_v16, %v4836_v24  ;;  %v4881_v7 = vmul.f32 %v8579_v60, %v4880_v37  ;;  %v5436_v57 = vsub.f32 0.0, %v10838_v36  ;;  %v10894_v46 = vadd.f32 %v4473_v35, %v4425_v8  ;;  %vm4885_vm8 = vmor %vm4883_vm7, %vm4884_vm5  ;;  %v4326_v24 = vpop.f32.mrf.mxu2 }
 0x57b   : > { %v5813_v55 = vrot.slane %v5812_v45, 1  ;;  %v5751_v58 = vmul.f32 %v5719_v18, %v4503_v19  ;;  %vm4888_vm9 = vcmp.eq.f32.partialorder %v4887_v43, 8.507059e+37  ;;  %v4890_v52 = vor.u32 1.1754944e-38, %v4889_v61 }
 0x57c   : > { %v4841_v62 = vsel %vm4840_vm6, %v8577_v16, %v4837_v15  ;;  %v4882_v59 = vadd.f32 %v8579_v60, %v4881_v7  ;;  %v4603_v19 = vmul.f32 0.3275911, %v10890_v63  ;;  %v5370_v28 = vadd.f32 0.2548296, %v5338_v42 }
 0x57d   : > { %v5814_v6 = vadd.f32 %v5813_v55, %v5812_v45  ;;  %v5801_v51 = vadd.f32 %v5751_v58, %v5749_v0  ;;  %v10898_v30 = vsel %vm10874_vm3, %v4845_v12, %v4841_v62  ;;  %v10909_v9 = vmul.f32 0.70710677, %v10894_v46  ;;  %v4426_v62 = vpop.f32.mrf.mxu0 }
 0x57e   : > { %v5145_v11 = vmul.f32 1.0614054, %v10898_v30  ;;  %v4886_v40 = vsel %vm4885_vm8, %v8579_v60, %v4882_v59  ;;  %v10906_v53 = vadd.f32 1.0, %v4603_v19  ;;  %8580 = vpow2.f32 %v5511_v31 }
 0x57f   : > { %v5897_v22 = vmul.f32 %v10637_v50, %v5814_v6  ;;  %v5802_v38 = vrot.slane %v5801_v51, 4  ;;  %v10904_v16 = vsel %vm4888_vm9, %v4890_v52, %v4886_v40  ;;  %vm5994_vm10 = vcmask 1042434   ;;  %v4375_v6 = vpop.f32.mrf.mxu3 }
 0x580   : > { %v5177_v20 = vadd.f32 -1.4531521, %v5145_v11  ;;  %v5148_v10 = vmul.f32 1.0614054, %v10904_v16  ;;  %8582 = vrcp.f32 %v10906_v53  ;;  %v5468_v60 = vmul.f32 %v5436_v57, %v10838_v36 }
 0x581   : > { %v5913_v41 = vpack.c.bf16 %v5897_v22, %v5897_v22  ;;  %v5803_v1 = vadd.f32 %v5802_v38, %v5801_v51  ;;  %v5402_v25 = vmul.f32 %v5370_v28, %v10842_v34  ;;  %v10917_v49 = vand.u32 2147483647, %v10909_v9 }
 0x582   : > { %v5209_v14 = vmul.f32 %v5177_v20, %v10898_v30  ;;  %v5180_v8 = vadd.f32 -1.4531521, %v5148_v10  ;;  %v5433_v39 = vsub.f32 0.0, %v10827_v23  ;;  %v5515_v34 = vmul.f32 1.442695, %v5468_v60 }
 0x583   : > { %v5981_v0 = vunpack.c.l.b16 %v5913_v41  ;;  %v5804_v48 = vrot.slane %v5803_v1, 2  ;;  %v4606_v37 = vmul.f32 0.3275911, %v10917_v49  ;;  %v4327_v15 = vadd.f32 %v4326_v24, %v10399_v21 }
 0x584   : > { %v5241_v44 = vadd.f32 1.4214138, %v5209_v14  ;;  %v5212_v32 = vmul.f32 %v5180_v8, %v10904_v16  ;;  %v8581_v47 = vpop.eup %8580  ;;  %v5465_v55 = vmul.f32 %v5433_v39, %v10827_v23  ;;  %8584 = vpow2.f32 %v5515_v34  ;;  %v4475_v23 = vpop.f32.mrf.mxu1 }
 0x585   : > { %v10921_v31 = vsel %vm5994_vm10, %v5981_v0, %v10789_v54  ;;  %v5805_v13 = vadd.f32 %v5804_v48, %v5803_v1  ;;  %v5562_v18 = vmul.f32 %v8581_v47, %v5402_v25  ;;  %v4872_v59 = vand.u32 2147483647, %v10906_v53 }
 0x586   : > { %v5273_v12 = vmul.f32 %v5241_v44, %v10898_v30  ;;  %v5244_v43 = vadd.f32 1.4214138, %v5212_v32  ;;  %v8583_v45 = vpop.eup %8582  ;;  %v4874_v11 = vand.u32 2147483648, %v10906_v53  ;;  %v10934_v52 = vadd.f32 1.0, %v4606_v37 }
 0x587   : > { %v5806_v36 = vrot.slane %v5805_v13, 1  ;;  %v4864_v42 = vmul.f32 %v8583_v45, %v10906_v53  ;;  %v5594_v51 = vsub.f32 1.0, %v5562_v18  ;;  %vm4869_vm11 = vweird.f32 %v8583_v45 }
 0x588   : > { %v5276_v54 = vmul.f32 %v5244_v43, %v10904_v16  ;;  %v5305_v61 = vadd.f32 -0.28449672, %v5273_v12  ;;  %v5509_v40 = vmul.f32 1.442695, %v5465_v55  ;;  %v4427_v20 = vadd.f32 %v4426_v62, %v10396_v17 }
 0x589   : > { %v5807_v35 = vadd.f32 %v5806_v36, %v5805_v13  ;;  %v4865_v57 = vsub.f32 1.0, %v4864_v42  ;;  %v10939_v41 = vadd.f32 %v4375_v6, %v4327_v15  ;;  %vm4868_vm12 = vweird.f32 %v10906_v53 }
 0x58a   : > { %v5308_v7 = vadd.f32 -0.28449672, %v5276_v54  ;;  %v5337_v28 = vmul.f32 %v5305_v61, %v10898_v30  ;;  %v5658_v0 = vsub.f32 0.0, %v5594_v51  ;;  %vm4870_vm13 = vmor %vm4868_vm12, %vm4869_vm11  ;;  %v4875_v48 = vor.u32 1.1754944e-38, %v4874_v11  ;;  %v8585_v60 = vpop.eup %8584 }
 0x58b   : > { %v5896_v58 = vmul.f32 %v10637_v50, %v5807_v35  ;;  %v4866_v38 = vmul.f32 %v8583_v45, %v4865_v57  ;;  %8586 = vrcp.f32 %v10934_v52  ;;  %v10943_v8 = vadd.f32 %v4475_v23, %v4427_v20  ;;  %v4377_v20 = vpop.f32.mrf.mxu3 }
 0x58c   : > { %v5340_v22 = vmul.f32 %v5308_v7, %v10904_v16  ;;  %vm4873_vm14 = vcmp.eq.f32.partialorder %v4872_v59, 8.507059e+37  ;;  %v5369_v32 = vadd.f32 0.2548296, %v5337_v28  ;;  %v5435_v53 = vsub.f32 0.0, %v10890_v63 }
 0x58d   : > { %v5912_v19 = vpack.c.bf16 %v5896_v58, %v5896_v58  ;;  %v4867_v14 = vadd.f32 %v8583_v45, %v4866_v38  ;;  %v10952_v39 = vmul.f32 0.70710677, %v10939_v41  ;;  %8588 = vpow2.f32 %v5509_v40 }
 0x58e   : > { %v5372_v10 = vadd.f32 0.2548296, %v5340_v22  ;;  %vm5626_vm15 = vcmp.ge.f32.partialorder %v10765_v2, 0.0  ;;  %v5401_v18 = vmul.f32 %v5369_v32, %v10898_v30  ;;  %v5467_v37 = vmul.f32 %v5435_v53, %v10890_v63  ;;  %v4328_v22 = vpop.f32.mrf.mxu2 }
 0x58f   : > { %v5980_v1 = vunpack.c.l.b16 %v5912_v19  ;;  %v4871_v13 = vsel %vm4870_vm13, %v8583_v45, %v4867_v14  ;;  %v10956_v36 = vand.u32 2147483647, %v10952_v39  ;;  %v4506_v2 = vmul.f32 0.5, %v10693_v56 }
 0x590   : > { %v5404_v44 = vmul.f32 %v5372_v10, %v10904_v16  ;;  %v4876_v12 = vsel %vm4873_vm14, %v4875_v48, %v4871_v13  ;;  %v5690_v16 = vsel %vm5626_vm15, %v5594_v51, %v5658_v0  ;;  %vm5628_vm0 = vcmp.ge.f32.partialorder %v10831_v33, 0.0 }
 0x591   : > { %v10947_v25 = vsel %vm5994_vm10, %v5980_v1, %v10834_v4  ;;  %v5147_v24 = vmul.f32 1.0614054, %v4876_v12  ;;  %v10959_v4 = vmul.f32 0.70710677, %v10943_v8  ;;  %v10961_v45 = vpop.eup %8586  ;;  %v4605_v35 = vmul.f32 0.3275911, %v10956_v36 }
 0x592   : > { %v5564_v47 = vmul.f32 %v8585_v60, %v5404_v44  ;;  %v5722_v61 = vadd.f32 1.0, %v5690_v16  ;;  %v4508_v30 = vmul.f32 0.5, %v10815_v26  ;;  %v4909_v57 = vmul.f32 %v10961_v45, %v10934_v52 }
 0x593   : > { %v5179_v34 = vadd.f32 -1.4531521, %v5147_v24  ;;  %v10967_v54 = vand.u32 2147483647, %v10959_v4  ;;  %v10971_v55 = vadd.f32 1.0, %v4605_v35  ;;  %v8589_v7 = vpop.eup %8588  ;;  %v4329_v10 = vadd.f32 %v4328_v22, %v10399_v21 }
 0x594   : > { %v5596_v43 = vsub.f32 1.0, %v5564_v47  ;;  %v5561_v6 = vmul.f32 %v8589_v7, %v5401_v18  ;;  %v5513_v56 = vmul.f32 1.442695, %v5467_v37  ;;  %v5754_v11 = vmul.f32 %v5722_v61, %v4506_v2  ;;  %v4478_v7 = vpop.f32.mrf.mxu1 }
 0x595   : > { %v5211_v15 = vmul.f32 %v5179_v34, %v4876_v12  ;;  %v4608_v58 = vmul.f32 0.3275911, %v10967_v54  ;;  %8590 = vrcp.f32 %v10971_v55  ;;  %v4910_v23 = vsub.f32 1.0, %v4909_v57 }
 0x596   : > { %v5660_v42 = vsub.f32 0.0, %v5596_v43  ;;  %v5593_v28 = vsub.f32 1.0, %v5561_v6  ;;  %8592 = vpow2.f32 %v5513_v56  ;;  %v10985_v13 = vadd.f32 %v4377_v20, %v4329_v10 }
 0x597   : > { %v5243_v62 = vadd.f32 1.4214138, %v5211_v15  ;;  %v10978_v19 = vadd.f32 1.0, %v4608_v58  ;;  %v4911_v48 = vmul.f32 %v10961_v45, %v4910_v23  ;;  %vm5625_vm1 = vcmp.ge.f32.partialorder %v10819_v29, 0.0 }
 0x598   : > { %v5692_v63 = vsel %vm5628_vm0, %v5596_v43, %v5660_v42  ;;  %v5657_v60 = vsub.f32 0.0, %v5593_v28  ;;  %v10991_v16 = vmul.f32 0.70710677, %v10985_v13  ;;  %vm4914_vm2 = vweird.f32 %v10961_v45 }
 0x599   : > { %v5724_v51 = vadd.f32 1.0, %v5692_v63  ;;  %v5275_v59 = vmul.f32 %v5243_v62, %v4876_v12  ;;  %8594 = vrcp.f32 %v10978_v19  ;;  %v4912_v18 = vadd.f32 %v10961_v45, %v4911_v48 }
 0x59a   : > { %v4919_v37 = vand.u32 2147483648, %v10934_v52  ;;  %v5689_v35 = vsel %vm5625_vm1, %v5593_v28, %v5657_v60  ;;  %v11001_v29 = vand.u32 2147483647, %v10991_v16  ;;  %vm4913_vm3 = vweird.f32 %v10934_v52 }
 0x59b   : > { %v5756_v33 = vmul.f32 %v5724_v51, %v4508_v30  ;;  %v5307_v38 = vadd.f32 -0.28449672, %v5275_v59  ;;  %v10981_v1 = vpop.eup %8590  ;;  %v4917_v61 = vand.u32 2147483647, %v10934_v52  ;;  %v4505_v30 = vmul.f32 0.5, %v10806_v3  ;;  %vm11006_vm4 = vmor %vm4913_vm3, %vm4914_vm2 }
 0x59c   : > { %v4894_v53 = vmul.f32 %v10981_v1, %v10971_v55  ;;  %v8593_v47 = vpop.eup %8592  ;;  %v5721_v51 = vadd.f32 1.0, %v5689_v35  ;;  %v4916_v59 = vsel %vm11006_vm4, %v10961_v45, %v4912_v18  ;;  %v4607_v52 = vmul.f32 0.3275911, %v11001_v29 }
 0x59d   : > { %v5822_v26 = vadd.f32 %v5756_v33, %v5754_v11  ;;  %v5339_v40 = vmul.f32 %v5307_v38, %v4876_v12  ;;  %vm5627_vm5 = vcmp.ge.f32.partialorder %v10883_v5, 0.0  ;;  %v4920_v3 = vor.u32 1.1754944e-38, %v4919_v37  ;;  %v4331_v37 = vpop.f32.mrf.mxu2 }
 0x59e   : > { %v4895_v58 = vsub.f32 1.0, %v4894_v53  ;;  %vm4918_vm6 = vcmp.eq.f32.partialorder %v4917_v61, 8.507059e+37  ;;  %v5753_v20 = vmul.f32 %v5721_v51, %v4505_v30  ;;  %vm5996_vm7 = vcmask 1043459  }
 0x59f   : > { %v5823_v14 = vrot.slane %v5822_v26, 4  ;;  %v5371_v0 = vadd.f32 0.2548296, %v5339_v40  ;;  %v10993_v43 = vpop.eup %8594  ;;  %v11022_v45 = vsel %vm4918_vm6, %v4920_v3, %v4916_v59  ;;  %vm4898_vm8 = vweird.f32 %v10971_v55  ;;  %v4480_v59 = vpop.f32.mrf.mxu1 }
 0x5a0   : > { %v4939_v42 = vmul.f32 %v10993_v43, %v10978_v19  ;;  %v4896_v38 = vmul.f32 %v10981_v1, %v4895_v58  ;;  %v11025_v5 = vadd.f32 1.0, %v4607_v52  ;;  %vm4899_vm9 = vweird.f32 %v10981_v1 }
 0x5a1   : > { %v5824_v44 = vadd.f32 %v5823_v14, %v5822_v26  ;;  %v5403_v32 = vmul.f32 %v5371_v0, %v4876_v12  ;;  %v4429_v12 = vpop.f32.mrf.mxu0  ;;  %v4507_v26 = vmul.f32 0.5, %v10871_v27  ;;  %v5150_v48 = vmul.f32 1.0614054, %v11022_v45  ;;  %vm11037_vm11 = vmor %vm4898_vm8, %vm4899_vm9 }
 0x5a2   : > { %v4430_v57 = vadd.f32 %v4429_v12, %v10396_v17  ;;  %v4940_v6 = vsub.f32 1.0, %v4939_v42  ;;  %v4897_v27 = vadd.f32 %v10981_v1, %v4896_v38  ;;  %vm4944_vm10 = vweird.f32 %v10993_v43 }
 0x5a3   : > { %v5825_v24 = vrot.slane %v5824_v44, 2  ;;  %v5563_v34 = vmul.f32 %v8593_v47, %v5403_v32  ;;  %v4904_v53 = vand.u32 2147483648, %v10971_v55  ;;  %v4949_v47 = vand.u32 2147483648, %v10978_v19 }
 0x5a4   : > { %v11016_v33 = vadd.f32 %v4478_v7, %v4430_v57  ;;  %v4941_v23 = vmul.f32 %v10993_v43, %v4940_v6  ;;  %vm4943_vm12 = vweird.f32 %v10978_v19  ;;  %v4947_v18 = vand.u32 2147483647, %v10978_v19 }
 0x5a5   : > { %v5826_v2 = vadd.f32 %v5825_v24, %v5824_v44  ;;  %v5595_v15 = vsub.f32 1.0, %v5563_v34  ;;  %v4902_v34 = vand.u32 2147483647, %v10971_v55  ;;  %8596 = vrcp.f32 %v11025_v5  ;;  %vm4945_vm13 = vmor %vm4943_vm12, %vm4944_vm10 }
 0x5a6   : > { %v11029_v0 = vmul.f32 0.70710677, %v11016_v33  ;;  %v4942_v60 = vadd.f32 %v10993_v43, %v4941_v23  ;;  %v4901_v55 = vsel %vm11037_vm11, %v10981_v1, %v4897_v27  ;;  %v5182_v19 = vadd.f32 -1.4531521, %v5150_v48  ;;  %v4380_v1 = vpop.f32.mrf.mxu3 }
 0x5a7   : > { %v5827_v63 = vrot.slane %v5826_v2, 1  ;;  %v5659_v56 = vsub.f32 0.0, %v5595_v15  ;;  %v4905_v61 = vor.u32 1.1754944e-38, %v4904_v53  ;;  %v4950_v58 = vor.u32 1.1754944e-38, %v4949_v47 }
 0x5a8   : > { %v4946_v42 = vsel %vm4945_vm13, %v10993_v43, %v4942_v60  ;;  %vm4903_vm14 = vcmp.eq.f32.partialorder %v4902_v34, 8.507059e+37  ;;  %vm4948_vm15 = vcmp.eq.f32.partialorder %v4947_v18, 8.507059e+37  ;;  %v4332_v43 = vadd.f32 %v4331_v37, %v10399_v21 }
 0x5a9   : > { %v5828_v11 = vadd.f32 %v5827_v63, %v5826_v2  ;;  %v5691_v22 = vsel %vm5627_vm5, %v5595_v15, %v5659_v56  ;;  %v11050_v2 = vand.u32 2147483647, %v11029_v0  ;;  %v11057_v30 = vsel %vm4903_vm14, %v4905_v61, %v4901_v55  ;;  %v4431_v62 = vpop.f32.mrf.mxu0 }
 0x5aa   : > { %v5723_v40 = vadd.f32 1.0, %v5691_v22  ;;  %v11059_v63 = vsel %vm4948_vm15, %v4950_v58, %v4946_v42  ;;  %v5214_v56 = vmul.f32 %v5182_v19, %v11022_v45  ;;  %v5149_v52 = vmul.f32 1.0614054, %v11057_v30 }
 0x5ab   : > { %v5899_v28 = vmul.f32 %v10637_v50, %v5828_v11  ;;  %v11061_v57 = vpop.eup %8596  ;;  %v5152_v11 = vmul.f32 1.0614054, %v11059_v63  ;;  %v4432_v3 = vadd.f32 %v4431_v62, %v10396_v17  ;;  %v11073_v23 = vadd.f32 %v4380_v1, %v4332_v43 }
 0x5ac   : > { %v5755_v14 = vmul.f32 %v5723_v40, %v4507_v26  ;;  %v4924_v38 = vmul.f32 %v11061_v57, %v11025_v5  ;;  %v4333_v26 = vpop.f32.mrf.mxu2  ;;  %v5438_v24 = vsub.f32 0.0, %v10917_v49  ;;  %vm4929_vm0 = vweird.f32 %v11061_v57 }
 0x5ad   : > { %v5915_v10 = vpack.c.bf16 %v5899_v28, %v5899_v28  ;;  %v11075_v28 = vadd.f32 %v4480_v59, %v4432_v3  ;;  %v5184_v48 = vadd.f32 -1.4531521, %v5152_v11  ;;  %v11079_v60 = vmul.f32 0.70710677, %v11073_v23 }
 0x5ae   : > { %v5815_v32 = vadd.f32 %v5755_v14, %v5753_v20  ;;  %v5246_v20 = vadd.f32 1.4214138, %v5214_v56  ;;  %v4925_v27 = vsub.f32 1.0, %v4924_v38  ;;  %v4934_v56 = vand.u32 2147483648, %v11025_v5 }
 0x5af   : > { %v5983_v44 = vunpack.c.l.b16 %v5915_v10  ;;  %v5181_v10 = vadd.f32 -1.4531521, %v5149_v52  ;;  %v11089_v34 = vand.u32 2147483647, %v11079_v60  ;;  %vm4928_vm1 = vweird.f32 %v11025_v5 }
 0x5b0   : > { %v5816_v35 = vrot.slane %v5815_v32, 4  ;;  %v5278_v47 = vmul.f32 %v5246_v20, %v11022_v45  ;;  %v4926_v55 = vmul.f32 %v11061_v57, %v4925_v27  ;;  %v5437_v3 = vsub.f32 0.0, %v10956_v36  ;;  %vm11118_vm2 = vmor %vm4928_vm1, %vm4929_vm0 }
 0x5b1   : > { %v11047_v12 = vsel %vm5996_vm7, %v5983_v44, %v10921_v31  ;;  %v4610_v31 = vmul.f32 0.3275911, %v11050_v2  ;;  %v11082_v44 = vmul.f32 0.70710677, %v11075_v28  ;;  %v5213_v37 = vmul.f32 %v5181_v10, %v11057_v30 }
 0x5b2   : > { %12006 = vst [vmem:[#allocation22_spill] sm:$0xff] %v11047_v12  ;;  %v5817_v15 = vadd.f32 %v5816_v35, %v5815_v32  ;;  %v5216_v35 = vmul.f32 %v5184_v48, %v11059_v63  ;;  %v5310_v58 = vadd.f32 -0.28449672, %v5278_v47  ;;  %v5440_v20 = vsub.f32 0.0, %v10967_v54  ;;  %v8403_v47 = vld [vmem:[#allocation10 + $0x78] sm:$0xff] }
 0x5b3   : > { %v11063_v6 = vadd.f32 1.0, %v4610_v31  ;;  %v11098_v19 = vand.u32 2147483647, %v11082_v44  ;;  %v5470_v31 = vmul.f32 %v5438_v24, %v10917_v49  ;;  %v5245_v1 = vadd.f32 1.4214138, %v5213_v37  ;;  %6126 = vmatpush.bf16.msrb.mxu3 %v8403_v47 }
 0x5b4   : > { %v5818_v7 = vrot.slane %v5817_v15, 2  ;;  %v11107_v62 = vpop.f32.mrf.mxu2  ;;  %v5248_v43 = vadd.f32 1.4214138, %v5216_v35  ;;  %v5342_v52 = vmul.f32 %v5310_v58, %v11022_v45  ;;  %v4932_v49 = vand.u32 2147483647, %v11025_v5  ;;  %v4382_v35 = vpop.f32.mrf.mxu3 }
 0x5b5   : > { %8598 = vrcp.f32 %v11063_v6  ;;  %v5519_v11 = vmul.f32 1.442695, %v5470_v31  ;;  %v5277_v38 = vmul.f32 %v5245_v1, %v11057_v30  ;;  %vm4973_vm5 = vweird.f32 %v11063_v6 }
 0x5b6   : > { %v5819_v51 = vadd.f32 %v5818_v7, %v5817_v15  ;;  %v4609_v15 = vmul.f32 0.3275911, %v11089_v34  ;;  %v5374_v27 = vadd.f32 0.2548296, %v5342_v52  ;;  %vm4933_vm3 = vcmp.eq.f32.partialorder %v4932_v49, 8.507059e+37 }
 0x5b7   : > { %vm5630_vm9 = vcmp.ge.f32.partialorder %v10909_v9, 0.0  ;;  %vm5629_vm13 = vcmp.ge.f32.partialorder %v10952_v39, 0.0  ;;  %vm5632_vm14 = vcmp.ge.f32.partialorder %v10959_v4, 0.0  ;;  %v11293_v39 = vmul.f32 0.5, %v11073_v23 }
 0x5b8   : > { %v5820_v22 = vrot.slane %v5819_v51, 1  ;;  %v11105_v7 = vadd.f32 1.0, %v4609_v15  ;;  %v5472_v15 = vmul.f32 %v5440_v20, %v10967_v54 }
 0x5ba   : > { %v5821_v40 = vadd.f32 %v5820_v22, %v5819_v51  ;;  %v4927_v51 = vadd.f32 %v11061_v57, %v4926_v55  ;;  %8600 = vrcp.f32 %v11105_v7  ;;  %v4334_v55 = vadd.f32 %v4333_v26, %v10399_v21 }
 0x5bb   : > { %v11084_v32 = vpop.eup %8598  ;;  %8602 = vpow2.f32 %v5519_v11  ;;  %vm4958_vm10 = vweird.f32 %v11105_v7 }
 0x5bc   : > { %v5898_v14 = vmul.f32 %v10637_v50, %v5821_v40  ;;  %v4969_v42 = vmul.f32 %v11084_v32, %v11063_v6  ;;  %v5280_v40 = vmul.f32 %v5248_v43, %v11059_v63  ;;  %v4931_v10 = vsel %vm11118_vm2, %v11061_v57, %v4927_v51  ;;  %v4338_v1 = vpop.f32.mrf.mxu2 }
 0x5bd   : > { %v5309_v57 = vadd.f32 -0.28449672, %v5277_v38  ;;  %vm4974_vm4 = vweird.f32 %v11084_v32  ;;  %v4979_v43 = vand.u32 2147483648, %v11063_v6  ;;  %v11146_v51 = vadd.f32 %v4382_v35, %v4334_v55 }
 0x5be   : > { %v5914_v53 = vpack.c.bf16 %v5898_v14, %v5898_v14  ;;  %v4970_v59 = vsub.f32 1.0, %v4969_v42  ;;  %v4935_v14 = vor.u32 1.1754944e-38, %v4934_v56  ;;  %v5312_v42 = vadd.f32 -0.28449672, %v5280_v40  ;;  %vm11152_vm6 = vmor %vm4973_vm5, %vm4974_vm4 }
 0x5bf   : > { %v4977_v56 = vand.u32 2147483647, %v11063_v6  ;;  %v11157_v49 = vmul.f32 0.70710677, %v11146_v51  ;;  %v4980_v20 = vor.u32 1.1754944e-38, %v4979_v43 }
 0x5c0   : > { %v5982_v18 = vunpack.c.l.b16 %v5914_v53  ;;  %v4971_v5 = vmul.f32 %v11084_v32, %v4970_v59  ;;  %v8395_v53 = vld [vmem:[#allocation10 + $0x38] sm:$0xff]  ;;  %v11131_v24 = vpop.eup %8600  ;;  %v11134_v37 = vsel %vm4933_vm3, %v4935_v14, %v4931_v10  ;;  %v5341_v59 = vmul.f32 %v5309_v57, %v11057_v30  ;;  %v4483_v14 = vpop.f32.mrf.mxu1 }
 0x5c1   : > { %6113 = vmatpush.bf16.msrb.mxu2 %v8395_v53  ;;  %v4954_v31 = vmul.f32 %v11131_v24, %v11105_v7  ;;  %v5151_v26 = vmul.f32 1.0614054, %v11134_v37  ;;  %v8603_v11 = vpop.eup %8602  ;;  %v11163_v10 = vand.u32 2147483647, %v11157_v49  ;;  %vm4959_vm8 = vweird.f32 %v11131_v24 }
 0x5c2   : > { %v11102_v61 = vsel %vm5996_vm7, %v5982_v18, %v10947_v25  ;;  %v4612_v25 = vmul.f32 0.3275911, %v11098_v19  ;;  %v5469_v18 = vmul.f32 %v5437_v3, %v10956_v36  ;;  %v4972_v58 = vadd.f32 %v11084_v32, %v4971_v5  ;;  %vm11212_vm11 = vmor %vm4958_vm10, %vm4959_vm8 }
 0x5c3   : > { %12007 = vst [vmem:[#allocation37_spill] sm:$0xff] %v11102_v61  ;;  %v5406_v36 = vmul.f32 %v5374_v27, %v11022_v45  ;;  %v4434_v45 = vpop.f32.mrf.mxu0  ;;  %v5523_v3 = vmul.f32 1.442695, %v5472_v15  ;;  %v4955_v38 = vsub.f32 1.0, %v4954_v31  ;;  %v5183_v40 = vadd.f32 -1.4531521, %v5151_v26 }
 0x5c4   : > { %v11129_v48 = vadd.f32 1.0, %v4612_v25  ;;  %v5517_v54 = vmul.f32 1.442695, %v5469_v18  ;;  %v5344_v25 = vmul.f32 %v5312_v42, %v11059_v63  ;;  %v4976_v22 = vsel %vm11152_vm6, %v11084_v32, %v4972_v58 }
 0x5c5   : > { %v5566_v6 = vmul.f32 %v8603_v11, %v5406_v36  ;;  %vm4978_vm7 = vcmp.eq.f32.partialorder %v4977_v56, 8.507059e+37  ;;  %v4435_v27 = vadd.f32 %v4434_v45, %v10396_v17  ;;  %v5373_v53 = vadd.f32 0.2548296, %v5341_v59  ;;  %v4341_v56 = vpop.f32.mrf.mxu2 }
 0x5c6   : > { %8604 = vrcp.f32 %v11129_v48  ;;  %v5376_v47 = vadd.f32 0.2548296, %v5344_v25  ;;  %v11168_v18 = vsel %vm4978_vm7, %v4980_v20, %v4976_v22  ;;  %v4611_v32 = vmul.f32 0.3275911, %v11163_v10 }
 0x5c7   : > { %8606 = vpow2.f32 %v5517_v54  ;;  %v4956_v35 = vmul.f32 %v11131_v24, %v4955_v38  ;;  %v11172_v55 = vadd.f32 %v4483_v14, %v4435_v27  ;;  %v5598_v57 = vsub.f32 1.0, %v5566_v6 }
 0x5c8   : > { %8608 = vpow2.f32 %v5523_v3  ;;  %v5215_v42 = vmul.f32 %v5183_v40, %v11134_v37  ;;  %v11177_v58 = vadd.f32 1.0, %v4611_v32  ;;  %v11181_v31 = vadd.f32 %v11107_v62, %v10399_v21 }
 0x5c9   : > { %v5154_v36 = vmul.f32 1.0614054, %v11168_v18  ;;  %v11185_v26 = vmul.f32 0.5, %v10894_v46  ;;  %v5405_v43 = vmul.f32 %v5373_v53, %v11057_v30  ;;  %v5408_v54 = vmul.f32 %v5376_v47, %v11059_v63 }
 0x5ca   : > { %v5439_v59 = vsub.f32 0.0, %v11001_v29  ;;  %v4957_v52 = vadd.f32 %v11131_v24, %v4956_v35  ;;  %8610 = vrcp.f32 %v11177_v58  ;;  %v11194_v62 = vmul.f32 0.70710677, %v11172_v55 }
 0x5cb   : > { %v5662_v45 = vsub.f32 0.0, %v5598_v57  ;;  %v5247_v46 = vadd.f32 1.4214138, %v5215_v42  ;;  %v4964_v11 = vand.u32 2147483648, %v11105_v7  ;;  %v5186_v63 = vadd.f32 -1.4531521, %v5154_v36 }
 0x5cc   : > { %v11165_v5 = vpop.eup %8604  ;;  %v4962_v22 = vand.u32 2147483647, %v11105_v7  ;;  %v11201_v38 = vadd.f32 %v4338_v1, %v10399_v21  ;;  %v11204_v6 = vmul.f32 0.5, %v10939_v41  ;;  %v11207_v40 = vadd.f32 %v4341_v56, %v10399_v21 }
 0x5cd   : > { %v4999_v15 = vmul.f32 %v11165_v5, %v11129_v48  ;;  %v8607_v25 = vpop.eup %8606  ;;  %v5471_v20 = vmul.f32 %v5439_v59, %v11001_v29  ;;  %v4961_v7 = vsel %vm11212_vm11, %v11131_v24, %v4957_v52  ;;  %v11220_v41 = vand.u32 2147483647, %v11194_v62 }
 0x5ce   : > { %v8609_v3 = vpop.eup %8608  ;;  %v5565_v14 = vmul.f32 %v8607_v25, %v5405_v43  ;;  %v5694_v1 = vsel %vm5630_vm9, %v5598_v57, %v5662_v45  ;;  %v5279_v53 = vmul.f32 %v5247_v46, %v11134_v37  ;;  %v4965_v47 = vor.u32 1.1754944e-38, %v4964_v11  ;;  %v4385_v25 = vpop.f32.mrf.mxu3 }
 0x5cf   : > { %v5000_v30 = vsub.f32 1.0, %v4999_v15  ;;  %v5568_v27 = vmul.f32 %v8609_v3, %v5408_v54  ;;  %v11227_v35 = vmul.f32 0.5, %v10943_v8  ;;  %v5218_v42 = vmul.f32 %v5186_v63, %v11168_v18  ;;  %v4343_v45 = vpop.f32.mrf.mxu2 }
 0x5d0   : > { %v11224_v32 = vpop.eup %8610  ;;  %vm4963_vm12 = vcmp.eq.f32.partialorder %v4962_v22, 8.507059e+37  ;;  %v4614_v15 = vmul.f32 0.3275911, %v11220_v41  ;;  %v11233_v24 = vmul.f32 0.5, %v10985_v13  ;;  %v5521_v57 = vmul.f32 1.442695, %v5471_v20  ;;  %v4436_v20 = vpop.f32.mrf.mxu0 }
 0x5d1   : > { %v5001_v29 = vmul.f32 %v11165_v5, %v5000_v30  ;;  %v5442_v36 = vsub.f32 0.0, %v11050_v2  ;;  %v11236_v43 = vsel %vm4963_vm12, %v4965_v47, %v4961_v7  ;;  %v5726_v54 = vadd.f32 1.0, %v5694_v1  ;;  %v4485_v47 = vpop.f32.mrf.mxu1 }
 0x5d2   : > { %v5597_v56 = vsub.f32 1.0, %v5565_v14  ;;  %v5600_v59 = vsub.f32 1.0, %v5568_v27  ;;  %v11239_v8 = vadd.f32 1.0, %v4614_v15  ;;  %v5311_v52 = vadd.f32 -0.28449672, %v5279_v53 }
 0x5d3   : > { %v5002_v46 = vadd.f32 %v11165_v5, %v5001_v29  ;;  %vm5004_vm15 = vweird.f32 %v11165_v5  ;;  %v4984_v13 = vmul.f32 %v11224_v32, %v11177_v58  ;;  %v5250_v11 = vadd.f32 1.4214138, %v5218_v42 }
 0x5d4   : > { %v5153_v30 = vmul.f32 1.0614054, %v11236_v43  ;;  %v5009_v3 = vand.u32 2147483648, %v11129_v48  ;;  %8612 = vrcp.f32 %v11239_v8  ;;  %v5474_v63 = vmul.f32 %v5442_v36, %v11050_v2 }
 0x5d5   : > { %vm5003_vm0 = vweird.f32 %v11129_v48  ;;  %v5007_v22 = vand.u32 2147483647, %v11129_v48  ;;  %v11252_v9 = vadd.f32 %v4385_v25, %v11181_v31  ;;  %v5661_v14 = vsub.f32 0.0, %v5597_v56 }
 0x5d6   : > { %8614 = vpow2.f32 %v5521_v57  ;;  %v11255_v27 = vmul.f32 0.5, %v11016_v33  ;;  %v11258_v7 = vadd.f32 %v4343_v45, %v10399_v21  ;;  %vm11262_vm1 = vmor %vm5003_vm0, %vm5004_vm15  ;;  %v5664_v1 = vsub.f32 0.0, %v5600_v59 }
 0x5d7   : > { %v5343_v48 = vmul.f32 %v5311_v52, %v11134_v37  ;;  %v5006_v31 = vsel %vm11262_vm1, %v11165_v5, %v5002_v46  ;;  %v4985_v53 = vsub.f32 1.0, %v4984_v13  ;;  %v5282_v33 = vmul.f32 %v5250_v11, %v11168_v18 }
 0x5d8   : > { %v5185_v29 = vadd.f32 -1.4531521, %v5153_v30  ;;  %v5010_v21 = vor.u32 1.1754944e-38, %v5009_v3  ;;  %v4437_v42 = vadd.f32 %v4436_v20, %v10396_v17  ;;  %v11273_v15 = vmul.f32 %v5726_v54, %v11185_v26 }
 0x5d9   : > { %v5527_v57 = vmul.f32 1.442695, %v5474_v63  ;;  %vm5008_vm2 = vcmp.eq.f32.partialorder %v5007_v22, 8.507059e+37  ;;  %v11276_v36 = vmul.f32 0.70710677, %v11252_v9  ;;  %v5693_v5 = vsel %vm5629_vm13, %v5597_v56, %v5661_v14 }
 0x5da   : > { %v11278_v25 = vpop.eup %8612  ;;  %v5441_v52 = vsub.f32 0.0, %v11089_v34  ;;  %v11283_v45 = vsel %vm5008_vm2, %v5010_v21, %v5006_v31  ;;  %v11285_v46 = vadd.f32 %v4485_v47, %v4437_v42  ;;  %v5696_v26 = vsel %vm5632_vm14, %v5600_v59, %v5664_v1 }
 0x5db   : > { %v5375_v54 = vadd.f32 0.2548296, %v5343_v48  ;;  %v4986_v13 = vmul.f32 %v11224_v32, %v4985_v53  ;;  %v5029_v11 = vmul.f32 %v11278_v25, %v11239_v8  ;;  %v5314_v3 = vadd.f32 -0.28449672, %v5282_v33 }
 0x5dc   : > { %v8615_v30 = vpop.eup %8614  ;;  %v5217_v56 = vmul.f32 %v5185_v29, %v11236_v43  ;;  %v11297_v63 = vand.u32 2147483647, %v11276_v36  ;;  %8616 = vpow2.f32 %v5527_v57  ;;  %v5156_v4 = vmul.f32 1.0614054, %v11283_v45 }
 0x5dd   : > { %v5030_v59 = vsub.f32 1.0, %v5029_v11  ;;  %v11301_v22 = vmul.f32 0.70710677, %v11285_v46  ;;  %v5725_v20 = vadd.f32 1.0, %v5693_v5  ;;  %v5728_v14 = vadd.f32 1.0, %v5696_v26 }
 0x5de   : > { %v5473_v2 = vmul.f32 %v5441_v52, %v11089_v34  ;;  %v4613_v1 = vmul.f32 0.3275911, %v11297_v63  ;;  %v5407_v23 = vmul.f32 %v5375_v54, %v11134_v37  ;;  %v4987_v48 = vadd.f32 %v11224_v32, %v4986_v13 }
 0x5df   : > { %vm4989_vm3 = vweird.f32 %v11224_v32  ;;  %v11309_v31 = vand.u32 2147483647, %v11301_v22  ;;  %v5346_v53 = vmul.f32 %v5314_v3, %v11168_v18  ;;  %v5249_v47 = vadd.f32 1.4214138, %v5217_v56 }
 0x5e0   : > { %v4994_v33 = vand.u32 2147483648, %v11177_v58  ;;  %v11313_v29 = vadd.f32 1.0, %v4613_v1  ;;  %v5188_v21 = vadd.f32 -1.4531521, %v5156_v4  ;;  %vm4988_vm4 = vweird.f32 %v11177_v58 }
 0x5e1   : > { %v4992_v34 = vand.u32 2147483647, %v11177_v58  ;;  %v5031_v37 = vmul.f32 %v11278_v25, %v5030_v59  ;;  %v11319_v42 = vmul.f32 0.5, %v11075_v28  ;;  %v5444_v57 = vsub.f32 0.0, %v11098_v19  ;;  %vm11322_vm5 = vmor %vm4988_vm4, %vm4989_vm3 }
 0x5e2   : > { %8618 = vrcp.f32 %v11313_v29  ;;  %v4616_v52 = vmul.f32 0.3275911, %v11309_v31  ;;  %v8617_v26 = vpop.eup %8616  ;;  %v11329_v54 = vmul.f32 %v5725_v20, %v11204_v6  ;;  %v11331_v58 = vmul.f32 %v8615_v30, %v5407_v23  ;;  %v4387_v6 = vpop.f32.mrf.mxu3 }
 0x5e3   : > { %v5525_v13 = vmul.f32 1.442695, %v5473_v2  ;;  %v4991_v28 = vsel %vm11322_vm5, %v11224_v32, %v4987_v48  ;;  %v5760_v11 = vmul.f32 %v5728_v14, %v11227_v35  ;;  %v5378_v3 = vadd.f32 0.2548296, %v5346_v53  ;;  %v4439_v23 = vpop.f32.mrf.mxu0 }
 0x5e4   : > { %v5281_v56 = vmul.f32 %v5249_v47, %v11236_v43  ;;  %v4995_v4 = vor.u32 1.1754944e-38, %v4994_v33  ;;  %v5220_v59 = vmul.f32 %v5188_v21, %v11283_v45  ;;  %vm4993_vm6 = vcmp.eq.f32.partialorder %v4992_v34, 8.507059e+37 }
 0x5e5   : > { %v5032_v1 = vadd.f32 %v11278_v25, %v5031_v37  ;;  %vm5034_vm7 = vweird.f32 %v11278_v25  ;;  %v5476_v30 = vmul.f32 %v5444_v57, %v11098_v19  ;;  %v5039_v32 = vand.u32 2147483648, %v11239_v8  ;;  %v8402_v37 = vld [vmem:[#allocation10 + $0x70] sm:$0xff] }
 0x5e6   : > { %v11342_v20 = vsel %vm4993_vm6, %v4995_v4, %v4991_v28  ;;  %v11345_v2 = vadd.f32 1.0, %v4616_v52  ;;  %v5599_v35 = vsub.f32 1.0, %v11331_v58  ;;  %vm5631_vm8 = vcmp.ge.f32.partialorder %v10991_v16, 0.0  ;;  %6127 = vmatpush.bf16.msrb.mxu3 %v8402_v37 }
 0x5e7   : > { %8620 = vpow2.f32 %v5525_v13  ;;  %vm5033_vm9 = vweird.f32 %v11239_v8  ;;  %v5037_v14 = vand.u32 2147483647, %v11239_v8  ;;  %v5410_v53 = vmul.f32 %v5378_v3, %v11168_v18  ;;  %v8394_v8 = vld [vmem:[#allocation10 + $0x30] sm:$0xff] }
 0x5e8   : > { %v8619_v48 = vpop.eup %8618  ;;  %v5313_v19 = vadd.f32 -0.28449672, %v5281_v56  ;;  %vm11354_vm10 = vmor %vm5033_vm9, %vm5034_vm7  ;;  %8622 = vrcp.f32 %v11345_v2  ;;  %v11360_v33 = vadd.f32 %v4387_v6, %v11201_v38  ;;  %v5252_v21 = vadd.f32 1.4214138, %v5220_v59  ;;  %6114 = vmatpush.bf16.msrb.mxu2 %v8394_v8 }
 0x5e9   : > { %v5155_v34 = vmul.f32 1.0614054, %v11342_v20  ;;  %v5036_v18 = vsel %vm11354_vm10, %v11278_v25, %v5032_v1  ;;  %v5014_v57 = vmul.f32 %v8619_v48, %v11313_v29  ;;  %v11368_v5 = vadd.f32 %v5760_v11, %v11273_v15  ;;  %v4488_v11 = vpop.f32.mrf.mxu1 }
 0x5ea   : > { %v5531_v52 = vmul.f32 1.442695, %v5476_v30  ;;  %v5040_v58 = vor.u32 1.1754944e-38, %v5039_v32  ;;  %v4440_v13 = vadd.f32 %v4439_v23, %v10396_v17  ;;  %v5663_v38 = vsub.f32 0.0, %v5599_v35 }
 0x5eb   : > { %v5443_v28 = vsub.f32 0.0, %v11163_v10  ;;  %vm5038_vm11 = vcmp.eq.f32.partialorder %v5037_v14, 8.507059e+37  ;;  %v5015_v3 = vsub.f32 1.0, %v5014_v57  ;;  %v11372_v56 = vmul.f32 %v8617_v26, %v5410_v53 }
 0x5ec   : > { %v5345_v25 = vmul.f32 %v5313_v19, %v11236_v43  ;;  %v11375_v4 = vsel %vm5038_vm11, %v5040_v58, %v5036_v18  ;;  %v11378_v15 = vmul.f32 0.70710677, %v11360_v33  ;;  %v5284_v1 = vmul.f32 %v5252_v21, %v11283_v45 }
 0x5ed   : > { %v11380_v59 = vpop.eup %8620  ;;  %v5187_v6 = vadd.f32 -1.4531521, %v5155_v34  ;;  %v5016_v30 = vmul.f32 %v8619_v48, %v5015_v3  ;;  %vm5019_vm12 = vweird.f32 %v8619_v48  ;;  %vm5018_vm13 = vweird.f32 %v11313_v29 }
 0x5ee   : > { %v8623_v32 = vpop.eup %8622  ;;  %v5022_v26 = vand.u32 2147483647, %v11313_v29  ;;  %v5024_v14 = vand.u32 2147483648, %v11313_v29  ;;  %v11387_v23 = vand.u32 2147483647, %v11378_v15  ;;  %v11391_v8 = vadd.f32 %v4488_v11, %v4440_v13  ;;  %vm11397_vm14 = vmor %vm5018_vm13, %vm5019_vm12 }
 0x5ef   : > { %v5158_v53 = vmul.f32 1.0614054, %v11375_v4  ;;  %v5017_v19 = vadd.f32 %v8619_v48, %v5016_v30  ;;  %v5059_v47 = vmul.f32 %v8623_v32, %v11345_v2  ;;  %v5695_v34 = vsel %vm5631_vm8, %v5599_v35, %v5663_v38 }
 0x5f0   : > { %v5475_v18 = vmul.f32 %v5443_v28, %v11163_v10  ;;  %v4615_v29 = vmul.f32 0.3275911, %v11387_v23  ;;  %v5316_v57 = vadd.f32 -0.28449672, %v5284_v1  ;;  %v5219_v58 = vmul.f32 %v5187_v6, %v11342_v20 }
 0x5f1   : > { %v5021_v13 = vsel %vm11397_vm14, %v8619_v48, %v5017_v19  ;;  %v5060_v3 = vsub.f32 1.0, %v5059_v47  ;;  %v5602_v11 = vsub.f32 1.0, %v11372_v56  ;;  %vm5634_vm15 = vcmp.ge.f32.partialorder %v11029_v0, 0.0 }
 0x5f2   : > { %v5377_v16 = vadd.f32 0.2548296, %v5345_v25  ;;  %v5025_v35 = vor.u32 1.1754944e-38, %v5024_v14  ;;  %v11407_v10 = vadd.f32 1.0, %v4615_v29  ;;  %v5190_v38 = vadd.f32 -1.4531521, %v5158_v53 }
 0x5f3   : > { %vm5023_vm0 = vcmp.eq.f32.partialorder %v5022_v26, 8.507059e+37  ;;  %v5069_v28 = vand.u32 2147483648, %v11345_v2  ;;  %v11411_v1 = vmul.f32 0.70710677, %v11391_v8  ;;  %v5061_v30 = vmul.f32 %v8623_v32, %v5060_v3 }
 0x5f4   : > { %v11413_v6 = vsel %vm5023_vm0, %v5025_v35, %v5021_v13  ;;  %vm5064_vm1 = vweird.f32 %v8623_v32  ;;  %8624 = vrcp.f32 %v11407_v10  ;;  %v5348_v48 = vmul.f32 %v5316_v57, %v11283_v45 }
 0x5f5   : > { %v5251_v56 = vadd.f32 1.4214138, %v5219_v58  ;;  %v5446_v25 = vsub.f32 0.0, %v11220_v41  ;;  %v5067_v14 = vand.u32 2147483647, %v11345_v2  ;;  %v5727_v53 = vadd.f32 1.0, %v5695_v34 }
 0x5f6   : > { %8626 = vpow2.f32 %v5531_v52  ;;  %v5062_v26 = vadd.f32 %v8623_v32, %v5061_v30  ;;  %vm5063_vm2 = vweird.f32 %v11345_v2  ;;  %v5666_v19 = vsub.f32 0.0, %v5602_v11 }
 0x5f7   : > { %v5409_v47 = vmul.f32 %v5377_v16, %v11236_v43  ;;  %v5222_v37 = vmul.f32 %v5190_v38, %v11375_v4  ;;  %v5157_v29 = vmul.f32 1.0614054, %v11413_v6  ;;  %vm5065_vm3 = vmor %vm5063_vm2, %vm5064_vm1  ;;  %v5529_v13 = vmul.f32 1.442695, %v5475_v18 }
 0x5f8   : > { %v5066_v57 = vsel %vm5065_vm3, %v8623_v32, %v5062_v26  ;;  %v5070_v58 = vor.u32 1.1754944e-38, %v5069_v28  ;;  %v11424_v3 = vand.u32 2147483647, %v11411_v1  ;;  %v5380_v35 = vadd.f32 0.2548296, %v5348_v48 }
 0x5f9   : > { %v5283_v52 = vmul.f32 %v5251_v56, %v11342_v20  ;;  %v5478_v34 = vmul.f32 %v5446_v25, %v11220_v41  ;;  %vm5068_vm4 = vcmp.eq.f32.partialorder %v5067_v14, 8.507059e+37  ;;  %v11429_v43 = vmul.f32 0.5, %v11146_v51 }
 0x5fa   : > { %v8625_v2 = vpop.eup %8624  ;;  %v11432_v16 = vmul.f32 0.5, %v11172_v55  ;;  %v11434_v38 = vsel %vm5068_vm4, %v5070_v58, %v5066_v57  ;;  %v4618_v32 = vmul.f32 0.3275911, %v11424_v3  ;;  %v5698_v18 = vsel %vm5634_vm15, %v5602_v11, %v5666_v19  ;;  %v4441_v19 = vpop.f32.mrf.mxu0 }
 0x5fb   : > { %v11440_v28 = vmul.f32 %v11380_v59, %v5409_v47  ;;  %v5254_v30 = vadd.f32 1.4214138, %v5222_v37  ;;  %v5189_v41 = vadd.f32 -1.4531521, %v5157_v29  ;;  %v11443_v56 = vmul.f32 %v5727_v53, %v11233_v24  ;;  %v4390_v57 = vpop.f32.mrf.mxu3 }
 0x5fc   : > { %v8627_v48 = vpop.eup %8626  ;;  %v5160_v51 = vmul.f32 1.0614054, %v11434_v38  ;;  %v5044_v55 = vmul.f32 %v8625_v2, %v11407_v10  ;;  %v11447_v25 = vadd.f32 1.0, %v4618_v32  ;;  %v5412_v14 = vmul.f32 %v5380_v35, %v11283_v45 }
 0x5fd   : > { %v5315_v26 = vadd.f32 -0.28449672, %v5283_v52  ;;  %8628 = vpow2.f32 %v5529_v13  ;;  %v5535_v0 = vmul.f32 1.442695, %v5478_v34  ;;  %v11450_v11 = vadd.f32 1.0, %v5698_v18 }
 0x5fe   : > { %v5192_v59 = vadd.f32 -1.4531521, %v5160_v51  ;;  %v5045_v47 = vsub.f32 1.0, %v5044_v55  ;;  %8630 = vrcp.f32 %v11447_v25  ;;  %v11806_v24 = vsub.f32 1.0, %v11440_v28 }
 0x5ff   : > { %v5286_v53 = vmul.f32 %v5254_v30, %v11375_v4  ;;  %v5221_v37 = vmul.f32 %v5189_v41, %v11413_v6  ;;  %v5054_v29 = vand.u32 2147483648, %v11407_v10  ;;  %vm5049_vm5 = vweird.f32 %v8625_v2 }
 0x600   : > { %v5224_v45 = vmul.f32 %v5192_v59, %v11434_v38  ;;  %v5046_v13 = vmul.f32 %v8625_v2, %v5045_v47  ;;  %v5052_v58 = vand.u32 2147483647, %v11407_v10  ;;  %v11459_v35 = vmul.f32 %v8627_v48, %v5412_v14 }
 0x601   : > { %v5347_v52 = vmul.f32 %v5315_v26, %v11342_v20  ;;  %8632 = vpow2.f32 %v5535_v0  ;;  %v4442_v34 = vadd.f32 %v4441_v19, %v10396_v17  ;;  %vm5048_vm6 = vweird.f32 %v11407_v10 }
 0x602   : > { %v5256_v32 = vadd.f32 1.4214138, %v5224_v45  ;;  %v5047_v18 = vadd.f32 %v8625_v2, %v5046_v13  ;;  %v11465_v30 = vadd.f32 %v4390_v57, %v11207_v40  ;;  %v5318_v51 = vadd.f32 -0.28449672, %v5286_v53  ;;  %vm5050_vm7 = vmor %vm5048_vm6, %vm5049_vm5  ;;  %v4490_v53 = vpop.f32.mrf.mxu1 }
 0x603   : > { %v8629_v41 = vpop.eup %8628  ;;  %v5253_v55 = vadd.f32 1.4214138, %v5221_v37  ;;  %v5448_v59 = vsub.f32 0.0, %v11309_v31  ;;  %v5055_v48 = vor.u32 1.1754944e-38, %v5054_v29  ;;  %v11470_v26 = vsub.f32 0.0, %v11806_v24 }
 0x604   : > { %v8631_v14 = vpop.eup %8630  ;;  %v5051_v17 = vsel %vm5050_vm7, %v8625_v2, %v5047_v18  ;;  %vm5053_vm8 = vcmp.eq.f32.partialorder %v5052_v58, 8.507059e+37  ;;  %v11473_v0 = vmul.f32 0.70710677, %v11465_v30  ;;  %v5379_v10 = vadd.f32 0.2548296, %v5347_v52 }
 0x605   : > { %v5445_v40 = vsub.f32 0.0, %v11297_v63  ;;  %v11476_v19 = vsel %vm5053_vm8, %v5055_v48, %v5051_v17  ;;  %v5089_v47 = vmul.f32 %v8631_v14, %v11447_v25  ;;  %v5288_v29 = vmul.f32 %v5256_v32, %v11434_v38 }
 0x606   : > { %v5159_v57 = vmul.f32 1.0614054, %v11476_v19  ;;  %v11483_v2 = vand.u32 2147483647, %v11473_v0  ;;  %v5350_v13 = vmul.f32 %v5318_v51, %v11375_v4  ;;  %v5285_v58 = vmul.f32 %v5253_v55, %v11413_v6 }
 0x607   : > { %v8633_v45 = vpop.eup %8632  ;;  %v5480_v52 = vmul.f32 %v5448_v59, %v11309_v31  ;;  %v5090_v18 = vsub.f32 1.0, %v5089_v47  ;;  %v5099_v17 = vand.u32 2147483648, %v11447_v25  ;;  %v11490_v24 = vadd.f32 %v4490_v53, %v4442_v34  ;;  %v4392_v47 = vpop.f32.mrf.mxu3 }
 0x608   : > { %v5191_v48 = vadd.f32 -1.4531521, %v5159_v57  ;;  %v4617_v21 = vmul.f32 0.3275911, %v11483_v2  ;;  %vm5633_vm9 = vcmp.ge.f32.partialorder %v11079_v60, 0.0  ;;  %v5411_v32 = vmul.f32 %v5379_v10, %v11342_v20 }
 0x609   : > { %v5091_v37 = vmul.f32 %v8631_v14, %v5090_v18  ;;  %vm5094_vm10 = vweird.f32 %v8631_v14  ;;  %v5097_v51 = vand.u32 2147483647, %v11447_v25  ;;  %v5320_v61 = vadd.f32 -0.28449672, %v5288_v29 }
 0x60a   : > { %v5223_v55 = vmul.f32 %v5191_v48, %v11476_v19  ;;  %v5447_v31 = vsub.f32 0.0, %v11387_v23  ;;  %v11497_v59 = vadd.f32 1.0, %v4617_v21  ;;  %v5382_v57 = vadd.f32 0.2548296, %v5350_v13 }
 0x60b   : > { %v5317_v12 = vadd.f32 -0.28449672, %v5285_v58  ;;  %v5092_v34 = vadd.f32 %v8631_v14, %v5091_v37  ;;  %vm5093_vm11 = vweird.f32 %v11447_v25  ;;  %vm5636_vm12 = vcmp.ge.f32.partialorder %v11082_v44, 0.0 }
 0x60c   : > { %v5255_v20 = vadd.f32 1.4214138, %v5223_v55  ;;  %vm5095_vm13 = vmor %vm5093_vm11, %vm5094_vm10  ;;  %v5100_v10 = vor.u32 1.1754944e-38, %v5099_v17  ;;  %8634 = vrcp.f32 %v11497_v59  ;;  %v11503_v53 = vmul.f32 0.70710677, %v11490_v24 }
 0x60d   : > { %v5477_v29 = vmul.f32 %v5445_v40, %v11297_v63  ;;  %v5096_v21 = vsel %vm5095_vm13, %v8631_v14, %v5092_v34  ;;  %vm5098_vm14 = vcmp.eq.f32.partialorder %v5097_v51, 8.507059e+37  ;;  %v11507_v13 = vadd.f32 %v4392_v47, %v11258_v7 }
 0x60e   : > { %v11509_v37 = vmul.f32 %v8629_v41, %v5411_v32  ;;  %v5352_v25 = vmul.f32 %v5320_v61, %v11434_v38  ;;  %v5287_v58 = vmul.f32 %v5255_v20, %v11476_v19  ;;  %v11513_v18 = vsel %vm5098_vm14, %v5100_v10, %v5096_v21 }
 0x60f   : > { %v12022_v48 = vsub.f32 1.0, %v11459_v35  ;;  %v5539_v55 = vmul.f32 1.442695, %v5480_v52  ;;  %v5479_v50 = vmul.f32 %v5447_v31, %v11387_v23  ;;  %v5162_v63 = vmul.f32 1.0614054, %v11513_v18 }
 0x610   : > { %v5414_v14 = vmul.f32 %v5382_v57, %v11375_v4  ;;  %v5349_v7 = vmul.f32 %v5317_v12, %v11413_v6  ;;  %v5319_v41 = vadd.f32 -0.28449672, %v5287_v58  ;;  %v11522_v40 = vand.u32 2147483647, %v11503_v53  ;;  %v8393_v57 = vld [vmem:[#allocation10 + $0x28] sm:$0xff] }
 0x611   : > { %v5668_v17 = vsub.f32 0.0, %v12022_v48  ;;  %v11526_v61 = vmul.f32 %v11450_v11, %v11255_v27  ;;  %v5533_v32 = vmul.f32 1.442695, %v5477_v29  ;;  %v5194_v51 = vadd.f32 -1.4531521, %v5162_v63  ;;  %6115 = vmatpush.bf16.msrb.mxu2 %v8393_v57 }
 0x612   : > { %v11529_v52 = vmul.f32 0.70710677, %v11507_v13  ;;  %v8635_v23 = vpop.eup %8634  ;;  %v12023_v31 = vsub.f32 1.0, %v11440_v28  ;;  %v5603_v4 = vsub.f32 1.0, %v11509_v37  ;;  %vm5635_vm15 = vcmp.ge.f32.partialorder %v11157_v49, 0.0 }
 0x613   : > { %v5384_v47 = vadd.f32 0.2548296, %v5352_v25  ;;  %v4620_v27 = vmul.f32 0.3275911, %v11522_v40  ;;  %8636 = vpow2.f32 %v5539_v55  ;;  %v5351_v11 = vmul.f32 %v5319_v41, %v11476_v19  ;;  %v8401_v25 = vld [vmem:[#allocation10 + $0x68] sm:$0xff] }
 0x614   : > { %v5697_v12 = vsel %vm5633_vm9, %v12023_v31, %v11470_v26  ;;  %v5537_v34 = vmul.f32 1.442695, %v5479_v50  ;;  %v5074_v20 = vmul.f32 %v8635_v23, %v11497_v59  ;;  %v5574_v10 = vmul.f32 %v8633_v45, %v5414_v14  ;;  %6128 = vmatpush.bf16.msrb.mxu3 %v8401_v25 }
 0x615   : > { %v5381_v29 = vadd.f32 0.2548296, %v5349_v7  ;;  %v11541_v28 = vadd.f32 1.0, %v4620_v27  ;;  %v11544_v60 = vand.u32 2147483647, %v11529_v52  ;;  %v12024_v26 = vmov %v12022_v48 }
 0x616   : > { %v5700_v21 = vsel %vm5636_vm12, %v12024_v26, %v5668_v17  ;;  %8638 = vpow2.f32 %v5533_v32  ;;  %v5226_v37 = vmul.f32 %v5194_v51, %v11513_v18  ;;  %v5075_v50 = vsub.f32 1.0, %v5074_v20 }
 0x617   : > { %v5667_v58 = vsub.f32 0.0, %v5603_v4  ;;  %v5416_v45 = vmul.f32 %v5384_v47, %v11434_v38  ;;  %v5084_v48 = vand.u32 2147483648, %v11497_v59  ;;  %8640 = vrcp.f32 %v11541_v28 }
 0x618   : > { %vm5638_vm0 = vcmp.ge.f32.partialorder %v11194_v62, 0.0  ;;  %v5383_v55 = vadd.f32 0.2548296, %v5351_v11  ;;  %v5076_v35 = vmul.f32 %v8635_v23, %v5075_v50  ;;  %vm5079_vm1 = vweird.f32 %v8635_v23 }
 0x619   : > { %v5082_v44 = vand.u32 2147483647, %v11497_v59  ;;  %v5606_v17 = vsub.f32 1.0, %v5574_v10  ;;  %v5413_v63 = vmul.f32 %v5381_v29, %v11413_v6  ;;  %8642 = vpow2.f32 %v5537_v34  ;;  %v8637_v7 = vpop.eup %8636 }
 0x61a   : > { %v4619_v14 = vmul.f32 0.3275911, %v11544_v60  ;;  %v5258_v38 = vadd.f32 1.4214138, %v5226_v37  ;;  %v5450_v41 = vsub.f32 0.0, %v11424_v3  ;;  %v5077_v32 = vadd.f32 %v8635_v23, %v5076_v35 }
 0x61b   : > { %vm5078_vm2 = vweird.f32 %v11497_v59  ;;  %v5732_v51 = vadd.f32 1.0, %v5700_v21  ;;  %v5576_v31 = vmul.f32 %v8637_v7, %v5416_v45  ;;  %v5085_v47 = vor.u32 1.1754944e-38, %v5084_v48 }
 0x61c   : > { %vm5080_vm3 = vmor %vm5078_vm2, %vm5079_vm1  ;;  %v11560_v57 = vadd.f32 1.0, %v4619_v14  ;;  %v8639_v27 = vpop.eup %8638  ;;  %v5699_v6 = vsel %vm5635_vm15, %v5603_v4, %v5667_v58  ;;  %v5415_v11 = vmul.f32 %v5383_v55, %v11476_v19  ;;  %vm5083_vm4 = vcmp.eq.f32.partialorder %v5082_v44, 8.507059e+37 }
 0x61d   : > { %v5081_v34 = vsel %vm5080_vm3, %v8635_v23, %v5077_v32  ;;  %v8641_v20 = vpop.eup %8640  ;;  %v5670_v10 = vsub.f32 0.0, %v5606_v17  ;;  %v5573_v29 = vmul.f32 %v8639_v27, %v5413_v63  ;;  %v5290_v59 = vmul.f32 %v5258_v38, %v11513_v18 }
 0x61e   : > { %v11565_v26 = vsel %vm5083_vm4, %v5085_v47, %v5081_v34  ;;  %8644 = vrcp.f32 %v11560_v57  ;;  %v5482_v21 = vmul.f32 %v5450_v41, %v11424_v3  ;;  %v5119_v49 = vmul.f32 %v8641_v20, %v11541_v28 }
 0x61f   : > { %v5161_v37 = vmul.f32 1.0614054, %v11565_v26  ;;  %v8643_v4 = vpop.eup %8642  ;;  %v11573_v19 = vmul.f32 0.5, %v11252_v9  ;;  %v11576_v23 = vmul.f32 0.5, %v11285_v46  ;;  %v5608_v25 = vsub.f32 1.0, %v5576_v31 }
 0x620   : > { %vm5640_vm5 = vcmp.ge.f32.partialorder %v11301_v22, 0.0  ;;  %v11579_v50 = vadd.f32 1.0, %v5697_v12  ;;  %v11582_v58 = vmul.f32 %v5732_v51, %v11319_v42  ;;  %v5575_v3 = vmul.f32 %v8643_v4, %v5415_v11 }
 0x621   : > { %v5193_v45 = vadd.f32 -1.4531521, %v5161_v37  ;;  %v11584_v48 = vadd.f32 1.0, %v5699_v6  ;;  %v5702_v55 = vsel %vm5638_vm0, %v5606_v17, %v5670_v10  ;;  %v5605_v9 = vsub.f32 1.0, %v5573_v29 }
 0x622   : > { %v5120_v35 = vsub.f32 1.0, %v5119_v49  ;;  %vm5637_vm6 = vcmp.ge.f32.partialorder %v11276_v36, 0.0  ;;  %v5322_v46 = vadd.f32 -0.28449672, %v5290_v59  ;;  %v5543_v44 = vmul.f32 1.442695, %v5482_v21 }
 0x623   : > { %v5225_v63 = vmul.f32 %v5193_v45, %v11565_v26  ;;  %v5449_v12 = vsub.f32 0.0, %v11483_v2  ;;  %v5672_v42 = vsub.f32 0.0, %v5608_v25  ;;  %vm5639_vm7 = vcmp.ge.f32.partialorder %v11378_v15, 0.0 }
 0x624   : > { %v8645_v14 = vpop.eup %8644  ;;  %v5121_v7 = vmul.f32 %v8641_v20, %v5120_v35  ;;  %vm5124_vm8 = vweird.f32 %v8641_v20  ;;  %v5129_v38 = vand.u32 2147483648, %v11541_v28  ;;  %v5734_v62 = vadd.f32 1.0, %v5702_v55 }
 0x625   : > { %v5607_v17 = vsub.f32 1.0, %v5575_v3  ;;  %v5257_v41 = vadd.f32 1.4214138, %v5225_v63  ;;  %v5127_v32 = vand.u32 2147483647, %v11541_v28  ;;  %v5669_v51 = vsub.f32 0.0, %v5605_v9 }
 0x626   : > { %v5122_v31 = vadd.f32 %v8641_v20, %v5121_v7  ;;  %vm5123_vm9 = vweird.f32 %v11541_v28  ;;  %v5104_v47 = vmul.f32 %v8645_v14, %v11560_v57  ;;  %v5354_v27 = vmul.f32 %v5322_v46, %v11513_v18  ;;  %v8400_v7 = vld [vmem:[#allocation10 + $0x60] sm:$0xff] }
 0x627   : > { %v5289_v6 = vmul.f32 %v5257_v41, %v11565_v26  ;;  %v5481_v11 = vmul.f32 %v5449_v12, %v11483_v2  ;;  %vm5125_vm10 = vmor %vm5123_vm9, %vm5124_vm8  ;;  %v5452_v34 = vsub.f32 0.0, %v11522_v40  ;;  %v5704_v10 = vsel %vm5640_vm5, %v5608_v25, %v5672_v42  ;;  %6129 = vmatpush.bf16.msrb.mxu3 %v8400_v7 }
 0x628   : > { %v5126_v29 = vsel %vm5125_vm10, %v8641_v20, %v5122_v31  ;;  %v5130_v59 = vor.u32 1.1754944e-38, %v5129_v38  ;;  %v5105_v21 = vsub.f32 1.0, %v5104_v47  ;;  %v5671_v37 = vsub.f32 0.0, %v5607_v17 }
 0x629   : > { %v5321_v49 = vadd.f32 -0.28449672, %v5289_v6  ;;  %vm5128_vm11 = vcmp.eq.f32.partialorder %v5127_v32, 8.507059e+37  ;;  %v5114_v28 = vand.u32 2147483648, %v11560_v57  ;;  %vm5109_vm12 = vweird.f32 %v8645_v14 }
 0x62a   : > { %v11603_v4 = vsel %vm5128_vm11, %v5130_v59, %v5126_v29  ;;  %v5106_v3 = vmul.f32 %v8645_v14, %v5105_v21  ;;  %v5112_v2 = vand.u32 2147483647, %v11560_v57  ;;  %v5736_v45 = vadd.f32 1.0, %v5704_v10  ;;  %v8392_v59 = vld [vmem:[#allocation10 + $0x20] sm:$0xff] }
 0x62b   : > { %v5386_v55 = vadd.f32 0.2548296, %v5354_v27  ;;  %8646 = vpow2.f32 %v5543_v44  ;;  %v5164_v22 = vmul.f32 1.0614054, %v11603_v4  ;;  %v5701_v20 = vsel %vm5637_vm6, %v5605_v9, %v5669_v51  ;;  %6116 = vmatpush.bf16.msrb.mxu2 %v8392_v59 }
 0x62c   : > { %v5353_v25 = vmul.f32 %v5321_v49, %v11565_v26  ;;  %v5107_v35 = vadd.f32 %v8645_v14, %v5106_v3  ;;  %vm5108_vm13 = vweird.f32 %v11560_v57  ;;  %v5703_v46 = vsel %vm5639_vm7, %v5607_v17, %v5671_v37  ;;  %v8398_v49 = vld [vmem:[#allocation10 + $0x50] sm:$0xff] }
 0x62d   : > { %v5541_v63 = vmul.f32 1.442695, %v5481_v11  ;;  %v5196_v12 = vadd.f32 -1.4531521, %v5164_v22  ;;  %vm5110_vm14 = vmor %vm5108_vm13, %vm5109_vm12  ;;  %v5115_v42 = vor.u32 1.1754944e-38, %v5114_v28  ;;  %v5484_v44 = vmul.f32 %v5452_v34, %v11522_v40 }
 0x62e   : > { %v5111_v38 = vsel %vm5110_vm14, %v8645_v14, %v5107_v35  ;;  %vm5113_vm15 = vcmp.eq.f32.partialorder %v5112_v2, 8.507059e+37  ;;  %v5451_v36 = vsub.f32 0.0, %v11544_v60  ;;  %v5768_v9 = vmul.f32 %v5736_v45, %v11576_v23 }
 0x62f   : > { %v5418_v41 = vmul.f32 %v5386_v55, %v11513_v18  ;;  %v5228_v57 = vmul.f32 %v5196_v12, %v11603_v4  ;;  %v11618_v32 = vsel %vm5113_vm15, %v5115_v42, %v5111_v38  ;;  %v5850_v15 = vadd.f32 %v11582_v58, %v11526_v61  ;;  %v8399_v18 = vld [vmem:[#allocation10 + $0x58] sm:$0xff] }
 0x630   : > { %v5735_v17 = vadd.f32 1.0, %v5703_v46  ;;  %v5385_v51 = vadd.f32 0.2548296, %v5353_v25  ;;  %v5163_v40 = vmul.f32 1.0614054, %v11618_v32  ;;  %v5766_v31 = vmul.f32 %v5734_v62, %v11432_v16  ;;  %6130 = vmatpush.bf16.msrb.mxu3 %v8399_v18  ;;  %v8391_v55 = vld [vmem:[#allocation10 + $0x18] sm:$0xff] }
 0x631   : > { %v8647_v14 = vpop.eup %8646  ;;  %v4519_v47 = vmul.f32 0.5, %v11360_v33  ;;  %8648 = vpow2.f32 %v5541_v63  ;;  %v5260_v23 = vadd.f32 1.4214138, %v5228_v57  ;;  %v5763_v27 = vmul.f32 %v11584_v48, %v11429_v43  ;;  %6117 = vmatpush.bf16.msrb.mxu2 %v8391_v55  ;;  %v8397_v63 = vld [vmem:[#allocation10 + $0x48] sm:$0xff] }
 0x632   : > { %v5733_v6 = vadd.f32 1.0, %v5701_v20  ;;  %v5547_v11 = vmul.f32 1.442695, %v5484_v44  ;;  %v5195_v34 = vadd.f32 -1.4531521, %v5163_v40  ;;  %v5864_v10 = vadd.f32 %v5768_v9, %v5766_v31 }
 0x633   : > { %v5578_v61 = vmul.f32 %v8647_v14, %v5418_v41  ;;  %v5292_v58 = vmul.f32 %v5260_v23, %v11603_v4  ;;  %v5483_v29 = vmul.f32 %v5451_v36, %v11544_v60  ;;  %v5761_v33 = vmul.f32 %v11579_v50, %v11293_v39  ;;  %v8390_v36 = vld [vmem:[#allocation10 + $0x10] sm:$0xff]  ;;  %v8396_v14 = vld [vmem:[#allocation10 + $0x40] sm:$0xff] }
 0x634   : > { %v5767_v16 = vmul.f32 %v5735_v17, %v4519_v47  ;;  %v5417_v62 = vmul.f32 %v5385_v51, %v11565_v26  ;;  %v5227_v21 = vmul.f32 %v5195_v34, %v11618_v32  ;;  %v5829_v43 = vadd.f32 %v11443_v56, %v11329_v54  ;;  %6131 = vmatpush.bf16.msrb.mxu3 %v8398_v49 }
 0x635   : > { %v5851_v48 = vrot.slane %v5850_v15, 4  ;;  %v5324_v37 = vadd.f32 -0.28449672, %v5292_v58  ;;  %v5843_v28 = vadd.f32 %v5763_v27, %v5761_v33  ;;  %v5765_v60 = vmul.f32 %v5733_v6, %v11573_v19  ;;  %6118 = vmatpush.bf16.msrb.mxu2 %v8390_v36  ;;  %v8389_v27 = vld [vmem:[#allocation10 + $0x8] sm:$0xff]  ;;  %v12026_v36 = vld [vmem:[#allocation21_spill] sm:$0xff] }
 0x636   : > { %8650 = vpow2.f32 %v5547_v11  ;;  %v5259_v3 = vadd.f32 1.4214138, %v5227_v21  ;;  %v5865_v45 = vrot.slane %v5864_v10, 4  ;;  %v5610_v39 = vsub.f32 1.0, %v5578_v61 }
 0x637   : > { %v8649_v2 = vpop.eup %8648  ;;  %v5356_v50 = vmul.f32 %v5324_v37, %v11603_v4  ;;  %v5545_v26 = vmul.f32 1.442695, %v5483_v29  ;;  %v12025_v54 = vrot.slane %v11368_v5, 4  ;;  %v5857_v22 = vadd.f32 %v5767_v16, %v5765_v60  ;;  %v8388_v16 = vld [vmem:[#allocation10] sm:$0xff] }
 0x638   : > { %v5577_v20 = vmul.f32 %v8649_v2, %v5417_v62  ;;  %v5291_v25 = vmul.f32 %v5259_v3, %v11618_v32  ;;  %v5830_v35 = vrot.slane %v5829_v43, 4  ;;  %v5852_v19 = vadd.f32 %v5851_v48, %v5850_v15  ;;  %6132 = vmatpush.bf16.msrb.mxu3 %v8397_v63 }
 0x639   : > { %v5838_v56 = vadd.f32 %v12025_v54, %v11368_v5  ;;  %v5388_v46 = vadd.f32 0.2548296, %v5356_v50  ;;  %v5844_v12 = vrot.slane %v5843_v28, 4  ;;  %v5866_v7 = vadd.f32 %v5865_v45, %v5864_v10  ;;  %6119 = vmatpush.bf16.msrb.mxu2 %v8389_v27 }
 0x63a   : > { %v5323_v42 = vadd.f32 -0.28449672, %v5291_v25  ;;  %v5674_v44 = vsub.f32 0.0, %v5610_v39  ;;  %8652 = vpow2.f32 %v5545_v26  ;;  %v5858_v41 = vrot.slane %v5857_v22, 4 }
 0x63b   : > { %v5420_v38 = vmul.f32 %v5388_v46, %v11603_v4  ;;  %v5839_v5 = vrot.slane %v5838_v56, 2  ;;  %v5609_v57 = vsub.f32 1.0, %v5577_v20  ;;  %v5831_v51 = vadd.f32 %v5830_v35, %v5829_v43 }
 0x63c   : > { %v8651_v9 = vpop.eup %8650  ;;  %v5355_v17 = vmul.f32 %v5323_v42, %v11618_v32  ;;  %v5853_v15 = vrot.slane %v5852_v19, 2  ;;  %v5845_v31 = vadd.f32 %v5844_v12, %v5843_v28  ;;  %vm5642_vm0 = vcmp.ge.f32.partialorder %v11411_v1, 0.0  ;;  %6133 = vmatpush.bf16.msrb.mxu3 %v8396_v14 }
 0x63d   : > { %v5580_v40 = vmul.f32 %v8651_v9, %v5420_v38  ;;  %v5867_v23 = vrot.slane %v5866_v7, 2  ;;  %v5706_v4 = vsel %vm5642_vm0, %v5610_v39, %v5674_v44  ;;  %v5840_v6 = vadd.f32 %v5839_v5, %v5838_v56  ;;  %6120 = vmatpush.bf16.msrb.mxu2 %v8388_v16 }
 0x63e   : > { %v5387_v47 = vadd.f32 0.2548296, %v5355_v17  ;;  %v5859_v11 = vadd.f32 %v5858_v41, %v5857_v22  ;;  %v5673_v34 = vsub.f32 0.0, %v5609_v57  ;;  %v5832_v58 = vrot.slane %v5831_v51, 2 }
 0x63f   : > { %v5612_v18 = vsub.f32 1.0, %v5580_v40  ;;  %v5854_v29 = vadd.f32 %v5853_v15, %v5852_v19  ;;  %v4522_v59 = vmul.f32 0.5, %v11391_v8  ;;  %v5846_v1 = vrot.slane %v5845_v31, 2 }
 0x640   : > { %v5419_v10 = vmul.f32 %v5387_v47, %v11618_v32  ;;  %v8653_v61 = vpop.eup %8652  ;;  %v5738_v62 = vadd.f32 1.0, %v5706_v4  ;;  %vm5644_vm1 = vcmp.ge.f32.partialorder %v11503_v53, 0.0  ;;  %v5868_v43 = vadd.f32 %v5867_v23, %v5866_v7 }
 0x641   : > { %v5676_v33 = vsub.f32 0.0, %v5612_v18  ;;  %vm5641_vm2 = vcmp.ge.f32.partialorder %v11473_v0, 0.0  ;;  %v4524_v48 = vmul.f32 0.5, %v11490_v24  ;;  %v5860_v32 = vrot.slane %v5859_v11, 2 }
 0x642   : > { %v5579_v21 = vmul.f32 %v8653_v61, %v5419_v10  ;;  %v5705_v49 = vsel %vm5641_vm2, %v5609_v57, %v5673_v34  ;;  %v5841_v3 = vrot.slane %v5840_v6, 1  ;;  %v5833_v8 = vadd.f32 %v5832_v58, %v5831_v51 }
 0x643   : > { %v5708_v37 = vsel %vm5644_vm1, %v5612_v18, %v5676_v33  ;;  %v5855_v2 = vrot.slane %v5854_v29, 1  ;;  %v5770_v45 = vmul.f32 %v5738_v62, %v4522_v59  ;;  %v5847_v26 = vadd.f32 %v5846_v1, %v5845_v31 }
 0x644   : > { %v5740_v28 = vadd.f32 1.0, %v5708_v37  ;;  %v5611_v60 = vsub.f32 1.0, %v5579_v21  ;;  %v5869_v53 = vrot.slane %v5868_v43, 1  ;;  %v5737_v55 = vadd.f32 1.0, %v5705_v49 }
 0x645   : > { %vm5643_vm3 = vcmp.ge.f32.partialorder %v11529_v52, 0.0  ;;  %v5861_v0 = vadd.f32 %v5860_v32, %v5859_v11  ;;  %v5842_v56 = vadd.f32 %v5841_v3, %v5840_v6  ;;  %v4521_v22 = vmul.f32 0.5, %v11465_v30 }
 0x646   : > { %v5772_v39 = vmul.f32 %v5740_v28, %v4524_v48  ;;  %v5675_v50 = vsub.f32 0.0, %v5611_v60  ;;  %v4523_v20 = vmul.f32 0.5, %v11507_v13  ;;  %v5834_v35 = vrot.slane %v5833_v8, 1 }
 0x647   : > { %v5856_v19 = vadd.f32 %v5855_v2, %v5854_v29  ;;  %v5848_v63 = vrot.slane %v5847_v26, 1  ;;  %v5870_v12 = vadd.f32 %v5869_v53, %v5868_v43  ;;  %v5769_v42 = vmul.f32 %v5737_v55, %v4521_v22  ;;  %v12027_v43 = vld [vmem:[#allocation22_spill] sm:$0xff]  ;;  %v8523_v22 = vld [vmem:[%s11719_s6] ss:$0 sm:$0xff] }
 0x648   : > { %v5878_v54 = vadd.f32 %v5772_v39, %v5770_v45  ;;  %v5707_v24 = vsel %vm5643_vm3, %v5611_v60, %v5675_v50  ;;  %v5862_v44 = vrot.slane %v5861_v0, 1  ;;  %v5901_v52 = vmul.f32 %v12026_v36, %v5842_v56  ;;  %v12028_v50 = vld [vmem:[#allocation37_spill] sm:$0xff] }
 0x649   : > { %v5739_v25 = vadd.f32 1.0, %v5707_v24  ;;  %v5835_v5 = vadd.f32 %v5834_v35, %v5833_v8  ;;  %v5903_v41 = vmul.f32 %v12026_v36, %v5856_v19  ;;  %v5849_v30 = vadd.f32 %v5848_v63, %v5847_v26 }
 0x64a   : > { %v5879_v46 = vrot.slane %v5878_v54, 4  ;;  %v5905_v13 = vmul.f32 %v12026_v36, %v5870_v12  ;;  %v5863_v51 = vadd.f32 %v5862_v44, %v5861_v0  ;;  %v5917_v40 = vpack.c.bf16 %v5901_v52, %v5901_v52 }
 0x64b   : > { %v5771_v7 = vmul.f32 %v5739_v25, %v4523_v20  ;;  %v5900_v31 = vmul.f32 %v12026_v36, %v5835_v5  ;;  %v5919_v47 = vpack.c.bf16 %v5903_v41, %v5903_v41  ;;  %v5902_v4 = vmul.f32 %v12026_v36, %v5849_v30 }
 0x64c   : > { %v5880_v38 = vadd.f32 %v5879_v46, %v5878_v54  ;;  %v5921_v18 = vpack.c.bf16 %v5905_v13, %v5905_v13  ;;  %v5904_v6 = vmul.f32 %v12026_v36, %v5863_v51  ;;  %v5985_v34 = vunpack.c.l.b16 %v5917_v40 }
 0x64d   : > { %v5871_v9 = vadd.f32 %v5771_v7, %v5769_v42  ;;  %v5916_v61 = vpack.c.bf16 %v5900_v31, %v5900_v31  ;;  %v5987_v58 = vunpack.c.l.b16 %v5919_v47  ;;  %vm5998_vm4 = vcmask 1044484  }
 0x64e   : > { %v5881_v57 = vrot.slane %v5880_v38, 2  ;;  %v5918_v59 = vpack.c.bf16 %v5902_v4, %v5902_v4  ;;  %v5989_v33 = vunpack.c.l.b16 %v5921_v18  ;;  %vm6000_vm5 = vcmask 1045509   ;;  %v6158_v4 = vld [vmem:[%s9140_s16] sm:$0xff] }
 0x64f   : > { %v5872_v17 = vrot.slane %v5871_v9, 4  ;;  %v5920_v1 = vpack.c.bf16 %v5904_v6, %v5904_v6  ;;  %vm6002_vm6 = vcmask 1046534   ;;  %vm6004_vm7 = vcmask 1047559  }
 0x650   : > { %v5882_v15 = vadd.f32 %v5881_v57, %v5880_v38  ;;  %v6009_v48 = vsel %vm5998_vm4, %v5985_v34, %v12027_v43  ;;  %v5984_v37 = vunpack.c.l.b16 %v5916_v61  ;;  %v5986_v28 = vunpack.c.l.b16 %v5918_v59 }
 0x651   : > { %v5873_v14 = vadd.f32 %v5872_v17, %v5871_v9  ;;  %v6010_v49 = vsel %vm6000_vm5, %v5987_v58, %v6009_v48  ;;  %v5988_v8 = vunpack.c.l.b16 %v5920_v1  ;;  %v6171_v44 = vlaneseq }
 0x652   : > { %v5883_v23 = vrot.slane %v5882_v15, 1  ;;  %v6011_v3 = vsel %vm6002_vm6, %v5989_v33, %v6010_v49  ;;  %v5999_v26 = vsel %vm5998_vm4, %v5984_v37, %v12028_v50  ;;  %v6179_v52 = vstv %s7990_s1 }
 0x653   : > { %v5874_v27 = vrot.slane %v5873_v14, 2  ;;  %v6001_v55 = vsel %vm6000_vm5, %v5986_v28, %v5999_v26  ;;  %v8934_v17 = vmov 0.0   ;;  %v6167_v34 = vsub.f32 1.0, %v6158_v4 }
 0x654   : > { %v5884_v11 = vadd.f32 %v5883_v23, %v5882_v15  ;;  %v6003_v0 = vsel %vm6002_vm6, %v5988_v8, %v6001_v55 }
 0x655   : > { %v5875_v10 = vadd.f32 %v5874_v27, %v5873_v14 }
 0x656   : > { %v5907_v29 = vmul.f32 %v12026_v36, %v5884_v11 }
 0x657   : > { %v5876_v16 = vrot.slane %v5875_v10, 1 }
 0x658   : > { %v5923_v62 = vpack.c.bf16 %v5907_v29, %v5907_v29 }
 0x659   : > { %v5877_v21 = vadd.f32 %v5876_v16, %v5875_v10  ;;  %v6172_v10 = vand.u32 127, %v6171_v44 }
 0x65a   : > { %v5991_v32 = vunpack.c.l.b16 %v5923_v62 }
 0x65b   : > { %v5906_v60 = vmul.f32 %v12026_v36, %v5877_v21  ;;  %v6178_v36 = vshrl.u32 %v6171_v44, 7  ;;  %vm6173_vm13 = vcmp.lt.s32.totalorder %v6172_v10, 4  ;;  %vm6188_vm14 = vcmp.eq.s32.totalorder %v6172_v10, 127 }
 0x65c   : > { %v6012_v2 = vsel %vm6004_vm7, %v5991_v32, %v6011_v3  ;;  %v7989_v33 = vsel %vm6173_vm13, 1.0, %v8934_v17 }
 0x65d   : > { %v5922_v45 = vpack.c.bf16 %v5906_v60, %v5906_v60  ;;  %v6014_v39 = vpack.c.b16 %v6012_v2, %v6012_v2  ;;  %v6180_v5 = vadd.s32 %v6179_v52, %v6178_v36 }
 0x65f   : > { %v5990_v53 = vunpack.c.l.b16 %v5922_v45  ;;  %6134 = vmatmul.bf16.vlgmr.msrb.gmra.mxu3 %v6014_v39  ;;  %vm6181_vm8 = vcmp.lt.s32.totalorder %v6180_v5, 16 }
 0x660   : > { %v7991_v51 = vsel %vm6181_vm8, 1.0, %v8934_v17 }
 0x661   : > { %v6005_v54 = vsel %vm6004_vm7, %v5990_v53, %v6003_v0 }
 0x662   : > { %v6013_v24 = vpack.c.b16 %v6005_v54, %v6005_v54 }
 0x664   : > { %6121 = vmatmul.bf16.vlgmr.msrb.gmra.mxu2 %v6013_v24 }
 0x6e2   : > { %v6135_v56 = vpop.f32.mrf.mxu3 }
 0x6e7   : > { %v6122_v20 = vpop.f32.mrf.mxu2 }
 0x6e8   : > { %v6123_v25 = vadd.f32 %v8523_v22, %v6122_v20 }
 0x6ea   : > { %v6136_v35 = vadd.f32 %v6135_v56, %v6123_v25  ;;  %v6137_v19 = vpop.f32.mrf.mxu3 }
 0x6ec   : > { %v6139_v46 = vsub.f32 0.0, %v6136_v35 }
 0x6ee   : > { %v6140_v63 = vmul.f32 1.442695, %v6139_v46 }
 0x6ef   : > { %v6124_v12 = vpop.f32.mrf.mxu2 }
 0x6f0   : > { %8654 = vpow2.f32 %v6140_v63 }
 0x6f6   : > { %v8655_v42 = vpop.eup %8654 }
 0x6f7   : > { %v6142_v7 = vadd.f32 1.0, %v8655_v42 }
 0x6f9   : > { %8656 = vrcp.f32 %v6142_v7  ;;  %v6154_v57 = vand.u32 2147483648, %v6142_v7  ;;  %v6152_v13 = vand.u32 2147483647, %v6142_v7  ;;  %vm6148_vm10 = vweird.f32 %v6142_v7 }
 0x6fb   : > { %v6155_v40 = vor.u32 1.1754944e-38, %v6154_v57  ;;  %vm6153_vm12 = vcmp.eq.f32.partialorder %v6152_v13, 8.507059e+37 }
 0x6ff   : > { %v8657_v38 = vpop.eup %8656 }
 0x700   : > { %v6144_v9 = vmul.f32 %v8657_v38, %v6142_v7  ;;  %vm6149_vm9 = vweird.f32 %v8657_v38 }
 0x701   : > { %vm6150_vm11 = vmor %vm6148_vm10, %vm6149_vm9 }
 0x702   : > { %v6145_v41 = vsub.f32 1.0, %v6144_v9 }
 0x704   : > { %v6146_v30 = vmul.f32 %v8657_v38, %v6145_v41 }
 0x706   : > { %v6147_v15 = vadd.f32 %v8657_v38, %v6146_v30 }
 0x708   : > { %v6151_v14 = vsel %vm6150_vm11, %v8657_v38, %v6147_v15 }
 0x709   : > { %v6156_v31 = vsel %vm6153_vm12, %v6155_v40, %v6151_v14 }
 0x70a   : > { %8658 = vlog2.f32 %v6156_v31  ;;  %v6162_v47 = vsub.f32 1.0, %v6156_v31 }
 0x70c   : > { %8660 = vlog2.f32 %v6162_v47 }
 0x710   : > { %v8659_v23 = vpop.eup %8658 }
 0x711   : > { %v6160_v18 = vmul.f32 0.6931472, %v8659_v23 }
 0x712   : > { %v8661_v27 = vpop.eup %8660 }
 0x713   : > { %v6161_v6 = vmax.f32 %v6160_v18, -100.0  ;;  %v6164_v11 = vmul.f32 0.6931472, %v8661_v27 }
 0x715   : > { %v6165_v61 = vmax.f32 %v6164_v11, -100.0  ;;  %v6166_v58 = vmul.f32 %v6161_v6, %v6158_v4 }
 0x717   : > { %v6168_v29 = vmul.f32 %v6167_v34, %v6165_v61 }
 0x719   : > { %v6169_v59 = vadd.f32 %v6168_v29, %v6166_v58 }
 0x71b   : > { %v6170_v16 = vsub.f32 0.0, %v6169_v59 }
 0x71d   : > { %v6184_v1 = vmul.f32 %v7989_v33, %v6170_v16 }
 0x71f   : > { %6185 = vadd.xlane.f32.xlu0 %v6184_v1 }
 0x792   : > { %v6186_v62 = vpop.xlane.xlu0 %6185 }
 0x793   : > { %v6187_v21 = vmul.f32 %v7991_v51, %v6186_v62 }
 0x795   : > { %v6189_v43 = vsel %vm6188_vm14, %v6187_v21, %v6156_v31 }
 0x796   : > { %6190 = vst [vmem:[%s429_s3] sm:$0xff] %v6189_v43 }
 0x797   : > { %8870 = shalt.err (!%p8867_p2)
}
 0x798   : > { %8443 = dma.vmem_to_hbm [thread:$0]  (%p9067_p5), %s6205_s24, 128, %s6207_s10, %s6192_s17  }
 0x799 PF: > { %s6218_s5 = sand.u32 1, %s8909_s27   ;;  %p12029_p12 = scmp.ge.s32.totalorder %s8921_s30, 2 }
 0x79a   : > { %s6219_s16 = scalar_lea.sflag [#allocation4], %s6218_s5 }
 0x79b   : > { %p8466_p13 = pnand %p12029_p12, %p9015_p6 }
 0x79d   : > { %p8467_p0 = pneg %p8466_p13 }
 0x79f   : > { %8904 = dma.done.wait (%p8467_p0), %s6219_s16, 128  }
 0x7a0   : > { %8906 = vsyncadd (%p8467_p0), %s6219_s16, 4294967168  ;;  %s12030_s11 = sld [smem:[#allocation19_spill]]  ;;  %p26_p3 = scmp.ge.s32.totalorder %s9054_s26, 4  }
 0x7a1   : > { %s12031_s29 = sld [smem:[#allocation20_spill]]  ;;  %s12032_s27 = smov %s8913_s28 }
 0x7a2   : > { %s12034_s30 = smov %s9054_s26  ;;  %28 = sbr.rel (!%p26_p3) target bundleno = 15 (0xf), region = 126 }
 0x7a6   : > { %s12033_s28 = smov %s12030_s11 }
 0x7a7   :  { %6225 = vsyncpa [#allocation3], 1 }
 0x7a8   :  { %6227 = vsyncpa [#allocation3 + $0x1], 1 }
 0x7a9   :  { %6228 = vsyncpa [#allocation6], 1 }
 0x7aa   :  { %6229 = vsyncpa [#allocation9], 1 }
 0x7ab   :  { %6230 = vsyncpa [#allocation12], 1 }
 0x7ac   :  { %6232 = vsyncpa [#allocation12 + $0x1], 1 }
 0x7ad   :  { %6233 = vsyncpa [#allocation4], 1 }
 0x7ae   :  { %6235 = vsyncpa [#allocation4 + $0x1], 1 }

</bundles_post_ra>
